<compile_context>
chip_gen: v5e
topology: v5e:2x2
jax: 0.10.0
libtpu: 0.0.40
codegen_flags: <defaults>
</compile_context>

<pallas_src>
import math
import functools

import jax
import jax.numpy as jnp
from jax.experimental import pallas as pl
from jax.experimental.pallas import tpu as pltpu


def _round_up(x, m):
    return ((x + m - 1) // m) * m


# ---------------------------------------------------------------------------
# Parameters (deterministic init, PyTorch LSTMCell parameterization)
# ---------------------------------------------------------------------------
def init_layer_params(key, input_size, hidden_size, bottom_size, top_size,
                      weight_dtype=jnp.float32):
    total = input_size + (bottom_size or 0) + (top_size or 0)
    bound = 1.0 / math.sqrt(hidden_size)
    k0, k1, k2, k3 = jax.random.split(key, 4)
    w_ih = jax.random.uniform(k0, (4 * hidden_size, total),
                              minval=-bound, maxval=bound, dtype=jnp.float32)
    w_hh = jax.random.uniform(k1, (4 * hidden_size, hidden_size),
                              minval=-bound, maxval=bound, dtype=jnp.float32)
    b_ih = jax.random.uniform(k2, (4 * hidden_size,),
                              minval=-bound, maxval=bound, dtype=jnp.float32)
    b_hh = jax.random.uniform(k3, (4 * hidden_size,),
                              minval=-bound, maxval=bound, dtype=jnp.float32)

    wT = w_ih.T.astype(weight_dtype)       # (total, 4H); rows = [x, h_bottom, h_top]
    wx = wT[:input_size]
    off = input_size
    whb = None
    if bottom_size:
        whb = wT[off:off + bottom_size]
        off += bottom_size
    wht = None
    if top_size:
        wht = wT[off:off + top_size]
    return dict(wx=wx, whb=whb, wht=wht, whh=w_hh.T.astype(weight_dtype),
                b=(b_ih + b_hh)[None, :],           # (1, 4H) f32
                input_size=input_size, hidden_size=hidden_size,
                bottom_size=bottom_size, top_size=top_size)


def fuse_layer_params(p):
    """Stack [wx; whb; wht; whh] -> (K, 4H) and pre-scale the g-gate columns by 2
    so tanh(x) = 2*sigmoid(2x) - 1 needs a single in-kernel sigmoid pass."""
    H = int(p['hidden_size'])
    parts = [p['wx']]
    if p['whb'] is not None:
        parts.append(p['whb'])
    if p['wht'] is not None:
        parts.append(p['wht'])
    parts.append(p['whh'])
    w_cat = jnp.concatenate([q.astype(jnp.float32) for q in parts], axis=0)
    scale = jnp.concatenate([jnp.ones((2 * H,), jnp.float32),
                             jnp.full((H,), 2.0, jnp.float32),
                             jnp.ones((H,), jnp.float32)])[None, :]
    w_cat = (w_cat * scale).astype(p['wx'].dtype)   # (K, 4H)
    b_cat = p['b'].astype(jnp.float32) * scale       # (1, 4H) f32
    return w_cat, b_cat


# ---------------------------------------------------------------------------
# Fused Pallas kernel: grid over time blocks, unrolled (T_BLK x L) loop inside
# ---------------------------------------------------------------------------
def _build_kernel(meta, B_pad, T_BLK):
    L = len(meta)

    def kernel(*refs):
        idx = 0
        x_refs = refs[idx:idx + L]; idx += L                 # (B_pad, T_BLK, In_l)
        db_ref = refs[idx]; d_ref = refs[idx + 1]; idx += 2  # (1, L, B_pad, T_BLK)
        h0_refs = refs[idx:idx + L]; idx += L                # (B_pad, H_l) resident
        c0_refs = refs[idx:idx + L]; idx += L
        w_refs = refs[idx:idx + L]; idx += L                 # (K_l, 4H_l) resident
        b_refs = refs[idx:idx + L]; idx += L                 # (1, 4H_l) resident
        out_h_refs = refs[idx:idx + L]; idx += L             # (B_pad, T_BLK, H_l)
        out_c_refs = refs[idx:idx + L]; idx += L             # (B_pad, H_l) resident
        h_scr = refs[idx:idx + L]; idx += L                  # VMEM recurrent state
        c_scr = refs[idx:idx + L]; idx += L

        tb = pl.program_id(0)

        # Load the carried state into scratch at the first time block.
        @pl.when(tb == 0)
        def _init():
            for l in range(L):
                h_scr[l][...] = h0_refs[l][...]
                c_scr[l][...] = c0_refs[l][...]

        # Hoisted g-lane masks (one per distinct gate width; not per layer/step).
        masks = {}
        for l in range(L):
            H = meta[l][1]
            if 4 * H not in masks:
                lane = jax.lax.broadcasted_iota(jnp.int32, (B_pad, 4 * H), 1)
                masks[4 * H] = (lane >= 2 * H) & (lane < 3 * H)

        # Recurrent state lives in vregs across the unrolled time block.
        h_state = [h_scr[l][...] for l in range(L)]
        c_state = [c_scr[l][...] for l in range(L)]

        for tl in range(T_BLK):                    # static (fully unrolled) time loop
            for l in range(L):                     # bottom-up layer order
                _, H, bot, top = meta[l]
                w_ref = w_refs[l]
                wdt = w_ref.dtype

                db_l = db_ref[0, l, :, tl:tl + 1]  # (B_pad, 1), static slices only
                d_l = d_ref[0, l, :, tl:tl + 1]

                h_prev = h_state[l]
                c_flush = c_state[l] * (1.0 - d_l)            # HM-LSTM cell flush

                # One fused matmul per layer: concat features, single MXU dot.
                x_t = x_refs[l][:, tl, :]                     # (B_pad, In)
                parts = [x_t * db_l]
                if bot:
                    parts.append(h_state[l - 1] * db_l)       # current-step h below
                if top:
                    parts.append(h_state[l + 1] * d_l)        # previous-step h above
                parts.append(h_prev)
                feat = jnp.concatenate(parts, axis=-1).astype(wdt)

                gates = jnp.dot(feat, w_ref[...],
                                preferred_element_type=jnp.float32) + b_refs[l][...]

                # Single EUP pass: g columns of W/b are pre-scaled by 2, so
                # tanh(pre_g) == 2*sigmoid(gates_g) - 1.
                s = jax.nn.sigmoid(gates)
                acts = jnp.where(masks[4 * H], 2.0 * s - 1.0, s)

                i_g = acts[:, 0:H]
                f_g = acts[:, H:2 * H]
                g_g = acts[:, 2 * H:3 * H]
                o_g = acts[:, 3 * H:4 * H]

                c_new = f_g * c_flush + i_g * g_g
                h_new = o_g * jnp.tanh(c_new)

                # COPY op: keep previous state when d_bottom + d == 0 (hard 0/1).
                copy = (db_l + d_l) == 0.0
                h_state[l] = jnp.where(copy, h_prev, h_new)
                c_state[l] = jnp.where(copy, c_flush, c_new)

                out_h_refs[l][:, tl, :] = h_state[l]          # VMEM block store

        # Carry state to the next time block.
        for l in range(L):
            h_scr[l][...] = h_state[l]
            c_scr[l][...] = c_state[l]

        # Final cell state: stored once, on the last grid step only.
        @pl.when(tb == pl.num_programs(0) - 1)
        def _final_c():
            for l in range(L):
                out_c_refs[l][...] = c_state[l]

    return kernel


@functools.partial(jax.jit, static_argnames=("meta",))
def _hmlstm_fused(xs, dx, dx_layer_zero, h0s, c0s, w_cats, b_cats, *, meta):
    L = len(meta)
    B, T = xs[0].shape[0], xs[0].shape[1]

    # Padding: batch to >=8 sublanes, time to a multiple of the time block.
    B_pad = max(8, _round_up(B, 8))
    T_BLK = next((c for c in (32, 16, 8) if T % c == 0), 8)
    T_pad = _round_up(T, T_BLK)
    n_tb = T_pad // T_BLK

    def pad_bt(a):                       # (B, T, F) -> (B_pad, T_pad, F)
        return jnp.pad(a.astype(jnp.float32),
                       ((0, B_pad - B), (0, T_pad - T), (0, 0)))

    xs_p = tuple(pad_bt(x) for x in xs)

    # Boundary indicators per layer/step, forced to 0 on padded steps so the COPY
    # path leaves the carried (h, c) untouched there.
    dx_f = jnp.pad(dx.astype(jnp.float32),
                   ((0, B_pad - B), (0, 0), (0, T_pad - T)))          # (B_pad, L, T_pad)
    if dx_layer_zero is not None:
        db0 = jnp.pad(dx_layer_zero.astype(jnp.float32),
                      ((0, B_pad - B), (0, T_pad - T)))
    else:
        db0 = jnp.ones((B_pad, T_pad), jnp.float32)
    valid = (jnp.arange(T_pad) < T).astype(jnp.float32)[None, :]

    db_list = [db0 * valid]
    for l in range(1, L):
        db_list.append(dx_f[:, l - 1, :] * valid)
    zero_col = jnp.zeros((B_pad, 1), jnp.float32)
    d_list = [jnp.concatenate([zero_col, dx_f[:, l, :T_pad - 1]], axis=1) * valid
              for l in range(L)]

    # (L, B_pad, T_pad) -> (n_tb, L, B_pad, T_BLK) so every per-step (B,1) read in
    # the kernel is a static slice of the current block.
    def to_blocks(lst):
        a = jnp.stack(lst, axis=0)                                     # (L, B_pad, T_pad)
        return a.reshape(L, B_pad, n_tb, T_BLK).transpose(2, 0, 1, 3)

    db_blk = to_blocks(db_list)
    d_blk = to_blocks(d_list)

    pad_b = lambda a: jnp.pad(a.astype(jnp.float32), ((0, B_pad - B), (0, 0)))
    h0_p = tuple(pad_b(h) for h in h0s)
    c0_p = tuple(pad_b(c) for c in c0s)

    kernel = _build_kernel(meta, B_pad, T_BLK)

    def _x_spec(shape):                  # new (B_pad, T_BLK, In) block per time block
        return pl.BlockSpec((shape[0], T_BLK, shape[2]), lambda tb: (0, tb, 0))

    def _resident(shape):                # same block every step -> DMA'd once
        shape = tuple(shape)
        nd = len(shape)
        return pl.BlockSpec(shape, lambda tb: (0,) * nd)

    ind_spec = pl.BlockSpec((1, L, B_pad, T_BLK), lambda tb: (tb, 0, 0, 0))

    in_specs = ([_x_spec(x.shape) for x in xs_p]
                + [ind_spec, ind_spec]
                + [_resident(h.shape) for h in h0_p]
                + [_resident(c.shape) for c in c0_p]
                + [_resident(w.shape) for w in w_cats]
                + [_resident(b.shape) for b in b_cats])

    out_shape = tuple([jax.ShapeDtypeStruct((B_pad, T_pad, m[1]), jnp.float32)
                       for m in meta]
                      + [jax.ShapeDtypeStruct((B_pad, m[1]), jnp.float32)
                         for m in meta])
    out_specs = tuple([pl.BlockSpec((B_pad, T_BLK, m[1]), lambda tb: (0, tb, 0))
                       for m in meta]
                      + [_resident((B_pad, m[1])) for m in meta])

    scratch_shapes = ([pltpu.VMEM((B_pad, m[1]), jnp.float32) for m in meta]
                      + [pltpu.VMEM((B_pad, m[1]), jnp.float32) for m in meta])

    grid_spec = pltpu.PrefetchScalarGridSpec(
        num_scalar_prefetch=0,
        grid=(n_tb,),
        in_specs=in_specs,
        out_specs=out_specs,
        scratch_shapes=scratch_shapes,
    )

    outs = pl.pallas_call(
        kernel,
        out_shape=out_shape,
        grid_spec=grid_spec,
        compiler_params=pltpu.CompilerParams(
            dimension_semantics=("arbitrary",),      # time axis is a recurrence
            vmem_limit_bytes=32 * 1024 * 1024),
    )(*xs_p, db_blk, d_blk, *h0_p, *c0_p, *w_cats, *b_cats)

    h_traj = tuple(o[:B, :T, :] for o in outs[:L])   # drop batch/time padding
    c_last = tuple(o[:B, :] for o in outs[L:])
    return h_traj, c_last


def hmlstm_forward(xs, hx, dx, params_list, dx_layer_zero=None):
    L = len(xs)
    B = xs[0].shape[0]
    meta = tuple((int(p['input_size']), int(p['hidden_size']),
                  int(p['bottom_size'] or 0), int(p['top_size'] or 0))
                 for p in params_list)

    if hx is not None:
        h0s = tuple(jnp.asarray(hx[l][0], jnp.float32) for l in range(L))
        c0s = tuple(jnp.asarray(hx[l][1], jnp.float32) for l in range(L))
    else:
        h0s = tuple(jnp.zeros((B, meta[l][1]), jnp.float32) for l in range(L))
        c0s = tuple(jnp.zeros((B, meta[l][1]), jnp.float32) for l in range(L))

    fused = [fuse_layer_params(p) for p in params_list]
    w_cats = tuple(f[0] for f in fused)
    b_cats = tuple(f[1] for f in fused)

    output, c_last = _hmlstm_fused(tuple(xs), dx, dx_layer_zero,
                                   h0s, c0s, w_cats, b_cats, meta=meta)
    output = list(output)
    hx_out = [[output[l][:, -1, :], c_last[l]] for l in range(L)]
    return output, hx_out


# ---------------------------------------------------------------------------
# Pure-JAX reference (mirrors the PyTorch double loop exactly)
# ---------------------------------------------------------------------------
def hmlstm_forward_ref(xs, hx, dx, params_list, dx_layer_zero=None):
    B, T = xs[0].shape[0], xs[0].shape[1]
    L = len(xs)
    output_h, output_c = [], []
    for t in range(T):
        output_h.append([])
        output_c.append([])
        for layer in range(L):
            p = params_list[layer]
            H = p['hidden_size']
            if t:
                h, c = output_h[t - 1][layer], output_c[t - 1][layer]
                h_bottom = output_h[t][layer - 1] if layer else None
                h_top = output_h[t - 1][layer + 1] if layer + 1 < L else None
            else:
                if hx is not None:
                    h, c = hx[layer]
                else:
                    h = jnp.zeros((B, H), jnp.float32)
                    c = jnp.zeros((B, H), jnp.float32)
                h_bottom = output_h[t][layer - 1] if layer else None
                h_top = (hx[layer + 1][0]
                         if (hx is not None and layer + 1 < L) else None)

            if layer:
                d_bottom = dx[:, layer - 1, t:t + 1]
            else:
                d_bottom = (dx_layer_zero[:, t:t + 1]
                            if dx_layer_zero is not None
                            else jnp.ones((B, 1), jnp.float32))
            d = dx[:, layer, t - 1:t] if t else jnp.zeros((B, 1), jnp.float32)

            c_pre = c * (1.0 - d)
            gates = ((xs[layer][:, t] * d_bottom) @ p['wx'].astype(jnp.float32)
                     + h @ p['whh'].astype(jnp.float32) + p['b'])
            if p['whb'] is not None:
                hb = (h_bottom if h_bottom is not None
                      else jnp.zeros((B, p['bottom_size']), jnp.float32))
                gates = gates + (hb * d_bottom) @ p['whb'].astype(jnp.float32)
            if p['wht'] is not None:
                ht = (h_top if h_top is not None
                      else jnp.zeros((B, p['top_size']), jnp.float32))
                gates = gates + (ht * d) @ p['wht'].astype(jnp.float32)

            i_g = jax.nn.sigmoid(gates[:, 0:H])
            f_g = jax.nn.sigmoid(gates[:, H:2 * H])
            g_g = jnp.tanh(gates[:, 2 * H:3 * H])
            o_g = jax.nn.sigmoid(gates[:, 3 * H:4 * H])
            c_new = f_g * c_pre + i_g * g_g
            h_new = o_g * jnp.tanh(c_new)
            copy = ((d_bottom + d) == 0.0).astype(jnp.float32)
            output_h[t].append(copy * h + (1.0 - copy) * h_new)
            output_c[t].append(copy * c_pre + (1.0 - copy) * c_new)

    output = [jnp.stack([output_h[t][layer] for t in range(T)], axis=1)
              for layer in range(L)]
    hx_out = [[output[layer][:, -1, :], output_c[-1][layer]]
              for layer in range(L)]
    return output, hx_out


# ---------------------------------------------------------------------------
if __name__ == "__main__":
    key = jax.random.PRNGKey(0)
    B, T = 2, 8
    input_sizes = [16, 8, 8]
    hidden_sizes = [32, 32, 32]
    L = len(input_sizes)

    keys = jax.random.split(key, 3 * L + 2)
    xs = [jax.random.normal(keys[i], (B, T, input_sizes[i]), jnp.float32)
          for i in range(L)]
    dx = (jax.random.uniform(keys[L], (B, L, T)) > 0.5).astype(jnp.float32)
    dx_layer_zero = (jax.random.uniform(keys[L + 1], (B, T)) > 0.5).astype(jnp.float32)
    hx = [(jax.random.normal(keys[L + 2 + 2 * i], (B, hidden_sizes[i]), jnp.float32),
           jax.random.normal(keys[L + 3 + 2 * i], (B, hidden_sizes[i]), jnp.float32))
          for i in range(L)]

    params_list = []
    pkeys = jax.random.split(jax.random.PRNGKey(42), L)
    for i in range(L):
        bottom = hidden_sizes[i - 1] if i > 0 else None
        top = hidden_sizes[i + 1] if i + 1 < L else None
        params_list.append(init_layer_params(pkeys[i], input_sizes[i],
                                             hidden_sizes[i], bottom, top))

    out, hx_new = hmlstm_forward(xs, hx, dx, params_list,
                                 dx_layer_zero=dx_layer_zero)
    out = jax.block_until_ready(out)

    out_ref, hx_ref = hmlstm_forward_ref(xs, hx, dx, params_list,
                                         dx_layer_zero=dx_layer_zero)
    for l in range(L):
        assert out[l].shape == (B, T, hidden_sizes[l])
        assert jnp.allclose(out[l], out_ref[l], atol=5e-5, rtol=5e-5)
        assert jnp.allclose(hx_new[l][0], hx_ref[l][0], atol=5e-5, rtol=5e-5)
        assert jnp.allclose(hx_new[l][1], hx_ref[l][1], atol=5e-5, rtol=5e-5)

    print("KERNEL_OK")
</pallas_src>

<mosaic_0001>
module attributes {stable_mosaic.version = 11 : i64} {
  func.func @kernel(%arg0: i32, %arg1: memref<8x8x16xf32, #tpu.memory_space<vmem>>, %arg2: memref<8x8x8xf32, #tpu.memory_space<vmem>>, %arg3: memref<8x8x8xf32, #tpu.memory_space<vmem>>, %arg4: memref<1x3x8x8xf32, #tpu.memory_space<vmem>>, %arg5: memref<1x3x8x8xf32, #tpu.memory_space<vmem>>, %arg6: memref<8x32xf32, #tpu.memory_space<vmem>>, %arg7: memref<8x32xf32, #tpu.memory_space<vmem>>, %arg8: memref<8x32xf32, #tpu.memory_space<vmem>>, %arg9: memref<8x32xf32, #tpu.memory_space<vmem>>, %arg10: memref<8x32xf32, #tpu.memory_space<vmem>>, %arg11: memref<8x32xf32, #tpu.memory_space<vmem>>, %arg12: memref<80x128xf32, #tpu.memory_space<vmem>>, %arg13: memref<104x128xf32, #tpu.memory_space<vmem>>, %arg14: memref<72x128xf32, #tpu.memory_space<vmem>>, %arg15: memref<1x128xf32, #tpu.memory_space<vmem>>, %arg16: memref<1x128xf32, #tpu.memory_space<vmem>>, %arg17: memref<1x128xf32, #tpu.memory_space<vmem>>, %arg18: memref<8x8x32xf32, #tpu.memory_space<vmem>>, %arg19: memref<8x8x32xf32, #tpu.memory_space<vmem>>, %arg20: memref<8x8x32xf32, #tpu.memory_space<vmem>>, %arg21: memref<8x32xf32, #tpu.memory_space<vmem>>, %arg22: memref<8x32xf32, #tpu.memory_space<vmem>>, %arg23: memref<8x32xf32, #tpu.memory_space<vmem>>, %arg24: memref<8x32xf32, #tpu.memory_space<vmem>>, %arg25: memref<8x32xf32, #tpu.memory_space<vmem>>, %arg26: memref<8x32xf32, #tpu.memory_space<vmem>>, %arg27: memref<8x32xf32, #tpu.memory_space<vmem>>, %arg28: memref<8x32xf32, #tpu.memory_space<vmem>>, %arg29: memref<8x32xf32, #tpu.memory_space<vmem>>) attributes {dimension_semantics = [#tpu.dimension_semantics<arbitrary>], iteration_bounds = array<i64: 1>, scalar_prefetch = 0 : i64, scratch_operands = 6 : i64, tpu.core_type = #tpu.core_type<tc>, window_params = [{transform_indices = @transform_0, window_bounds = array<i64: 8, 8, 16>}, {transform_indices = @transform_1, window_bounds = array<i64: 8, 8, 8>}, {transform_indices = @transform_2, window_bounds = array<i64: 8, 8, 8>}, {transform_indices = @transform_3, window_bounds = array<i64: 1, 3, 8, 8>}, {transform_indices = @transform_4, window_bounds = array<i64: 1, 3, 8, 8>}, {pipeline_mode = #tpu.pipeline_mode<synchronous>, transform_indices = @transform_5, window_bounds = array<i64: 8, 32>}, {pipeline_mode = #tpu.pipeline_mode<synchronous>, transform_indices = @transform_6, window_bounds = array<i64: 8, 32>}, {pipeline_mode = #tpu.pipeline_mode<synchronous>, transform_indices = @transform_7, window_bounds = array<i64: 8, 32>}, {pipeline_mode = #tpu.pipeline_mode<synchronous>, transform_indices = @transform_8, window_bounds = array<i64: 8, 32>}, {pipeline_mode = #tpu.pipeline_mode<synchronous>, transform_indices = @transform_9, window_bounds = array<i64: 8, 32>}, {pipeline_mode = #tpu.pipeline_mode<synchronous>, transform_indices = @transform_10, window_bounds = array<i64: 8, 32>}, {pipeline_mode = #tpu.pipeline_mode<synchronous>, transform_indices = @transform_11, window_bounds = array<i64: 80, 128>}, {pipeline_mode = #tpu.pipeline_mode<synchronous>, transform_indices = @transform_12, window_bounds = array<i64: 104, 128>}, {pipeline_mode = #tpu.pipeline_mode<synchronous>, transform_indices = @transform_13, window_bounds = array<i64: 72, 128>}, {pipeline_mode = #tpu.pipeline_mode<synchronous>, transform_indices = @transform_14, window_bounds = array<i64: 1, 128>}, {pipeline_mode = #tpu.pipeline_mode<synchronous>, transform_indices = @transform_15, window_bounds = array<i64: 1, 128>}, {pipeline_mode = #tpu.pipeline_mode<synchronous>, transform_indices = @transform_16, window_bounds = array<i64: 1, 128>}, {transform_indices = @transform_17, window_bounds = array<i64: 8, 8, 32>}, {transform_indices = @transform_18, window_bounds = array<i64: 8, 8, 32>}, {transform_indices = @transform_19, window_bounds = array<i64: 8, 8, 32>}, {pipeline_mode = #tpu.pipeline_mode<synchronous>, transform_indices = @transform_20, window_bounds = array<i64: 8, 32>}, {pipeline_mode = #tpu.pipeline_mode<synchronous>, transform_indices = @transform_21, window_bounds = array<i64: 8, 32>}, {pipeline_mode = #tpu.pipeline_mode<synchronous>, transform_indices = @transform_22, window_bounds = array<i64: 8, 32>}]} {
    %c0_i32 = arith.constant 0 : i32
    %0 = arith.cmpi eq, %arg0, %c0_i32 : i32
    %1 = arith.extui %0 : i1 to i32
    %c0_i32_0 = arith.constant 0 : i32
    %2 = arith.cmpi ne, %1, %c0_i32_0 : i32
    scf.if %2 {
      %c0_594 = arith.constant 0 : index
      %c0_595 = arith.constant 0 : index
      %1264 = vector.load %arg6[%c0_594, %c0_595] : memref<8x32xf32, #tpu.memory_space<vmem>>, vector<8x32xf32>
      %c0_596 = arith.constant 0 : index
      %c0_597 = arith.constant 0 : index
      %1265 = vector.load %arg24[%c0_596, %c0_597] : memref<8x32xf32, #tpu.memory_space<vmem>>, vector<8x32xf32>
      tpu.vector_store %arg24[%c0_596, %c0_597], %1264 {strides = array<i32>} : memref<8x32xf32, #tpu.memory_space<vmem>>, vector<8x32xf32>,
      %c0_598 = arith.constant 0 : index
      %c0_599 = arith.constant 0 : index
      %1266 = vector.load %arg9[%c0_598, %c0_599] : memref<8x32xf32, #tpu.memory_space<vmem>>, vector<8x32xf32>
      %c0_600 = arith.constant 0 : index
      %c0_601 = arith.constant 0 : index
      %1267 = vector.load %arg27[%c0_600, %c0_601] : memref<8x32xf32, #tpu.memory_space<vmem>>, vector<8x32xf32>
      tpu.vector_store %arg27[%c0_600, %c0_601], %1266 {strides = array<i32>} : memref<8x32xf32, #tpu.memory_space<vmem>>, vector<8x32xf32>,
      %c0_602 = arith.constant 0 : index
      %c0_603 = arith.constant 0 : index
      %1268 = vector.load %arg7[%c0_602, %c0_603] : memref<8x32xf32, #tpu.memory_space<vmem>>, vector<8x32xf32>
      %c0_604 = arith.constant 0 : index
      %c0_605 = arith.constant 0 : index
      %1269 = vector.load %arg25[%c0_604, %c0_605] : memref<8x32xf32, #tpu.memory_space<vmem>>, vector<8x32xf32>
      tpu.vector_store %arg25[%c0_604, %c0_605], %1268 {strides = array<i32>} : memref<8x32xf32, #tpu.memory_space<vmem>>, vector<8x32xf32>,
      %c0_606 = arith.constant 0 : index
      %c0_607 = arith.constant 0 : index
      %1270 = vector.load %arg10[%c0_606, %c0_607] : memref<8x32xf32, #tpu.memory_space<vmem>>, vector<8x32xf32>
      %c0_608 = arith.constant 0 : index
      %c0_609 = arith.constant 0 : index
      %1271 = vector.load %arg28[%c0_608, %c0_609] : memref<8x32xf32, #tpu.memory_space<vmem>>, vector<8x32xf32>
      tpu.vector_store %arg28[%c0_608, %c0_609], %1270 {strides = array<i32>} : memref<8x32xf32, #tpu.memory_space<vmem>>, vector<8x32xf32>,
      %c0_610 = arith.constant 0 : index
      %c0_611 = arith.constant 0 : index
      %1272 = vector.load %arg8[%c0_610, %c0_611] : memref<8x32xf32, #tpu.memory_space<vmem>>, vector<8x32xf32>
      %c0_612 = arith.constant 0 : index
      %c0_613 = arith.constant 0 : index
      %1273 = vector.load %arg26[%c0_612, %c0_613] : memref<8x32xf32, #tpu.memory_space<vmem>>, vector<8x32xf32>
      tpu.vector_store %arg26[%c0_612, %c0_613], %1272 {strides = array<i32>} : memref<8x32xf32, #tpu.memory_space<vmem>>, vector<8x32xf32>,
      %c0_614 = arith.constant 0 : index
      %c0_615 = arith.constant 0 : index
      %1274 = vector.load %arg11[%c0_614, %c0_615] : memref<8x32xf32, #tpu.memory_space<vmem>>, vector<8x32xf32>
      %c0_616 = arith.constant 0 : index
      %c0_617 = arith.constant 0 : index
      %1275 = vector.load %arg29[%c0_616, %c0_617] : memref<8x32xf32, #tpu.memory_space<vmem>>, vector<8x32xf32>
      tpu.vector_store %arg29[%c0_616, %c0_617], %1274 {strides = array<i32>} : memref<8x32xf32, #tpu.memory_space<vmem>>, vector<8x32xf32>,
    } else {
    }
    %3 = tpu.iota {dimensions = array<i32: 1>} : vector<8x128xi32>
    %c64_i32 = arith.constant 64 : i32
    %4 = vector.broadcast %c64_i32 : i32 to vector<8x128xi32>
    %5 = arith.cmpi sge, %3, %4 : vector<8x128xi32>
    %c96_i32 = arith.constant 96 : i32
    %6 = vector.broadcast %c96_i32 : i32 to vector<8x128xi32>
    %7 = arith.cmpi slt, %3, %6 : vector<8x128xi32>
    %8 = arith.andi %5, %7 : vector<8x128xi1>
    %c0 = arith.constant 0 : index
    %c0_1 = arith.constant 0 : index
    %9 = vector.load %arg24[%c0, %c0_1] : memref<8x32xf32, #tpu.memory_space<vmem>>, vector<8x32xf32>
    %c0_2 = arith.constant 0 : index
    %c0_3 = arith.constant 0 : index
    %10 = vector.load %arg25[%c0_2, %c0_3] : memref<8x32xf32, #tpu.memory_space<vmem>>, vector<8x32xf32>
    %c0_4 = arith.constant 0 : index
    %c0_5 = arith.constant 0 : index
    %11 = vector.load %arg26[%c0_4, %c0_5] : memref<8x32xf32, #tpu.memory_space<vmem>>, vector<8x32xf32>
    %c0_6 = arith.constant 0 : index
    %c0_7 = arith.constant 0 : index
    %12 = vector.load %arg27[%c0_6, %c0_7] : memref<8x32xf32, #tpu.memory_space<vmem>>, vector<8x32xf32>
    %c0_8 = arith.constant 0 : index
    %c0_9 = arith.constant 0 : index
    %13 = vector.load %arg28[%c0_8, %c0_9] : memref<8x32xf32, #tpu.memory_space<vmem>>, vector<8x32xf32>
    %c0_10 = arith.constant 0 : index
    %c0_11 = arith.constant 0 : index
    %14 = vector.load %arg29[%c0_10, %c0_11] : memref<8x32xf32, #tpu.memory_space<vmem>>, vector<8x32xf32>
    %c0_12 = arith.constant 0 : index
    %c0_13 = arith.constant 0 : index
    %c0_14 = arith.constant 0 : index
    %c0_15 = arith.constant 0 : index
    %15 = vector.load %arg4[%c0_12, %c0_13, %c0_14, %c0_15] : memref<1x3x8x8xf32, #tpu.memory_space<vmem>>, vector<1x1x8x1xf32>
    %16 = vector.shape_cast %15 : vector<1x1x8x1xf32> to vector<8x1xf32>
    %c0_16 = arith.constant 0 : index
    %c0_17 = arith.constant 0 : index
    %c0_18 = arith.constant 0 : index
    %c0_19 = arith.constant 0 : index
    %17 = vector.load %arg5[%c0_16, %c0_17, %c0_18, %c0_19] : memref<1x3x8x8xf32, #tpu.memory_space<vmem>>, vector<1x1x8x1xf32>
    %18 = vector.shape_cast %17 : vector<1x1x8x1xf32> to vector<8x1xf32>
    %cst = arith.constant 1.000000e+00 : f32
    %19 = vector.broadcast %cst : f32 to vector<8x1xf32>
    %20 = arith.subf %19, %18 : vector<8x1xf32>
    %21 = vector.broadcast %20 : vector<8x1xf32> to vector<8x32xf32>
    %22 = arith.mulf %12, %21 : vector<8x32xf32>
    %c0_20 = arith.constant 0 : index
    %c0_21 = arith.constant 0 : index
    %c0_22 = arith.constant 0 : index
    %23 = vector.load %arg1[%c0_20, %c0_21, %c0_22] : memref<8x8x16xf32, #tpu.memory_space<vmem>>, vector<8x1x16xf32>
    %24 = vector.shape_cast %23 : vector<8x1x16xf32> to vector<8x16xf32>
    %25 = vector.broadcast %16 : vector<8x1xf32> to vector<8x16xf32>
    %26 = arith.mulf %24, %25 : vector<8x16xf32>
    %27 = vector.broadcast %18 : vector<8x1xf32> to vector<8x32xf32>
    %28 = arith.mulf %10, %27 : vector<8x32xf32>
    %29 = tpu.concatenate %26, %28, %9 in 1 : vector<8x16xf32>, vector<8x32xf32>, vector<8x32xf32> -> vector<8x80xf32>
    %c0_23 = arith.constant 0 : index
    %c0_24 = arith.constant 0 : index
    %30 = vector.load %arg12[%c0_23, %c0_24] : memref<80x128xf32, #tpu.memory_space<vmem>>, vector<80x128xf32>
    %cst_25 = arith.constant dense<0.000000e+00> : vector<8x128xf32>
    %31 = tpu.matmul %29, %30, %cst_25 {dimension_numbers = #tpu.dot_dimension_numbers<[1], [0], [0], [1], [0, 0, 1, 1], [], []>} : vector<8x80xf32>, vector<80x128xf32>, vector<8x128xf32> -> vector<8x128xf32>
    %c0_26 = arith.constant 0 : index
    %c0_27 = arith.constant 0 : index
    %32 = vector.load %arg15[%c0_26, %c0_27] : memref<1x128xf32, #tpu.memory_space<vmem>>, vector<1x128xf32>
    %33 = vector.broadcast %32 : vector<1x128xf32> to vector<8x128xf32>
    %34 = arith.addf %31, %33 : vector<8x128xf32>
    %35 = arith.negf %34 : vector<8x128xf32>
    %36 = math.exp %35 : vector<8x128xf32>
    %cst_28 = arith.constant 1.000000e+00 : f32
    %37 = vector.broadcast %cst_28 : f32 to vector<8x128xf32>
    %38 = arith.addf %37, %36 : vector<8x128xf32>
    %39 = arith.divf %37, %38 : vector<8x128xf32>
    %cst_29 = arith.constant 2.000000e+00 : f32
    %40 = vector.broadcast %cst_29 : f32 to vector<8x128xf32>
    %41 = arith.mulf %40, %39 : vector<8x128xf32>
    %cst_30 = arith.constant 1.000000e+00 : f32
    %42 = vector.broadcast %cst_30 : f32 to vector<8x128xf32>
    %43 = arith.subf %41, %42 : vector<8x128xf32>
    %44 = arith.select %8, %43, %39 : vector<8x128xi1>, vector<8x128xf32>
    %45 = vector.extract_strided_slice %44 {offsets = [0, 0], sizes = [8, 32], strides = [1, 1]} : vector<8x128xf32> to vector<8x32xf32>
    %46 = vector.extract_strided_slice %44 {offsets = [0, 32], sizes = [8, 32], strides = [1, 1]} : vector<8x128xf32> to vector<8x32xf32>
    %47 = vector.extract_strided_slice %44 {offsets = [0, 64], sizes = [8, 32], strides = [1, 1]} : vector<8x128xf32> to vector<8x32xf32>
    %48 = vector.extract_strided_slice %44 {offsets = [0, 96], sizes = [8, 32], strides = [1, 1]} : vector<8x128xf32> to vector<8x32xf32>
    %49 = arith.mulf %46, %22 : vector<8x32xf32>
    %50 = arith.mulf %45, %47 : vector<8x32xf32>
    %51 = arith.addf %49, %50 : vector<8x32xf32>
    %52 = math.tanh %51 : vector<8x32xf32>
    %53 = arith.mulf %48, %52 : vector<8x32xf32>
    %54 = arith.addf %16, %18 : vector<8x1xf32>
    %cst_31 = arith.constant 0.000000e+00 : f32
    %55 = vector.broadcast %cst_31 : f32 to vector<8x1xf32>
    %56 = arith.cmpf oeq, %54, %55 : vector<8x1xf32>
    %57 = vector.shape_cast %56 : vector<8x1xi1> to vector<8x1xi1>
    %58 = vector.broadcast %57 : vector<8x1xi1> to vector<8x32xi1>
    %59 = arith.select %58, %9, %53 : vector<8x32xi1>, vector<8x32xf32>
    %60 = vector.shape_cast %56 : vector<8x1xi1> to vector<8x1xi1>
    %61 = vector.broadcast %60 : vector<8x1xi1> to vector<8x32xi1>
    %62 = arith.select %61, %22, %51 : vector<8x32xi1>, vector<8x32xf32>
    %c0_32 = arith.constant 0 : index
    %c0_33 = arith.constant 0 : index
    %c0_34 = arith.constant 0 : index
    %63 = vector.load %arg18[%c0_32, %c0_33, %c0_34] : memref<8x8x32xf32, #tpu.memory_space<vmem>>, vector<8x1x32xf32>
    %64 = vector.shape_cast %63 : vector<8x1x32xf32> to vector<8x32xf32>
    %65 = vector.shape_cast %59 : vector<8x32xf32> to vector<8x1x32xf32>
    tpu.vector_store %arg18[%c0_32, %c0_33, %c0_34], %65 {strides = array<i32>} : memref<8x8x32xf32, #tpu.memory_space<vmem>>, vector<8x1x32xf32>,
    %c0_35 = arith.constant 0 : index
    %c1 = arith.constant 1 : index
    %c0_36 = arith.constant 0 : index
    %c0_37 = arith.constant 0 : index
    %66 = vector.load %arg4[%c0_35, %c1, %c0_36, %c0_37] : memref<1x3x8x8xf32, #tpu.memory_space<vmem>>, vector<1x1x8x1xf32>
    %67 = vector.shape_cast %66 : vector<1x1x8x1xf32> to vector<8x1xf32>
    %c0_38 = arith.constant 0 : index
    %c1_39 = arith.constant 1 : index
    %c0_40 = arith.constant 0 : index
    %c0_41 = arith.constant 0 : index
    %68 = vector.load %arg5[%c0_38, %c1_39, %c0_40, %c0_41] : memref<1x3x8x8xf32, #tpu.memory_space<vmem>>, vector<1x1x8x1xf32>
    %69 = vector.shape_cast %68 : vector<1x1x8x1xf32> to vector<8x1xf32>
    %cst_42 = arith.constant 1.000000e+00 : f32
    %70 = vector.broadcast %cst_42 : f32 to vector<8x1xf32>
    %71 = arith.subf %70, %69 : vector<8x1xf32>
    %72 = vector.broadcast %71 : vector<8x1xf32> to vector<8x32xf32>
    %73 = arith.mulf %13, %72 : vector<8x32xf32>
    %c0_43 = arith.constant 0 : index
    %c0_44 = arith.constant 0 : index
    %c0_45 = arith.constant 0 : index
    %74 = vector.load %arg2[%c0_43, %c0_44, %c0_45] : memref<8x8x8xf32, #tpu.memory_space<vmem>>, vector<8x1x8xf32>
    %75 = vector.shape_cast %74 : vector<8x1x8xf32> to vector<8x8xf32>
    %76 = vector.broadcast %67 : vector<8x1xf32> to vector<8x8xf32>
    %77 = arith.mulf %75, %76 : vector<8x8xf32>
    %78 = vector.broadcast %67 : vector<8x1xf32> to vector<8x32xf32>
    %79 = arith.mulf %59, %78 : vector<8x32xf32>
    %80 = vector.broadcast %69 : vector<8x1xf32> to vector<8x32xf32>
    %81 = arith.mulf %11, %80 : vector<8x32xf32>
    %82 = tpu.concatenate %77, %79, %81, %10 in 1 : vector<8x8xf32>, vector<8x32xf32>, vector<8x32xf32>, vector<8x32xf32> -> vector<8x104xf32>
    %c0_46 = arith.constant 0 : index
    %c0_47 = arith.constant 0 : index
    %83 = vector.load %arg13[%c0_46, %c0_47] : memref<104x128xf32, #tpu.memory_space<vmem>>, vector<104x128xf32>
    %cst_48 = arith.constant dense<0.000000e+00> : vector<8x128xf32>
    %84 = tpu.matmul %82, %83, %cst_48 {dimension_numbers = #tpu.dot_dimension_numbers<[1], [0], [0], [1], [0, 0, 1, 1], [], []>} : vector<8x104xf32>, vector<104x128xf32>, vector<8x128xf32> -> vector<8x128xf32>
    %c0_49 = arith.constant 0 : index
    %c0_50 = arith.constant 0 : index
    %85 = vector.load %arg16[%c0_49, %c0_50] : memref<1x128xf32, #tpu.memory_space<vmem>>, vector<1x128xf32>
    %86 = vector.broadcast %85 : vector<1x128xf32> to vector<8x128xf32>
    %87 = arith.addf %84, %86 : vector<8x128xf32>
    %88 = arith.negf %87 : vector<8x128xf32>
    %89 = math.exp %88 : vector<8x128xf32>
    %cst_51 = arith.constant 1.000000e+00 : f32
    %90 = vector.broadcast %cst_51 : f32 to vector<8x128xf32>
    %91 = arith.addf %90, %89 : vector<8x128xf32>
    %92 = arith.divf %90, %91 : vector<8x128xf32>
    %cst_52 = arith.constant 2.000000e+00 : f32
    %93 = vector.broadcast %cst_52 : f32 to vector<8x128xf32>
    %94 = arith.mulf %93, %92 : vector<8x128xf32>
    %cst_53 = arith.constant 1.000000e+00 : f32
    %95 = vector.broadcast %cst_53 : f32 to vector<8x128xf32>
    %96 = arith.subf %94, %95 : vector<8x128xf32>
    %97 = arith.select %8, %96, %92 : vector<8x128xi1>, vector<8x128xf32>
    %98 = vector.extract_strided_slice %97 {offsets = [0, 0], sizes = [8, 32], strides = [1, 1]} : vector<8x128xf32> to vector<8x32xf32>
    %99 = vector.extract_strided_slice %97 {offsets = [0, 32], sizes = [8, 32], strides = [1, 1]} : vector<8x128xf32> to vector<8x32xf32>
    %100 = vector.extract_strided_slice %97 {offsets = [0, 64], sizes = [8, 32], strides = [1, 1]} : vector<8x128xf32> to vector<8x32xf32>
    %101 = vector.extract_strided_slice %97 {offsets = [0, 96], sizes = [8, 32], strides = [1, 1]} : vector<8x128xf32> to vector<8x32xf32>
    %102 = arith.mulf %99, %73 : vector<8x32xf32>
    %103 = arith.mulf %98, %100 : vector<8x32xf32>
    %104 = arith.addf %102, %103 : vector<8x32xf32>
    %105 = math.tanh %104 : vector<8x32xf32>
    %106 = arith.mulf %101, %105 : vector<8x32xf32>
    %107 = arith.addf %67, %69 : vector<8x1xf32>
    %cst_54 = arith.constant 0.000000e+00 : f32
    %108 = vector.broadcast %cst_54 : f32 to vector<8x1xf32>
    %109 = arith.cmpf oeq, %107, %108 : vector<8x1xf32>
    %110 = vector.shape_cast %109 : vector<8x1xi1> to vector<8x1xi1>
    %111 = vector.broadcast %110 : vector<8x1xi1> to vector<8x32xi1>
    %112 = arith.select %111, %10, %106 : vector<8x32xi1>, vector<8x32xf32>
    %113 = vector.shape_cast %109 : vector<8x1xi1> to vector<8x1xi1>
    %114 = vector.broadcast %113 : vector<8x1xi1> to vector<8x32xi1>
    %115 = arith.select %114, %73, %104 : vector<8x32xi1>, vector<8x32xf32>
    %c0_55 = arith.constant 0 : index
    %c0_56 = arith.constant 0 : index
    %c0_57 = arith.constant 0 : index
    %116 = vector.load %arg19[%c0_55, %c0_56, %c0_57] : memref<8x8x32xf32, #tpu.memory_space<vmem>>, vector<8x1x32xf32>
    %117 = vector.shape_cast %116 : vector<8x1x32xf32> to vector<8x32xf32>
    %118 = vector.shape_cast %112 : vector<8x32xf32> to vector<8x1x32xf32>
    tpu.vector_store %arg19[%c0_55, %c0_56, %c0_57], %118 {strides = array<i32>} : memref<8x8x32xf32, #tpu.memory_space<vmem>>, vector<8x1x32xf32>,
    %c0_58 = arith.constant 0 : index
    %c2 = arith.constant 2 : index
    %c0_59 = arith.constant 0 : index
    %c0_60 = arith.constant 0 : index
    %119 = vector.load %arg4[%c0_58, %c2, %c0_59, %c0_60] : memref<1x3x8x8xf32, #tpu.memory_space<vmem>>, vector<1x1x8x1xf32>
    %120 = vector.shape_cast %119 : vector<1x1x8x1xf32> to vector<8x1xf32>
    %c0_61 = arith.constant 0 : index
    %c2_62 = arith.constant 2 : index
    %c0_63 = arith.constant 0 : index
    %c0_64 = arith.constant 0 : index
    %121 = vector.load %arg5[%c0_61, %c2_62, %c0_63, %c0_64] : memref<1x3x8x8xf32, #tpu.memory_space<vmem>>, vector<1x1x8x1xf32>
    %122 = vector.shape_cast %121 : vector<1x1x8x1xf32> to vector<8x1xf32>
    %cst_65 = arith.constant 1.000000e+00 : f32
    %123 = vector.broadcast %cst_65 : f32 to vector<8x1xf32>
    %124 = arith.subf %123, %122 : vector<8x1xf32>
    %125 = vector.broadcast %124 : vector<8x1xf32> to vector<8x32xf32>
    %126 = arith.mulf %14, %125 : vector<8x32xf32>
    %c0_66 = arith.constant 0 : index
    %c0_67 = arith.constant 0 : index
    %c0_68 = arith.constant 0 : index
    %127 = vector.load %arg3[%c0_66, %c0_67, %c0_68] : memref<8x8x8xf32, #tpu.memory_space<vmem>>, vector<8x1x8xf32>
    %128 = vector.shape_cast %127 : vector<8x1x8xf32> to vector<8x8xf32>
    %129 = vector.broadcast %120 : vector<8x1xf32> to vector<8x8xf32>
    %130 = arith.mulf %128, %129 : vector<8x8xf32>
    %131 = vector.broadcast %120 : vector<8x1xf32> to vector<8x32xf32>
    %132 = arith.mulf %112, %131 : vector<8x32xf32>
    %133 = tpu.concatenate %130, %132, %11 in 1 : vector<8x8xf32>, vector<8x32xf32>, vector<8x32xf32> -> vector<8x72xf32>
    %c0_69 = arith.constant 0 : index
    %c0_70 = arith.constant 0 : index
    %134 = vector.load %arg14[%c0_69, %c0_70] : memref<72x128xf32, #tpu.memory_space<vmem>>, vector<72x128xf32>
    %cst_71 = arith.constant dense<0.000000e+00> : vector<8x128xf32>
    %135 = tpu.matmul %133, %134, %cst_71 {dimension_numbers = #tpu.dot_dimension_numbers<[1], [0], [0], [1], [0, 0, 1, 1], [], []>} : vector<8x72xf32>, vector<72x128xf32>, vector<8x128xf32> -> vector<8x128xf32>
    %c0_72 = arith.constant 0 : index
    %c0_73 = arith.constant 0 : index
    %136 = vector.load %arg17[%c0_72, %c0_73] : memref<1x128xf32, #tpu.memory_space<vmem>>, vector<1x128xf32>
    %137 = vector.broadcast %136 : vector<1x128xf32> to vector<8x128xf32>
    %138 = arith.addf %135, %137 : vector<8x128xf32>
    %139 = arith.negf %138 : vector<8x128xf32>
    %140 = math.exp %139 : vector<8x128xf32>
    %cst_74 = arith.constant 1.000000e+00 : f32
    %141 = vector.broadcast %cst_74 : f32 to vector<8x128xf32>
    %142 = arith.addf %141, %140 : vector<8x128xf32>
    %143 = arith.divf %141, %142 : vector<8x128xf32>
    %cst_75 = arith.constant 2.000000e+00 : f32
    %144 = vector.broadcast %cst_75 : f32 to vector<8x128xf32>
    %145 = arith.mulf %144, %143 : vector<8x128xf32>
    %cst_76 = arith.constant 1.000000e+00 : f32
    %146 = vector.broadcast %cst_76 : f32 to vector<8x128xf32>
    %147 = arith.subf %145, %146 : vector<8x128xf32>
    %148 = arith.select %8, %147, %143 : vector<8x128xi1>, vector<8x128xf32>
    %149 = vector.extract_strided_slice %148 {offsets = [0, 0], sizes = [8, 32], strides = [1, 1]} : vector<8x128xf32> to vector<8x32xf32>
    %150 = vector.extract_strided_slice %148 {offsets = [0, 32], sizes = [8, 32], strides = [1, 1]} : vector<8x128xf32> to vector<8x32xf32>
    %151 = vector.extract_strided_slice %148 {offsets = [0, 64], sizes = [8, 32], strides = [1, 1]} : vector<8x128xf32> to vector<8x32xf32>
    %152 = vector.extract_strided_slice %148 {offsets = [0, 96], sizes = [8, 32], strides = [1, 1]} : vector<8x128xf32> to vector<8x32xf32>
    %153 = arith.mulf %150, %126 : vector<8x32xf32>
    %154 = arith.mulf %149, %151 : vector<8x32xf32>
    %155 = arith.addf %153, %154 : vector<8x32xf32>
    %156 = math.tanh %155 : vector<8x32xf32>
    %157 = arith.mulf %152, %156 : vector<8x32xf32>
    %158 = arith.addf %120, %122 : vector<8x1xf32>
    %cst_77 = arith.constant 0.000000e+00 : f32
    %159 = vector.broadcast %cst_77 : f32 to vector<8x1xf32>
    %160 = arith.cmpf oeq, %158, %159 : vector<8x1xf32>
    %161 = vector.shape_cast %160 : vector<8x1xi1> to vector<8x1xi1>
    %162 = vector.broadcast %161 : vector<8x1xi1> to vector<8x32xi1>
    %163 = arith.select %162, %11, %157 : vector<8x32xi1>, vector<8x32xf32>
    %164 = vector.shape_cast %160 : vector<8x1xi1> to vector<8x1xi1>
    %165 = vector.broadcast %164 : vector<8x1xi1> to vector<8x32xi1>
    %166 = arith.select %165, %126, %155 : vector<8x32xi1>, vector<8x32xf32>
    %c0_78 = arith.constant 0 : index
    %c0_79 = arith.constant 0 : index
    %c0_80 = arith.constant 0 : index
    %167 = vector.load %arg20[%c0_78, %c0_79, %c0_80] : memref<8x8x32xf32, #tpu.memory_space<vmem>>, vector<8x1x32xf32>
    %168 = vector.shape_cast %167 : vector<8x1x32xf32> to vector<8x32xf32>
    %169 = vector.shape_cast %163 : vector<8x32xf32> to vector<8x1x32xf32>
    tpu.vector_store %arg20[%c0_78, %c0_79, %c0_80], %169 {strides = array<i32>} : memref<8x8x32xf32, #tpu.memory_space<vmem>>, vector<8x1x32xf32>,
    %c0_81 = arith.constant 0 : index
    %c0_82 = arith.constant 0 : index
    %c0_83 = arith.constant 0 : index
    %c1_84 = arith.constant 1 : index
    %170 = vector.load %arg4[%c0_81, %c0_82, %c0_83, %c1_84] : memref<1x3x8x8xf32, #tpu.memory_space<vmem>>, vector<1x1x8x1xf32>
    %171 = vector.shape_cast %170 : vector<1x1x8x1xf32> to vector<8x1xf32>
    %c0_85 = arith.constant 0 : index
    %c0_86 = arith.constant 0 : index
    %c0_87 = arith.constant 0 : index
    %c1_88 = arith.constant 1 : index
    %172 = vector.load %arg5[%c0_85, %c0_86, %c0_87, %c1_88] : memref<1x3x8x8xf32, #tpu.memory_space<vmem>>, vector<1x1x8x1xf32>
    %173 = vector.shape_cast %172 : vector<1x1x8x1xf32> to vector<8x1xf32>
    %cst_89 = arith.constant 1.000000e+00 : f32
    %174 = vector.broadcast %cst_89 : f32 to vector<8x1xf32>
    %175 = arith.subf %174, %173 : vector<8x1xf32>
    %176 = vector.broadcast %175 : vector<8x1xf32> to vector<8x32xf32>
    %177 = arith.mulf %62, %176 : vector<8x32xf32>
    %c0_90 = arith.constant 0 : index
    %c1_91 = arith.constant 1 : index
    %c0_92 = arith.constant 0 : index
    %178 = vector.load %arg1[%c0_90, %c1_91, %c0_92] : memref<8x8x16xf32, #tpu.memory_space<vmem>>, vector<8x1x16xf32>
    %179 = vector.shape_cast %178 : vector<8x1x16xf32> to vector<8x16xf32>
    %180 = vector.broadcast %171 : vector<8x1xf32> to vector<8x16xf32>
    %181 = arith.mulf %179, %180 : vector<8x16xf32>
    %182 = vector.broadcast %173 : vector<8x1xf32> to vector<8x32xf32>
    %183 = arith.mulf %112, %182 : vector<8x32xf32>
    %184 = tpu.concatenate %181, %183, %59 in 1 : vector<8x16xf32>, vector<8x32xf32>, vector<8x32xf32> -> vector<8x80xf32>
    %c0_93 = arith.constant 0 : index
    %c0_94 = arith.constant 0 : index
    %185 = vector.load %arg12[%c0_93, %c0_94] : memref<80x128xf32, #tpu.memory_space<vmem>>, vector<80x128xf32>
    %cst_95 = arith.constant dense<0.000000e+00> : vector<8x128xf32>
    %186 = tpu.matmul %184, %185, %cst_95 {dimension_numbers = #tpu.dot_dimension_numbers<[1], [0], [0], [1], [0, 0, 1, 1], [], []>} : vector<8x80xf32>, vector<80x128xf32>, vector<8x128xf32> -> vector<8x128xf32>
    %c0_96 = arith.constant 0 : index
    %c0_97 = arith.constant 0 : index
    %187 = vector.load %arg15[%c0_96, %c0_97] : memref<1x128xf32, #tpu.memory_space<vmem>>, vector<1x128xf32>
    %188 = vector.broadcast %187 : vector<1x128xf32> to vector<8x128xf32>
    %189 = arith.addf %186, %188 : vector<8x128xf32>
    %190 = arith.negf %189 : vector<8x128xf32>
    %191 = math.exp %190 : vector<8x128xf32>
    %cst_98 = arith.constant 1.000000e+00 : f32
    %192 = vector.broadcast %cst_98 : f32 to vector<8x128xf32>
    %193 = arith.addf %192, %191 : vector<8x128xf32>
    %194 = arith.divf %192, %193 : vector<8x128xf32>
    %cst_99 = arith.constant 2.000000e+00 : f32
    %195 = vector.broadcast %cst_99 : f32 to vector<8x128xf32>
    %196 = arith.mulf %195, %194 : vector<8x128xf32>
    %cst_100 = arith.constant 1.000000e+00 : f32
    %197 = vector.broadcast %cst_100 : f32 to vector<8x128xf32>
    %198 = arith.subf %196, %197 : vector<8x128xf32>
    %199 = arith.select %8, %198, %194 : vector<8x128xi1>, vector<8x128xf32>
    %200 = vector.extract_strided_slice %199 {offsets = [0, 0], sizes = [8, 32], strides = [1, 1]} : vector<8x128xf32> to vector<8x32xf32>
    %201 = vector.extract_strided_slice %199 {offsets = [0, 32], sizes = [8, 32], strides = [1, 1]} : vector<8x128xf32> to vector<8x32xf32>
    %202 = vector.extract_strided_slice %199 {offsets = [0, 64], sizes = [8, 32], strides = [1, 1]} : vector<8x128xf32> to vector<8x32xf32>
    %203 = vector.extract_strided_slice %199 {offsets = [0, 96], sizes = [8, 32], strides = [1, 1]} : vector<8x128xf32> to vector<8x32xf32>
    %204 = arith.mulf %201, %177 : vector<8x32xf32>
    %205 = arith.mulf %200, %202 : vector<8x32xf32>
    %206 = arith.addf %204, %205 : vector<8x32xf32>
    %207 = math.tanh %206 : vector<8x32xf32>
    %208 = arith.mulf %203, %207 : vector<8x32xf32>
    %209 = arith.addf %171, %173 : vector<8x1xf32>
    %cst_101 = arith.constant 0.000000e+00 : f32
    %210 = vector.broadcast %cst_101 : f32 to vector<8x1xf32>
    %211 = arith.cmpf oeq, %209, %210 : vector<8x1xf32>
    %212 = vector.shape_cast %211 : vector<8x1xi1> to vector<8x1xi1>
    %213 = vector.broadcast %212 : vector<8x1xi1> to vector<8x32xi1>
    %214 = arith.select %213, %59, %208 : vector<8x32xi1>, vector<8x32xf32>
    %215 = vector.shape_cast %211 : vector<8x1xi1> to vector<8x1xi1>
    %216 = vector.broadcast %215 : vector<8x1xi1> to vector<8x32xi1>
    %217 = arith.select %216, %177, %206 : vector<8x32xi1>, vector<8x32xf32>
    %c0_102 = arith.constant 0 : index
    %c1_103 = arith.constant 1 : index
    %c0_104 = arith.constant 0 : index
    %218 = vector.load %arg18[%c0_102, %c1_103, %c0_104] : memref<8x8x32xf32, #tpu.memory_space<vmem>>, vector<8x1x32xf32>
    %219 = vector.shape_cast %218 : vector<8x1x32xf32> to vector<8x32xf32>
    %220 = vector.shape_cast %214 : vector<8x32xf32> to vector<8x1x32xf32>
    tpu.vector_store %arg18[%c0_102, %c1_103, %c0_104], %220 {strides = array<i32>} : memref<8x8x32xf32, #tpu.memory_space<vmem>>, vector<8x1x32xf32>,
    %c0_105 = arith.constant 0 : index
    %c1_106 = arith.constant 1 : index
    %c0_107 = arith.constant 0 : index
    %c1_108 = arith.constant 1 : index
    %221 = vector.load %arg4[%c0_105, %c1_106, %c0_107, %c1_108] : memref<1x3x8x8xf32, #tpu.memory_space<vmem>>, vector<1x1x8x1xf32>
    %222 = vector.shape_cast %221 : vector<1x1x8x1xf32> to vector<8x1xf32>
    %c0_109 = arith.constant 0 : index
    %c1_110 = arith.constant 1 : index
    %c0_111 = arith.constant 0 : index
    %c1_112 = arith.constant 1 : index
    %223 = vector.load %arg5[%c0_109, %c1_110, %c0_111, %c1_112] : memref<1x3x8x8xf32, #tpu.memory_space<vmem>>, vector<1x1x8x1xf32>
    %224 = vector.shape_cast %223 : vector<1x1x8x1xf32> to vector<8x1xf32>
    %cst_113 = arith.constant 1.000000e+00 : f32
    %225 = vector.broadcast %cst_113 : f32 to vector<8x1xf32>
    %226 = arith.subf %225, %224 : vector<8x1xf32>
    %227 = vector.broadcast %226 : vector<8x1xf32> to vector<8x32xf32>
    %228 = arith.mulf %115, %227 : vector<8x32xf32>
    %c0_114 = arith.constant 0 : index
    %c1_115 = arith.constant 1 : index
    %c0_116 = arith.constant 0 : index
    %229 = vector.load %arg2[%c0_114, %c1_115, %c0_116] : memref<8x8x8xf32, #tpu.memory_space<vmem>>, vector<8x1x8xf32>
    %230 = vector.shape_cast %229 : vector<8x1x8xf32> to vector<8x8xf32>
    %231 = vector.broadcast %222 : vector<8x1xf32> to vector<8x8xf32>
    %232 = arith.mulf %230, %231 : vector<8x8xf32>
    %233 = vector.broadcast %222 : vector<8x1xf32> to vector<8x32xf32>
    %234 = arith.mulf %214, %233 : vector<8x32xf32>
    %235 = vector.broadcast %224 : vector<8x1xf32> to vector<8x32xf32>
    %236 = arith.mulf %163, %235 : vector<8x32xf32>
    %237 = tpu.concatenate %232, %234, %236, %112 in 1 : vector<8x8xf32>, vector<8x32xf32>, vector<8x32xf32>, vector<8x32xf32> -> vector<8x104xf32>
    %c0_117 = arith.constant 0 : index
    %c0_118 = arith.constant 0 : index
    %238 = vector.load %arg13[%c0_117, %c0_118] : memref<104x128xf32, #tpu.memory_space<vmem>>, vector<104x128xf32>
    %cst_119 = arith.constant dense<0.000000e+00> : vector<8x128xf32>
    %239 = tpu.matmul %237, %238, %cst_119 {dimension_numbers = #tpu.dot_dimension_numbers<[1], [0], [0], [1], [0, 0, 1, 1], [], []>} : vector<8x104xf32>, vector<104x128xf32>, vector<8x128xf32> -> vector<8x128xf32>
    %c0_120 = arith.constant 0 : index
    %c0_121 = arith.constant 0 : index
    %240 = vector.load %arg16[%c0_120, %c0_121] : memref<1x128xf32, #tpu.memory_space<vmem>>, vector<1x128xf32>
    %241 = vector.broadcast %240 : vector<1x128xf32> to vector<8x128xf32>
    %242 = arith.addf %239, %241 : vector<8x128xf32>
    %243 = arith.negf %242 : vector<8x128xf32>
    %244 = math.exp %243 : vector<8x128xf32>
    %cst_122 = arith.constant 1.000000e+00 : f32
    %245 = vector.broadcast %cst_122 : f32 to vector<8x128xf32>
    %246 = arith.addf %245, %244 : vector<8x128xf32>
    %247 = arith.divf %245, %246 : vector<8x128xf32>
    %cst_123 = arith.constant 2.000000e+00 : f32
    %248 = vector.broadcast %cst_123 : f32 to vector<8x128xf32>
    %249 = arith.mulf %248, %247 : vector<8x128xf32>
    %cst_124 = arith.constant 1.000000e+00 : f32
    %250 = vector.broadcast %cst_124 : f32 to vector<8x128xf32>
    %251 = arith.subf %249, %250 : vector<8x128xf32>
    %252 = arith.select %8, %251, %247 : vector<8x128xi1>, vector<8x128xf32>
    %253 = vector.extract_strided_slice %252 {offsets = [0, 0], sizes = [8, 32], strides = [1, 1]} : vector<8x128xf32> to vector<8x32xf32>
    %254 = vector.extract_strided_slice %252 {offsets = [0, 32], sizes = [8, 32], strides = [1, 1]} : vector<8x128xf32> to vector<8x32xf32>
    %255 = vector.extract_strided_slice %252 {offsets = [0, 64], sizes = [8, 32], strides = [1, 1]} : vector<8x128xf32> to vector<8x32xf32>
    %256 = vector.extract_strided_slice %252 {offsets = [0, 96], sizes = [8, 32], strides = [1, 1]} : vector<8x128xf32> to vector<8x32xf32>
    %257 = arith.mulf %254, %228 : vector<8x32xf32>
    %258 = arith.mulf %253, %255 : vector<8x32xf32>
    %259 = arith.addf %257, %258 : vector<8x32xf32>
    %260 = math.tanh %259 : vector<8x32xf32>
    %261 = arith.mulf %256, %260 : vector<8x32xf32>
    %262 = arith.addf %222, %224 : vector<8x1xf32>
    %cst_125 = arith.constant 0.000000e+00 : f32
    %263 = vector.broadcast %cst_125 : f32 to vector<8x1xf32>
    %264 = arith.cmpf oeq, %262, %263 : vector<8x1xf32>
    %265 = vector.shape_cast %264 : vector<8x1xi1> to vector<8x1xi1>
    %266 = vector.broadcast %265 : vector<8x1xi1> to vector<8x32xi1>
    %267 = arith.select %266, %112, %261 : vector<8x32xi1>, vector<8x32xf32>
    %268 = vector.shape_cast %264 : vector<8x1xi1> to vector<8x1xi1>
    %269 = vector.broadcast %268 : vector<8x1xi1> to vector<8x32xi1>
    %270 = arith.select %269, %228, %259 : vector<8x32xi1>, vector<8x32xf32>
    %c0_126 = arith.constant 0 : index
    %c1_127 = arith.constant 1 : index
    %c0_128 = arith.constant 0 : index
    %271 = vector.load %arg19[%c0_126, %c1_127, %c0_128] : memref<8x8x32xf32, #tpu.memory_space<vmem>>, vector<8x1x32xf32>
    %272 = vector.shape_cast %271 : vector<8x1x32xf32> to vector<8x32xf32>
    %273 = vector.shape_cast %267 : vector<8x32xf32> to vector<8x1x32xf32>
    tpu.vector_store %arg19[%c0_126, %c1_127, %c0_128], %273 {strides = array<i32>} : memref<8x8x32xf32, #tpu.memory_space<vmem>>, vector<8x1x32xf32>,
    %c0_129 = arith.constant 0 : index
    %c2_130 = arith.constant 2 : index
    %c0_131 = arith.constant 0 : index
    %c1_132 = arith.constant 1 : index
    %274 = vector.load %arg4[%c0_129, %c2_130, %c0_131, %c1_132] : memref<1x3x8x8xf32, #tpu.memory_space<vmem>>, vector<1x1x8x1xf32>
    %275 = vector.shape_cast %274 : vector<1x1x8x1xf32> to vector<8x1xf32>
    %c0_133 = arith.constant 0 : index
    %c2_134 = arith.constant 2 : index
    %c0_135 = arith.constant 0 : index
    %c1_136 = arith.constant 1 : index
    %276 = vector.load %arg5[%c0_133, %c2_134, %c0_135, %c1_136] : memref<1x3x8x8xf32, #tpu.memory_space<vmem>>, vector<1x1x8x1xf32>
    %277 = vector.shape_cast %276 : vector<1x1x8x1xf32> to vector<8x1xf32>
    %cst_137 = arith.constant 1.000000e+00 : f32
    %278 = vector.broadcast %cst_137 : f32 to vector<8x1xf32>
    %279 = arith.subf %278, %277 : vector<8x1xf32>
    %280 = vector.broadcast %279 : vector<8x1xf32> to vector<8x32xf32>
    %281 = arith.mulf %166, %280 : vector<8x32xf32>
    %c0_138 = arith.constant 0 : index
    %c1_139 = arith.constant 1 : index
    %c0_140 = arith.constant 0 : index
    %282 = vector.load %arg3[%c0_138, %c1_139, %c0_140] : memref<8x8x8xf32, #tpu.memory_space<vmem>>, vector<8x1x8xf32>
    %283 = vector.shape_cast %282 : vector<8x1x8xf32> to vector<8x8xf32>
    %284 = vector.broadcast %275 : vector<8x1xf32> to vector<8x8xf32>
    %285 = arith.mulf %283, %284 : vector<8x8xf32>
    %286 = vector.broadcast %275 : vector<8x1xf32> to vector<8x32xf32>
    %287 = arith.mulf %267, %286 : vector<8x32xf32>
    %288 = tpu.concatenate %285, %287, %163 in 1 : vector<8x8xf32>, vector<8x32xf32>, vector<8x32xf32> -> vector<8x72xf32>
    %c0_141 = arith.constant 0 : index
    %c0_142 = arith.constant 0 : index
    %289 = vector.load %arg14[%c0_141, %c0_142] : memref<72x128xf32, #tpu.memory_space<vmem>>, vector<72x128xf32>
    %cst_143 = arith.constant dense<0.000000e+00> : vector<8x128xf32>
    %290 = tpu.matmul %288, %289, %cst_143 {dimension_numbers = #tpu.dot_dimension_numbers<[1], [0], [0], [1], [0, 0, 1, 1], [], []>} : vector<8x72xf32>, vector<72x128xf32>, vector<8x128xf32> -> vector<8x128xf32>
    %c0_144 = arith.constant 0 : index
    %c0_145 = arith.constant 0 : index
    %291 = vector.load %arg17[%c0_144, %c0_145] : memref<1x128xf32, #tpu.memory_space<vmem>>, vector<1x128xf32>
    %292 = vector.broadcast %291 : vector<1x128xf32> to vector<8x128xf32>
    %293 = arith.addf %290, %292 : vector<8x128xf32>
    %294 = arith.negf %293 : vector<8x128xf32>
    %295 = math.exp %294 : vector<8x128xf32>
    %cst_146 = arith.constant 1.000000e+00 : f32
    %296 = vector.broadcast %cst_146 : f32 to vector<8x128xf32>
    %297 = arith.addf %296, %295 : vector<8x128xf32>
    %298 = arith.divf %296, %297 : vector<8x128xf32>
    %cst_147 = arith.constant 2.000000e+00 : f32
    %299 = vector.broadcast %cst_147 : f32 to vector<8x128xf32>
    %300 = arith.mulf %299, %298 : vector<8x128xf32>
    %cst_148 = arith.constant 1.000000e+00 : f32
    %301 = vector.broadcast %cst_148 : f32 to vector<8x128xf32>
    %302 = arith.subf %300, %301 : vector<8x128xf32>
    %303 = arith.select %8, %302, %298 : vector<8x128xi1>, vector<8x128xf32>
    %304 = vector.extract_strided_slice %303 {offsets = [0, 0], sizes = [8, 32], strides = [1, 1]} : vector<8x128xf32> to vector<8x32xf32>
    %305 = vector.extract_strided_slice %303 {offsets = [0, 32], sizes = [8, 32], strides = [1, 1]} : vector<8x128xf32> to vector<8x32xf32>
    %306 = vector.extract_strided_slice %303 {offsets = [0, 64], sizes = [8, 32], strides = [1, 1]} : vector<8x128xf32> to vector<8x32xf32>
    %307 = vector.extract_strided_slice %303 {offsets = [0, 96], sizes = [8, 32], strides = [1, 1]} : vector<8x128xf32> to vector<8x32xf32>
    %308 = arith.mulf %305, %281 : vector<8x32xf32>
    %309 = arith.mulf %304, %306 : vector<8x32xf32>
    %310 = arith.addf %308, %309 : vector<8x32xf32>
    %311 = math.tanh %310 : vector<8x32xf32>
    %312 = arith.mulf %307, %311 : vector<8x32xf32>
    %313 = arith.addf %275, %277 : vector<8x1xf32>
    %cst_149 = arith.constant 0.000000e+00 : f32
    %314 = vector.broadcast %cst_149 : f32 to vector<8x1xf32>
    %315 = arith.cmpf oeq, %313, %314 : vector<8x1xf32>
    %316 = vector.shape_cast %315 : vector<8x1xi1> to vector<8x1xi1>
    %317 = vector.broadcast %316 : vector<8x1xi1> to vector<8x32xi1>
    %318 = arith.select %317, %163, %312 : vector<8x32xi1>, vector<8x32xf32>
    %319 = vector.shape_cast %315 : vector<8x1xi1> to vector<8x1xi1>
    %320 = vector.broadcast %319 : vector<8x1xi1> to vector<8x32xi1>
    %321 = arith.select %320, %281, %310 : vector<8x32xi1>, vector<8x32xf32>
    %c0_150 = arith.constant 0 : index
    %c1_151 = arith.constant 1 : index
    %c0_152 = arith.constant 0 : index
    %322 = vector.load %arg20[%c0_150, %c1_151, %c0_152] : memref<8x8x32xf32, #tpu.memory_space<vmem>>, vector<8x1x32xf32>
    %323 = vector.shape_cast %322 : vector<8x1x32xf32> to vector<8x32xf32>
    %324 = vector.shape_cast %318 : vector<8x32xf32> to vector<8x1x32xf32>
    tpu.vector_store %arg20[%c0_150, %c1_151, %c0_152], %324 {strides = array<i32>} : memref<8x8x32xf32, #tpu.memory_space<vmem>>, vector<8x1x32xf32>,
    %c0_153 = arith.constant 0 : index
    %c0_154 = arith.constant 0 : index
    %c0_155 = arith.constant 0 : index
    %c2_156 = arith.constant 2 : index
    %325 = vector.load %arg4[%c0_153, %c0_154, %c0_155, %c2_156] : memref<1x3x8x8xf32, #tpu.memory_space<vmem>>, vector<1x1x8x1xf32>
    %326 = vector.shape_cast %325 : vector<1x1x8x1xf32> to vector<8x1xf32>
    %c0_157 = arith.constant 0 : index
    %c0_158 = arith.constant 0 : index
    %c0_159 = arith.constant 0 : index
    %c2_160 = arith.constant 2 : index
    %327 = vector.load %arg5[%c0_157, %c0_158, %c0_159, %c2_160] : memref<1x3x8x8xf32, #tpu.memory_space<vmem>>, vector<1x1x8x1xf32>
    %328 = vector.shape_cast %327 : vector<1x1x8x1xf32> to vector<8x1xf32>
    %cst_161 = arith.constant 1.000000e+00 : f32
    %329 = vector.broadcast %cst_161 : f32 to vector<8x1xf32>
    %330 = arith.subf %329, %328 : vector<8x1xf32>
    %331 = vector.broadcast %330 : vector<8x1xf32> to vector<8x32xf32>
    %332 = arith.mulf %217, %331 : vector<8x32xf32>
    %c0_162 = arith.constant 0 : index
    %c2_163 = arith.constant 2 : index
    %c0_164 = arith.constant 0 : index
    %333 = vector.load %arg1[%c0_162, %c2_163, %c0_164] : memref<8x8x16xf32, #tpu.memory_space<vmem>>, vector<8x1x16xf32>
    %334 = vector.shape_cast %333 : vector<8x1x16xf32> to vector<8x16xf32>
    %335 = vector.broadcast %326 : vector<8x1xf32> to vector<8x16xf32>
    %336 = arith.mulf %334, %335 : vector<8x16xf32>
    %337 = vector.broadcast %328 : vector<8x1xf32> to vector<8x32xf32>
    %338 = arith.mulf %267, %337 : vector<8x32xf32>
    %339 = tpu.concatenate %336, %338, %214 in 1 : vector<8x16xf32>, vector<8x32xf32>, vector<8x32xf32> -> vector<8x80xf32>
    %c0_165 = arith.constant 0 : index
    %c0_166 = arith.constant 0 : index
    %340 = vector.load %arg12[%c0_165, %c0_166] : memref<80x128xf32, #tpu.memory_space<vmem>>, vector<80x128xf32>
    %cst_167 = arith.constant dense<0.000000e+00> : vector<8x128xf32>
    %341 = tpu.matmul %339, %340, %cst_167 {dimension_numbers = #tpu.dot_dimension_numbers<[1], [0], [0], [1], [0, 0, 1, 1], [], []>} : vector<8x80xf32>, vector<80x128xf32>, vector<8x128xf32> -> vector<8x128xf32>
    %c0_168 = arith.constant 0 : index
    %c0_169 = arith.constant 0 : index
    %342 = vector.load %arg15[%c0_168, %c0_169] : memref<1x128xf32, #tpu.memory_space<vmem>>, vector<1x128xf32>
    %343 = vector.broadcast %342 : vector<1x128xf32> to vector<8x128xf32>
    %344 = arith.addf %341, %343 : vector<8x128xf32>
    %345 = arith.negf %344 : vector<8x128xf32>
    %346 = math.exp %345 : vector<8x128xf32>
    %cst_170 = arith.constant 1.000000e+00 : f32
    %347 = vector.broadcast %cst_170 : f32 to vector<8x128xf32>
    %348 = arith.addf %347, %346 : vector<8x128xf32>
    %349 = arith.divf %347, %348 : vector<8x128xf32>
    %cst_171 = arith.constant 2.000000e+00 : f32
    %350 = vector.broadcast %cst_171 : f32 to vector<8x128xf32>
    %351 = arith.mulf %350, %349 : vector<8x128xf32>
    %cst_172 = arith.constant 1.000000e+00 : f32
    %352 = vector.broadcast %cst_172 : f32 to vector<8x128xf32>
    %353 = arith.subf %351, %352 : vector<8x128xf32>
    %354 = arith.select %8, %353, %349 : vector<8x128xi1>, vector<8x128xf32>
    %355 = vector.extract_strided_slice %354 {offsets = [0, 0], sizes = [8, 32], strides = [1, 1]} : vector<8x128xf32> to vector<8x32xf32>
    %356 = vector.extract_strided_slice %354 {offsets = [0, 32], sizes = [8, 32], strides = [1, 1]} : vector<8x128xf32> to vector<8x32xf32>
    %357 = vector.extract_strided_slice %354 {offsets = [0, 64], sizes = [8, 32], strides = [1, 1]} : vector<8x128xf32> to vector<8x32xf32>
    %358 = vector.extract_strided_slice %354 {offsets = [0, 96], sizes = [8, 32], strides = [1, 1]} : vector<8x128xf32> to vector<8x32xf32>
    %359 = arith.mulf %356, %332 : vector<8x32xf32>
    %360 = arith.mulf %355, %357 : vector<8x32xf32>
    %361 = arith.addf %359, %360 : vector<8x32xf32>
    %362 = math.tanh %361 : vector<8x32xf32>
    %363 = arith.mulf %358, %362 : vector<8x32xf32>
    %364 = arith.addf %326, %328 : vector<8x1xf32>
    %cst_173 = arith.constant 0.000000e+00 : f32
    %365 = vector.broadcast %cst_173 : f32 to vector<8x1xf32>
    %366 = arith.cmpf oeq, %364, %365 : vector<8x1xf32>
    %367 = vector.shape_cast %366 : vector<8x1xi1> to vector<8x1xi1>
    %368 = vector.broadcast %367 : vector<8x1xi1> to vector<8x32xi1>
    %369 = arith.select %368, %214, %363 : vector<8x32xi1>, vector<8x32xf32>
    %370 = vector.shape_cast %366 : vector<8x1xi1> to vector<8x1xi1>
    %371 = vector.broadcast %370 : vector<8x1xi1> to vector<8x32xi1>
    %372 = arith.select %371, %332, %361 : vector<8x32xi1>, vector<8x32xf32>
    %c0_174 = arith.constant 0 : index
    %c2_175 = arith.constant 2 : index
    %c0_176 = arith.constant 0 : index
    %373 = vector.load %arg18[%c0_174, %c2_175, %c0_176] : memref<8x8x32xf32, #tpu.memory_space<vmem>>, vector<8x1x32xf32>
    %374 = vector.shape_cast %373 : vector<8x1x32xf32> to vector<8x32xf32>
    %375 = vector.shape_cast %369 : vector<8x32xf32> to vector<8x1x32xf32>
    tpu.vector_store %arg18[%c0_174, %c2_175, %c0_176], %375 {strides = array<i32>} : memref<8x8x32xf32, #tpu.memory_space<vmem>>, vector<8x1x32xf32>,
    %c0_177 = arith.constant 0 : index
    %c1_178 = arith.constant 1 : index
    %c0_179 = arith.constant 0 : index
    %c2_180 = arith.constant 2 : index
    %376 = vector.load %arg4[%c0_177, %c1_178, %c0_179, %c2_180] : memref<1x3x8x8xf32, #tpu.memory_space<vmem>>, vector<1x1x8x1xf32>
    %377 = vector.shape_cast %376 : vector<1x1x8x1xf32> to vector<8x1xf32>
    %c0_181 = arith.constant 0 : index
    %c1_182 = arith.constant 1 : index
    %c0_183 = arith.constant 0 : index
    %c2_184 = arith.constant 2 : index
    %378 = vector.load %arg5[%c0_181, %c1_182, %c0_183, %c2_184] : memref<1x3x8x8xf32, #tpu.memory_space<vmem>>, vector<1x1x8x1xf32>
    %379 = vector.shape_cast %378 : vector<1x1x8x1xf32> to vector<8x1xf32>
    %cst_185 = arith.constant 1.000000e+00 : f32
    %380 = vector.broadcast %cst_185 : f32 to vector<8x1xf32>
    %381 = arith.subf %380, %379 : vector<8x1xf32>
    %382 = vector.broadcast %381 : vector<8x1xf32> to vector<8x32xf32>
    %383 = arith.mulf %270, %382 : vector<8x32xf32>
    %c0_186 = arith.constant 0 : index
    %c2_187 = arith.constant 2 : index
    %c0_188 = arith.constant 0 : index
    %384 = vector.load %arg2[%c0_186, %c2_187, %c0_188] : memref<8x8x8xf32, #tpu.memory_space<vmem>>, vector<8x1x8xf32>
    %385 = vector.shape_cast %384 : vector<8x1x8xf32> to vector<8x8xf32>
    %386 = vector.broadcast %377 : vector<8x1xf32> to vector<8x8xf32>
    %387 = arith.mulf %385, %386 : vector<8x8xf32>
    %388 = vector.broadcast %377 : vector<8x1xf32> to vector<8x32xf32>
    %389 = arith.mulf %369, %388 : vector<8x32xf32>
    %390 = vector.broadcast %379 : vector<8x1xf32> to vector<8x32xf32>
    %391 = arith.mulf %318, %390 : vector<8x32xf32>
    %392 = tpu.concatenate %387, %389, %391, %267 in 1 : vector<8x8xf32>, vector<8x32xf32>, vector<8x32xf32>, vector<8x32xf32> -> vector<8x104xf32>
    %c0_189 = arith.constant 0 : index
    %c0_190 = arith.constant 0 : index
    %393 = vector.load %arg13[%c0_189, %c0_190] : memref<104x128xf32, #tpu.memory_space<vmem>>, vector<104x128xf32>
    %cst_191 = arith.constant dense<0.000000e+00> : vector<8x128xf32>
    %394 = tpu.matmul %392, %393, %cst_191 {dimension_numbers = #tpu.dot_dimension_numbers<[1], [0], [0], [1], [0, 0, 1, 1], [], []>} : vector<8x104xf32>, vector<104x128xf32>, vector<8x128xf32> -> vector<8x128xf32>
    %c0_192 = arith.constant 0 : index
    %c0_193 = arith.constant 0 : index
    %395 = vector.load %arg16[%c0_192, %c0_193] : memref<1x128xf32, #tpu.memory_space<vmem>>, vector<1x128xf32>
    %396 = vector.broadcast %395 : vector<1x128xf32> to vector<8x128xf32>
    %397 = arith.addf %394, %396 : vector<8x128xf32>
    %398 = arith.negf %397 : vector<8x128xf32>
    %399 = math.exp %398 : vector<8x128xf32>
    %cst_194 = arith.constant 1.000000e+00 : f32
    %400 = vector.broadcast %cst_194 : f32 to vector<8x128xf32>
    %401 = arith.addf %400, %399 : vector<8x128xf32>
    %402 = arith.divf %400, %401 : vector<8x128xf32>
    %cst_195 = arith.constant 2.000000e+00 : f32
    %403 = vector.broadcast %cst_195 : f32 to vector<8x128xf32>
    %404 = arith.mulf %403, %402 : vector<8x128xf32>
    %cst_196 = arith.constant 1.000000e+00 : f32
    %405 = vector.broadcast %cst_196 : f32 to vector<8x128xf32>
    %406 = arith.subf %404, %405 : vector<8x128xf32>
    %407 = arith.select %8, %406, %402 : vector<8x128xi1>, vector<8x128xf32>
    %408 = vector.extract_strided_slice %407 {offsets = [0, 0], sizes = [8, 32], strides = [1, 1]} : vector<8x128xf32> to vector<8x32xf32>
    %409 = vector.extract_strided_slice %407 {offsets = [0, 32], sizes = [8, 32], strides = [1, 1]} : vector<8x128xf32> to vector<8x32xf32>
    %410 = vector.extract_strided_slice %407 {offsets = [0, 64], sizes = [8, 32], strides = [1, 1]} : vector<8x128xf32> to vector<8x32xf32>
    %411 = vector.extract_strided_slice %407 {offsets = [0, 96], sizes = [8, 32], strides = [1, 1]} : vector<8x128xf32> to vector<8x32xf32>
    %412 = arith.mulf %409, %383 : vector<8x32xf32>
    %413 = arith.mulf %408, %410 : vector<8x32xf32>
    %414 = arith.addf %412, %413 : vector<8x32xf32>
    %415 = math.tanh %414 : vector<8x32xf32>
    %416 = arith.mulf %411, %415 : vector<8x32xf32>
    %417 = arith.addf %377, %379 : vector<8x1xf32>
    %cst_197 = arith.constant 0.000000e+00 : f32
    %418 = vector.broadcast %cst_197 : f32 to vector<8x1xf32>
    %419 = arith.cmpf oeq, %417, %418 : vector<8x1xf32>
    %420 = vector.shape_cast %419 : vector<8x1xi1> to vector<8x1xi1>
    %421 = vector.broadcast %420 : vector<8x1xi1> to vector<8x32xi1>
    %422 = arith.select %421, %267, %416 : vector<8x32xi1>, vector<8x32xf32>
    %423 = vector.shape_cast %419 : vector<8x1xi1> to vector<8x1xi1>
    %424 = vector.broadcast %423 : vector<8x1xi1> to vector<8x32xi1>
    %425 = arith.select %424, %383, %414 : vector<8x32xi1>, vector<8x32xf32>
    %c0_198 = arith.constant 0 : index
    %c2_199 = arith.constant 2 : index
    %c0_200 = arith.constant 0 : index
    %426 = vector.load %arg19[%c0_198, %c2_199, %c0_200] : memref<8x8x32xf32, #tpu.memory_space<vmem>>, vector<8x1x32xf32>
    %427 = vector.shape_cast %426 : vector<8x1x32xf32> to vector<8x32xf32>
    %428 = vector.shape_cast %422 : vector<8x32xf32> to vector<8x1x32xf32>
    tpu.vector_store %arg19[%c0_198, %c2_199, %c0_200], %428 {strides = array<i32>} : memref<8x8x32xf32, #tpu.memory_space<vmem>>, vector<8x1x32xf32>,
    %c0_201 = arith.constant 0 : index
    %c2_202 = arith.constant 2 : index
    %c0_203 = arith.constant 0 : index
    %c2_204 = arith.constant 2 : index
    %429 = vector.load %arg4[%c0_201, %c2_202, %c0_203, %c2_204] : memref<1x3x8x8xf32, #tpu.memory_space<vmem>>, vector<1x1x8x1xf32>
    %430 = vector.shape_cast %429 : vector<1x1x8x1xf32> to vector<8x1xf32>
    %c0_205 = arith.constant 0 : index
    %c2_206 = arith.constant 2 : index
    %c0_207 = arith.constant 0 : index
    %c2_208 = arith.constant 2 : index
    %431 = vector.load %arg5[%c0_205, %c2_206, %c0_207, %c2_208] : memref<1x3x8x8xf32, #tpu.memory_space<vmem>>, vector<1x1x8x1xf32>
    %432 = vector.shape_cast %431 : vector<1x1x8x1xf32> to vector<8x1xf32>
    %cst_209 = arith.constant 1.000000e+00 : f32
    %433 = vector.broadcast %cst_209 : f32 to vector<8x1xf32>
    %434 = arith.subf %433, %432 : vector<8x1xf32>
    %435 = vector.broadcast %434 : vector<8x1xf32> to vector<8x32xf32>
    %436 = arith.mulf %321, %435 : vector<8x32xf32>
    %c0_210 = arith.constant 0 : index
    %c2_211 = arith.constant 2 : index
    %c0_212 = arith.constant 0 : index
    %437 = vector.load %arg3[%c0_210, %c2_211, %c0_212] : memref<8x8x8xf32, #tpu.memory_space<vmem>>, vector<8x1x8xf32>
    %438 = vector.shape_cast %437 : vector<8x1x8xf32> to vector<8x8xf32>
    %439 = vector.broadcast %430 : vector<8x1xf32> to vector<8x8xf32>
    %440 = arith.mulf %438, %439 : vector<8x8xf32>
    %441 = vector.broadcast %430 : vector<8x1xf32> to vector<8x32xf32>
    %442 = arith.mulf %422, %441 : vector<8x32xf32>
    %443 = tpu.concatenate %440, %442, %318 in 1 : vector<8x8xf32>, vector<8x32xf32>, vector<8x32xf32> -> vector<8x72xf32>
    %c0_213 = arith.constant 0 : index
    %c0_214 = arith.constant 0 : index
    %444 = vector.load %arg14[%c0_213, %c0_214] : memref<72x128xf32, #tpu.memory_space<vmem>>, vector<72x128xf32>
    %cst_215 = arith.constant dense<0.000000e+00> : vector<8x128xf32>
    %445 = tpu.matmul %443, %444, %cst_215 {dimension_numbers = #tpu.dot_dimension_numbers<[1], [0], [0], [1], [0, 0, 1, 1], [], []>} : vector<8x72xf32>, vector<72x128xf32>, vector<8x128xf32> -> vector<8x128xf32>
    %c0_216 = arith.constant 0 : index
    %c0_217 = arith.constant 0 : index
    %446 = vector.load %arg17[%c0_216, %c0_217] : memref<1x128xf32, #tpu.memory_space<vmem>>, vector<1x128xf32>
    %447 = vector.broadcast %446 : vector<1x128xf32> to vector<8x128xf32>
    %448 = arith.addf %445, %447 : vector<8x128xf32>
    %449 = arith.negf %448 : vector<8x128xf32>
    %450 = math.exp %449 : vector<8x128xf32>
    %cst_218 = arith.constant 1.000000e+00 : f32
    %451 = vector.broadcast %cst_218 : f32 to vector<8x128xf32>
    %452 = arith.addf %451, %450 : vector<8x128xf32>
    %453 = arith.divf %451, %452 : vector<8x128xf32>
    %cst_219 = arith.constant 2.000000e+00 : f32
    %454 = vector.broadcast %cst_219 : f32 to vector<8x128xf32>
    %455 = arith.mulf %454, %453 : vector<8x128xf32>
    %cst_220 = arith.constant 1.000000e+00 : f32
    %456 = vector.broadcast %cst_220 : f32 to vector<8x128xf32>
    %457 = arith.subf %455, %456 : vector<8x128xf32>
    %458 = arith.select %8, %457, %453 : vector<8x128xi1>, vector<8x128xf32>
    %459 = vector.extract_strided_slice %458 {offsets = [0, 0], sizes = [8, 32], strides = [1, 1]} : vector<8x128xf32> to vector<8x32xf32>
    %460 = vector.extract_strided_slice %458 {offsets = [0, 32], sizes = [8, 32], strides = [1, 1]} : vector<8x128xf32> to vector<8x32xf32>
    %461 = vector.extract_strided_slice %458 {offsets = [0, 64], sizes = [8, 32], strides = [1, 1]} : vector<8x128xf32> to vector<8x32xf32>
    %462 = vector.extract_strided_slice %458 {offsets = [0, 96], sizes = [8, 32], strides = [1, 1]} : vector<8x128xf32> to vector<8x32xf32>
    %463 = arith.mulf %460, %436 : vector<8x32xf32>
    %464 = arith.mulf %459, %461 : vector<8x32xf32>
    %465 = arith.addf %463, %464 : vector<8x32xf32>
    %466 = math.tanh %465 : vector<8x32xf32>
    %467 = arith.mulf %462, %466 : vector<8x32xf32>
    %468 = arith.addf %430, %432 : vector<8x1xf32>
    %cst_221 = arith.constant 0.000000e+00 : f32
    %469 = vector.broadcast %cst_221 : f32 to vector<8x1xf32>
    %470 = arith.cmpf oeq, %468, %469 : vector<8x1xf32>
    %471 = vector.shape_cast %470 : vector<8x1xi1> to vector<8x1xi1>
    %472 = vector.broadcast %471 : vector<8x1xi1> to vector<8x32xi1>
    %473 = arith.select %472, %318, %467 : vector<8x32xi1>, vector<8x32xf32>
    %474 = vector.shape_cast %470 : vector<8x1xi1> to vector<8x1xi1>
    %475 = vector.broadcast %474 : vector<8x1xi1> to vector<8x32xi1>
    %476 = arith.select %475, %436, %465 : vector<8x32xi1>, vector<8x32xf32>
    %c0_222 = arith.constant 0 : index
    %c2_223 = arith.constant 2 : index
    %c0_224 = arith.constant 0 : index
    %477 = vector.load %arg20[%c0_222, %c2_223, %c0_224] : memref<8x8x32xf32, #tpu.memory_space<vmem>>, vector<8x1x32xf32>
    %478 = vector.shape_cast %477 : vector<8x1x32xf32> to vector<8x32xf32>
    %479 = vector.shape_cast %473 : vector<8x32xf32> to vector<8x1x32xf32>
    tpu.vector_store %arg20[%c0_222, %c2_223, %c0_224], %479 {strides = array<i32>} : memref<8x8x32xf32, #tpu.memory_space<vmem>>, vector<8x1x32xf32>,
    %c0_225 = arith.constant 0 : index
    %c0_226 = arith.constant 0 : index
    %c0_227 = arith.constant 0 : index
    %c3 = arith.constant 3 : index
    %480 = vector.load %arg4[%c0_225, %c0_226, %c0_227, %c3] : memref<1x3x8x8xf32, #tpu.memory_space<vmem>>, vector<1x1x8x1xf32>
    %481 = vector.shape_cast %480 : vector<1x1x8x1xf32> to vector<8x1xf32>
    %c0_228 = arith.constant 0 : index
    %c0_229 = arith.constant 0 : index
    %c0_230 = arith.constant 0 : index
    %c3_231 = arith.constant 3 : index
    %482 = vector.load %arg5[%c0_228, %c0_229, %c0_230, %c3_231] : memref<1x3x8x8xf32, #tpu.memory_space<vmem>>, vector<1x1x8x1xf32>
    %483 = vector.shape_cast %482 : vector<1x1x8x1xf32> to vector<8x1xf32>
    %cst_232 = arith.constant 1.000000e+00 : f32
    %484 = vector.broadcast %cst_232 : f32 to vector<8x1xf32>
    %485 = arith.subf %484, %483 : vector<8x1xf32>
    %486 = vector.broadcast %485 : vector<8x1xf32> to vector<8x32xf32>
    %487 = arith.mulf %372, %486 : vector<8x32xf32>
    %c0_233 = arith.constant 0 : index
    %c3_234 = arith.constant 3 : index
    %c0_235 = arith.constant 0 : index
    %488 = vector.load %arg1[%c0_233, %c3_234, %c0_235] : memref<8x8x16xf32, #tpu.memory_space<vmem>>, vector<8x1x16xf32>
    %489 = vector.shape_cast %488 : vector<8x1x16xf32> to vector<8x16xf32>
    %490 = vector.broadcast %481 : vector<8x1xf32> to vector<8x16xf32>
    %491 = arith.mulf %489, %490 : vector<8x16xf32>
    %492 = vector.broadcast %483 : vector<8x1xf32> to vector<8x32xf32>
    %493 = arith.mulf %422, %492 : vector<8x32xf32>
    %494 = tpu.concatenate %491, %493, %369 in 1 : vector<8x16xf32>, vector<8x32xf32>, vector<8x32xf32> -> vector<8x80xf32>
    %c0_236 = arith.constant 0 : index
    %c0_237 = arith.constant 0 : index
    %495 = vector.load %arg12[%c0_236, %c0_237] : memref<80x128xf32, #tpu.memory_space<vmem>>, vector<80x128xf32>
    %cst_238 = arith.constant dense<0.000000e+00> : vector<8x128xf32>
    %496 = tpu.matmul %494, %495, %cst_238 {dimension_numbers = #tpu.dot_dimension_numbers<[1], [0], [0], [1], [0, 0, 1, 1], [], []>} : vector<8x80xf32>, vector<80x128xf32>, vector<8x128xf32> -> vector<8x128xf32>
    %c0_239 = arith.constant 0 : index
    %c0_240 = arith.constant 0 : index
    %497 = vector.load %arg15[%c0_239, %c0_240] : memref<1x128xf32, #tpu.memory_space<vmem>>, vector<1x128xf32>
    %498 = vector.broadcast %497 : vector<1x128xf32> to vector<8x128xf32>
    %499 = arith.addf %496, %498 : vector<8x128xf32>
    %500 = arith.negf %499 : vector<8x128xf32>
    %501 = math.exp %500 : vector<8x128xf32>
    %cst_241 = arith.constant 1.000000e+00 : f32
    %502 = vector.broadcast %cst_241 : f32 to vector<8x128xf32>
    %503 = arith.addf %502, %501 : vector<8x128xf32>
    %504 = arith.divf %502, %503 : vector<8x128xf32>
    %cst_242 = arith.constant 2.000000e+00 : f32
    %505 = vector.broadcast %cst_242 : f32 to vector<8x128xf32>
    %506 = arith.mulf %505, %504 : vector<8x128xf32>
    %cst_243 = arith.constant 1.000000e+00 : f32
    %507 = vector.broadcast %cst_243 : f32 to vector<8x128xf32>
    %508 = arith.subf %506, %507 : vector<8x128xf32>
    %509 = arith.select %8, %508, %504 : vector<8x128xi1>, vector<8x128xf32>
    %510 = vector.extract_strided_slice %509 {offsets = [0, 0], sizes = [8, 32], strides = [1, 1]} : vector<8x128xf32> to vector<8x32xf32>
    %511 = vector.extract_strided_slice %509 {offsets = [0, 32], sizes = [8, 32], strides = [1, 1]} : vector<8x128xf32> to vector<8x32xf32>
    %512 = vector.extract_strided_slice %509 {offsets = [0, 64], sizes = [8, 32], strides = [1, 1]} : vector<8x128xf32> to vector<8x32xf32>
    %513 = vector.extract_strided_slice %509 {offsets = [0, 96], sizes = [8, 32], strides = [1, 1]} : vector<8x128xf32> to vector<8x32xf32>
    %514 = arith.mulf %511, %487 : vector<8x32xf32>
    %515 = arith.mulf %510, %512 : vector<8x32xf32>
    %516 = arith.addf %514, %515 : vector<8x32xf32>
    %517 = math.tanh %516 : vector<8x32xf32>
    %518 = arith.mulf %513, %517 : vector<8x32xf32>
    %519 = arith.addf %481, %483 : vector<8x1xf32>
    %cst_244 = arith.constant 0.000000e+00 : f32
    %520 = vector.broadcast %cst_244 : f32 to vector<8x1xf32>
    %521 = arith.cmpf oeq, %519, %520 : vector<8x1xf32>
    %522 = vector.shape_cast %521 : vector<8x1xi1> to vector<8x1xi1>
    %523 = vector.broadcast %522 : vector<8x1xi1> to vector<8x32xi1>
    %524 = arith.select %523, %369, %518 : vector<8x32xi1>, vector<8x32xf32>
    %525 = vector.shape_cast %521 : vector<8x1xi1> to vector<8x1xi1>
    %526 = vector.broadcast %525 : vector<8x1xi1> to vector<8x32xi1>
    %527 = arith.select %526, %487, %516 : vector<8x32xi1>, vector<8x32xf32>
    %c0_245 = arith.constant 0 : index
    %c3_246 = arith.constant 3 : index
    %c0_247 = arith.constant 0 : index
    %528 = vector.load %arg18[%c0_245, %c3_246, %c0_247] : memref<8x8x32xf32, #tpu.memory_space<vmem>>, vector<8x1x32xf32>
    %529 = vector.shape_cast %528 : vector<8x1x32xf32> to vector<8x32xf32>
    %530 = vector.shape_cast %524 : vector<8x32xf32> to vector<8x1x32xf32>
    tpu.vector_store %arg18[%c0_245, %c3_246, %c0_247], %530 {strides = array<i32>} : memref<8x8x32xf32, #tpu.memory_space<vmem>>, vector<8x1x32xf32>,
    %c0_248 = arith.constant 0 : index
    %c1_249 = arith.constant 1 : index
    %c0_250 = arith.constant 0 : index
    %c3_251 = arith.constant 3 : index
    %531 = vector.load %arg4[%c0_248, %c1_249, %c0_250, %c3_251] : memref<1x3x8x8xf32, #tpu.memory_space<vmem>>, vector<1x1x8x1xf32>
    %532 = vector.shape_cast %531 : vector<1x1x8x1xf32> to vector<8x1xf32>
    %c0_252 = arith.constant 0 : index
    %c1_253 = arith.constant 1 : index
    %c0_254 = arith.constant 0 : index
    %c3_255 = arith.constant 3 : index
    %533 = vector.load %arg5[%c0_252, %c1_253, %c0_254, %c3_255] : memref<1x3x8x8xf32, #tpu.memory_space<vmem>>, vector<1x1x8x1xf32>
    %534 = vector.shape_cast %533 : vector<1x1x8x1xf32> to vector<8x1xf32>
    %cst_256 = arith.constant 1.000000e+00 : f32
    %535 = vector.broadcast %cst_256 : f32 to vector<8x1xf32>
    %536 = arith.subf %535, %534 : vector<8x1xf32>
    %537 = vector.broadcast %536 : vector<8x1xf32> to vector<8x32xf32>
    %538 = arith.mulf %425, %537 : vector<8x32xf32>
    %c0_257 = arith.constant 0 : index
    %c3_258 = arith.constant 3 : index
    %c0_259 = arith.constant 0 : index
    %539 = vector.load %arg2[%c0_257, %c3_258, %c0_259] : memref<8x8x8xf32, #tpu.memory_space<vmem>>, vector<8x1x8xf32>
    %540 = vector.shape_cast %539 : vector<8x1x8xf32> to vector<8x8xf32>
    %541 = vector.broadcast %532 : vector<8x1xf32> to vector<8x8xf32>
    %542 = arith.mulf %540, %541 : vector<8x8xf32>
    %543 = vector.broadcast %532 : vector<8x1xf32> to vector<8x32xf32>
    %544 = arith.mulf %524, %543 : vector<8x32xf32>
    %545 = vector.broadcast %534 : vector<8x1xf32> to vector<8x32xf32>
    %546 = arith.mulf %473, %545 : vector<8x32xf32>
    %547 = tpu.concatenate %542, %544, %546, %422 in 1 : vector<8x8xf32>, vector<8x32xf32>, vector<8x32xf32>, vector<8x32xf32> -> vector<8x104xf32>
    %c0_260 = arith.constant 0 : index
    %c0_261 = arith.constant 0 : index
    %548 = vector.load %arg13[%c0_260, %c0_261] : memref<104x128xf32, #tpu.memory_space<vmem>>, vector<104x128xf32>
    %cst_262 = arith.constant dense<0.000000e+00> : vector<8x128xf32>
    %549 = tpu.matmul %547, %548, %cst_262 {dimension_numbers = #tpu.dot_dimension_numbers<[1], [0], [0], [1], [0, 0, 1, 1], [], []>} : vector<8x104xf32>, vector<104x128xf32>, vector<8x128xf32> -> vector<8x128xf32>
    %c0_263 = arith.constant 0 : index
    %c0_264 = arith.constant 0 : index
    %550 = vector.load %arg16[%c0_263, %c0_264] : memref<1x128xf32, #tpu.memory_space<vmem>>, vector<1x128xf32>
    %551 = vector.broadcast %550 : vector<1x128xf32> to vector<8x128xf32>
    %552 = arith.addf %549, %551 : vector<8x128xf32>
    %553 = arith.negf %552 : vector<8x128xf32>
    %554 = math.exp %553 : vector<8x128xf32>
    %cst_265 = arith.constant 1.000000e+00 : f32
    %555 = vector.broadcast %cst_265 : f32 to vector<8x128xf32>
    %556 = arith.addf %555, %554 : vector<8x128xf32>
    %557 = arith.divf %555, %556 : vector<8x128xf32>
    %cst_266 = arith.constant 2.000000e+00 : f32
    %558 = vector.broadcast %cst_266 : f32 to vector<8x128xf32>
    %559 = arith.mulf %558, %557 : vector<8x128xf32>
    %cst_267 = arith.constant 1.000000e+00 : f32
    %560 = vector.broadcast %cst_267 : f32 to vector<8x128xf32>
    %561 = arith.subf %559, %560 : vector<8x128xf32>
    %562 = arith.select %8, %561, %557 : vector<8x128xi1>, vector<8x128xf32>
    %563 = vector.extract_strided_slice %562 {offsets = [0, 0], sizes = [8, 32], strides = [1, 1]} : vector<8x128xf32> to vector<8x32xf32>
    %564 = vector.extract_strided_slice %562 {offsets = [0, 32], sizes = [8, 32], strides = [1, 1]} : vector<8x128xf32> to vector<8x32xf32>
    %565 = vector.extract_strided_slice %562 {offsets = [0, 64], sizes = [8, 32], strides = [1, 1]} : vector<8x128xf32> to vector<8x32xf32>
    %566 = vector.extract_strided_slice %562 {offsets = [0, 96], sizes = [8, 32], strides = [1, 1]} : vector<8x128xf32> to vector<8x32xf32>
    %567 = arith.mulf %564, %538 : vector<8x32xf32>
    %568 = arith.mulf %563, %565 : vector<8x32xf32>
    %569 = arith.addf %567, %568 : vector<8x32xf32>
    %570 = math.tanh %569 : vector<8x32xf32>
    %571 = arith.mulf %566, %570 : vector<8x32xf32>
    %572 = arith.addf %532, %534 : vector<8x1xf32>
    %cst_268 = arith.constant 0.000000e+00 : f32
    %573 = vector.broadcast %cst_268 : f32 to vector<8x1xf32>
    %574 = arith.cmpf oeq, %572, %573 : vector<8x1xf32>
    %575 = vector.shape_cast %574 : vector<8x1xi1> to vector<8x1xi1>
    %576 = vector.broadcast %575 : vector<8x1xi1> to vector<8x32xi1>
    %577 = arith.select %576, %422, %571 : vector<8x32xi1>, vector<8x32xf32>
    %578 = vector.shape_cast %574 : vector<8x1xi1> to vector<8x1xi1>
    %579 = vector.broadcast %578 : vector<8x1xi1> to vector<8x32xi1>
    %580 = arith.select %579, %538, %569 : vector<8x32xi1>, vector<8x32xf32>
    %c0_269 = arith.constant 0 : index
    %c3_270 = arith.constant 3 : index
    %c0_271 = arith.constant 0 : index
    %581 = vector.load %arg19[%c0_269, %c3_270, %c0_271] : memref<8x8x32xf32, #tpu.memory_space<vmem>>, vector<8x1x32xf32>
    %582 = vector.shape_cast %581 : vector<8x1x32xf32> to vector<8x32xf32>
    %583 = vector.shape_cast %577 : vector<8x32xf32> to vector<8x1x32xf32>
    tpu.vector_store %arg19[%c0_269, %c3_270, %c0_271], %583 {strides = array<i32>} : memref<8x8x32xf32, #tpu.memory_space<vmem>>, vector<8x1x32xf32>,
    %c0_272 = arith.constant 0 : index
    %c2_273 = arith.constant 2 : index
    %c0_274 = arith.constant 0 : index
    %c3_275 = arith.constant 3 : index
    %584 = vector.load %arg4[%c0_272, %c2_273, %c0_274, %c3_275] : memref<1x3x8x8xf32, #tpu.memory_space<vmem>>, vector<1x1x8x1xf32>
    %585 = vector.shape_cast %584 : vector<1x1x8x1xf32> to vector<8x1xf32>
    %c0_276 = arith.constant 0 : index
    %c2_277 = arith.constant 2 : index
    %c0_278 = arith.constant 0 : index
    %c3_279 = arith.constant 3 : index
    %586 = vector.load %arg5[%c0_276, %c2_277, %c0_278, %c3_279] : memref<1x3x8x8xf32, #tpu.memory_space<vmem>>, vector<1x1x8x1xf32>
    %587 = vector.shape_cast %586 : vector<1x1x8x1xf32> to vector<8x1xf32>
    %cst_280 = arith.constant 1.000000e+00 : f32
    %588 = vector.broadcast %cst_280 : f32 to vector<8x1xf32>
    %589 = arith.subf %588, %587 : vector<8x1xf32>
    %590 = vector.broadcast %589 : vector<8x1xf32> to vector<8x32xf32>
    %591 = arith.mulf %476, %590 : vector<8x32xf32>
    %c0_281 = arith.constant 0 : index
    %c3_282 = arith.constant 3 : index
    %c0_283 = arith.constant 0 : index
    %592 = vector.load %arg3[%c0_281, %c3_282, %c0_283] : memref<8x8x8xf32, #tpu.memory_space<vmem>>, vector<8x1x8xf32>
    %593 = vector.shape_cast %592 : vector<8x1x8xf32> to vector<8x8xf32>
    %594 = vector.broadcast %585 : vector<8x1xf32> to vector<8x8xf32>
    %595 = arith.mulf %593, %594 : vector<8x8xf32>
    %596 = vector.broadcast %585 : vector<8x1xf32> to vector<8x32xf32>
    %597 = arith.mulf %577, %596 : vector<8x32xf32>
    %598 = tpu.concatenate %595, %597, %473 in 1 : vector<8x8xf32>, vector<8x32xf32>, vector<8x32xf32> -> vector<8x72xf32>
    %c0_284 = arith.constant 0 : index
    %c0_285 = arith.constant 0 : index
    %599 = vector.load %arg14[%c0_284, %c0_285] : memref<72x128xf32, #tpu.memory_space<vmem>>, vector<72x128xf32>
    %cst_286 = arith.constant dense<0.000000e+00> : vector<8x128xf32>
    %600 = tpu.matmul %598, %599, %cst_286 {dimension_numbers = #tpu.dot_dimension_numbers<[1], [0], [0], [1], [0, 0, 1, 1], [], []>} : vector<8x72xf32>, vector<72x128xf32>, vector<8x128xf32> -> vector<8x128xf32>
    %c0_287 = arith.constant 0 : index
    %c0_288 = arith.constant 0 : index
    %601 = vector.load %arg17[%c0_287, %c0_288] : memref<1x128xf32, #tpu.memory_space<vmem>>, vector<1x128xf32>
    %602 = vector.broadcast %601 : vector<1x128xf32> to vector<8x128xf32>
    %603 = arith.addf %600, %602 : vector<8x128xf32>
    %604 = arith.negf %603 : vector<8x128xf32>
    %605 = math.exp %604 : vector<8x128xf32>
    %cst_289 = arith.constant 1.000000e+00 : f32
    %606 = vector.broadcast %cst_289 : f32 to vector<8x128xf32>
    %607 = arith.addf %606, %605 : vector<8x128xf32>
    %608 = arith.divf %606, %607 : vector<8x128xf32>
    %cst_290 = arith.constant 2.000000e+00 : f32
    %609 = vector.broadcast %cst_290 : f32 to vector<8x128xf32>
    %610 = arith.mulf %609, %608 : vector<8x128xf32>
    %cst_291 = arith.constant 1.000000e+00 : f32
    %611 = vector.broadcast %cst_291 : f32 to vector<8x128xf32>
    %612 = arith.subf %610, %611 : vector<8x128xf32>
    %613 = arith.select %8, %612, %608 : vector<8x128xi1>, vector<8x128xf32>
    %614 = vector.extract_strided_slice %613 {offsets = [0, 0], sizes = [8, 32], strides = [1, 1]} : vector<8x128xf32> to vector<8x32xf32>
    %615 = vector.extract_strided_slice %613 {offsets = [0, 32], sizes = [8, 32], strides = [1, 1]} : vector<8x128xf32> to vector<8x32xf32>
    %616 = vector.extract_strided_slice %613 {offsets = [0, 64], sizes = [8, 32], strides = [1, 1]} : vector<8x128xf32> to vector<8x32xf32>
    %617 = vector.extract_strided_slice %613 {offsets = [0, 96], sizes = [8, 32], strides = [1, 1]} : vector<8x128xf32> to vector<8x32xf32>
    %618 = arith.mulf %615, %591 : vector<8x32xf32>
    %619 = arith.mulf %614, %616 : vector<8x32xf32>
    %620 = arith.addf %618, %619 : vector<8x32xf32>
    %621 = math.tanh %620 : vector<8x32xf32>
    %622 = arith.mulf %617, %621 : vector<8x32xf32>
    %623 = arith.addf %585, %587 : vector<8x1xf32>
    %cst_292 = arith.constant 0.000000e+00 : f32
    %624 = vector.broadcast %cst_292 : f32 to vector<8x1xf32>
    %625 = arith.cmpf oeq, %623, %624 : vector<8x1xf32>
    %626 = vector.shape_cast %625 : vector<8x1xi1> to vector<8x1xi1>
    %627 = vector.broadcast %626 : vector<8x1xi1> to vector<8x32xi1>
    %628 = arith.select %627, %473, %622 : vector<8x32xi1>, vector<8x32xf32>
    %629 = vector.shape_cast %625 : vector<8x1xi1> to vector<8x1xi1>
    %630 = vector.broadcast %629 : vector<8x1xi1> to vector<8x32xi1>
    %631 = arith.select %630, %591, %620 : vector<8x32xi1>, vector<8x32xf32>
    %c0_293 = arith.constant 0 : index
    %c3_294 = arith.constant 3 : index
    %c0_295 = arith.constant 0 : index
    %632 = vector.load %arg20[%c0_293, %c3_294, %c0_295] : memref<8x8x32xf32, #tpu.memory_space<vmem>>, vector<8x1x32xf32>
    %633 = vector.shape_cast %632 : vector<8x1x32xf32> to vector<8x32xf32>
    %634 = vector.shape_cast %628 : vector<8x32xf32> to vector<8x1x32xf32>
    tpu.vector_store %arg20[%c0_293, %c3_294, %c0_295], %634 {strides = array<i32>} : memref<8x8x32xf32, #tpu.memory_space<vmem>>, vector<8x1x32xf32>,
    %c0_296 = arith.constant 0 : index
    %c0_297 = arith.constant 0 : index
    %c0_298 = arith.constant 0 : index
    %c4 = arith.constant 4 : index
    %635 = vector.load %arg4[%c0_296, %c0_297, %c0_298, %c4] : memref<1x3x8x8xf32, #tpu.memory_space<vmem>>, vector<1x1x8x1xf32>
    %636 = vector.shape_cast %635 : vector<1x1x8x1xf32> to vector<8x1xf32>
    %c0_299 = arith.constant 0 : index
    %c0_300 = arith.constant 0 : index
    %c0_301 = arith.constant 0 : index
    %c4_302 = arith.constant 4 : index
    %637 = vector.load %arg5[%c0_299, %c0_300, %c0_301, %c4_302] : memref<1x3x8x8xf32, #tpu.memory_space<vmem>>, vector<1x1x8x1xf32>
    %638 = vector.shape_cast %637 : vector<1x1x8x1xf32> to vector<8x1xf32>
    %cst_303 = arith.constant 1.000000e+00 : f32
    %639 = vector.broadcast %cst_303 : f32 to vector<8x1xf32>
    %640 = arith.subf %639, %638 : vector<8x1xf32>
    %641 = vector.broadcast %640 : vector<8x1xf32> to vector<8x32xf32>
    %642 = arith.mulf %527, %641 : vector<8x32xf32>
    %c0_304 = arith.constant 0 : index
    %c4_305 = arith.constant 4 : index
    %c0_306 = arith.constant 0 : index
    %643 = vector.load %arg1[%c0_304, %c4_305, %c0_306] : memref<8x8x16xf32, #tpu.memory_space<vmem>>, vector<8x1x16xf32>
    %644 = vector.shape_cast %643 : vector<8x1x16xf32> to vector<8x16xf32>
    %645 = vector.broadcast %636 : vector<8x1xf32> to vector<8x16xf32>
    %646 = arith.mulf %644, %645 : vector<8x16xf32>
    %647 = vector.broadcast %638 : vector<8x1xf32> to vector<8x32xf32>
    %648 = arith.mulf %577, %647 : vector<8x32xf32>
    %649 = tpu.concatenate %646, %648, %524 in 1 : vector<8x16xf32>, vector<8x32xf32>, vector<8x32xf32> -> vector<8x80xf32>
    %c0_307 = arith.constant 0 : index
    %c0_308 = arith.constant 0 : index
    %650 = vector.load %arg12[%c0_307, %c0_308] : memref<80x128xf32, #tpu.memory_space<vmem>>, vector<80x128xf32>
    %cst_309 = arith.constant dense<0.000000e+00> : vector<8x128xf32>
    %651 = tpu.matmul %649, %650, %cst_309 {dimension_numbers = #tpu.dot_dimension_numbers<[1], [0], [0], [1], [0, 0, 1, 1], [], []>} : vector<8x80xf32>, vector<80x128xf32>, vector<8x128xf32> -> vector<8x128xf32>
    %c0_310 = arith.constant 0 : index
    %c0_311 = arith.constant 0 : index
    %652 = vector.load %arg15[%c0_310, %c0_311] : memref<1x128xf32, #tpu.memory_space<vmem>>, vector<1x128xf32>
    %653 = vector.broadcast %652 : vector<1x128xf32> to vector<8x128xf32>
    %654 = arith.addf %651, %653 : vector<8x128xf32>
    %655 = arith.negf %654 : vector<8x128xf32>
    %656 = math.exp %655 : vector<8x128xf32>
    %cst_312 = arith.constant 1.000000e+00 : f32
    %657 = vector.broadcast %cst_312 : f32 to vector<8x128xf32>
    %658 = arith.addf %657, %656 : vector<8x128xf32>
    %659 = arith.divf %657, %658 : vector<8x128xf32>
    %cst_313 = arith.constant 2.000000e+00 : f32
    %660 = vector.broadcast %cst_313 : f32 to vector<8x128xf32>
    %661 = arith.mulf %660, %659 : vector<8x128xf32>
    %cst_314 = arith.constant 1.000000e+00 : f32
    %662 = vector.broadcast %cst_314 : f32 to vector<8x128xf32>
    %663 = arith.subf %661, %662 : vector<8x128xf32>
    %664 = arith.select %8, %663, %659 : vector<8x128xi1>, vector<8x128xf32>
    %665 = vector.extract_strided_slice %664 {offsets = [0, 0], sizes = [8, 32], strides = [1, 1]} : vector<8x128xf32> to vector<8x32xf32>
    %666 = vector.extract_strided_slice %664 {offsets = [0, 32], sizes = [8, 32], strides = [1, 1]} : vector<8x128xf32> to vector<8x32xf32>
    %667 = vector.extract_strided_slice %664 {offsets = [0, 64], sizes = [8, 32], strides = [1, 1]} : vector<8x128xf32> to vector<8x32xf32>
    %668 = vector.extract_strided_slice %664 {offsets = [0, 96], sizes = [8, 32], strides = [1, 1]} : vector<8x128xf32> to vector<8x32xf32>
    %669 = arith.mulf %666, %642 : vector<8x32xf32>
    %670 = arith.mulf %665, %667 : vector<8x32xf32>
    %671 = arith.addf %669, %670 : vector<8x32xf32>
    %672 = math.tanh %671 : vector<8x32xf32>
    %673 = arith.mulf %668, %672 : vector<8x32xf32>
    %674 = arith.addf %636, %638 : vector<8x1xf32>
    %cst_315 = arith.constant 0.000000e+00 : f32
    %675 = vector.broadcast %cst_315 : f32 to vector<8x1xf32>
    %676 = arith.cmpf oeq, %674, %675 : vector<8x1xf32>
    %677 = vector.shape_cast %676 : vector<8x1xi1> to vector<8x1xi1>
    %678 = vector.broadcast %677 : vector<8x1xi1> to vector<8x32xi1>
    %679 = arith.select %678, %524, %673 : vector<8x32xi1>, vector<8x32xf32>
    %680 = vector.shape_cast %676 : vector<8x1xi1> to vector<8x1xi1>
    %681 = vector.broadcast %680 : vector<8x1xi1> to vector<8x32xi1>
    %682 = arith.select %681, %642, %671 : vector<8x32xi1>, vector<8x32xf32>
    %c0_316 = arith.constant 0 : index
    %c4_317 = arith.constant 4 : index
    %c0_318 = arith.constant 0 : index
    %683 = vector.load %arg18[%c0_316, %c4_317, %c0_318] : memref<8x8x32xf32, #tpu.memory_space<vmem>>, vector<8x1x32xf32>
    %684 = vector.shape_cast %683 : vector<8x1x32xf32> to vector<8x32xf32>
    %685 = vector.shape_cast %679 : vector<8x32xf32> to vector<8x1x32xf32>
    tpu.vector_store %arg18[%c0_316, %c4_317, %c0_318], %685 {strides = array<i32>} : memref<8x8x32xf32, #tpu.memory_space<vmem>>, vector<8x1x32xf32>,
    %c0_319 = arith.constant 0 : index
    %c1_320 = arith.constant 1 : index
    %c0_321 = arith.constant 0 : index
    %c4_322 = arith.constant 4 : index
    %686 = vector.load %arg4[%c0_319, %c1_320, %c0_321, %c4_322] : memref<1x3x8x8xf32, #tpu.memory_space<vmem>>, vector<1x1x8x1xf32>
    %687 = vector.shape_cast %686 : vector<1x1x8x1xf32> to vector<8x1xf32>
    %c0_323 = arith.constant 0 : index
    %c1_324 = arith.constant 1 : index
    %c0_325 = arith.constant 0 : index
    %c4_326 = arith.constant 4 : index
    %688 = vector.load %arg5[%c0_323, %c1_324, %c0_325, %c4_326] : memref<1x3x8x8xf32, #tpu.memory_space<vmem>>, vector<1x1x8x1xf32>
    %689 = vector.shape_cast %688 : vector<1x1x8x1xf32> to vector<8x1xf32>
    %cst_327 = arith.constant 1.000000e+00 : f32
    %690 = vector.broadcast %cst_327 : f32 to vector<8x1xf32>
    %691 = arith.subf %690, %689 : vector<8x1xf32>
    %692 = vector.broadcast %691 : vector<8x1xf32> to vector<8x32xf32>
    %693 = arith.mulf %580, %692 : vector<8x32xf32>
    %c0_328 = arith.constant 0 : index
    %c4_329 = arith.constant 4 : index
    %c0_330 = arith.constant 0 : index
    %694 = vector.load %arg2[%c0_328, %c4_329, %c0_330] : memref<8x8x8xf32, #tpu.memory_space<vmem>>, vector<8x1x8xf32>
    %695 = vector.shape_cast %694 : vector<8x1x8xf32> to vector<8x8xf32>
    %696 = vector.broadcast %687 : vector<8x1xf32> to vector<8x8xf32>
    %697 = arith.mulf %695, %696 : vector<8x8xf32>
    %698 = vector.broadcast %687 : vector<8x1xf32> to vector<8x32xf32>
    %699 = arith.mulf %679, %698 : vector<8x32xf32>
    %700 = vector.broadcast %689 : vector<8x1xf32> to vector<8x32xf32>
    %701 = arith.mulf %628, %700 : vector<8x32xf32>
    %702 = tpu.concatenate %697, %699, %701, %577 in 1 : vector<8x8xf32>, vector<8x32xf32>, vector<8x32xf32>, vector<8x32xf32> -> vector<8x104xf32>
    %c0_331 = arith.constant 0 : index
    %c0_332 = arith.constant 0 : index
    %703 = vector.load %arg13[%c0_331, %c0_332] : memref<104x128xf32, #tpu.memory_space<vmem>>, vector<104x128xf32>
    %cst_333 = arith.constant dense<0.000000e+00> : vector<8x128xf32>
    %704 = tpu.matmul %702, %703, %cst_333 {dimension_numbers = #tpu.dot_dimension_numbers<[1], [0], [0], [1], [0, 0, 1, 1], [], []>} : vector<8x104xf32>, vector<104x128xf32>, vector<8x128xf32> -> vector<8x128xf32>
    %c0_334 = arith.constant 0 : index
    %c0_335 = arith.constant 0 : index
    %705 = vector.load %arg16[%c0_334, %c0_335] : memref<1x128xf32, #tpu.memory_space<vmem>>, vector<1x128xf32>
    %706 = vector.broadcast %705 : vector<1x128xf32> to vector<8x128xf32>
    %707 = arith.addf %704, %706 : vector<8x128xf32>
    %708 = arith.negf %707 : vector<8x128xf32>
    %709 = math.exp %708 : vector<8x128xf32>
    %cst_336 = arith.constant 1.000000e+00 : f32
    %710 = vector.broadcast %cst_336 : f32 to vector<8x128xf32>
    %711 = arith.addf %710, %709 : vector<8x128xf32>
    %712 = arith.divf %710, %711 : vector<8x128xf32>
    %cst_337 = arith.constant 2.000000e+00 : f32
    %713 = vector.broadcast %cst_337 : f32 to vector<8x128xf32>
    %714 = arith.mulf %713, %712 : vector<8x128xf32>
    %cst_338 = arith.constant 1.000000e+00 : f32
    %715 = vector.broadcast %cst_338 : f32 to vector<8x128xf32>
    %716 = arith.subf %714, %715 : vector<8x128xf32>
    %717 = arith.select %8, %716, %712 : vector<8x128xi1>, vector<8x128xf32>
    %718 = vector.extract_strided_slice %717 {offsets = [0, 0], sizes = [8, 32], strides = [1, 1]} : vector<8x128xf32> to vector<8x32xf32>
    %719 = vector.extract_strided_slice %717 {offsets = [0, 32], sizes = [8, 32], strides = [1, 1]} : vector<8x128xf32> to vector<8x32xf32>
    %720 = vector.extract_strided_slice %717 {offsets = [0, 64], sizes = [8, 32], strides = [1, 1]} : vector<8x128xf32> to vector<8x32xf32>
    %721 = vector.extract_strided_slice %717 {offsets = [0, 96], sizes = [8, 32], strides = [1, 1]} : vector<8x128xf32> to vector<8x32xf32>
    %722 = arith.mulf %719, %693 : vector<8x32xf32>
    %723 = arith.mulf %718, %720 : vector<8x32xf32>
    %724 = arith.addf %722, %723 : vector<8x32xf32>
    %725 = math.tanh %724 : vector<8x32xf32>
    %726 = arith.mulf %721, %725 : vector<8x32xf32>
    %727 = arith.addf %687, %689 : vector<8x1xf32>
    %cst_339 = arith.constant 0.000000e+00 : f32
    %728 = vector.broadcast %cst_339 : f32 to vector<8x1xf32>
    %729 = arith.cmpf oeq, %727, %728 : vector<8x1xf32>
    %730 = vector.shape_cast %729 : vector<8x1xi1> to vector<8x1xi1>
    %731 = vector.broadcast %730 : vector<8x1xi1> to vector<8x32xi1>
    %732 = arith.select %731, %577, %726 : vector<8x32xi1>, vector<8x32xf32>
    %733 = vector.shape_cast %729 : vector<8x1xi1> to vector<8x1xi1>
    %734 = vector.broadcast %733 : vector<8x1xi1> to vector<8x32xi1>
    %735 = arith.select %734, %693, %724 : vector<8x32xi1>, vector<8x32xf32>
    %c0_340 = arith.constant 0 : index
    %c4_341 = arith.constant 4 : index
    %c0_342 = arith.constant 0 : index
    %736 = vector.load %arg19[%c0_340, %c4_341, %c0_342] : memref<8x8x32xf32, #tpu.memory_space<vmem>>, vector<8x1x32xf32>
    %737 = vector.shape_cast %736 : vector<8x1x32xf32> to vector<8x32xf32>
    %738 = vector.shape_cast %732 : vector<8x32xf32> to vector<8x1x32xf32>
    tpu.vector_store %arg19[%c0_340, %c4_341, %c0_342], %738 {strides = array<i32>} : memref<8x8x32xf32, #tpu.memory_space<vmem>>, vector<8x1x32xf32>,
    %c0_343 = arith.constant 0 : index
    %c2_344 = arith.constant 2 : index
    %c0_345 = arith.constant 0 : index
    %c4_346 = arith.constant 4 : index
    %739 = vector.load %arg4[%c0_343, %c2_344, %c0_345, %c4_346] : memref<1x3x8x8xf32, #tpu.memory_space<vmem>>, vector<1x1x8x1xf32>
    %740 = vector.shape_cast %739 : vector<1x1x8x1xf32> to vector<8x1xf32>
    %c0_347 = arith.constant 0 : index
    %c2_348 = arith.constant 2 : index
    %c0_349 = arith.constant 0 : index
    %c4_350 = arith.constant 4 : index
    %741 = vector.load %arg5[%c0_347, %c2_348, %c0_349, %c4_350] : memref<1x3x8x8xf32, #tpu.memory_space<vmem>>, vector<1x1x8x1xf32>
    %742 = vector.shape_cast %741 : vector<1x1x8x1xf32> to vector<8x1xf32>
    %cst_351 = arith.constant 1.000000e+00 : f32
    %743 = vector.broadcast %cst_351 : f32 to vector<8x1xf32>
    %744 = arith.subf %743, %742 : vector<8x1xf32>
    %745 = vector.broadcast %744 : vector<8x1xf32> to vector<8x32xf32>
    %746 = arith.mulf %631, %745 : vector<8x32xf32>
    %c0_352 = arith.constant 0 : index
    %c4_353 = arith.constant 4 : index
    %c0_354 = arith.constant 0 : index
    %747 = vector.load %arg3[%c0_352, %c4_353, %c0_354] : memref<8x8x8xf32, #tpu.memory_space<vmem>>, vector<8x1x8xf32>
    %748 = vector.shape_cast %747 : vector<8x1x8xf32> to vector<8x8xf32>
    %749 = vector.broadcast %740 : vector<8x1xf32> to vector<8x8xf32>
    %750 = arith.mulf %748, %749 : vector<8x8xf32>
    %751 = vector.broadcast %740 : vector<8x1xf32> to vector<8x32xf32>
    %752 = arith.mulf %732, %751 : vector<8x32xf32>
    %753 = tpu.concatenate %750, %752, %628 in 1 : vector<8x8xf32>, vector<8x32xf32>, vector<8x32xf32> -> vector<8x72xf32>
    %c0_355 = arith.constant 0 : index
    %c0_356 = arith.constant 0 : index
    %754 = vector.load %arg14[%c0_355, %c0_356] : memref<72x128xf32, #tpu.memory_space<vmem>>, vector<72x128xf32>
    %cst_357 = arith.constant dense<0.000000e+00> : vector<8x128xf32>
    %755 = tpu.matmul %753, %754, %cst_357 {dimension_numbers = #tpu.dot_dimension_numbers<[1], [0], [0], [1], [0, 0, 1, 1], [], []>} : vector<8x72xf32>, vector<72x128xf32>, vector<8x128xf32> -> vector<8x128xf32>
    %c0_358 = arith.constant 0 : index
    %c0_359 = arith.constant 0 : index
    %756 = vector.load %arg17[%c0_358, %c0_359] : memref<1x128xf32, #tpu.memory_space<vmem>>, vector<1x128xf32>
    %757 = vector.broadcast %756 : vector<1x128xf32> to vector<8x128xf32>
    %758 = arith.addf %755, %757 : vector<8x128xf32>
    %759 = arith.negf %758 : vector<8x128xf32>
    %760 = math.exp %759 : vector<8x128xf32>
    %cst_360 = arith.constant 1.000000e+00 : f32
    %761 = vector.broadcast %cst_360 : f32 to vector<8x128xf32>
    %762 = arith.addf %761, %760 : vector<8x128xf32>
    %763 = arith.divf %761, %762 : vector<8x128xf32>
    %cst_361 = arith.constant 2.000000e+00 : f32
    %764 = vector.broadcast %cst_361 : f32 to vector<8x128xf32>
    %765 = arith.mulf %764, %763 : vector<8x128xf32>
    %cst_362 = arith.constant 1.000000e+00 : f32
    %766 = vector.broadcast %cst_362 : f32 to vector<8x128xf32>
    %767 = arith.subf %765, %766 : vector<8x128xf32>
    %768 = arith.select %8, %767, %763 : vector<8x128xi1>, vector<8x128xf32>
    %769 = vector.extract_strided_slice %768 {offsets = [0, 0], sizes = [8, 32], strides = [1, 1]} : vector<8x128xf32> to vector<8x32xf32>
    %770 = vector.extract_strided_slice %768 {offsets = [0, 32], sizes = [8, 32], strides = [1, 1]} : vector<8x128xf32> to vector<8x32xf32>
    %771 = vector.extract_strided_slice %768 {offsets = [0, 64], sizes = [8, 32], strides = [1, 1]} : vector<8x128xf32> to vector<8x32xf32>
    %772 = vector.extract_strided_slice %768 {offsets = [0, 96], sizes = [8, 32], strides = [1, 1]} : vector<8x128xf32> to vector<8x32xf32>
    %773 = arith.mulf %770, %746 : vector<8x32xf32>
    %774 = arith.mulf %769, %771 : vector<8x32xf32>
    %775 = arith.addf %773, %774 : vector<8x32xf32>
    %776 = math.tanh %775 : vector<8x32xf32>
    %777 = arith.mulf %772, %776 : vector<8x32xf32>
    %778 = arith.addf %740, %742 : vector<8x1xf32>
    %cst_363 = arith.constant 0.000000e+00 : f32
    %779 = vector.broadcast %cst_363 : f32 to vector<8x1xf32>
    %780 = arith.cmpf oeq, %778, %779 : vector<8x1xf32>
    %781 = vector.shape_cast %780 : vector<8x1xi1> to vector<8x1xi1>
    %782 = vector.broadcast %781 : vector<8x1xi1> to vector<8x32xi1>
    %783 = arith.select %782, %628, %777 : vector<8x32xi1>, vector<8x32xf32>
    %784 = vector.shape_cast %780 : vector<8x1xi1> to vector<8x1xi1>
    %785 = vector.broadcast %784 : vector<8x1xi1> to vector<8x32xi1>
    %786 = arith.select %785, %746, %775 : vector<8x32xi1>, vector<8x32xf32>
    %c0_364 = arith.constant 0 : index
    %c4_365 = arith.constant 4 : index
    %c0_366 = arith.constant 0 : index
    %787 = vector.load %arg20[%c0_364, %c4_365, %c0_366] : memref<8x8x32xf32, #tpu.memory_space<vmem>>, vector<8x1x32xf32>
    %788 = vector.shape_cast %787 : vector<8x1x32xf32> to vector<8x32xf32>
    %789 = vector.shape_cast %783 : vector<8x32xf32> to vector<8x1x32xf32>
    tpu.vector_store %arg20[%c0_364, %c4_365, %c0_366], %789 {strides = array<i32>} : memref<8x8x32xf32, #tpu.memory_space<vmem>>, vector<8x1x32xf32>,
    %c0_367 = arith.constant 0 : index
    %c0_368 = arith.constant 0 : index
    %c0_369 = arith.constant 0 : index
    %c5 = arith.constant 5 : index
    %790 = vector.load %arg4[%c0_367, %c0_368, %c0_369, %c5] : memref<1x3x8x8xf32, #tpu.memory_space<vmem>>, vector<1x1x8x1xf32>
    %791 = vector.shape_cast %790 : vector<1x1x8x1xf32> to vector<8x1xf32>
    %c0_370 = arith.constant 0 : index
    %c0_371 = arith.constant 0 : index
    %c0_372 = arith.constant 0 : index
    %c5_373 = arith.constant 5 : index
    %792 = vector.load %arg5[%c0_370, %c0_371, %c0_372, %c5_373] : memref<1x3x8x8xf32, #tpu.memory_space<vmem>>, vector<1x1x8x1xf32>
    %793 = vector.shape_cast %792 : vector<1x1x8x1xf32> to vector<8x1xf32>
    %cst_374 = arith.constant 1.000000e+00 : f32
    %794 = vector.broadcast %cst_374 : f32 to vector<8x1xf32>
    %795 = arith.subf %794, %793 : vector<8x1xf32>
    %796 = vector.broadcast %795 : vector<8x1xf32> to vector<8x32xf32>
    %797 = arith.mulf %682, %796 : vector<8x32xf32>
    %c0_375 = arith.constant 0 : index
    %c5_376 = arith.constant 5 : index
    %c0_377 = arith.constant 0 : index
    %798 = vector.load %arg1[%c0_375, %c5_376, %c0_377] : memref<8x8x16xf32, #tpu.memory_space<vmem>>, vector<8x1x16xf32>
    %799 = vector.shape_cast %798 : vector<8x1x16xf32> to vector<8x16xf32>
    %800 = vector.broadcast %791 : vector<8x1xf32> to vector<8x16xf32>
    %801 = arith.mulf %799, %800 : vector<8x16xf32>
    %802 = vector.broadcast %793 : vector<8x1xf32> to vector<8x32xf32>
    %803 = arith.mulf %732, %802 : vector<8x32xf32>
    %804 = tpu.concatenate %801, %803, %679 in 1 : vector<8x16xf32>, vector<8x32xf32>, vector<8x32xf32> -> vector<8x80xf32>
    %c0_378 = arith.constant 0 : index
    %c0_379 = arith.constant 0 : index
    %805 = vector.load %arg12[%c0_378, %c0_379] : memref<80x128xf32, #tpu.memory_space<vmem>>, vector<80x128xf32>
    %cst_380 = arith.constant dense<0.000000e+00> : vector<8x128xf32>
    %806 = tpu.matmul %804, %805, %cst_380 {dimension_numbers = #tpu.dot_dimension_numbers<[1], [0], [0], [1], [0, 0, 1, 1], [], []>} : vector<8x80xf32>, vector<80x128xf32>, vector<8x128xf32> -> vector<8x128xf32>
    %c0_381 = arith.constant 0 : index
    %c0_382 = arith.constant 0 : index
    %807 = vector.load %arg15[%c0_381, %c0_382] : memref<1x128xf32, #tpu.memory_space<vmem>>, vector<1x128xf32>
    %808 = vector.broadcast %807 : vector<1x128xf32> to vector<8x128xf32>
    %809 = arith.addf %806, %808 : vector<8x128xf32>
    %810 = arith.negf %809 : vector<8x128xf32>
    %811 = math.exp %810 : vector<8x128xf32>
    %cst_383 = arith.constant 1.000000e+00 : f32
    %812 = vector.broadcast %cst_383 : f32 to vector<8x128xf32>
    %813 = arith.addf %812, %811 : vector<8x128xf32>
    %814 = arith.divf %812, %813 : vector<8x128xf32>
    %cst_384 = arith.constant 2.000000e+00 : f32
    %815 = vector.broadcast %cst_384 : f32 to vector<8x128xf32>
    %816 = arith.mulf %815, %814 : vector<8x128xf32>
    %cst_385 = arith.constant 1.000000e+00 : f32
    %817 = vector.broadcast %cst_385 : f32 to vector<8x128xf32>
    %818 = arith.subf %816, %817 : vector<8x128xf32>
    %819 = arith.select %8, %818, %814 : vector<8x128xi1>, vector<8x128xf32>
    %820 = vector.extract_strided_slice %819 {offsets = [0, 0], sizes = [8, 32], strides = [1, 1]} : vector<8x128xf32> to vector<8x32xf32>
    %821 = vector.extract_strided_slice %819 {offsets = [0, 32], sizes = [8, 32], strides = [1, 1]} : vector<8x128xf32> to vector<8x32xf32>
    %822 = vector.extract_strided_slice %819 {offsets = [0, 64], sizes = [8, 32], strides = [1, 1]} : vector<8x128xf32> to vector<8x32xf32>
    %823 = vector.extract_strided_slice %819 {offsets = [0, 96], sizes = [8, 32], strides = [1, 1]} : vector<8x128xf32> to vector<8x32xf32>
    %824 = arith.mulf %821, %797 : vector<8x32xf32>
    %825 = arith.mulf %820, %822 : vector<8x32xf32>
    %826 = arith.addf %824, %825 : vector<8x32xf32>
    %827 = math.tanh %826 : vector<8x32xf32>
    %828 = arith.mulf %823, %827 : vector<8x32xf32>
    %829 = arith.addf %791, %793 : vector<8x1xf32>
    %cst_386 = arith.constant 0.000000e+00 : f32
    %830 = vector.broadcast %cst_386 : f32 to vector<8x1xf32>
    %831 = arith.cmpf oeq, %829, %830 : vector<8x1xf32>
    %832 = vector.shape_cast %831 : vector<8x1xi1> to vector<8x1xi1>
    %833 = vector.broadcast %832 : vector<8x1xi1> to vector<8x32xi1>
    %834 = arith.select %833, %679, %828 : vector<8x32xi1>, vector<8x32xf32>
    %835 = vector.shape_cast %831 : vector<8x1xi1> to vector<8x1xi1>
    %836 = vector.broadcast %835 : vector<8x1xi1> to vector<8x32xi1>
    %837 = arith.select %836, %797, %826 : vector<8x32xi1>, vector<8x32xf32>
    %c0_387 = arith.constant 0 : index
    %c5_388 = arith.constant 5 : index
    %c0_389 = arith.constant 0 : index
    %838 = vector.load %arg18[%c0_387, %c5_388, %c0_389] : memref<8x8x32xf32, #tpu.memory_space<vmem>>, vector<8x1x32xf32>
    %839 = vector.shape_cast %838 : vector<8x1x32xf32> to vector<8x32xf32>
    %840 = vector.shape_cast %834 : vector<8x32xf32> to vector<8x1x32xf32>
    tpu.vector_store %arg18[%c0_387, %c5_388, %c0_389], %840 {strides = array<i32>} : memref<8x8x32xf32, #tpu.memory_space<vmem>>, vector<8x1x32xf32>,
    %c0_390 = arith.constant 0 : index
    %c1_391 = arith.constant 1 : index
    %c0_392 = arith.constant 0 : index
    %c5_393 = arith.constant 5 : index
    %841 = vector.load %arg4[%c0_390, %c1_391, %c0_392, %c5_393] : memref<1x3x8x8xf32, #tpu.memory_space<vmem>>, vector<1x1x8x1xf32>
    %842 = vector.shape_cast %841 : vector<1x1x8x1xf32> to vector<8x1xf32>
    %c0_394 = arith.constant 0 : index
    %c1_395 = arith.constant 1 : index
    %c0_396 = arith.constant 0 : index
    %c5_397 = arith.constant 5 : index
    %843 = vector.load %arg5[%c0_394, %c1_395, %c0_396, %c5_397] : memref<1x3x8x8xf32, #tpu.memory_space<vmem>>, vector<1x1x8x1xf32>
    %844 = vector.shape_cast %843 : vector<1x1x8x1xf32> to vector<8x1xf32>
    %cst_398 = arith.constant 1.000000e+00 : f32
    %845 = vector.broadcast %cst_398 : f32 to vector<8x1xf32>
    %846 = arith.subf %845, %844 : vector<8x1xf32>
    %847 = vector.broadcast %846 : vector<8x1xf32> to vector<8x32xf32>
    %848 = arith.mulf %735, %847 : vector<8x32xf32>
    %c0_399 = arith.constant 0 : index
    %c5_400 = arith.constant 5 : index
    %c0_401 = arith.constant 0 : index
    %849 = vector.load %arg2[%c0_399, %c5_400, %c0_401] : memref<8x8x8xf32, #tpu.memory_space<vmem>>, vector<8x1x8xf32>
    %850 = vector.shape_cast %849 : vector<8x1x8xf32> to vector<8x8xf32>
    %851 = vector.broadcast %842 : vector<8x1xf32> to vector<8x8xf32>
    %852 = arith.mulf %850, %851 : vector<8x8xf32>
    %853 = vector.broadcast %842 : vector<8x1xf32> to vector<8x32xf32>
    %854 = arith.mulf %834, %853 : vector<8x32xf32>
    %855 = vector.broadcast %844 : vector<8x1xf32> to vector<8x32xf32>
    %856 = arith.mulf %783, %855 : vector<8x32xf32>
    %857 = tpu.concatenate %852, %854, %856, %732 in 1 : vector<8x8xf32>, vector<8x32xf32>, vector<8x32xf32>, vector<8x32xf32> -> vector<8x104xf32>
    %c0_402 = arith.constant 0 : index
    %c0_403 = arith.constant 0 : index
    %858 = vector.load %arg13[%c0_402, %c0_403] : memref<104x128xf32, #tpu.memory_space<vmem>>, vector<104x128xf32>
    %cst_404 = arith.constant dense<0.000000e+00> : vector<8x128xf32>
    %859 = tpu.matmul %857, %858, %cst_404 {dimension_numbers = #tpu.dot_dimension_numbers<[1], [0], [0], [1], [0, 0, 1, 1], [], []>} : vector<8x104xf32>, vector<104x128xf32>, vector<8x128xf32> -> vector<8x128xf32>
    %c0_405 = arith.constant 0 : index
    %c0_406 = arith.constant 0 : index
    %860 = vector.load %arg16[%c0_405, %c0_406] : memref<1x128xf32, #tpu.memory_space<vmem>>, vector<1x128xf32>
    %861 = vector.broadcast %860 : vector<1x128xf32> to vector<8x128xf32>
    %862 = arith.addf %859, %861 : vector<8x128xf32>
    %863 = arith.negf %862 : vector<8x128xf32>
    %864 = math.exp %863 : vector<8x128xf32>
    %cst_407 = arith.constant 1.000000e+00 : f32
    %865 = vector.broadcast %cst_407 : f32 to vector<8x128xf32>
    %866 = arith.addf %865, %864 : vector<8x128xf32>
    %867 = arith.divf %865, %866 : vector<8x128xf32>
    %cst_408 = arith.constant 2.000000e+00 : f32
    %868 = vector.broadcast %cst_408 : f32 to vector<8x128xf32>
    %869 = arith.mulf %868, %867 : vector<8x128xf32>
    %cst_409 = arith.constant 1.000000e+00 : f32
    %870 = vector.broadcast %cst_409 : f32 to vector<8x128xf32>
    %871 = arith.subf %869, %870 : vector<8x128xf32>
    %872 = arith.select %8, %871, %867 : vector<8x128xi1>, vector<8x128xf32>
    %873 = vector.extract_strided_slice %872 {offsets = [0, 0], sizes = [8, 32], strides = [1, 1]} : vector<8x128xf32> to vector<8x32xf32>
    %874 = vector.extract_strided_slice %872 {offsets = [0, 32], sizes = [8, 32], strides = [1, 1]} : vector<8x128xf32> to vector<8x32xf32>
    %875 = vector.extract_strided_slice %872 {offsets = [0, 64], sizes = [8, 32], strides = [1, 1]} : vector<8x128xf32> to vector<8x32xf32>
    %876 = vector.extract_strided_slice %872 {offsets = [0, 96], sizes = [8, 32], strides = [1, 1]} : vector<8x128xf32> to vector<8x32xf32>
    %877 = arith.mulf %874, %848 : vector<8x32xf32>
    %878 = arith.mulf %873, %875 : vector<8x32xf32>
    %879 = arith.addf %877, %878 : vector<8x32xf32>
    %880 = math.tanh %879 : vector<8x32xf32>
    %881 = arith.mulf %876, %880 : vector<8x32xf32>
    %882 = arith.addf %842, %844 : vector<8x1xf32>
    %cst_410 = arith.constant 0.000000e+00 : f32
    %883 = vector.broadcast %cst_410 : f32 to vector<8x1xf32>
    %884 = arith.cmpf oeq, %882, %883 : vector<8x1xf32>
    %885 = vector.shape_cast %884 : vector<8x1xi1> to vector<8x1xi1>
    %886 = vector.broadcast %885 : vector<8x1xi1> to vector<8x32xi1>
    %887 = arith.select %886, %732, %881 : vector<8x32xi1>, vector<8x32xf32>
    %888 = vector.shape_cast %884 : vector<8x1xi1> to vector<8x1xi1>
    %889 = vector.broadcast %888 : vector<8x1xi1> to vector<8x32xi1>
    %890 = arith.select %889, %848, %879 : vector<8x32xi1>, vector<8x32xf32>
    %c0_411 = arith.constant 0 : index
    %c5_412 = arith.constant 5 : index
    %c0_413 = arith.constant 0 : index
    %891 = vector.load %arg19[%c0_411, %c5_412, %c0_413] : memref<8x8x32xf32, #tpu.memory_space<vmem>>, vector<8x1x32xf32>
    %892 = vector.shape_cast %891 : vector<8x1x32xf32> to vector<8x32xf32>
    %893 = vector.shape_cast %887 : vector<8x32xf32> to vector<8x1x32xf32>
    tpu.vector_store %arg19[%c0_411, %c5_412, %c0_413], %893 {strides = array<i32>} : memref<8x8x32xf32, #tpu.memory_space<vmem>>, vector<8x1x32xf32>,
    %c0_414 = arith.constant 0 : index
    %c2_415 = arith.constant 2 : index
    %c0_416 = arith.constant 0 : index
    %c5_417 = arith.constant 5 : index
    %894 = vector.load %arg4[%c0_414, %c2_415, %c0_416, %c5_417] : memref<1x3x8x8xf32, #tpu.memory_space<vmem>>, vector<1x1x8x1xf32>
    %895 = vector.shape_cast %894 : vector<1x1x8x1xf32> to vector<8x1xf32>
    %c0_418 = arith.constant 0 : index
    %c2_419 = arith.constant 2 : index
    %c0_420 = arith.constant 0 : index
    %c5_421 = arith.constant 5 : index
    %896 = vector.load %arg5[%c0_418, %c2_419, %c0_420, %c5_421] : memref<1x3x8x8xf32, #tpu.memory_space<vmem>>, vector<1x1x8x1xf32>
    %897 = vector.shape_cast %896 : vector<1x1x8x1xf32> to vector<8x1xf32>
    %cst_422 = arith.constant 1.000000e+00 : f32
    %898 = vector.broadcast %cst_422 : f32 to vector<8x1xf32>
    %899 = arith.subf %898, %897 : vector<8x1xf32>
    %900 = vector.broadcast %899 : vector<8x1xf32> to vector<8x32xf32>
    %901 = arith.mulf %786, %900 : vector<8x32xf32>
    %c0_423 = arith.constant 0 : index
    %c5_424 = arith.constant 5 : index
    %c0_425 = arith.constant 0 : index
    %902 = vector.load %arg3[%c0_423, %c5_424, %c0_425] : memref<8x8x8xf32, #tpu.memory_space<vmem>>, vector<8x1x8xf32>
    %903 = vector.shape_cast %902 : vector<8x1x8xf32> to vector<8x8xf32>
    %904 = vector.broadcast %895 : vector<8x1xf32> to vector<8x8xf32>
    %905 = arith.mulf %903, %904 : vector<8x8xf32>
    %906 = vector.broadcast %895 : vector<8x1xf32> to vector<8x32xf32>
    %907 = arith.mulf %887, %906 : vector<8x32xf32>
    %908 = tpu.concatenate %905, %907, %783 in 1 : vector<8x8xf32>, vector<8x32xf32>, vector<8x32xf32> -> vector<8x72xf32>
    %c0_426 = arith.constant 0 : index
    %c0_427 = arith.constant 0 : index
    %909 = vector.load %arg14[%c0_426, %c0_427] : memref<72x128xf32, #tpu.memory_space<vmem>>, vector<72x128xf32>
    %cst_428 = arith.constant dense<0.000000e+00> : vector<8x128xf32>
    %910 = tpu.matmul %908, %909, %cst_428 {dimension_numbers = #tpu.dot_dimension_numbers<[1], [0], [0], [1], [0, 0, 1, 1], [], []>} : vector<8x72xf32>, vector<72x128xf32>, vector<8x128xf32> -> vector<8x128xf32>
    %c0_429 = arith.constant 0 : index
    %c0_430 = arith.constant 0 : index
    %911 = vector.load %arg17[%c0_429, %c0_430] : memref<1x128xf32, #tpu.memory_space<vmem>>, vector<1x128xf32>
    %912 = vector.broadcast %911 : vector<1x128xf32> to vector<8x128xf32>
    %913 = arith.addf %910, %912 : vector<8x128xf32>
    %914 = arith.negf %913 : vector<8x128xf32>
    %915 = math.exp %914 : vector<8x128xf32>
    %cst_431 = arith.constant 1.000000e+00 : f32
    %916 = vector.broadcast %cst_431 : f32 to vector<8x128xf32>
    %917 = arith.addf %916, %915 : vector<8x128xf32>
    %918 = arith.divf %916, %917 : vector<8x128xf32>
    %cst_432 = arith.constant 2.000000e+00 : f32
    %919 = vector.broadcast %cst_432 : f32 to vector<8x128xf32>
    %920 = arith.mulf %919, %918 : vector<8x128xf32>
    %cst_433 = arith.constant 1.000000e+00 : f32
    %921 = vector.broadcast %cst_433 : f32 to vector<8x128xf32>
    %922 = arith.subf %920, %921 : vector<8x128xf32>
    %923 = arith.select %8, %922, %918 : vector<8x128xi1>, vector<8x128xf32>
    %924 = vector.extract_strided_slice %923 {offsets = [0, 0], sizes = [8, 32], strides = [1, 1]} : vector<8x128xf32> to vector<8x32xf32>
    %925 = vector.extract_strided_slice %923 {offsets = [0, 32], sizes = [8, 32], strides = [1, 1]} : vector<8x128xf32> to vector<8x32xf32>
    %926 = vector.extract_strided_slice %923 {offsets = [0, 64], sizes = [8, 32], strides = [1, 1]} : vector<8x128xf32> to vector<8x32xf32>
    %927 = vector.extract_strided_slice %923 {offsets = [0, 96], sizes = [8, 32], strides = [1, 1]} : vector<8x128xf32> to vector<8x32xf32>
    %928 = arith.mulf %925, %901 : vector<8x32xf32>
    %929 = arith.mulf %924, %926 : vector<8x32xf32>
    %930 = arith.addf %928, %929 : vector<8x32xf32>
    %931 = math.tanh %930 : vector<8x32xf32>
    %932 = arith.mulf %927, %931 : vector<8x32xf32>
    %933 = arith.addf %895, %897 : vector<8x1xf32>
    %cst_434 = arith.constant 0.000000e+00 : f32
    %934 = vector.broadcast %cst_434 : f32 to vector<8x1xf32>
    %935 = arith.cmpf oeq, %933, %934 : vector<8x1xf32>
    %936 = vector.shape_cast %935 : vector<8x1xi1> to vector<8x1xi1>
    %937 = vector.broadcast %936 : vector<8x1xi1> to vector<8x32xi1>
    %938 = arith.select %937, %783, %932 : vector<8x32xi1>, vector<8x32xf32>
    %939 = vector.shape_cast %935 : vector<8x1xi1> to vector<8x1xi1>
    %940 = vector.broadcast %939 : vector<8x1xi1> to vector<8x32xi1>
    %941 = arith.select %940, %901, %930 : vector<8x32xi1>, vector<8x32xf32>
    %c0_435 = arith.constant 0 : index
    %c5_436 = arith.constant 5 : index
    %c0_437 = arith.constant 0 : index
    %942 = vector.load %arg20[%c0_435, %c5_436, %c0_437] : memref<8x8x32xf32, #tpu.memory_space<vmem>>, vector<8x1x32xf32>
    %943 = vector.shape_cast %942 : vector<8x1x32xf32> to vector<8x32xf32>
    %944 = vector.shape_cast %938 : vector<8x32xf32> to vector<8x1x32xf32>
    tpu.vector_store %arg20[%c0_435, %c5_436, %c0_437], %944 {strides = array<i32>} : memref<8x8x32xf32, #tpu.memory_space<vmem>>, vector<8x1x32xf32>,
    %c0_438 = arith.constant 0 : index
    %c0_439 = arith.constant 0 : index
    %c0_440 = arith.constant 0 : index
    %c6 = arith.constant 6 : index
    %945 = vector.load %arg4[%c0_438, %c0_439, %c0_440, %c6] : memref<1x3x8x8xf32, #tpu.memory_space<vmem>>, vector<1x1x8x1xf32>
    %946 = vector.shape_cast %945 : vector<1x1x8x1xf32> to vector<8x1xf32>
    %c0_441 = arith.constant 0 : index
    %c0_442 = arith.constant 0 : index
    %c0_443 = arith.constant 0 : index
    %c6_444 = arith.constant 6 : index
    %947 = vector.load %arg5[%c0_441, %c0_442, %c0_443, %c6_444] : memref<1x3x8x8xf32, #tpu.memory_space<vmem>>, vector<1x1x8x1xf32>
    %948 = vector.shape_cast %947 : vector<1x1x8x1xf32> to vector<8x1xf32>
    %cst_445 = arith.constant 1.000000e+00 : f32
    %949 = vector.broadcast %cst_445 : f32 to vector<8x1xf32>
    %950 = arith.subf %949, %948 : vector<8x1xf32>
    %951 = vector.broadcast %950 : vector<8x1xf32> to vector<8x32xf32>
    %952 = arith.mulf %837, %951 : vector<8x32xf32>
    %c0_446 = arith.constant 0 : index
    %c6_447 = arith.constant 6 : index
    %c0_448 = arith.constant 0 : index
    %953 = vector.load %arg1[%c0_446, %c6_447, %c0_448] : memref<8x8x16xf32, #tpu.memory_space<vmem>>, vector<8x1x16xf32>
    %954 = vector.shape_cast %953 : vector<8x1x16xf32> to vector<8x16xf32>
    %955 = vector.broadcast %946 : vector<8x1xf32> to vector<8x16xf32>
    %956 = arith.mulf %954, %955 : vector<8x16xf32>
    %957 = vector.broadcast %948 : vector<8x1xf32> to vector<8x32xf32>
    %958 = arith.mulf %887, %957 : vector<8x32xf32>
    %959 = tpu.concatenate %956, %958, %834 in 1 : vector<8x16xf32>, vector<8x32xf32>, vector<8x32xf32> -> vector<8x80xf32>
    %c0_449 = arith.constant 0 : index
    %c0_450 = arith.constant 0 : index
    %960 = vector.load %arg12[%c0_449, %c0_450] : memref<80x128xf32, #tpu.memory_space<vmem>>, vector<80x128xf32>
    %cst_451 = arith.constant dense<0.000000e+00> : vector<8x128xf32>
    %961 = tpu.matmul %959, %960, %cst_451 {dimension_numbers = #tpu.dot_dimension_numbers<[1], [0], [0], [1], [0, 0, 1, 1], [], []>} : vector<8x80xf32>, vector<80x128xf32>, vector<8x128xf32> -> vector<8x128xf32>
    %c0_452 = arith.constant 0 : index
    %c0_453 = arith.constant 0 : index
    %962 = vector.load %arg15[%c0_452, %c0_453] : memref<1x128xf32, #tpu.memory_space<vmem>>, vector<1x128xf32>
    %963 = vector.broadcast %962 : vector<1x128xf32> to vector<8x128xf32>
    %964 = arith.addf %961, %963 : vector<8x128xf32>
    %965 = arith.negf %964 : vector<8x128xf32>
    %966 = math.exp %965 : vector<8x128xf32>
    %cst_454 = arith.constant 1.000000e+00 : f32
    %967 = vector.broadcast %cst_454 : f32 to vector<8x128xf32>
    %968 = arith.addf %967, %966 : vector<8x128xf32>
    %969 = arith.divf %967, %968 : vector<8x128xf32>
    %cst_455 = arith.constant 2.000000e+00 : f32
    %970 = vector.broadcast %cst_455 : f32 to vector<8x128xf32>
    %971 = arith.mulf %970, %969 : vector<8x128xf32>
    %cst_456 = arith.constant 1.000000e+00 : f32
    %972 = vector.broadcast %cst_456 : f32 to vector<8x128xf32>
    %973 = arith.subf %971, %972 : vector<8x128xf32>
    %974 = arith.select %8, %973, %969 : vector<8x128xi1>, vector<8x128xf32>
    %975 = vector.extract_strided_slice %974 {offsets = [0, 0], sizes = [8, 32], strides = [1, 1]} : vector<8x128xf32> to vector<8x32xf32>
    %976 = vector.extract_strided_slice %974 {offsets = [0, 32], sizes = [8, 32], strides = [1, 1]} : vector<8x128xf32> to vector<8x32xf32>
    %977 = vector.extract_strided_slice %974 {offsets = [0, 64], sizes = [8, 32], strides = [1, 1]} : vector<8x128xf32> to vector<8x32xf32>
    %978 = vector.extract_strided_slice %974 {offsets = [0, 96], sizes = [8, 32], strides = [1, 1]} : vector<8x128xf32> to vector<8x32xf32>
    %979 = arith.mulf %976, %952 : vector<8x32xf32>
    %980 = arith.mulf %975, %977 : vector<8x32xf32>
    %981 = arith.addf %979, %980 : vector<8x32xf32>
    %982 = math.tanh %981 : vector<8x32xf32>
    %983 = arith.mulf %978, %982 : vector<8x32xf32>
    %984 = arith.addf %946, %948 : vector<8x1xf32>
    %cst_457 = arith.constant 0.000000e+00 : f32
    %985 = vector.broadcast %cst_457 : f32 to vector<8x1xf32>
    %986 = arith.cmpf oeq, %984, %985 : vector<8x1xf32>
    %987 = vector.shape_cast %986 : vector<8x1xi1> to vector<8x1xi1>
    %988 = vector.broadcast %987 : vector<8x1xi1> to vector<8x32xi1>
    %989 = arith.select %988, %834, %983 : vector<8x32xi1>, vector<8x32xf32>
    %990 = vector.shape_cast %986 : vector<8x1xi1> to vector<8x1xi1>
    %991 = vector.broadcast %990 : vector<8x1xi1> to vector<8x32xi1>
    %992 = arith.select %991, %952, %981 : vector<8x32xi1>, vector<8x32xf32>
    %c0_458 = arith.constant 0 : index
    %c6_459 = arith.constant 6 : index
    %c0_460 = arith.constant 0 : index
    %993 = vector.load %arg18[%c0_458, %c6_459, %c0_460] : memref<8x8x32xf32, #tpu.memory_space<vmem>>, vector<8x1x32xf32>
    %994 = vector.shape_cast %993 : vector<8x1x32xf32> to vector<8x32xf32>
    %995 = vector.shape_cast %989 : vector<8x32xf32> to vector<8x1x32xf32>
    tpu.vector_store %arg18[%c0_458, %c6_459, %c0_460], %995 {strides = array<i32>} : memref<8x8x32xf32, #tpu.memory_space<vmem>>, vector<8x1x32xf32>,
    %c0_461 = arith.constant 0 : index
    %c1_462 = arith.constant 1 : index
    %c0_463 = arith.constant 0 : index
    %c6_464 = arith.constant 6 : index
    %996 = vector.load %arg4[%c0_461, %c1_462, %c0_463, %c6_464] : memref<1x3x8x8xf32, #tpu.memory_space<vmem>>, vector<1x1x8x1xf32>
    %997 = vector.shape_cast %996 : vector<1x1x8x1xf32> to vector<8x1xf32>
    %c0_465 = arith.constant 0 : index
    %c1_466 = arith.constant 1 : index
    %c0_467 = arith.constant 0 : index
    %c6_468 = arith.constant 6 : index
    %998 = vector.load %arg5[%c0_465, %c1_466, %c0_467, %c6_468] : memref<1x3x8x8xf32, #tpu.memory_space<vmem>>, vector<1x1x8x1xf32>
    %999 = vector.shape_cast %998 : vector<1x1x8x1xf32> to vector<8x1xf32>
    %cst_469 = arith.constant 1.000000e+00 : f32
    %1000 = vector.broadcast %cst_469 : f32 to vector<8x1xf32>
    %1001 = arith.subf %1000, %999 : vector<8x1xf32>
    %1002 = vector.broadcast %1001 : vector<8x1xf32> to vector<8x32xf32>
    %1003 = arith.mulf %890, %1002 : vector<8x32xf32>
    %c0_470 = arith.constant 0 : index
    %c6_471 = arith.constant 6 : index
    %c0_472 = arith.constant 0 : index
    %1004 = vector.load %arg2[%c0_470, %c6_471, %c0_472] : memref<8x8x8xf32, #tpu.memory_space<vmem>>, vector<8x1x8xf32>
    %1005 = vector.shape_cast %1004 : vector<8x1x8xf32> to vector<8x8xf32>
    %1006 = vector.broadcast %997 : vector<8x1xf32> to vector<8x8xf32>
    %1007 = arith.mulf %1005, %1006 : vector<8x8xf32>
    %1008 = vector.broadcast %997 : vector<8x1xf32> to vector<8x32xf32>
    %1009 = arith.mulf %989, %1008 : vector<8x32xf32>
    %1010 = vector.broadcast %999 : vector<8x1xf32> to vector<8x32xf32>
    %1011 = arith.mulf %938, %1010 : vector<8x32xf32>
    %1012 = tpu.concatenate %1007, %1009, %1011, %887 in 1 : vector<8x8xf32>, vector<8x32xf32>, vector<8x32xf32>, vector<8x32xf32> -> vector<8x104xf32>
    %c0_473 = arith.constant 0 : index
    %c0_474 = arith.constant 0 : index
    %1013 = vector.load %arg13[%c0_473, %c0_474] : memref<104x128xf32, #tpu.memory_space<vmem>>, vector<104x128xf32>
    %cst_475 = arith.constant dense<0.000000e+00> : vector<8x128xf32>
    %1014 = tpu.matmul %1012, %1013, %cst_475 {dimension_numbers = #tpu.dot_dimension_numbers<[1], [0], [0], [1], [0, 0, 1, 1], [], []>} : vector<8x104xf32>, vector<104x128xf32>, vector<8x128xf32> -> vector<8x128xf32>
    %c0_476 = arith.constant 0 : index
    %c0_477 = arith.constant 0 : index
    %1015 = vector.load %arg16[%c0_476, %c0_477] : memref<1x128xf32, #tpu.memory_space<vmem>>, vector<1x128xf32>
    %1016 = vector.broadcast %1015 : vector<1x128xf32> to vector<8x128xf32>
    %1017 = arith.addf %1014, %1016 : vector<8x128xf32>
    %1018 = arith.negf %1017 : vector<8x128xf32>
    %1019 = math.exp %1018 : vector<8x128xf32>
    %cst_478 = arith.constant 1.000000e+00 : f32
    %1020 = vector.broadcast %cst_478 : f32 to vector<8x128xf32>
    %1021 = arith.addf %1020, %1019 : vector<8x128xf32>
    %1022 = arith.divf %1020, %1021 : vector<8x128xf32>
    %cst_479 = arith.constant 2.000000e+00 : f32
    %1023 = vector.broadcast %cst_479 : f32 to vector<8x128xf32>
    %1024 = arith.mulf %1023, %1022 : vector<8x128xf32>
    %cst_480 = arith.constant 1.000000e+00 : f32
    %1025 = vector.broadcast %cst_480 : f32 to vector<8x128xf32>
    %1026 = arith.subf %1024, %1025 : vector<8x128xf32>
    %1027 = arith.select %8, %1026, %1022 : vector<8x128xi1>, vector<8x128xf32>
    %1028 = vector.extract_strided_slice %1027 {offsets = [0, 0], sizes = [8, 32], strides = [1, 1]} : vector<8x128xf32> to vector<8x32xf32>
    %1029 = vector.extract_strided_slice %1027 {offsets = [0, 32], sizes = [8, 32], strides = [1, 1]} : vector<8x128xf32> to vector<8x32xf32>
    %1030 = vector.extract_strided_slice %1027 {offsets = [0, 64], sizes = [8, 32], strides = [1, 1]} : vector<8x128xf32> to vector<8x32xf32>
    %1031 = vector.extract_strided_slice %1027 {offsets = [0, 96], sizes = [8, 32], strides = [1, 1]} : vector<8x128xf32> to vector<8x32xf32>
    %1032 = arith.mulf %1029, %1003 : vector<8x32xf32>
    %1033 = arith.mulf %1028, %1030 : vector<8x32xf32>
    %1034 = arith.addf %1032, %1033 : vector<8x32xf32>
    %1035 = math.tanh %1034 : vector<8x32xf32>
    %1036 = arith.mulf %1031, %1035 : vector<8x32xf32>
    %1037 = arith.addf %997, %999 : vector<8x1xf32>
    %cst_481 = arith.constant 0.000000e+00 : f32
    %1038 = vector.broadcast %cst_481 : f32 to vector<8x1xf32>
    %1039 = arith.cmpf oeq, %1037, %1038 : vector<8x1xf32>
    %1040 = vector.shape_cast %1039 : vector<8x1xi1> to vector<8x1xi1>
    %1041 = vector.broadcast %1040 : vector<8x1xi1> to vector<8x32xi1>
    %1042 = arith.select %1041, %887, %1036 : vector<8x32xi1>, vector<8x32xf32>
    %1043 = vector.shape_cast %1039 : vector<8x1xi1> to vector<8x1xi1>
    %1044 = vector.broadcast %1043 : vector<8x1xi1> to vector<8x32xi1>
    %1045 = arith.select %1044, %1003, %1034 : vector<8x32xi1>, vector<8x32xf32>
    %c0_482 = arith.constant 0 : index
    %c6_483 = arith.constant 6 : index
    %c0_484 = arith.constant 0 : index
    %1046 = vector.load %arg19[%c0_482, %c6_483, %c0_484] : memref<8x8x32xf32, #tpu.memory_space<vmem>>, vector<8x1x32xf32>
    %1047 = vector.shape_cast %1046 : vector<8x1x32xf32> to vector<8x32xf32>
    %1048 = vector.shape_cast %1042 : vector<8x32xf32> to vector<8x1x32xf32>
    tpu.vector_store %arg19[%c0_482, %c6_483, %c0_484], %1048 {strides = array<i32>} : memref<8x8x32xf32, #tpu.memory_space<vmem>>, vector<8x1x32xf32>,
    %c0_485 = arith.constant 0 : index
    %c2_486 = arith.constant 2 : index
    %c0_487 = arith.constant 0 : index
    %c6_488 = arith.constant 6 : index
    %1049 = vector.load %arg4[%c0_485, %c2_486, %c0_487, %c6_488] : memref<1x3x8x8xf32, #tpu.memory_space<vmem>>, vector<1x1x8x1xf32>
    %1050 = vector.shape_cast %1049 : vector<1x1x8x1xf32> to vector<8x1xf32>
    %c0_489 = arith.constant 0 : index
    %c2_490 = arith.constant 2 : index
    %c0_491 = arith.constant 0 : index
    %c6_492 = arith.constant 6 : index
    %1051 = vector.load %arg5[%c0_489, %c2_490, %c0_491, %c6_492] : memref<1x3x8x8xf32, #tpu.memory_space<vmem>>, vector<1x1x8x1xf32>
    %1052 = vector.shape_cast %1051 : vector<1x1x8x1xf32> to vector<8x1xf32>
    %cst_493 = arith.constant 1.000000e+00 : f32
    %1053 = vector.broadcast %cst_493 : f32 to vector<8x1xf32>
    %1054 = arith.subf %1053, %1052 : vector<8x1xf32>
    %1055 = vector.broadcast %1054 : vector<8x1xf32> to vector<8x32xf32>
    %1056 = arith.mulf %941, %1055 : vector<8x32xf32>
    %c0_494 = arith.constant 0 : index
    %c6_495 = arith.constant 6 : index
    %c0_496 = arith.constant 0 : index
    %1057 = vector.load %arg3[%c0_494, %c6_495, %c0_496] : memref<8x8x8xf32, #tpu.memory_space<vmem>>, vector<8x1x8xf32>
    %1058 = vector.shape_cast %1057 : vector<8x1x8xf32> to vector<8x8xf32>
    %1059 = vector.broadcast %1050 : vector<8x1xf32> to vector<8x8xf32>
    %1060 = arith.mulf %1058, %1059 : vector<8x8xf32>
    %1061 = vector.broadcast %1050 : vector<8x1xf32> to vector<8x32xf32>
    %1062 = arith.mulf %1042, %1061 : vector<8x32xf32>
    %1063 = tpu.concatenate %1060, %1062, %938 in 1 : vector<8x8xf32>, vector<8x32xf32>, vector<8x32xf32> -> vector<8x72xf32>
    %c0_497 = arith.constant 0 : index
    %c0_498 = arith.constant 0 : index
    %1064 = vector.load %arg14[%c0_497, %c0_498] : memref<72x128xf32, #tpu.memory_space<vmem>>, vector<72x128xf32>
    %cst_499 = arith.constant dense<0.000000e+00> : vector<8x128xf32>
    %1065 = tpu.matmul %1063, %1064, %cst_499 {dimension_numbers = #tpu.dot_dimension_numbers<[1], [0], [0], [1], [0, 0, 1, 1], [], []>} : vector<8x72xf32>, vector<72x128xf32>, vector<8x128xf32> -> vector<8x128xf32>
    %c0_500 = arith.constant 0 : index
    %c0_501 = arith.constant 0 : index
    %1066 = vector.load %arg17[%c0_500, %c0_501] : memref<1x128xf32, #tpu.memory_space<vmem>>, vector<1x128xf32>
    %1067 = vector.broadcast %1066 : vector<1x128xf32> to vector<8x128xf32>
    %1068 = arith.addf %1065, %1067 : vector<8x128xf32>
    %1069 = arith.negf %1068 : vector<8x128xf32>
    %1070 = math.exp %1069 : vector<8x128xf32>
    %cst_502 = arith.constant 1.000000e+00 : f32
    %1071 = vector.broadcast %cst_502 : f32 to vector<8x128xf32>
    %1072 = arith.addf %1071, %1070 : vector<8x128xf32>
    %1073 = arith.divf %1071, %1072 : vector<8x128xf32>
    %cst_503 = arith.constant 2.000000e+00 : f32
    %1074 = vector.broadcast %cst_503 : f32 to vector<8x128xf32>
    %1075 = arith.mulf %1074, %1073 : vector<8x128xf32>
    %cst_504 = arith.constant 1.000000e+00 : f32
    %1076 = vector.broadcast %cst_504 : f32 to vector<8x128xf32>
    %1077 = arith.subf %1075, %1076 : vector<8x128xf32>
    %1078 = arith.select %8, %1077, %1073 : vector<8x128xi1>, vector<8x128xf32>
    %1079 = vector.extract_strided_slice %1078 {offsets = [0, 0], sizes = [8, 32], strides = [1, 1]} : vector<8x128xf32> to vector<8x32xf32>
    %1080 = vector.extract_strided_slice %1078 {offsets = [0, 32], sizes = [8, 32], strides = [1, 1]} : vector<8x128xf32> to vector<8x32xf32>
    %1081 = vector.extract_strided_slice %1078 {offsets = [0, 64], sizes = [8, 32], strides = [1, 1]} : vector<8x128xf32> to vector<8x32xf32>
    %1082 = vector.extract_strided_slice %1078 {offsets = [0, 96], sizes = [8, 32], strides = [1, 1]} : vector<8x128xf32> to vector<8x32xf32>
    %1083 = arith.mulf %1080, %1056 : vector<8x32xf32>
    %1084 = arith.mulf %1079, %1081 : vector<8x32xf32>
    %1085 = arith.addf %1083, %1084 : vector<8x32xf32>
    %1086 = math.tanh %1085 : vector<8x32xf32>
    %1087 = arith.mulf %1082, %1086 : vector<8x32xf32>
    %1088 = arith.addf %1050, %1052 : vector<8x1xf32>
    %cst_505 = arith.constant 0.000000e+00 : f32
    %1089 = vector.broadcast %cst_505 : f32 to vector<8x1xf32>
    %1090 = arith.cmpf oeq, %1088, %1089 : vector<8x1xf32>
    %1091 = vector.shape_cast %1090 : vector<8x1xi1> to vector<8x1xi1>
    %1092 = vector.broadcast %1091 : vector<8x1xi1> to vector<8x32xi1>
    %1093 = arith.select %1092, %938, %1087 : vector<8x32xi1>, vector<8x32xf32>
    %1094 = vector.shape_cast %1090 : vector<8x1xi1> to vector<8x1xi1>
    %1095 = vector.broadcast %1094 : vector<8x1xi1> to vector<8x32xi1>
    %1096 = arith.select %1095, %1056, %1085 : vector<8x32xi1>, vector<8x32xf32>
    %c0_506 = arith.constant 0 : index
    %c6_507 = arith.constant 6 : index
    %c0_508 = arith.constant 0 : index
    %1097 = vector.load %arg20[%c0_506, %c6_507, %c0_508] : memref<8x8x32xf32, #tpu.memory_space<vmem>>, vector<8x1x32xf32>
    %1098 = vector.shape_cast %1097 : vector<8x1x32xf32> to vector<8x32xf32>
    %1099 = vector.shape_cast %1093 : vector<8x32xf32> to vector<8x1x32xf32>
    tpu.vector_store %arg20[%c0_506, %c6_507, %c0_508], %1099 {strides = array<i32>} : memref<8x8x32xf32, #tpu.memory_space<vmem>>, vector<8x1x32xf32>,
    %c0_509 = arith.constant 0 : index
    %c0_510 = arith.constant 0 : index
    %c0_511 = arith.constant 0 : index
    %c7 = arith.constant 7 : index
    %1100 = vector.load %arg4[%c0_509, %c0_510, %c0_511, %c7] : memref<1x3x8x8xf32, #tpu.memory_space<vmem>>, vector<1x1x8x1xf32>
    %1101 = vector.shape_cast %1100 : vector<1x1x8x1xf32> to vector<8x1xf32>
    %c0_512 = arith.constant 0 : index
    %c0_513 = arith.constant 0 : index
    %c0_514 = arith.constant 0 : index
    %c7_515 = arith.constant 7 : index
    %1102 = vector.load %arg5[%c0_512, %c0_513, %c0_514, %c7_515] : memref<1x3x8x8xf32, #tpu.memory_space<vmem>>, vector<1x1x8x1xf32>
    %1103 = vector.shape_cast %1102 : vector<1x1x8x1xf32> to vector<8x1xf32>
    %cst_516 = arith.constant 1.000000e+00 : f32
    %1104 = vector.broadcast %cst_516 : f32 to vector<8x1xf32>
    %1105 = arith.subf %1104, %1103 : vector<8x1xf32>
    %1106 = vector.broadcast %1105 : vector<8x1xf32> to vector<8x32xf32>
    %1107 = arith.mulf %992, %1106 : vector<8x32xf32>
    %c0_517 = arith.constant 0 : index
    %c7_518 = arith.constant 7 : index
    %c0_519 = arith.constant 0 : index
    %1108 = vector.load %arg1[%c0_517, %c7_518, %c0_519] : memref<8x8x16xf32, #tpu.memory_space<vmem>>, vector<8x1x16xf32>
    %1109 = vector.shape_cast %1108 : vector<8x1x16xf32> to vector<8x16xf32>
    %1110 = vector.broadcast %1101 : vector<8x1xf32> to vector<8x16xf32>
    %1111 = arith.mulf %1109, %1110 : vector<8x16xf32>
    %1112 = vector.broadcast %1103 : vector<8x1xf32> to vector<8x32xf32>
    %1113 = arith.mulf %1042, %1112 : vector<8x32xf32>
    %1114 = tpu.concatenate %1111, %1113, %989 in 1 : vector<8x16xf32>, vector<8x32xf32>, vector<8x32xf32> -> vector<8x80xf32>
    %c0_520 = arith.constant 0 : index
    %c0_521 = arith.constant 0 : index
    %1115 = vector.load %arg12[%c0_520, %c0_521] : memref<80x128xf32, #tpu.memory_space<vmem>>, vector<80x128xf32>
    %cst_522 = arith.constant dense<0.000000e+00> : vector<8x128xf32>
    %1116 = tpu.matmul %1114, %1115, %cst_522 {dimension_numbers = #tpu.dot_dimension_numbers<[1], [0], [0], [1], [0, 0, 1, 1], [], []>} : vector<8x80xf32>, vector<80x128xf32>, vector<8x128xf32> -> vector<8x128xf32>
    %c0_523 = arith.constant 0 : index
    %c0_524 = arith.constant 0 : index
    %1117 = vector.load %arg15[%c0_523, %c0_524] : memref<1x128xf32, #tpu.memory_space<vmem>>, vector<1x128xf32>
    %1118 = vector.broadcast %1117 : vector<1x128xf32> to vector<8x128xf32>
    %1119 = arith.addf %1116, %1118 : vector<8x128xf32>
    %1120 = arith.negf %1119 : vector<8x128xf32>
    %1121 = math.exp %1120 : vector<8x128xf32>
    %cst_525 = arith.constant 1.000000e+00 : f32
    %1122 = vector.broadcast %cst_525 : f32 to vector<8x128xf32>
    %1123 = arith.addf %1122, %1121 : vector<8x128xf32>
    %1124 = arith.divf %1122, %1123 : vector<8x128xf32>
    %cst_526 = arith.constant 2.000000e+00 : f32
    %1125 = vector.broadcast %cst_526 : f32 to vector<8x128xf32>
    %1126 = arith.mulf %1125, %1124 : vector<8x128xf32>
    %cst_527 = arith.constant 1.000000e+00 : f32
    %1127 = vector.broadcast %cst_527 : f32 to vector<8x128xf32>
    %1128 = arith.subf %1126, %1127 : vector<8x128xf32>
    %1129 = arith.select %8, %1128, %1124 : vector<8x128xi1>, vector<8x128xf32>
    %1130 = vector.extract_strided_slice %1129 {offsets = [0, 0], sizes = [8, 32], strides = [1, 1]} : vector<8x128xf32> to vector<8x32xf32>
    %1131 = vector.extract_strided_slice %1129 {offsets = [0, 32], sizes = [8, 32], strides = [1, 1]} : vector<8x128xf32> to vector<8x32xf32>
    %1132 = vector.extract_strided_slice %1129 {offsets = [0, 64], sizes = [8, 32], strides = [1, 1]} : vector<8x128xf32> to vector<8x32xf32>
    %1133 = vector.extract_strided_slice %1129 {offsets = [0, 96], sizes = [8, 32], strides = [1, 1]} : vector<8x128xf32> to vector<8x32xf32>
    %1134 = arith.mulf %1131, %1107 : vector<8x32xf32>
    %1135 = arith.mulf %1130, %1132 : vector<8x32xf32>
    %1136 = arith.addf %1134, %1135 : vector<8x32xf32>
    %1137 = math.tanh %1136 : vector<8x32xf32>
    %1138 = arith.mulf %1133, %1137 : vector<8x32xf32>
    %1139 = arith.addf %1101, %1103 : vector<8x1xf32>
    %cst_528 = arith.constant 0.000000e+00 : f32
    %1140 = vector.broadcast %cst_528 : f32 to vector<8x1xf32>
    %1141 = arith.cmpf oeq, %1139, %1140 : vector<8x1xf32>
    %1142 = vector.shape_cast %1141 : vector<8x1xi1> to vector<8x1xi1>
    %1143 = vector.broadcast %1142 : vector<8x1xi1> to vector<8x32xi1>
    %1144 = arith.select %1143, %989, %1138 : vector<8x32xi1>, vector<8x32xf32>
    %1145 = vector.shape_cast %1141 : vector<8x1xi1> to vector<8x1xi1>
    %1146 = vector.broadcast %1145 : vector<8x1xi1> to vector<8x32xi1>
    %1147 = arith.select %1146, %1107, %1136 : vector<8x32xi1>, vector<8x32xf32>
    %c0_529 = arith.constant 0 : index
    %c7_530 = arith.constant 7 : index
    %c0_531 = arith.constant 0 : index
    %1148 = vector.load %arg18[%c0_529, %c7_530, %c0_531] : memref<8x8x32xf32, #tpu.memory_space<vmem>>, vector<8x1x32xf32>
    %1149 = vector.shape_cast %1148 : vector<8x1x32xf32> to vector<8x32xf32>
    %1150 = vector.shape_cast %1144 : vector<8x32xf32> to vector<8x1x32xf32>
    tpu.vector_store %arg18[%c0_529, %c7_530, %c0_531], %1150 {strides = array<i32>} : memref<8x8x32xf32, #tpu.memory_space<vmem>>, vector<8x1x32xf32>,
    %c0_532 = arith.constant 0 : index
    %c1_533 = arith.constant 1 : index
    %c0_534 = arith.constant 0 : index
    %c7_535 = arith.constant 7 : index
    %1151 = vector.load %arg4[%c0_532, %c1_533, %c0_534, %c7_535] : memref<1x3x8x8xf32, #tpu.memory_space<vmem>>, vector<1x1x8x1xf32>
    %1152 = vector.shape_cast %1151 : vector<1x1x8x1xf32> to vector<8x1xf32>
    %c0_536 = arith.constant 0 : index
    %c1_537 = arith.constant 1 : index
    %c0_538 = arith.constant 0 : index
    %c7_539 = arith.constant 7 : index
    %1153 = vector.load %arg5[%c0_536, %c1_537, %c0_538, %c7_539] : memref<1x3x8x8xf32, #tpu.memory_space<vmem>>, vector<1x1x8x1xf32>
    %1154 = vector.shape_cast %1153 : vector<1x1x8x1xf32> to vector<8x1xf32>
    %cst_540 = arith.constant 1.000000e+00 : f32
    %1155 = vector.broadcast %cst_540 : f32 to vector<8x1xf32>
    %1156 = arith.subf %1155, %1154 : vector<8x1xf32>
    %1157 = vector.broadcast %1156 : vector<8x1xf32> to vector<8x32xf32>
    %1158 = arith.mulf %1045, %1157 : vector<8x32xf32>
    %c0_541 = arith.constant 0 : index
    %c7_542 = arith.constant 7 : index
    %c0_543 = arith.constant 0 : index
    %1159 = vector.load %arg2[%c0_541, %c7_542, %c0_543] : memref<8x8x8xf32, #tpu.memory_space<vmem>>, vector<8x1x8xf32>
    %1160 = vector.shape_cast %1159 : vector<8x1x8xf32> to vector<8x8xf32>
    %1161 = vector.broadcast %1152 : vector<8x1xf32> to vector<8x8xf32>
    %1162 = arith.mulf %1160, %1161 : vector<8x8xf32>
    %1163 = vector.broadcast %1152 : vector<8x1xf32> to vector<8x32xf32>
    %1164 = arith.mulf %1144, %1163 : vector<8x32xf32>
    %1165 = vector.broadcast %1154 : vector<8x1xf32> to vector<8x32xf32>
    %1166 = arith.mulf %1093, %1165 : vector<8x32xf32>
    %1167 = tpu.concatenate %1162, %1164, %1166, %1042 in 1 : vector<8x8xf32>, vector<8x32xf32>, vector<8x32xf32>, vector<8x32xf32> -> vector<8x104xf32>
    %c0_544 = arith.constant 0 : index
    %c0_545 = arith.constant 0 : index
    %1168 = vector.load %arg13[%c0_544, %c0_545] : memref<104x128xf32, #tpu.memory_space<vmem>>, vector<104x128xf32>
    %cst_546 = arith.constant dense<0.000000e+00> : vector<8x128xf32>
    %1169 = tpu.matmul %1167, %1168, %cst_546 {dimension_numbers = #tpu.dot_dimension_numbers<[1], [0], [0], [1], [0, 0, 1, 1], [], []>} : vector<8x104xf32>, vector<104x128xf32>, vector<8x128xf32> -> vector<8x128xf32>
    %c0_547 = arith.constant 0 : index
    %c0_548 = arith.constant 0 : index
    %1170 = vector.load %arg16[%c0_547, %c0_548] : memref<1x128xf32, #tpu.memory_space<vmem>>, vector<1x128xf32>
    %1171 = vector.broadcast %1170 : vector<1x128xf32> to vector<8x128xf32>
    %1172 = arith.addf %1169, %1171 : vector<8x128xf32>
    %1173 = arith.negf %1172 : vector<8x128xf32>
    %1174 = math.exp %1173 : vector<8x128xf32>
    %cst_549 = arith.constant 1.000000e+00 : f32
    %1175 = vector.broadcast %cst_549 : f32 to vector<8x128xf32>
    %1176 = arith.addf %1175, %1174 : vector<8x128xf32>
    %1177 = arith.divf %1175, %1176 : vector<8x128xf32>
    %cst_550 = arith.constant 2.000000e+00 : f32
    %1178 = vector.broadcast %cst_550 : f32 to vector<8x128xf32>
    %1179 = arith.mulf %1178, %1177 : vector<8x128xf32>
    %cst_551 = arith.constant 1.000000e+00 : f32
    %1180 = vector.broadcast %cst_551 : f32 to vector<8x128xf32>
    %1181 = arith.subf %1179, %1180 : vector<8x128xf32>
    %1182 = arith.select %8, %1181, %1177 : vector<8x128xi1>, vector<8x128xf32>
    %1183 = vector.extract_strided_slice %1182 {offsets = [0, 0], sizes = [8, 32], strides = [1, 1]} : vector<8x128xf32> to vector<8x32xf32>
    %1184 = vector.extract_strided_slice %1182 {offsets = [0, 32], sizes = [8, 32], strides = [1, 1]} : vector<8x128xf32> to vector<8x32xf32>
    %1185 = vector.extract_strided_slice %1182 {offsets = [0, 64], sizes = [8, 32], strides = [1, 1]} : vector<8x128xf32> to vector<8x32xf32>
    %1186 = vector.extract_strided_slice %1182 {offsets = [0, 96], sizes = [8, 32], strides = [1, 1]} : vector<8x128xf32> to vector<8x32xf32>
    %1187 = arith.mulf %1184, %1158 : vector<8x32xf32>
    %1188 = arith.mulf %1183, %1185 : vector<8x32xf32>
    %1189 = arith.addf %1187, %1188 : vector<8x32xf32>
    %1190 = math.tanh %1189 : vector<8x32xf32>
    %1191 = arith.mulf %1186, %1190 : vector<8x32xf32>
    %1192 = arith.addf %1152, %1154 : vector<8x1xf32>
    %cst_552 = arith.constant 0.000000e+00 : f32
    %1193 = vector.broadcast %cst_552 : f32 to vector<8x1xf32>
    %1194 = arith.cmpf oeq, %1192, %1193 : vector<8x1xf32>
    %1195 = vector.shape_cast %1194 : vector<8x1xi1> to vector<8x1xi1>
    %1196 = vector.broadcast %1195 : vector<8x1xi1> to vector<8x32xi1>
    %1197 = arith.select %1196, %1042, %1191 : vector<8x32xi1>, vector<8x32xf32>
    %1198 = vector.shape_cast %1194 : vector<8x1xi1> to vector<8x1xi1>
    %1199 = vector.broadcast %1198 : vector<8x1xi1> to vector<8x32xi1>
    %1200 = arith.select %1199, %1158, %1189 : vector<8x32xi1>, vector<8x32xf32>
    %c0_553 = arith.constant 0 : index
    %c7_554 = arith.constant 7 : index
    %c0_555 = arith.constant 0 : index
    %1201 = vector.load %arg19[%c0_553, %c7_554, %c0_555] : memref<8x8x32xf32, #tpu.memory_space<vmem>>, vector<8x1x32xf32>
    %1202 = vector.shape_cast %1201 : vector<8x1x32xf32> to vector<8x32xf32>
    %1203 = vector.shape_cast %1197 : vector<8x32xf32> to vector<8x1x32xf32>
    tpu.vector_store %arg19[%c0_553, %c7_554, %c0_555], %1203 {strides = array<i32>} : memref<8x8x32xf32, #tpu.memory_space<vmem>>, vector<8x1x32xf32>,
    %c0_556 = arith.constant 0 : index
    %c2_557 = arith.constant 2 : index
    %c0_558 = arith.constant 0 : index
    %c7_559 = arith.constant 7 : index
    %1204 = vector.load %arg4[%c0_556, %c2_557, %c0_558, %c7_559] : memref<1x3x8x8xf32, #tpu.memory_space<vmem>>, vector<1x1x8x1xf32>
    %1205 = vector.shape_cast %1204 : vector<1x1x8x1xf32> to vector<8x1xf32>
    %c0_560 = arith.constant 0 : index
    %c2_561 = arith.constant 2 : index
    %c0_562 = arith.constant 0 : index
    %c7_563 = arith.constant 7 : index
    %1206 = vector.load %arg5[%c0_560, %c2_561, %c0_562, %c7_563] : memref<1x3x8x8xf32, #tpu.memory_space<vmem>>, vector<1x1x8x1xf32>
    %1207 = vector.shape_cast %1206 : vector<1x1x8x1xf32> to vector<8x1xf32>
    %cst_564 = arith.constant 1.000000e+00 : f32
    %1208 = vector.broadcast %cst_564 : f32 to vector<8x1xf32>
    %1209 = arith.subf %1208, %1207 : vector<8x1xf32>
    %1210 = vector.broadcast %1209 : vector<8x1xf32> to vector<8x32xf32>
    %1211 = arith.mulf %1096, %1210 : vector<8x32xf32>
    %c0_565 = arith.constant 0 : index
    %c7_566 = arith.constant 7 : index
    %c0_567 = arith.constant 0 : index
    %1212 = vector.load %arg3[%c0_565, %c7_566, %c0_567] : memref<8x8x8xf32, #tpu.memory_space<vmem>>, vector<8x1x8xf32>
    %1213 = vector.shape_cast %1212 : vector<8x1x8xf32> to vector<8x8xf32>
    %1214 = vector.broadcast %1205 : vector<8x1xf32> to vector<8x8xf32>
    %1215 = arith.mulf %1213, %1214 : vector<8x8xf32>
    %1216 = vector.broadcast %1205 : vector<8x1xf32> to vector<8x32xf32>
    %1217 = arith.mulf %1197, %1216 : vector<8x32xf32>
    %1218 = tpu.concatenate %1215, %1217, %1093 in 1 : vector<8x8xf32>, vector<8x32xf32>, vector<8x32xf32> -> vector<8x72xf32>
    %c0_568 = arith.constant 0 : index
    %c0_569 = arith.constant 0 : index
    %1219 = vector.load %arg14[%c0_568, %c0_569] : memref<72x128xf32, #tpu.memory_space<vmem>>, vector<72x128xf32>
    %cst_570 = arith.constant dense<0.000000e+00> : vector<8x128xf32>
    %1220 = tpu.matmul %1218, %1219, %cst_570 {dimension_numbers = #tpu.dot_dimension_numbers<[1], [0], [0], [1], [0, 0, 1, 1], [], []>} : vector<8x72xf32>, vector<72x128xf32>, vector<8x128xf32> -> vector<8x128xf32>
    %c0_571 = arith.constant 0 : index
    %c0_572 = arith.constant 0 : index
    %1221 = vector.load %arg17[%c0_571, %c0_572] : memref<1x128xf32, #tpu.memory_space<vmem>>, vector<1x128xf32>
    %1222 = vector.broadcast %1221 : vector<1x128xf32> to vector<8x128xf32>
    %1223 = arith.addf %1220, %1222 : vector<8x128xf32>
    %1224 = arith.negf %1223 : vector<8x128xf32>
    %1225 = math.exp %1224 : vector<8x128xf32>
    %cst_573 = arith.constant 1.000000e+00 : f32
    %1226 = vector.broadcast %cst_573 : f32 to vector<8x128xf32>
    %1227 = arith.addf %1226, %1225 : vector<8x128xf32>
    %1228 = arith.divf %1226, %1227 : vector<8x128xf32>
    %cst_574 = arith.constant 2.000000e+00 : f32
    %1229 = vector.broadcast %cst_574 : f32 to vector<8x128xf32>
    %1230 = arith.mulf %1229, %1228 : vector<8x128xf32>
    %cst_575 = arith.constant 1.000000e+00 : f32
    %1231 = vector.broadcast %cst_575 : f32 to vector<8x128xf32>
    %1232 = arith.subf %1230, %1231 : vector<8x128xf32>
    %1233 = arith.select %8, %1232, %1228 : vector<8x128xi1>, vector<8x128xf32>
    %1234 = vector.extract_strided_slice %1233 {offsets = [0, 0], sizes = [8, 32], strides = [1, 1]} : vector<8x128xf32> to vector<8x32xf32>
    %1235 = vector.extract_strided_slice %1233 {offsets = [0, 32], sizes = [8, 32], strides = [1, 1]} : vector<8x128xf32> to vector<8x32xf32>
    %1236 = vector.extract_strided_slice %1233 {offsets = [0, 64], sizes = [8, 32], strides = [1, 1]} : vector<8x128xf32> to vector<8x32xf32>
    %1237 = vector.extract_strided_slice %1233 {offsets = [0, 96], sizes = [8, 32], strides = [1, 1]} : vector<8x128xf32> to vector<8x32xf32>
    %1238 = arith.mulf %1235, %1211 : vector<8x32xf32>
    %1239 = arith.mulf %1234, %1236 : vector<8x32xf32>
    %1240 = arith.addf %1238, %1239 : vector<8x32xf32>
    %1241 = math.tanh %1240 : vector<8x32xf32>
    %1242 = arith.mulf %1237, %1241 : vector<8x32xf32>
    %1243 = arith.addf %1205, %1207 : vector<8x1xf32>
    %cst_576 = arith.constant 0.000000e+00 : f32
    %1244 = vector.broadcast %cst_576 : f32 to vector<8x1xf32>
    %1245 = arith.cmpf oeq, %1243, %1244 : vector<8x1xf32>
    %1246 = vector.shape_cast %1245 : vector<8x1xi1> to vector<8x1xi1>
    %1247 = vector.broadcast %1246 : vector<8x1xi1> to vector<8x32xi1>
    %1248 = arith.select %1247, %1093, %1242 : vector<8x32xi1>, vector<8x32xf32>
    %1249 = vector.shape_cast %1245 : vector<8x1xi1> to vector<8x1xi1>
    %1250 = vector.broadcast %1249 : vector<8x1xi1> to vector<8x32xi1>
    %1251 = arith.select %1250, %1211, %1240 : vector<8x32xi1>, vector<8x32xf32>
    %c0_577 = arith.constant 0 : index
    %c7_578 = arith.constant 7 : index
    %c0_579 = arith.constant 0 : index
    %1252 = vector.load %arg20[%c0_577, %c7_578, %c0_579] : memref<8x8x32xf32, #tpu.memory_space<vmem>>, vector<8x1x32xf32>
    %1253 = vector.shape_cast %1252 : vector<8x1x32xf32> to vector<8x32xf32>
    %1254 = vector.shape_cast %1248 : vector<8x32xf32> to vector<8x1x32xf32>
    tpu.vector_store %arg20[%c0_577, %c7_578, %c0_579], %1254 {strides = array<i32>} : memref<8x8x32xf32, #tpu.memory_space<vmem>>, vector<8x1x32xf32>,
    %c0_580 = arith.constant 0 : index
    %c0_581 = arith.constant 0 : index
    %1255 = vector.load %arg24[%c0_580, %c0_581] : memref<8x32xf32, #tpu.memory_space<vmem>>, vector<8x32xf32>
    tpu.vector_store %arg24[%c0_580, %c0_581], %1144 {strides = array<i32>} : memref<8x32xf32, #tpu.memory_space<vmem>>, vector<8x32xf32>,
    %c0_582 = arith.constant 0 : index
    %c0_583 = arith.constant 0 : index
    %1256 = vector.load %arg27[%c0_582, %c0_583] : memref<8x32xf32, #tpu.memory_space<vmem>>, vector<8x32xf32>
    tpu.vector_store %arg27[%c0_582, %c0_583], %1147 {strides = array<i32>} : memref<8x32xf32, #tpu.memory_space<vmem>>, vector<8x32xf32>,
    %c0_584 = arith.constant 0 : index
    %c0_585 = arith.constant 0 : index
    %1257 = vector.load %arg25[%c0_584, %c0_585] : memref<8x32xf32, #tpu.memory_space<vmem>>, vector<8x32xf32>
    tpu.vector_store %arg25[%c0_584, %c0_585], %1197 {strides = array<i32>} : memref<8x32xf32, #tpu.memory_space<vmem>>, vector<8x32xf32>,
    %c0_586 = arith.constant 0 : index
    %c0_587 = arith.constant 0 : index
    %1258 = vector.load %arg28[%c0_586, %c0_587] : memref<8x32xf32, #tpu.memory_space<vmem>>, vector<8x32xf32>
    tpu.vector_store %arg28[%c0_586, %c0_587], %1200 {strides = array<i32>} : memref<8x32xf32, #tpu.memory_space<vmem>>, vector<8x32xf32>,
    %c0_588 = arith.constant 0 : index
    %c0_589 = arith.constant 0 : index
    %1259 = vector.load %arg26[%c0_588, %c0_589] : memref<8x32xf32, #tpu.memory_space<vmem>>, vector<8x32xf32>
    tpu.vector_store %arg26[%c0_588, %c0_589], %1248 {strides = array<i32>} : memref<8x32xf32, #tpu.memory_space<vmem>>, vector<8x32xf32>,
    %c0_590 = arith.constant 0 : index
    %c0_591 = arith.constant 0 : index
    %1260 = vector.load %arg29[%c0_590, %c0_591] : memref<8x32xf32, #tpu.memory_space<vmem>>, vector<8x32xf32>
    tpu.vector_store %arg29[%c0_590, %c0_591], %1251 {strides = array<i32>} : memref<8x32xf32, #tpu.memory_space<vmem>>, vector<8x32xf32>,
    %c0_i32_592 = arith.constant 0 : i32
    %1261 = arith.cmpi eq, %arg0, %c0_i32_592 : i32
    %1262 = arith.extui %1261 : i1 to i32
    %c0_i32_593 = arith.constant 0 : i32
    %1263 = arith.cmpi ne, %1262, %c0_i32_593 : i32
    scf.if %1263 {
      %c0_594 = arith.constant 0 : index
      %c0_595 = arith.constant 0 : index
      %1264 = vector.load %arg21[%c0_594, %c0_595] : memref<8x32xf32, #tpu.memory_space<vmem>>, vector<8x32xf32>
      tpu.vector_store %arg21[%c0_594, %c0_595], %1147 {strides = array<i32>} : memref<8x32xf32, #tpu.memory_space<vmem>>, vector<8x32xf32>,
      %c0_596 = arith.constant 0 : index
      %c0_597 = arith.constant 0 : index
      %1265 = vector.load %arg22[%c0_596, %c0_597] : memref<8x32xf32, #tpu.memory_space<vmem>>, vector<8x32xf32>
      tpu.vector_store %arg22[%c0_596, %c0_597], %1200 {strides = array<i32>} : memref<8x32xf32, #tpu.memory_space<vmem>>, vector<8x32xf32>,
      %c0_598 = arith.constant 0 : index
      %c0_599 = arith.constant 0 : index
      %1266 = vector.load %arg23[%c0_598, %c0_599] : memref<8x32xf32, #tpu.memory_space<vmem>>, vector<8x32xf32>
      tpu.vector_store %arg23[%c0_598, %c0_599], %1251 {strides = array<i32>} : memref<8x32xf32, #tpu.memory_space<vmem>>, vector<8x32xf32>,
    } else {
    }
    return
  }
  func.func @transform_0(%arg0: i32) -> (i32, i32, i32) {
    %c0_i32 = arith.constant 0 : i32
    %c0_i32_0 = arith.constant 0 : i32
    %c0_i32_1 = arith.constant 0 : i32
    return %c0_i32, %arg0, %c0_i32_0 : i32, i32, i32
  }
  func.func @transform_1(%arg0: i32) -> (i32, i32, i32) {
    %c0_i32 = arith.constant 0 : i32
    %c0_i32_0 = arith.constant 0 : i32
    %c0_i32_1 = arith.constant 0 : i32
    return %c0_i32, %arg0, %c0_i32_0 : i32, i32, i32
  }
  func.func @transform_2(%arg0: i32) -> (i32, i32, i32) {
    %c0_i32 = arith.constant 0 : i32
    %c0_i32_0 = arith.constant 0 : i32
    %c0_i32_1 = arith.constant 0 : i32
    return %c0_i32, %arg0, %c0_i32_0 : i32, i32, i32
  }
  func.func @transform_3(%arg0: i32) -> (i32, i32, i32, i32) {
    %c0_i32 = arith.constant 0 : i32
    %c0_i32_0 = arith.constant 0 : i32
    %c0_i32_1 = arith.constant 0 : i32
    %c0_i32_2 = arith.constant 0 : i32
    return %arg0, %c0_i32, %c0_i32_0, %c0_i32_1 : i32, i32, i32, i32
  }
  func.func @transform_4(%arg0: i32) -> (i32, i32, i32, i32) {
    %c0_i32 = arith.constant 0 : i32
    %c0_i32_0 = arith.constant 0 : i32
    %c0_i32_1 = arith.constant 0 : i32
    %c0_i32_2 = arith.constant 0 : i32
    return %arg0, %c0_i32, %c0_i32_0, %c0_i32_1 : i32, i32, i32, i32
  }
  func.func @transform_5(%arg0: i32) -> (i32, i32) {
    %c0_i32 = arith.constant 0 : i32
    %c0_i32_0 = arith.constant 0 : i32
    %c0_i32_1 = arith.constant 0 : i32
    return %c0_i32, %c0_i32_0 : i32, i32
  }
  func.func @transform_6(%arg0: i32) -> (i32, i32) {
    %c0_i32 = arith.constant 0 : i32
    %c0_i32_0 = arith.constant 0 : i32
    %c0_i32_1 = arith.constant 0 : i32
    return %c0_i32, %c0_i32_0 : i32, i32
  }
  func.func @transform_7(%arg0: i32) -> (i32, i32) {
    %c0_i32 = arith.constant 0 : i32
    %c0_i32_0 = arith.constant 0 : i32
    %c0_i32_1 = arith.constant 0 : i32
    return %c0_i32, %c0_i32_0 : i32, i32
  }
  func.func @transform_8(%arg0: i32) -> (i32, i32) {
    %c0_i32 = arith.constant 0 : i32
    %c0_i32_0 = arith.constant 0 : i32
    %c0_i32_1 = arith.constant 0 : i32
    return %c0_i32, %c0_i32_0 : i32, i32
  }
  func.func @transform_9(%arg0: i32) -> (i32, i32) {
    %c0_i32 = arith.constant 0 : i32
    %c0_i32_0 = arith.constant 0 : i32
    %c0_i32_1 = arith.constant 0 : i32
    return %c0_i32, %c0_i32_0 : i32, i32
  }
  func.func @transform_10(%arg0: i32) -> (i32, i32) {
    %c0_i32 = arith.constant 0 : i32
    %c0_i32_0 = arith.constant 0 : i32
    %c0_i32_1 = arith.constant 0 : i32
    return %c0_i32, %c0_i32_0 : i32, i32
  }
  func.func @transform_11(%arg0: i32) -> (i32, i32) {
    %c0_i32 = arith.constant 0 : i32
    %c0_i32_0 = arith.constant 0 : i32
    %c0_i32_1 = arith.constant 0 : i32
    return %c0_i32, %c0_i32_0 : i32, i32
  }
  func.func @transform_12(%arg0: i32) -> (i32, i32) {
    %c0_i32 = arith.constant 0 : i32
    %c0_i32_0 = arith.constant 0 : i32
    %c0_i32_1 = arith.constant 0 : i32
    return %c0_i32, %c0_i32_0 : i32, i32
  }
  func.func @transform_13(%arg0: i32) -> (i32, i32) {
    %c0_i32 = arith.constant 0 : i32
    %c0_i32_0 = arith.constant 0 : i32
    %c0_i32_1 = arith.constant 0 : i32
    return %c0_i32, %c0_i32_0 : i32, i32
  }
  func.func @transform_14(%arg0: i32) -> (i32, i32) {
    %c0_i32 = arith.constant 0 : i32
    %c0_i32_0 = arith.constant 0 : i32
    %c0_i32_1 = arith.constant 0 : i32
    return %c0_i32, %c0_i32_0 : i32, i32
  }
  func.func @transform_15(%arg0: i32) -> (i32, i32) {
    %c0_i32 = arith.constant 0 : i32
    %c0_i32_0 = arith.constant 0 : i32
    %c0_i32_1 = arith.constant 0 : i32
    return %c0_i32, %c0_i32_0 : i32, i32
  }
  func.func @transform_16(%arg0: i32) -> (i32, i32) {
    %c0_i32 = arith.constant 0 : i32
    %c0_i32_0 = arith.constant 0 : i32
    %c0_i32_1 = arith.constant 0 : i32
    return %c0_i32, %c0_i32_0 : i32, i32
  }
  func.func @transform_17(%arg0: i32) -> (i32, i32, i32) {
    %c0_i32 = arith.constant 0 : i32
    %c0_i32_0 = arith.constant 0 : i32
    %c0_i32_1 = arith.constant 0 : i32
    return %c0_i32, %arg0, %c0_i32_0 : i32, i32, i32
  }
  func.func @transform_18(%arg0: i32) -> (i32, i32, i32) {
    %c0_i32 = arith.constant 0 : i32
    %c0_i32_0 = arith.constant 0 : i32
    %c0_i32_1 = arith.constant 0 : i32
    return %c0_i32, %arg0, %c0_i32_0 : i32, i32, i32
  }
  func.func @transform_19(%arg0: i32) -> (i32, i32, i32) {
    %c0_i32 = arith.constant 0 : i32
    %c0_i32_0 = arith.constant 0 : i32
    %c0_i32_1 = arith.constant 0 : i32
    return %c0_i32, %arg0, %c0_i32_0 : i32, i32, i32
  }
  func.func @transform_20(%arg0: i32) -> (i32, i32) {
    %c0_i32 = arith.constant 0 : i32
    %c0_i32_0 = arith.constant 0 : i32
    %c0_i32_1 = arith.constant 0 : i32
    return %c0_i32, %c0_i32_0 : i32, i32
  }
  func.func @transform_21(%arg0: i32) -> (i32, i32) {
    %c0_i32 = arith.constant 0 : i32
    %c0_i32_0 = arith.constant 0 : i32
    %c0_i32_1 = arith.constant 0 : i32
    return %c0_i32, %c0_i32_0 : i32, i32
  }
  func.func @transform_22(%arg0: i32) -> (i32, i32) {
    %c0_i32 = arith.constant 0 : i32
    %c0_i32_0 = arith.constant 0 : i32
    %c0_i32_1 = arith.constant 0 : i32
    return %c0_i32, %c0_i32_0 : i32, i32
  }
}

</mosaic_0001>

<bundles_post_ra>
// kernel: _hmlstm_fused.1
= control target key start
LH: loop header
LB: loop body
LE: loop exit
PB: predicated region body
PF: predicated region fallthrough
CT: control target
= control target key end

     0   :  { %vm9123_vm0 = vcmask 261120   ;;  %v5360_v0 = vmov 0   ;;  %vm149_vm2 = vcmask 1041409   ;;  %vm152_vm3 = vcmask 1042434   ;;  %s9107_s26 = smov 40   ;;  %s9173_s28 = smov 48   ;;  %s9077_s4 = inlined_call_operand.vmem [shape: f32[1,3,8,8], index: 4, kind: input, shape index: {}]   ;;  %s9078_s8 = inlined_call_operand.vmem [shape: f32[8,32], index: 8, kind: input, shape index: {}]   ;;  %s9079_s3 = inlined_call_operand.vmem [shape: f32[1,3,8,8], index: 3, kind: input, shape index: {}]   ;;  %s9080_s6 = inlined_call_operand.vmem [shape: f32[8,32], index: 6, kind: input, shape index: {}]   ;;  %s9081_s5 = inlined_call_operand.vmem [shape: f32[8,32], index: 5, kind: input, shape index: {}]   ;;  %s9082_s14 = inlined_call_operand.vmem [shape: f32[1,128], index: 14, kind: input, shape index: {}]   ;;  %s9083_s7 = inlined_call_operand.vmem [shape: f32[8,32], index: 7, kind: input, shape index: {}]   ;;  %s9084_s11 = inlined_call_operand.vmem [shape: f32[80,128], index: 11, kind: input, shape index: {}]   ;;  %s9085_s0 = inlined_call_operand.vmem [shape: f32[8,8,16], index: 0, kind: input, shape index: {}]   ;;  %s9086_s12 = inlined_call_operand.vmem [shape: f32[104,128], index: 12, kind: input, shape index: {}]   ;;  %s9087_s17 = inlined_call_operand.vmem [shape: f32[8,8,32], index: 17, kind: output, shape index: {0}]   ;;  %s9088_s9 = inlined_call_operand.vmem [shape: f32[8,32], index: 9, kind: input, shape index: {}]   ;;  %s9089_s1 = inlined_call_operand.vmem [shape: f32[8,8,8], index: 1, kind: input, shape index: {}]   ;;  %s9090_s15 = inlined_call_operand.vmem [shape: f32[1,128], index: 15, kind: input, shape index: {}]   ;;  %s9091_s18 = inlined_call_operand.vmem [shape: f32[8,8,32], index: 18, kind: output, shape index: {1}]   ;;  %s9092_s13 = inlined_call_operand.vmem [shape: f32[72,128], index: 13, kind: input, shape index: {}]   ;;  %s9093_s2 = inlined_call_operand.vmem [shape: f32[8,8,8], index: 2, kind: input, shape index: {}]   ;;  %s9094_s10 = inlined_call_operand.vmem [shape: f32[8,32], index: 10, kind: input, shape index: {}]   ;;  %s9095_s16 = inlined_call_operand.vmem [shape: f32[1,128], index: 16, kind: input, shape index: {}]   ;;  %s9096_s19 = inlined_call_operand.vmem [shape: f32[8,8,32], index: 19, kind: output, shape index: {2}]   ;;  %s9097_s21 = inlined_call_operand.vmem [shape: f32[8,32], index: 21, kind: output, shape index: {4}]   ;;  %s9098_s20 = inlined_call_operand.vmem [shape: f32[8,32], index: 20, kind: output, shape index: {3}]   ;;  %s9099_s22 = inlined_call_operand.vmem [shape: f32[8,32], index: 22, kind: output, shape index: {5}]  }
   0x1   :  { %9138 = sst [smem:[#allocation8_spill]] %s9077_s4  ;;  %5141 = vset.pattern.permute.xlu0 %v5360_v0  ;;  %5142 = vset.pattern.permute.xlu2 %v5360_v0  ;;  %v191_v18 = vld [vmem:[%s9084_s11 + $0x48] sm:$0xff]  ;;  %v190_v19 = vld [vmem:[%s9084_s11 + $0x40] sm:$0xff]  ;;  %v189_v20 = vld [vmem:[%s9084_s11 + $0x38] sm:$0xff]  ;;  %vm155_vm4 = vcmask 1043459   ;;  %vm9131_vm5 = vcmask 1044484  }
   0x2   :  { %9139 = sst [smem:[#allocation9_spill]] %s9078_s8  ;;  %5143 = vset.pattern.permute.xlu1 %v5360_v0  ;;  %206 = vmatpush.msra.mxu0 %v191_v18  ;;  %v188_v21 = vld [vmem:[%s9084_s11 + $0x30] sm:$0xff]  ;;  %v187_v22 = vld [vmem:[%s9084_s11 + $0x28] sm:$0xff]  ;;  %v186_v23 = vld [vmem:[%s9084_s11 + $0x20] sm:$0xff]  ;;  %vm161_vm6 = vcmask 1045509   ;;  %vm164_vm7 = vcmask 1046534  }
   0x3   :  { %9140 = sst [smem:[#allocation10_spill]] %s9079_s3  ;;  %826 = vmatpush.msra.mxu3 %v191_v18  ;;  %v185_v24 = vld [vmem:[%s9084_s11 + $0x18] sm:$0xff]  ;;  %v184_v25 = vld [vmem:[%s9084_s11 + $0x10] sm:$0xff]  ;;  %v183_v26 = vld [vmem:[%s9084_s11 + $0x8] sm:$0xff]  ;;  %vm9133_vm8 = vcmask 1047559   ;;  %vm9127_vm9 = vcmask 130048  }
   0x4   :  { %9141 = sst [smem:[#allocation11_spill]] %s9080_s6  ;;  %s9124_s6 = smov 32   ;;  %207 = vmatpush.msra.mxu0 %v190_v19  ;;  %v182_v28 = vld [vmem:[%s9084_s11] sm:$0xff]  ;;  %v100_v30 = vld [vmem:[%s9085_s0 + $0x8] sm:$0x1]  ;;  %vm9104_vm10 = vcmask 392192  }
   0x5   :  { %9142 = sst [smem:[#allocation12_spill]] %s9081_s5  ;;  %s9109_s5 = smov 16   ;;  %827 = vmatpush.msra.mxu3 %v190_v19  ;;  %v101_v32 = vld [vmem:[%s9085_s0 + $0x10] sm:$0x1]  ;;  %v99_v34 = vld [vmem:[%s9085_s0] sm:$0x1] }
   0x6   :  { %9143 = sst [smem:[#allocation13_spill]] %s9082_s14  ;;  %208 = vmatpush.msra.mxu0 %v189_v20  ;;  %v102_v38 = vld [vmem:[%s9085_s0 + $0x18] sm:$0x1]  ;;  %v103_v42 = vld [vmem:[%s9085_s0 + $0x20] sm:$0x1]  ;;  %vm9103_vm11 = vcmask 654336  }
   0x7   :  { %9144 = sst [smem:[#allocation14_spill]] %s9083_s7  ;;  %828 = vmatpush.msra.mxu3 %v189_v20  ;;  %v104_v46 = vld [vmem:[%s9085_s0 + $0x28] sm:$0x1]  ;;  %v105_v51 = vld [vmem:[%s9085_s0 + $0x30] sm:$0x1]  ;;  %s9105_s3 = smov 72  }
   0x8   :  { %9145 = sst [smem:[#allocation15_spill]] %s9084_s11  ;;  %209 = vmatpush.msra.mxu0 %v188_v21  ;;  %v106_v56 = vld [vmem:[%s9085_s0 + $0x38] sm:$0x1]  ;;  %s9117_s7 = smov 8  }
   0x9   :  { %9146 = sst [smem:[#allocation16_spill]] %s9097_s21  ;;  %829 = vmatpush.msra.mxu3 %v188_v21 }
   0xa   :  { %9147 = sst [smem:[#allocation17_spill]] %s9098_s20  ;;  %210 = vmatpush.msra.mxu0 %v187_v22 }
   0xb   :  { %9148 = sst [smem:[#allocation18_spill]] %s9099_s22  ;;  %830 = vmatpush.msra.mxu3 %v187_v22  ;;  %v79_v22 = vlaneseq }
   0xc   :  { %s9149_s29 = sld [smem:[#allocation8_spill]]  ;;  %211 = vmatpush.msra.mxu0 %v186_v23 }
   0xd   :  { %s9150_s4 = sld [smem:[#allocation9_spill]]  ;;  %831 = vmatpush.msra.mxu3 %v186_v23 }
   0xe   :  { %s9151_s14 = sld [smem:[#allocation10_spill]]  ;;  %212 = vmatpush.msra.mxu0 %v185_v24 }
   0xf   :  { %s9152_s25 = sld [smem:[#allocation11_spill]]  ;;  %832 = vmatpush.msra.mxu3 %v185_v24 }
  0x10   :  { %s9153_s27 = sld [smem:[#allocation12_spill]]  ;;  %213 = vmatpush.msra.mxu0 %v184_v25 }
  0x11   :  { %s9154_s24 = sld [smem:[#allocation14_spill]]  ;;  %833 = vmatpush.msra.mxu3 %v184_v25  ;;  %v80_v25 = vand.u32 127, %v79_v22  ;;  %v317_v22 = vld [vmem:[%s9089_s1 + $0x10] sm:$0x1] }
  0x12   :  { %v5495_v1 = vld [vmem:[%s9149_s29] sm:$0xff]  ;;  %v5531_v12 = vld [vmem:[%s9149_s29 + $0x8] sm:$0xff]  ;;  %214 = vmatpush.msra.mxu0 %v183_v26  ;;  %s9155_s8 = sld [smem:[#allocation13_spill]] }
  0x13   :  { %v69_v2 = vld [vmem:[%s9150_s4] sm:$0xff]  ;;  %136 = vperm.xlu0 %5141, %v5495_v1   ;;  %v92_v3 = vsub.f32 1.0, %v5495_v1  ;;  %s9115_s4 = smov 48   ;;  %834 = vmatpush.msra.mxu3 %v183_v26  ;;  %vm81_vm15 = vcmp.ge.s32.totalorder %v80_v25, 64  ;;  %s9272_s20 = sld [smem:[#allocation16_spill]] }
  0x14   :  { %70 = vst.msk [vmem:[#allocation5] sm:$0xff] %vm9123_vm0, %v69_v2  ;;  %v5510_v4 = vld [vmem:[%s9151_s14] sm:$0xff]  ;;  %215 = vmatpush.msra.mxu0 %v182_v28 }
  0x15   :  { %95 = vperm.xlu2 %5142, %v92_v3   ;;  %v71_v5 = vld [vmem:[%s9152_s25] sm:$0xff]  ;;  %v263_v9 = vadd.f32 %v5495_v1, %v5510_v4  ;;  %835 = vmatpush.msra.mxu3 %v182_v28  ;;  %s9119_s25 = smov 96  }
  0x16   :  { %72 = vst.msk [vmem:[#allocation3] sm:$0xff] %vm9123_vm0, %v71_v5  ;;  %v66_v6 = vld [vmem:[%s9153_s27] sm:$0xff] }
  0x17   :  { %68 = vst.msk [vmem:[#allocation2] sm:$0xff] %vm9123_vm0, %v66_v6  ;;  %vm264_vm1 = vcmp.eq.f32.partialorder %v263_v9, 0.0  ;;  %v75_v17 = vld [vmem:[%s9154_s24] sm:$0xff]  ;;  %s9121_s24 = smov 64  }
  0x18   :  { %v265_v11 = vsel %vm264_vm1, 1, %v5360_v0  ;;  %76 = vst.msk [vmem:[#allocation4] sm:$0xff] %vm9123_vm0, %v75_v17  ;;  %vm82_vm1 = vcmp.lt.s32.totalorder %v80_v25, 96 }
  0x1b   :  { %109 = vperm.xlu0 %5141, %v5510_v4   ;;  %v87_v7 = vld [vmem:[#allocation5] sm:$0xff] }
  0x1d   :  { %v5534_v13 = vld [vmem:[#allocation3] sm:$0xff] }
  0x1e   :  { %v5538_v16 = vld [vmem:[#allocation2] sm:$0xff] }
  0x6f   :  { %v96_v8 = vpop.permute.xlu2 %95 }
  0x70   :  { %v5523_v10 = vmul.f32 %v96_v8, %v87_v7 }
  0x72   :  { %243 = vrot.lane.b32.xlu0 %v5523_v10, %s9124_s6 }
  0x7a   :  { %267 = vperm.xlu0 %5141, %v265_v11   ;;  %v5183_v11 = vld [vmem:[%s9155_s8] ss:$0 sm:$0xff] }
  0x82   :  { %353 = vperm.xlu0 %5141, %v5531_v12  }
  0x85   :  { %v137_v14 = vpop.permute.xlu0 %136 }
  0x86   :  { %v139_v15 = vmul.f32 %v137_v14, %v5534_v13 }
  0x88   :  { %171 = vrot.lane.b32.xlu1 %v139_v15, %s9109_s5  ;;  %s9166_s5 = smov 96  }
  0x8a   :  { %389 = vrot.lane.b32.xlu0 %v5534_v13, %s9105_s3  ;;  %s9194_s3 = sld [smem:[#allocation15_spill]] }
  0x8d   :  { %v110_v27 = vpop.permute.xlu0 %109 }
  0x8e   :  { %v111_v29 = vrot.slane %v110_v27, 1  ;;  %v112_v31 = vrot.slane %v110_v27, 2  ;;  %v113_v36 = vrot.slane %v110_v27, 3  ;;  %v126_v39 = vmul.f32 %v110_v27, %v99_v34 }
  0x8f   :  { %v114_v40 = vrot.slane %v110_v27, 4  ;;  %v115_v45 = vrot.slane %v110_v27, 5  ;;  %v116_v50 = vrot.slane %v110_v27, 6  ;;  %v117_v55 = vrot.slane %v110_v27, 7 }
  0x90   :  { %175 = vrot.lane.b32.xlu1 %v5538_v16, %s9115_s4  ;;  %v127_v33 = vmul.f32 %v111_v29, %v100_v30  ;;  %v128_v35 = vmul.f32 %v112_v31, %v101_v32  ;;  %v129_v43 = vmul.f32 %v113_v36, %v102_v38 }
  0x91   :  { %v130_v47 = vmul.f32 %v114_v40, %v103_v42  ;;  %v131_v52 = vmul.f32 %v115_v45, %v104_v46  ;;  %v132_v57 = vmul.f32 %v116_v50, %v105_v51  ;;  %v133_v61 = vmul.f32 %v117_v55, %v106_v56  ;;  %v5633_v45 = vld [vmem:[#allocation4] sm:$0xff]  ;;  %v5643_v50 = vld [vmem:[%s9086_s12 + $0x60] sm:$0xff]  ;;  %v5648_v51 = vld [vmem:[%s9086_s12 + $0x58] sm:$0xff] }
  0x92   :  { %v148_v37 = vrot.slane %v127_v33, 7  ;;  %v151_v41 = vrot.slane %v128_v35, 6  ;;  %v154_v49 = vrot.slane %v129_v43, 5  ;;  %422 = vmatpush.msra.mxu1 %v5643_v50  ;;  %v5672_v55 = vld [vmem:[%s9086_s12 + $0x38] sm:$0xff]  ;;  %v5678_v56 = vld [vmem:[%s9086_s12 + $0x30] sm:$0xff] }
  0x93   :  { %v157_v54 = vrot.slane %v130_v47, 4  ;;  %v160_v59 = vrot.slane %v131_v52, 3  ;;  %v163_v63 = vrot.slane %v132_v57, 2  ;;  %v166_v5 = vrot.slane %v133_v61, 1  ;;  %v5654_v52 = vld [vmem:[%s9086_s12 + $0x50] sm:$0xff]  ;;  %v5684_v57 = vld [vmem:[%s9086_s12 + $0x28] sm:$0xff] }
  0x94   :  { %v150_v44 = vsel %vm149_vm2, %v148_v37, %v126_v39  ;;  %423 = vmatpush.msra.mxu1 %v5648_v51 }
  0x95   :  { %v153_v48 = vsel %vm152_vm3, %v151_v41, %v150_v44  ;;  %v5630_v44 = vld [vmem:[%s9151_s14 + $0x8] sm:$0xff] }
  0x96   :  { %v156_v53 = vsel %vm155_vm4, %v154_v49, %v153_v48  ;;  %424 = vmatpush.msra.mxu1 %v5654_v52 }
  0x97   :  { %v159_v58 = vsel %vm9131_vm5, %v157_v54, %v156_v53  ;;  %v5660_v53 = vld [vmem:[%s9086_s12 + $0x48] sm:$0xff]  ;;  %v5666_v54 = vld [vmem:[%s9086_s12 + $0x40] sm:$0xff] }
  0x98   :  { %v162_v62 = vsel %vm161_vm6, %v160_v59, %v159_v58  ;;  %425 = vmatpush.msra.mxu1 %v5660_v53  ;;  %v5690_v58 = vld [vmem:[%s9086_s12 + $0x20] sm:$0xff]  ;;  %v5696_v59 = vld [vmem:[%s9086_s12 + $0x18] sm:$0xff] }
  0x99   :  { %v165_v2 = vsel %vm164_vm7, %v163_v63, %v162_v62 }
  0x9a   :  { %v168_v6 = vsel %vm9133_vm8, %v166_v5, %v165_v2  ;;  %426 = vmatpush.msra.mxu1 %v5666_v54 }
  0x9c   :  { %427 = vmatpush.msra.mxu1 %v5672_v55 }
  0x9e   :  { %428 = vmatpush.msra.mxu1 %v5678_v56 }
  0xa0   :  { %429 = vmatpush.msra.mxu1 %v5684_v57 }
  0xa2   :  { %430 = vmatpush.msra.mxu1 %v5690_v58 }
  0xa4   :  { %431 = vmatpush.msra.mxu1 %v5696_v59 }
  0xe4   :  { %v244_v38 = vpop.permute.xlu0 %243 }
  0xec   :  { %v5625_v43 = vpop.permute.xlu0 %267 }
  0xf4   :  { %v354_v46 = vpop.permute.xlu0 %353 }
  0xf5   :  { %v356_v47 = vmul.f32 %v354_v46, %v5633_v45  ;;  %v321_v46 = vld [vmem:[%s9089_s1 + $0x30] sm:$0x1] }
  0xfa   :  { %v172_v60 = vpop.permute.xlu1 %171 }
  0xfb   :  { %v179_v7 = vsel %vm9127_vm9, %v168_v6, %v172_v60  ;;  %v5702_v60 = vld [vmem:[%s9086_s12 + $0x10] sm:$0xff] }
  0xfc   :  { %432 = vmatpush.msra.mxu1 %v5702_v60 }
 0x102   :  { %v176_v8 = vpop.permute.xlu1 %175 }
 0x103   :  { %v181_v9 = vsel %vm9104_vm10, %v179_v7, %v176_v8  ;;  %vm5613_vm10 = vmand %vm81_vm15, %vm82_vm1  ;;  %vm9113_vm15 = vcmask 588800   ;;  %vm9112_vm1 = vcmask 850944  }
 0x104   :  { %5021 = vmatmul.msk.f32.vlgmr.msra.gmra.mxu0 %vm9103_vm11, %v181_v9 }
 0x181   :  { %v217_v14 = vpop.f32.mrf.mxu0 }
 0x182   :  { %v218_v15 = vadd.f32 %v5183_v11, %v217_v14  ;;  %v308_v14 = vsub.f32 1.0, %v5531_v12 }
 0x184   :  { %v5022_v17 = vmul.f32 -1.442695, %v218_v15  ;;  %v5758_v15 = vld [vmem:[%s9086_s12 + $0x8] sm:$0xff] }
 0x185   :  { %433 = vmatpush.msra.mxu1 %v5758_v15 }
 0x186   :  { %5207 = vpow2.f32 %v5022_v17  ;;  %v5763_v17 = vld [vmem:[%s9086_s12] sm:$0xff] }
 0x187   :  { %434 = vmatpush.msra.mxu1 %v5763_v17 }
 0x18c   :  { %v5208_v18 = vpop.eup %5207 }
 0x18d   :  { %v223_v19 = vadd.f32 1.0, %v5208_v18 }
 0x18f   :  { %5209 = vrcp.f32 %v223_v19  ;;  %v235_v24 = vand.u32 2147483648, %v223_v19  ;;  %v233_v27 = vand.u32 2147483647, %v223_v19  ;;  %vm229_vm13 = vweird.f32 %v223_v19 }
 0x191   :  { %v236_v29 = vor.u32 1.1754944e-38, %v235_v24  ;;  %vm234_vm11 = vcmp.eq.f32.partialorder %v233_v27, 8.507059e+37  ;;  %v315_v24 = vld [vmem:[%s9089_s1] sm:$0x1] }
 0x195   :  { %v5210_v20 = vpop.eup %5209 }
 0x196   :  { %v225_v21 = vmul.f32 %v5210_v20, %v223_v19  ;;  %vm230_vm12 = vweird.f32 %v5210_v20  ;;  %v316_v19 = vld [vmem:[%s9089_s1 + $0x8] sm:$0x1] }
 0x197   :  { %vm231_vm14 = vmor %vm229_vm13, %vm230_vm12  ;;  %vm9111_vm12 = vcmp.eq.s32.totalorder %v5625_v43, 1  ;;  %vm9132_vm13 = vcmask 64512  }
 0x198   :  { %v226_v23 = vsub.f32 1.0, %v225_v21 }
 0x19a   :  { %v227_v26 = vmul.f32 %v5210_v20, %v226_v23 }
 0x19c   :  { %v228_v28 = vadd.f32 %v5210_v20, %v227_v26 }
 0x19e   :  { %v232_v30 = vsel %vm231_vm14, %v5210_v20, %v228_v28  ;;  %v73_v20 = vld [vmem:[%s9088_s9] sm:$0xff]  ;;  %v318_v28 = vld [vmem:[%s9089_s1 + $0x18] sm:$0x1]  ;;  %vm9114_vm14 = vcmask 326656   ;;  %s9158_s9 = smov 16  }
 0x19f   :  { %v237_v31 = vsel %vm234_vm11, %v236_v29, %v232_v30  ;;  %vm295_vm11 = vcmask 253952   ;;  %74 = vst.msk [vmem:[#allocation6] sm:$0xff] %vm9123_vm0, %v73_v20 }
 0x1a0   :  { %v239_v32 = vmul.f32 2.0, %v237_v31 }
 0x1a2   :  { %v5023_v34 = vadd.f32 -1.0, %v239_v32  ;;  %v319_v32 = vld [vmem:[%s9089_s1 + $0x20] sm:$0x1] }
 0x1a4   :  { %v241_v35 = vsel %vm5613_vm10, %v5023_v34, %v237_v31 }
 0x1a5   :  { %248 = vrot.lane.b32.xlu2 %v241_v35, %s9121_s24  ;;  %v246_v39 = vmul.f32 %v244_v38, %v241_v35 }
 0x1ff   :  { %v249_v36 = vpop.permute.xlu2 %248 }
 0x200   :  { %v251_v37 = vmul.f32 %v249_v36, %v241_v35 }
 0x202   :  { %253 = vrot.lane.b32.xlu1 %v251_v37, %s9124_s6  ;;  %v320_v37 = vld [vmem:[%s9089_s1 + $0x28] sm:$0x1] }
 0x274   :  { %v254_v40 = vpop.permute.xlu1 %253 }
 0x275   :  { %v5621_v41 = vadd.f32 %v254_v40, %v246_v39 }
 0x277   :  { %5211 = vtanh.f32 %v5621_v41 }
 0x27d   :  { %v5212_v42 = vpop.eup %5211 }
 0x27e   :  { %259 = vrot.lane.b32.xlu2 %v5212_v42, %s9121_s24 }
 0x286   :  { %325 = vperm.xlu2 %5142, %v5630_v44  }
 0x28e   :  { %385 = vrot.lane.b32.xlu2 %v356_v47, %s9107_s26  ;;  %s9168_s26 = smov 72  }
 0x2d8   :  { %v260_v48 = vpop.permute.xlu2 %259 }
 0x2d9   :  { %v262_v49 = vmul.f32 %v260_v48, %v241_v35 }
 0x2db   :  { %271 = vrot.lane.b32.xlu1 %v262_v49, %s9124_s6 }
 0x2e0   :  { %v326_v63 = vpop.permute.xlu2 %325 }
 0x2e1   :  { %v327_v18 = vrot.slane %v326_v63, 1  ;;  %v328_v21 = vrot.slane %v326_v63, 2  ;;  %v329_v26 = vrot.slane %v326_v63, 3  ;;  %v342_v29 = vmul.f32 %v326_v63, %v315_v24  ;;  %v88_v24 = vld [vmem:[#allocation6] sm:$0xff] }
 0x2e2   :  { %v330_v30 = vrot.slane %v326_v63, 4  ;;  %v331_v36 = vrot.slane %v326_v63, 5  ;;  %v332_v42 = vrot.slane %v326_v63, 6  ;;  %v333_v49 = vrot.slane %v326_v63, 7 }
 0x2e3   :  { %v343_v23 = vmul.f32 %v327_v18, %v316_v19  ;;  %v344_v25 = vmul.f32 %v328_v21, %v317_v22  ;;  %v345_v34 = vmul.f32 %v329_v26, %v318_v28  ;;  %v390_v19 = vpop.permute.xlu0 %389  ;;  %v482_v26 = vadd.f32 %v5531_v12, %v5630_v44  ;;  %v5184_v12 = vld [vmem:[%s9090_s15] ss:$0 sm:$0xff] }
 0x2e4   :  { %v346_v38 = vmul.f32 %v330_v30, %v319_v32  ;;  %v347_v47 = vmul.f32 %v331_v36, %v320_v37 }
 0x2e5   :  { %v365_v27 = vrot.slane %v343_v23, 7  ;;  %v367_v31 = vrot.slane %v344_v25, 6  ;;  %v369_v40 = vrot.slane %v345_v34, 5 }
 0x2e7   :  { %v366_v35 = vsel %vm149_vm2, %v365_v27, %v342_v29  ;;  %v5816_v29 = vld [vmem:[%s9151_s14 + $0x10] sm:$0xff] }
 0x2e8   :  { %v368_v39 = vsel %vm152_vm3, %v367_v31, %v366_v35  ;;  %v386_v20 = vpop.permute.xlu2 %385 }
 0x2e9   :  { %v370_v48 = vsel %vm155_vm4, %v369_v40, %v368_v39 }
 0x34d   :  { %v272_v61 = vpop.permute.xlu1 %271 }
 0x34e   :  { %v5709_v62 = vsel %vm9111_vm12, %v5538_v16, %v272_v61  ;;  %v371_v61 = vrot.slane %v346_v38, 4  ;;  %vm483_vm12 = vcmp.eq.f32.partialorder %v482_v26, 0.0 }
 0x34f   :  { %v281_v2 = vrot.slane %v5709_v62, 1  ;;  %v282_v5 = vrot.slane %v5709_v62, 2  ;;  %v283_v6 = vrot.slane %v5709_v62, 3  ;;  %296 = vst.msk [vmem:[%s9087_s17] sm:$0x1] %vm295_vm11, %v5709_v62  ;;  %v284_v7 = vrot.slane %v5709_v62, 4 }
 0x350   :  { %v350_v16 = vmul.f32 %v326_v63, %v5709_v62  ;;  %v285_v8 = vrot.slane %v5709_v62, 5  ;;  %v286_v9 = vrot.slane %v5709_v62, 6  ;;  %v287_v11 = vrot.slane %v5709_v62, 7 }
 0x351   :  { %297 = vst.msk [vmem:[%s9087_s17 + $0x8] sm:$0x1] %vm295_vm11, %v281_v2  ;;  %v322_v2 = vld [vmem:[%s9089_s1 + $0x38] sm:$0x1]  ;;  %v484_v28 = vsel %vm483_vm12, 1, %v5360_v0 }
 0x352   :  { %298 = vst.msk [vmem:[%s9087_s17 + $0x10] sm:$0x1] %vm295_vm11, %v282_v5  ;;  %381 = vrot.lane.b32.xlu1 %v350_v16, %s9117_s7  ;;  %v348_v5 = vmul.f32 %v332_v42, %v321_v46  ;;  %v349_v16 = vmul.f32 %v333_v49, %v322_v2 }
 0x353   :  { %299 = vst.msk [vmem:[%s9087_s17 + $0x18] sm:$0x1] %vm295_vm11, %v283_v6  ;;  %v372_v6 = vsel %vm9131_vm5, %v371_v61, %v370_v48 }
 0x354   :  { %300 = vst.msk [vmem:[%s9087_s17 + $0x20] sm:$0x1] %vm295_vm11, %v284_v7  ;;  %v373_v7 = vrot.slane %v347_v47, 3 }
 0x355   :  { %301 = vst.msk [vmem:[%s9087_s17 + $0x28] sm:$0x1] %vm295_vm11, %v285_v8 }
 0x356   :  { %302 = vst.msk [vmem:[%s9087_s17 + $0x30] sm:$0x1] %vm295_vm11, %v286_v9  ;;  %v374_v8 = vsel %vm161_vm6, %v373_v7, %v372_v6  ;;  %v375_v9 = vrot.slane %v348_v5, 2 }
 0x357   :  { %303 = vst.msk [vmem:[%s9087_s17 + $0x38] sm:$0x1] %vm295_vm11, %v287_v11 }
 0x358   :  { %v376_v11 = vsel %vm164_vm7, %v375_v9, %v374_v8 }
 0x35a   :  { %311 = vperm.xlu1 %5143, %v308_v14   ;;  %v377_v14 = vrot.slane %v349_v16, 1 }
 0x35c   :  { %v378_v63 = vsel %vm9133_vm8, %v377_v14, %v376_v11 }
 0x3c4   :  { %v382_v18 = vpop.permute.xlu1 %381 }
 0x3c5   :  { %v393_v21 = vsel %vm9132_vm13, %v378_v63, %v382_v18  ;;  %v5368_v18 = vmov 1  }
 0x3c6   :  { %v395_v22 = vsel %vm9114_vm14, %v393_v21, %v386_v20  ;;  %5145 = vset.pattern.permute.xlu1 %v5368_v18  ;;  %5144 = vset.pattern.permute.xlu2 %v5368_v18 }
 0x3c7   :  { %v397_v23 = vsel %vm9113_vm15, %v395_v22, %v390_v19 }
 0x3c8   :  { %5026 = vmatmul.msk.f32.vlgmr.msra.gmra.mxu1 %vm9112_vm1, %v397_v23 }
 0x3cc   :  { %v312_v25 = vpop.permute.xlu1 %311 }
 0x3cd   :  { %v5808_v27 = vmul.f32 %v312_v25, %v88_v24 }
 0x3cf   :  { %462 = vrot.lane.b32.xlu0 %v5808_v27, %s9124_s6 }
 0x3d7   :  { %486 = vperm.xlu0 %5141, %v484_v28  }
 0x3df   :  { %543 = vperm.xlu0 %5141, %v5816_v29  }
 0x441   :  { %v463_v16 = vpop.permute.xlu0 %462 }
 0x445   :  { %v436_v30 = vpop.f32.mrf.mxu1 }
 0x446   :  { %v437_v31 = vadd.f32 %v5184_v12, %v436_v30 }
 0x448   :  { %v5027_v32 = vmul.f32 -1.442695, %v437_v31 }
 0x449   :  { %v5840_v20 = vpop.permute.xlu0 %486 }
 0x44a   :  { %5213 = vpow2.f32 %v5027_v32 }
 0x450   :  { %v5214_v34 = vpop.eup %5213 }
 0x451   :  { %v442_v35 = vadd.f32 1.0, %v5214_v34  ;;  %v731_v34 = vld [vmem:[%s9085_s0 + $0x9] sm:$0x1] }
 0x453   :  { %5215 = vrcp.f32 %v442_v35  ;;  %v454_v39 = vand.u32 2147483648, %v442_v35  ;;  %v452_v42 = vand.u32 2147483647, %v442_v35  ;;  %vm448_vm1 = vweird.f32 %v442_v35 }
 0x455   :  { %v455_v47 = vor.u32 1.1754944e-38, %v454_v39  ;;  %vm453_vm14 = vcmp.eq.f32.partialorder %v452_v42, 8.507059e+37  ;;  %v607_v42 = vld [vmem:[%s9092_s13 + $0x28] sm:$0xff] }
 0x459   :  { %v5216_v36 = vpop.eup %5215 }
 0x45a   :  { %v444_v37 = vmul.f32 %v5216_v36, %v442_v35  ;;  %vm449_vm12 = vweird.f32 %v5216_v36  ;;  %v610_v35 = vld [vmem:[%s9092_s13 + $0x40] sm:$0xff] }
 0x45b   :  { %vm450_vm15 = vmor %vm448_vm1, %vm449_vm12  ;;  %625 = vmatpush.msra.mxu2 %v610_v35  ;;  %1234 = vmatpush.msrb.mxu0 %v610_v35  ;;  %vm9161_vm1 = vcmask 654336   ;;  %vm9162_vm12 = vcmask 326656  }
 0x45c   :  { %v445_v38 = vsub.f32 1.0, %v444_v37 }
 0x45e   :  { %v446_v40 = vmul.f32 %v5216_v36, %v445_v38  ;;  %v732_v38 = vld [vmem:[%s9085_s0 + $0x11] sm:$0x1] }
 0x460   :  { %v447_v46 = vadd.f32 %v5216_v36, %v446_v40  ;;  %v730_v40 = vld [vmem:[%s9085_s0 + $0x1] sm:$0x1] }
 0x462   :  { %v451_v48 = vsel %vm450_vm15, %v5216_v36, %v447_v46  ;;  %v609_v36 = vld [vmem:[%s9092_s13 + $0x38] sm:$0xff]  ;;  %vm9160_vm15 = vcmask 392192  }
 0x463   :  { %v456_v49 = vsel %vm453_vm14, %v455_v47, %v451_v48  ;;  %vm488_vm14 = vcmp.eq.s32.totalorder %v5840_v20, 1  ;;  %626 = vmatpush.msra.mxu2 %v609_v36  ;;  %1235 = vmatpush.msrb.mxu0 %v609_v36  ;;  %v733_v47 = vld [vmem:[%s9085_s0 + $0x19] sm:$0x1] }
 0x464   :  { %v458_v61 = vmul.f32 2.0, %v456_v49 }
 0x466   :  { %v5028_v2 = vadd.f32 -1.0, %v458_v61 }
 0x468   :  { %v460_v5 = vsel %vm5613_vm10, %v5028_v2, %v456_v49  ;;  %v606_v49 = vld [vmem:[%s9092_s13 + $0x20] sm:$0xff] }
 0x469   :  { %467 = vrot.lane.b32.xlu2 %v460_v5, %s9121_s24  ;;  %v465_v8 = vmul.f32 %v463_v16, %v460_v5 }
 0x4c3   :  { %v468_v6 = vpop.permute.xlu2 %467 }
 0x4c4   :  { %v470_v7 = vmul.f32 %v468_v6, %v460_v5  ;;  %v605_v6 = vld [vmem:[%s9092_s13 + $0x18] sm:$0xff] }
 0x4c6   :  { %472 = vrot.lane.b32.xlu1 %v470_v7, %s9124_s6  ;;  %v734_v7 = vld [vmem:[%s9085_s0 + $0x21] sm:$0x1] }
 0x538   :  { %v473_v9 = vpop.permute.xlu1 %472 }
 0x539   :  { %v5826_v11 = vadd.f32 %v473_v9, %v465_v8  ;;  %v604_v9 = vld [vmem:[%s9092_s13 + $0x10] sm:$0xff] }
 0x53b   :  { %5217 = vtanh.f32 %v5826_v11 }
 0x541   :  { %v5218_v14 = vpop.eup %5217 }
 0x542   :  { %478 = vrot.lane.b32.xlu2 %v5218_v14, %s9121_s24  ;;  %s9167_s24 = smov 8  }
 0x54a   :  { %767 = vperm.xlu2 %5144, %v5495_v1   ;;  %v5856_v1 = vpop.permute.xlu0 %543 }
 0x552   :  { %5146 = vset.pattern.permute.xlu2 %v5360_v0 }
 0x59c   :  { %v479_v63 = vpop.permute.xlu2 %478 }
 0x59d   :  { %v481_v19 = vmul.f32 %v479_v63, %v460_v5 }
 0x59f   :  { %490 = vrot.lane.b32.xlu1 %v481_v19, %s9124_s6  ;;  %v735_v19 = vld [vmem:[%s9085_s0 + $0x29] sm:$0x1] }
 0x5a4   :  { %v768_v22 = vpop.permute.xlu2 %767 }
 0x5a7   :  { %740 = vperm.xlu1 %5145, %v5510_v4  }
 0x5af   :  { %798 = vrot.lane.b32.xlu1 %v5709_v62, %s9115_s4  ;;  %s9159_s4 = smov 40  }
 0x5b7   :  { %726 = vperm.xlu1 %5145, %v92_v3  }
 0x611   :  { %v491_v21 = vpop.permute.xlu1 %490 }
 0x612   :  { %v5846_v23 = vsel %vm488_vm14, %v5534_v13, %v491_v21 }
 0x613   :  { %v500_v24 = vrot.slane %v5846_v23, 1  ;;  %v501_v4 = vrot.slane %v5846_v23, 2  ;;  %v502_v25 = vrot.slane %v5846_v23, 3  ;;  %514 = vst.msk [vmem:[%s9091_s18] sm:$0x1] %vm295_vm11, %v5846_v23  ;;  %v503_v3 = vrot.slane %v5846_v23, 4 }
 0x614   :  { %v770_v26 = vmul.f32 %v768_v22, %v5846_v23  ;;  %v504_v13 = vrot.slane %v5846_v23, 5  ;;  %v568_v28 = vmul.f32 %v5856_v1, %v5846_v23  ;;  %v505_v12 = vrot.slane %v5846_v23, 6  ;;  %v603_v22 = vld [vmem:[%s9092_s13 + $0x8] sm:$0xff] }
 0x615   :  { %515 = vst.msk [vmem:[%s9091_s18 + $0x8] sm:$0x1] %vm295_vm11, %v500_v24  ;;  %v506_v30 = vrot.slane %v5846_v23, 7 }
 0x616   :  { %516 = vst.msk [vmem:[%s9091_s18 + $0x10] sm:$0x1] %vm295_vm11, %v501_v4  ;;  %795 = vrot.lane.b32.xlu2 %v770_v26, %s9158_s9  ;;  %593 = vrot.lane.b32.xlu0 %v568_v28, %s9117_s7 }
 0x617   :  { %517 = vst.msk [vmem:[%s9091_s18 + $0x18] sm:$0x1] %vm295_vm11, %v502_v25 }
 0x618   :  { %518 = vst.msk [vmem:[%s9091_s18 + $0x20] sm:$0x1] %vm295_vm11, %v503_v3  ;;  %v736_v3 = vld [vmem:[%s9085_s0 + $0x31] sm:$0x1] }
 0x619   :  { %519 = vst.msk [vmem:[%s9091_s18 + $0x28] sm:$0x1] %vm295_vm11, %v504_v13  ;;  %v741_v31 = vpop.permute.xlu1 %740 }
 0x61a   :  { %520 = vst.msk [vmem:[%s9091_s18 + $0x30] sm:$0x1] %vm295_vm11, %v505_v12  ;;  %v742_v32 = vrot.slane %v741_v31, 1  ;;  %v743_v37 = vrot.slane %v741_v31, 2  ;;  %v744_v46 = vrot.slane %v741_v31, 3  ;;  %v757_v61 = vmul.f32 %v741_v31, %v730_v40 }
 0x61b   :  { %521 = vst.msk [vmem:[%s9091_s18 + $0x38] sm:$0x1] %vm295_vm11, %v506_v30  ;;  %v745_v5 = vrot.slane %v741_v31, 4  ;;  %v746_v14 = vrot.slane %v741_v31, 5  ;;  %v747_v4 = vrot.slane %v741_v31, 6  ;;  %v748_v28 = vrot.slane %v741_v31, 7 }
 0x61c   :  { %v758_v39 = vmul.f32 %v742_v32, %v731_v34  ;;  %v759_v48 = vmul.f32 %v743_v37, %v732_v38  ;;  %v760_v16 = vmul.f32 %v744_v46, %v733_v47  ;;  %v737_v30 = vld [vmem:[%s9085_s0 + $0x39] sm:$0x1]  ;;  %v5954_v37 = vld [vmem:[%s9149_s29 + $0x10] sm:$0xff]  ;;  %v602_v31 = vld [vmem:[%s9092_s13] sm:$0xff] }
 0x61d   :  { %v761_v21 = vmul.f32 %v745_v5, %v734_v7  ;;  %v762_v26 = vmul.f32 %v746_v14, %v735_v19  ;;  %v763_v32 = vmul.f32 %v747_v4, %v736_v3  ;;  %v764_v36 = vmul.f32 %v748_v28, %v737_v30  ;;  %v538_v4 = vld [vmem:[%s9093_s2 + $0x28] sm:$0x1] }
 0x61e   :  { %597 = vrot.lane.b32.xlu2 %v5633_v45, %s9159_s4  ;;  %276 = vrot.lane.b32.xlu0 %v5621_v41, %s9119_s25  ;;  %v608_v41 = vld [vmem:[%s9092_s13 + $0x30] sm:$0xff]  ;;  %v779_v2 = vrot.slane %v758_v39, 7  ;;  %v781_v8 = vrot.slane %v759_v48, 6  ;;  %v783_v24 = vrot.slane %v760_v16, 5  ;;  %v545_v39 = vrot.slane %v5856_v1, 1  ;;  %s9165_s25 = smov 64  }
 0x61f   :  { %627 = vmatpush.msra.mxu2 %v608_v41  ;;  %1236 = vmatpush.msrb.mxu0 %v608_v41  ;;  %v785_v13 = vrot.slane %v761_v21, 4  ;;  %v787_v34 = vrot.slane %v762_v26, 3  ;;  %v789_v41 = vrot.slane %v763_v32, 2  ;;  %v791_v40 = vrot.slane %v764_v36, 1  ;;  %v533_v16 = vld [vmem:[%s9093_s2] sm:$0x1] }
 0x620   :  { %v780_v63 = vsel %vm149_vm2, %v779_v2, %v757_v61  ;;  %v526_v46 = vsub.f32 1.0, %v5954_v37  ;;  %v546_v48 = vrot.slane %v5856_v1, 2  ;;  %v560_v14 = vmul.f32 %v5856_v1, %v533_v16  ;;  %v537_v21 = vld [vmem:[%s9093_s2 + $0x20] sm:$0x1] }
 0x621   :  { %628 = vmatpush.msra.mxu2 %v607_v42  ;;  %1237 = vmatpush.msrb.mxu0 %v607_v42  ;;  %v782_v25 = vsel %vm152_vm3, %v781_v8, %v780_v63  ;;  %v534_v42 = vld [vmem:[%s9093_s2 + $0x8] sm:$0x1]  ;;  %v547_v8 = vrot.slane %v5856_v1, 3  ;;  %v77_v63 = vld [vmem:[%s9094_s10] sm:$0xff]  ;;  %v548_v19 = vrot.slane %v5856_v1, 4  ;;  %v550_v26 = vrot.slane %v5856_v1, 6 }
 0x622   :  { %v784_v12 = vsel %vm155_vm4, %v783_v24, %v782_v25  ;;  %v561_v61 = vmul.f32 %v545_v39, %v534_v42  ;;  %78 = vst.msk [vmem:[#allocation7] sm:$0xff] %vm9123_vm0, %v77_v63  ;;  %v549_v24 = vrot.slane %v5856_v1, 5  ;;  %v551_v30 = vrot.slane %v5856_v1, 7 }
 0x623   :  { %629 = vmatpush.msra.mxu2 %v606_v49  ;;  %1238 = vmatpush.msrb.mxu0 %v606_v49  ;;  %v786_v35 = vsel %vm9131_vm5, %v785_v13, %v784_v12  ;;  %v535_v49 = vld [vmem:[%s9093_s2 + $0x10] sm:$0x1]  ;;  %v564_v25 = vmul.f32 %v548_v19, %v537_v21 }
 0x624   :  { %v788_v38 = vsel %vm161_vm6, %v787_v34, %v786_v35  ;;  %v565_v13 = vmul.f32 %v549_v24, %v538_v4 }
 0x625   :  { %630 = vmatpush.msra.mxu2 %v605_v6  ;;  %1239 = vmatpush.msrb.mxu0 %v605_v6  ;;  %v790_v47 = vsel %vm164_vm7, %v789_v41, %v788_v38  ;;  %v583_v12 = vrot.slane %v564_v25, 4 }
 0x626   :  { %529 = vperm.xlu2 %5146, %v526_v46   ;;  %v792_v2 = vsel %vm9133_vm8, %v791_v40, %v790_v47 }
 0x627   :  { %631 = vmatpush.msra.mxu2 %v604_v9  ;;  %1240 = vmatpush.msrb.mxu0 %v604_v9  ;;  %v577_v9 = vrot.slane %v561_v61, 7 }
 0x629   :  { %632 = vmatpush.msra.mxu2 %v603_v22  ;;  %1241 = vmatpush.msrb.mxu0 %v603_v22  ;;  %v578_v22 = vsel %vm149_vm2, %v577_v9, %v560_v14  ;;  %v89_v25 = vld [vmem:[#allocation7] sm:$0xff] }
 0x62b   :  { %633 = vmatpush.msra.mxu2 %v602_v31  ;;  %1242 = vmatpush.msrb.mxu0 %v602_v31 }
 0x62d   :  { %1034 = vmatpush.msrb.mxu2 %v5643_v50  ;;  %v799_v50 = vpop.permute.xlu1 %798 }
 0x62e   :  { %5147 = vset.pattern.permute.xlu2 %v5368_v18 }
 0x62f   :  { %1035 = vmatpush.msrb.mxu2 %v5648_v51  ;;  %v562_v51 = vmul.f32 %v546_v48, %v535_v49  ;;  %v5185_v48 = vld [vmem:[%s9155_s8] ss:$0 sm:$0xff] }
 0x631   :  { %1036 = vmatpush.msrb.mxu2 %v5654_v52  ;;  %v536_v52 = vld [vmem:[%s9093_s2 + $0x18] sm:$0x1] }
 0x633   :  { %1037 = vmatpush.msrb.mxu2 %v5660_v53  ;;  %v579_v53 = vrot.slane %v562_v51, 6 }
 0x635   :  { %1038 = vmatpush.msrb.mxu2 %v5666_v54  ;;  %v563_v54 = vmul.f32 %v547_v8, %v536_v52  ;;  %v580_v3 = vsel %vm152_vm3, %v579_v53, %v578_v22  ;;  %v727_v42 = vpop.permute.xlu1 %726 }
 0x637   :  { %1039 = vmatpush.msrb.mxu2 %v5672_v55  ;;  %v581_v55 = vrot.slane %v563_v54, 5 }
 0x639   :  { %1040 = vmatpush.msrb.mxu2 %v5678_v56  ;;  %v539_v56 = vld [vmem:[%s9093_s2 + $0x30] sm:$0x1]  ;;  %v582_v28 = vsel %vm155_vm4, %v581_v55, %v580_v3 }
 0x63a   :  { %v566_v32 = vmul.f32 %v550_v26, %v539_v56  ;;  %v584_v34 = vsel %vm9131_vm5, %v583_v12, %v582_v28 }
 0x63b   :  { %1041 = vmatpush.msrb.mxu2 %v5684_v57  ;;  %v540_v57 = vld [vmem:[%s9093_s2 + $0x38] sm:$0x1] }
 0x63c   :  { %v567_v35 = vmul.f32 %v551_v30, %v540_v57  ;;  %v587_v41 = vrot.slane %v566_v32, 2 }
 0x63d   :  { %1042 = vmatpush.msrb.mxu2 %v5690_v58  ;;  %v585_v58 = vrot.slane %v565_v13, 3 }
 0x63e   :  { %v589_v1 = vrot.slane %v567_v35, 1 }
 0x63f   :  { %1043 = vmatpush.msrb.mxu2 %v5696_v59  ;;  %v586_v36 = vsel %vm161_vm6, %v585_v58, %v584_v34 }
 0x640   :  { %v588_v59 = vsel %vm164_vm7, %v587_v41, %v586_v36 }
 0x641   :  { %1044 = vmatpush.msrb.mxu2 %v5702_v60  ;;  %v590_v31 = vsel %vm9133_vm8, %v589_v1, %v588_v59 }
 0x643   :  { %1045 = vmatpush.msrb.mxu2 %v5758_v15 }
 0x645   :  { %1046 = vmatpush.msrb.mxu2 %v5763_v17 }
 0x670   :  { %v796_v5 = vpop.permute.xlu2 %795 }
 0x671   :  { %v801_v6 = vsel %vm9127_vm9, %v792_v2, %v796_v5 }
 0x672   :  { %v802_v7 = vsel %vm9160_vm15, %v801_v6, %v799_v50  ;;  %vm9163_vm15 = vcmask 588800  }
 0x673   :  { %5034 = vmatmul.msk.f32.vlgmr.msra.gmra.mxu3 %vm9161_vm1, %v802_v7  ;;  %vm9164_vm1 = vcmp.eq.s32.totalorder %v5625_v43, 1 }
 0x678   :  { %v598_v38 = vpop.permute.xlu2 %597 }
 0x680   :  { %v530_v55 = vpop.permute.xlu2 %529 }
 0x681   :  { %v6044_v26 = vmul.f32 %v530_v55, %v89_v25 }
 0x688   :  { %v594_v39 = vpop.permute.xlu0 %593 }
 0x689   :  { %v600_v40 = vsel %vm9132_vm13, %v590_v31, %v594_v39 }
 0x68a   :  { %v601_v60 = vsel %vm9162_vm12, %v600_v40, %v598_v38 }
 0x68b   :  { %5031 = vmatmul.msk.f32.vlgmr.msra.gmra.mxu2 %vm9163_vm15, %v601_v60 }
 0x690   :  { %v277_v15 = vpop.permute.xlu0 %276 }
 0x691   :  { %v279_v47 = vsel %vm9164_vm1, %v5523_v10, %v277_v15  ;;  %v5186_v10 = vld [vmem:[%s9095_s16] ss:$0 sm:$0xff] }
 0x692   :  { %v6031_v17 = vmul.f32 %v727_v42, %v279_v47 }
 0x694   :  { %863 = vrot.lane.b32.xlu2 %v6031_v17, %s9124_s6 }
 0x6ee   :  { %v864_v40 = vpop.permute.xlu2 %863 }
 0x6f6   :  { %v837_v49 = vpop.f32.mrf.mxu3 }
 0x6f7   :  { %v838_v61 = vadd.f32 %v5185_v48, %v837_v49 }
 0x6f9   :  { %v5035_v2 = vmul.f32 -1.442695, %v838_v61 }
 0x6fb   :  { %5219 = vpow2.f32 %v5035_v2  ;;  %v5351_v2 = vld [vmem:[%s9149_s29] sm:$0xff] }
 0x701   :  { %v5220_v5 = vpop.eup %5219 }
 0x702   :  { %v843_v50 = vadd.f32 1.0, %v5220_v5  ;;  %v5352_v5 = vld [vmem:[%s9151_s14] sm:$0xff] }
 0x704   :  { %5221 = vrcp.f32 %v843_v50  ;;  %v855_v16 = vand.u32 2147483648, %v843_v50  ;;  %v853_v9 = vand.u32 2147483647, %v843_v50  ;;  %vm849_vm15 = vweird.f32 %v843_v50 }
 0x706   :  { %v856_v19 = vor.u32 1.1754944e-38, %v855_v16  ;;  %vm854_vm0 = vcmp.eq.f32.partialorder %v853_v9, 8.507059e+37 }
 0x70a   :  { %v5222_v6 = vpop.eup %5221 }
 0x70b   :  { %v845_v7 = vmul.f32 %v5222_v6, %v843_v50  ;;  %vm850_vm12 = vweird.f32 %v5222_v6  ;;  %v883_v50 = vadd.f32 %v5352_v5, %v5351_v2 }
 0x70c   :  { %vm851_vm1 = vmor %vm849_vm15, %vm850_vm12 }
 0x70d   :  { %v846_v43 = vsub.f32 1.0, %v845_v7  ;;  %v681_v7 = vadd.f32 %v5954_v37, %v5816_v29 }
 0x70e   :  { %v635_v51 = vpop.f32.mrf.mxu2 }
 0x70f   :  { %v847_v8 = vmul.f32 %v5222_v6, %v846_v43  ;;  %v636_v52 = vadd.f32 %v5186_v10, %v635_v51 }
 0x711   :  { %v848_v14 = vadd.f32 %v5222_v6, %v847_v8  ;;  %v5032_v63 = vmul.f32 -1.442695, %v636_v52 }
 0x713   :  { %v852_v53 = vsel %vm851_vm1, %v5222_v6, %v848_v14  ;;  %5223 = vpow2.f32 %v5032_v63  ;;  %v6083_v14 = vld [vmem:[%s9149_s29 + $0x8] sm:$0xff] }
 0x714   :  { %v857_v21 = vsel %vm854_vm0, %v856_v19, %v852_v53 }
 0x715   :  { %v859_v54 = vmul.f32 2.0, %v857_v21 }
 0x717   :  { %v5036_v22 = vadd.f32 -1.0, %v859_v54 }
 0x719   :  { %v861_v24 = vsel %vm5613_vm10, %v5036_v22, %v857_v21  ;;  %v5224_v4 = vpop.eup %5223 }
 0x71a   :  { %868 = vrot.lane.b32.xlu0 %v861_v24, %s9165_s25  ;;  %v641_v3 = vadd.f32 1.0, %v5224_v4  ;;  %v866_v15 = vmul.f32 %v864_v40, %v861_v24  ;;  %v935_v40 = vld [vmem:[%s9089_s1 + $0x19] sm:$0x1] }
 0x71c   :  { %5225 = vrcp.f32 %v641_v3  ;;  %v653_v12 = vand.u32 2147483648, %v641_v3  ;;  %v651_v57 = vand.u32 2147483647, %v641_v3  ;;  %vm647_vm12 = vweird.f32 %v641_v3 }
 0x71e   :  { %v654_v34 = vor.u32 1.1754944e-38, %v653_v12  ;;  %vm652_vm1 = vcmp.eq.f32.partialorder %v651_v57, 8.507059e+37 }
 0x722   :  { %661 = vrot.lane.b32.xlu0 %v6044_v26, %s9124_s6  ;;  %v5226_v56 = vpop.eup %5225 }
 0x723   :  { %v643_v13 = vmul.f32 %v5226_v56, %v641_v3  ;;  %vm648_vm0 = vweird.f32 %v5226_v56 }
 0x724   :  { %vm649_vm15 = vmor %vm647_vm12, %vm648_vm0  ;;  %vm884_vm0 = vcmp.eq.f32.partialorder %v883_v50, 0.0  ;;  %vm682_vm12 = vcmp.eq.f32.partialorder %v681_v7, 0.0  ;;  %v937_v7 = vld [vmem:[%s9089_s1 + $0x29] sm:$0x1] }
 0x725   :  { %v644_v28 = vsub.f32 1.0, %v643_v13  ;;  %v885_v6 = vsel %vm884_vm0, 1, %v5360_v0  ;;  %v6071_v16 = vsel %vm682_vm12, 1, %v5360_v0  ;;  %vm9169_vm0 = vcmask 326656  }
 0x726   :  { %vm9170_vm12 = vcmask 588800  }
 0x727   :  { %v645_v30 = vmul.f32 %v5226_v56, %v644_v28 }
 0x729   :  { %v646_v32 = vadd.f32 %v5226_v56, %v645_v30 }
 0x72b   :  { %v650_v58 = vsel %vm649_vm15, %v5226_v56, %v646_v32 }
 0x72c   :  { %v655_v35 = vsel %vm652_vm1, %v654_v34, %v650_v58 }
 0x72d   :  { %v657_v36 = vmul.f32 2.0, %v655_v35 }
 0x72f   :  { %v5033_v41 = vadd.f32 -1.0, %v657_v36 }
 0x731   :  { %v659_v59 = vsel %vm5613_vm10, %v5033_v41, %v655_v35  ;;  %v925_v35 = vsub.f32 1.0, %v6083_v14  ;;  %v933_v41 = vld [vmem:[%s9089_s1 + $0x9] sm:$0x1] }
 0x732   :  { %666 = vrot.lane.b32.xlu1 %v659_v59, %s9165_s25 }
 0x78c   :  { %v869_v1 = vpop.permute.xlu0 %868 }
 0x78d   :  { %v871_v38 = vmul.f32 %v869_v1, %v861_v24  ;;  %v934_v1 = vld [vmem:[%s9089_s1 + $0x11] sm:$0x1] }
 0x78f   :  { %873 = vrot.lane.b32.xlu1 %v871_v38, %s9124_s6 }
 0x794   :  { %v662_v60 = vpop.permute.xlu0 %661 }
 0x795   :  { %v664_v42 = vmul.f32 %v662_v60, %v659_v59 }
 0x7a4   :  { %v667_v31 = vpop.permute.xlu1 %666 }
 0x7a5   :  { %v669_v39 = vmul.f32 %v667_v31, %v659_v59  ;;  %v932_v31 = vld [vmem:[%s9089_s1 + $0x1] sm:$0x1] }
 0x7a7   :  { %671 = vrot.lane.b32.xlu2 %v669_v39, %s9124_s6 }
 0x7af   :  { %887 = vperm.xlu2 %5147, %v885_v6  }
 0x801   :  { %v874_v47 = vpop.permute.xlu1 %873  ;;  %v672_v49 = vpop.permute.xlu2 %671 }
 0x802   :  { %v6053_v48 = vadd.f32 %v874_v47, %v866_v15  ;;  %v6055_v61 = vadd.f32 %v672_v49, %v664_v42  ;;  %v936_v49 = vld [vmem:[%s9089_s1 + $0x21] sm:$0x1] }
 0x804   :  { %5227 = vtanh.f32 %v6053_v48 }
 0x805   :  { %5229 = vtanh.f32 %v6055_v61 }
 0x809   :  { %v6086_v63 = vpop.permute.xlu2 %887 }
 0x80a   :  { %v5228_v10 = vpop.eup %5227  ;;  %vm889_vm1 = vcmp.eq.s32.totalorder %v6086_v63, 1 }
 0x80b   :  { %v5230_v43 = vpop.eup %5229  ;;  %879 = vrot.lane.b32.xlu0 %v5228_v10, %s9165_s25 }
 0x80c   :  { %677 = vrot.lane.b32.xlu1 %v5230_v43, %s9165_s25 }
 0x813   :  { %685 = vperm.xlu0 %5141, %v6071_v16  }
 0x81b   :  { %5148 = vset.pattern.permute.xlu0 %v5368_v18 }
 0x81c   :  { %942 = vperm.xlu0 %5148, %v5630_v44  }
 0x824   :  { %495 = vrot.lane.b32.xlu0 %v5826_v11, %s9166_s5 }
 0x87d   :  { %v880_v51 = vpop.permute.xlu0 %879 }
 0x87e   :  { %v882_v8 = vmul.f32 %v880_v51, %v861_v24  ;;  %v678_v9 = vpop.permute.xlu1 %677 }
 0x87f   :  { %v680_v52 = vmul.f32 %v678_v9, %v659_v59  ;;  %v938_v9 = vld [vmem:[%s9089_s1 + $0x31] sm:$0x1] }
 0x880   :  { %891 = vrot.lane.b32.xlu1 %v882_v8, %s9124_s6 }
 0x881   :  { %689 = vrot.lane.b32.xlu2 %v680_v52, %s9124_s6  ;;  %s9172_s6 = smov 32  }
 0x885   :  { %v6088_v44 = vpop.permute.xlu0 %685 }
 0x886   :  { %vm9126_vm15 = vcmp.eq.s32.totalorder %v6088_v44, 1 }
 0x888   :  { %970 = vperm.xlu1 %5145, %v6083_v14  }
 0x88e   :  { %v943_v55 = vpop.permute.xlu0 %942 }
 0x88f   :  { %v944_v36 = vrot.slane %v943_v55, 1  ;;  %v945_v59 = vrot.slane %v943_v55, 2  ;;  %v946_v39 = vrot.slane %v943_v55, 3  ;;  %v959_v15 = vmul.f32 %v943_v55, %v932_v31 }
 0x890   :  { %v947_v47 = vrot.slane %v943_v55, 4  ;;  %v948_v50 = vrot.slane %v943_v55, 5  ;;  %v949_v51 = vrot.slane %v943_v55, 6 }
 0x891   :  { %v960_v38 = vmul.f32 %v944_v36, %v933_v41  ;;  %v961_v60 = vmul.f32 %v945_v59, %v934_v1  ;;  %v962_v2 = vmul.f32 %v946_v39, %v935_v40  ;;  %v5353_v1 = vld [vmem:[%s9151_s14 + $0x8] sm:$0xff] }
 0x892   :  { %v963_v10 = vmul.f32 %v947_v47, %v936_v49  ;;  %v964_v52 = vmul.f32 %v948_v50, %v937_v7 }
 0x893   :  { %v982_v42 = vrot.slane %v960_v38, 7  ;;  %v984_v5 = vrot.slane %v961_v60, 6  ;;  %v986_v43 = vrot.slane %v962_v2, 5  ;;  %v1094_v38 = vadd.f32 %v5353_v1, %v6083_v14 }
 0x895   :  { %v983_v6 = vsel %vm149_vm2, %v982_v42, %v959_v15 }
 0x896   :  { %v985_v8 = vsel %vm152_vm3, %v984_v5, %v983_v6 }
 0x8db   :  { %v690_v11 = vpop.permute.xlu2 %689 }
 0x8dc   :  { %v6094_v19 = vsel %vm9126_vm15, %v5633_v45, %v690_v11  ;;  %v988_v11 = vrot.slane %v963_v10, 4  ;;  %vm9171_vm15 = vcmask 850944  }
 0x8dd   :  { %v699_v53 = vrot.slane %v6094_v19, 1  ;;  %v700_v21 = vrot.slane %v6094_v19, 2  ;;  %v701_v54 = vrot.slane %v6094_v19, 3  ;;  %713 = vst.msk [vmem:[%s9096_s19] sm:$0x1] %vm295_vm11, %v6094_v19  ;;  %v702_v22 = vrot.slane %v6094_v19, 4 }
 0x8de   :  { %v703_v24 = vrot.slane %v6094_v19, 5  ;;  %v704_v45 = vrot.slane %v6094_v19, 6  ;;  %v705_v4 = vrot.slane %v6094_v19, 7 }
 0x8df   :  { %714 = vst.msk [vmem:[%s9096_s19 + $0x8] sm:$0x1] %vm295_vm11, %v699_v53  ;;  %v950_v53 = vrot.slane %v943_v55, 7 }
 0x8e0   :  { %715 = vst.msk [vmem:[%s9096_s19 + $0x10] sm:$0x1] %vm295_vm11, %v700_v21  ;;  %v987_v21 = vsel %vm155_vm4, %v986_v43, %v985_v8 }
 0x8e1   :  { %716 = vst.msk [vmem:[%s9096_s19 + $0x18] sm:$0x1] %vm295_vm11, %v701_v54  ;;  %v939_v54 = vld [vmem:[%s9089_s1 + $0x39] sm:$0x1] }
 0x8e2   :  { %717 = vst.msk [vmem:[%s9096_s19 + $0x20] sm:$0x1] %vm295_vm11, %v702_v22  ;;  %v965_v22 = vmul.f32 %v949_v51, %v938_v9 }
 0x8e3   :  { %718 = vst.msk [vmem:[%s9096_s19 + $0x28] sm:$0x1] %vm295_vm11, %v703_v24  ;;  %v990_v24 = vrot.slane %v964_v52, 3 }
 0x8e4   :  { %719 = vst.msk [vmem:[%s9096_s19 + $0x30] sm:$0x1] %vm295_vm11, %v704_v45  ;;  %v989_v45 = vsel %vm9131_vm5, %v988_v11, %v987_v21  ;;  %v6259_v21 = vld [vmem:[%s9149_s29] sm:$0xff] }
 0x8e5   :  { %720 = vst.msk [vmem:[%s9096_s19 + $0x38] sm:$0x1] %vm295_vm11, %v705_v4  ;;  %v966_v4 = vmul.f32 %v950_v53, %v939_v54  ;;  %v5370_v54 = vmov 2  }
 0x8e6   :  { %5149 = vset.pattern.permute.xlu2 %v5370_v54 }
 0x8f2   :  { %v892_v25 = vpop.permute.xlu1 %891 }
 0x8f3   :  { %v6140_v3 = vsel %vm889_vm1, %v5709_v62, %v892_v25 }
 0x8f4   :  { %v901_v56 = vrot.slane %v6140_v3, 1  ;;  %v902_v13 = vrot.slane %v6140_v3, 2  ;;  %v903_v28 = vrot.slane %v6140_v3, 3  ;;  %915 = vst.msk [vmem:[%s9087_s17 + $0x1] sm:$0x1] %vm295_vm11, %v6140_v3  ;;  %v904_v12 = vrot.slane %v6140_v3, 4 }
 0x8f5   :  { %v967_v30 = vmul.f32 %v943_v55, %v6140_v3  ;;  %v905_v62 = vrot.slane %v6140_v3, 5  ;;  %v906_v57 = vrot.slane %v6140_v3, 6  ;;  %v907_v32 = vrot.slane %v6140_v3, 7 }
 0x8f6   :  { %916 = vst.msk [vmem:[%s9087_s17 + $0x9] sm:$0x1] %vm295_vm11, %v901_v56  ;;  %v992_v56 = vrot.slane %v965_v22, 2 }
 0x8f7   :  { %917 = vst.msk [vmem:[%s9087_s17 + $0x11] sm:$0x1] %vm295_vm11, %v902_v13  ;;  %998 = vrot.lane.b32.xlu2 %v967_v30, %s9167_s24  ;;  %v991_v13 = vsel %vm161_vm6, %v990_v24, %v989_v45  ;;  %v6269_v45 = vld [vmem:[%s9151_s14] sm:$0xff] }
 0x8f8   :  { %918 = vst.msk [vmem:[%s9087_s17 + $0x19] sm:$0x1] %vm295_vm11, %v903_v28  ;;  %v994_v28 = vrot.slane %v966_v4, 1  ;;  %v1421_v4 = vld [vmem:[%s9084_s11 + $0x48] sm:$0xff] }
 0x8f9   :  { %919 = vst.msk [vmem:[%s9087_s17 + $0x21] sm:$0x1] %vm295_vm11, %v904_v12  ;;  %v993_v12 = vsel %vm164_vm7, %v992_v56, %v991_v13  ;;  %1435 = vmatpush.msrb.mxu3 %v1421_v4  ;;  %v1419_v56 = vld [vmem:[%s9084_s11 + $0x38] sm:$0xff] }
 0x8fa   :  { %920 = vst.msk [vmem:[%s9087_s17 + $0x29] sm:$0x1] %vm295_vm11, %v905_v62  ;;  %v971_v34 = vpop.permute.xlu1 %970  ;;  %v995_v55 = vsel %vm9133_vm8, %v994_v28, %v993_v12  ;;  %v1417_v28 = vld [vmem:[%s9084_s11 + $0x28] sm:$0xff]  ;;  %v1416_v12 = vld [vmem:[%s9084_s11 + $0x20] sm:$0xff] }
 0x8fb   :  { %921 = vst.msk [vmem:[%s9087_s17 + $0x31] sm:$0x1] %vm295_vm11, %v906_v57  ;;  %v973_v58 = vmul.f32 %v971_v34, %v6094_v19 }
 0x8fc   :  { %922 = vst.msk [vmem:[%s9087_s17 + $0x39] sm:$0x1] %vm295_vm11, %v907_v32 }
 0x8fd   :  { %1002 = vrot.lane.b32.xlu1 %v973_v58, %s9159_s4  ;;  %v496_v58 = vpop.permute.xlu0 %495 }
 0x8fe   :  { %v498_v36 = vsel %vm488_vm14, %v5808_v27, %v496_v58  ;;  %v5187_v27 = vld [vmem:[%s9090_s15] ss:$0 sm:$0xff] }
 0x8ff   :  { %1005 = vrot.lane.b32.xlu2 %v5846_v23, %s9168_s26 }
 0x905   :  { %928 = vperm.xlu1 %5145, %v925_v35  }
 0x90d   :  { %5150 = vset.pattern.permute.xlu1 %v5370_v54 }
 0x951   :  { %v999_v25 = vpop.permute.xlu2 %998 }
 0x952   :  { %v1008_v30 = vsel %vm9132_vm13, %v995_v55, %v999_v25  ;;  %v1420_v25 = vld [vmem:[%s9084_s11 + $0x40] sm:$0xff]  ;;  %v6296_v55 = vld [vmem:[%s9084_s11 + $0x18] sm:$0xff] }
 0x953   :  { %1436 = vmatpush.msrb.mxu3 %v1420_v25 }
 0x955   :  { %1437 = vmatpush.msrb.mxu3 %v1419_v56 }
 0x959   :  { %v1006_v57 = vpop.permute.xlu2 %1005 }
 0x96f   :  { %v1003_v62 = vpop.permute.xlu1 %1002 }
 0x970   :  { %v1009_v32 = vsel %vm9169_vm0, %v1008_v30, %v1003_v62  ;;  %vm1095_vm0 = vcmp.eq.f32.partialorder %v1094_v38, 0.0  ;;  %v1413_v38 = vld [vmem:[%s9084_s11 + $0x8] sm:$0xff] }
 0x971   :  { %v1010_v34 = vsel %vm9170_vm12, %v1009_v32, %v1006_v57  ;;  %v1096_v31 = vsel %vm1095_vm0, 1, %v5360_v0  ;;  %v1414_v32 = vld [vmem:[%s9084_s11 + $0x10] sm:$0xff] }
 0x972   :  { %5039 = vmatmul.msk.f32.vlgmr.msrb.gmra.mxu2 %vm9171_vm15, %v1010_v34 }
 0x977   :  { %v929_v41 = vpop.permute.xlu1 %928 }
 0x978   :  { %v6229_v59 = vmul.f32 %v929_v41, %v498_v36 }
 0x97a   :  { %1074 = vrot.lane.b32.xlu0 %v6229_v59, %s9172_s6 }
 0x982   :  { %1098 = vperm.xlu0 %5148, %v1096_v31  }
 0x98a   :  { %1153 = vperm.xlu0 %5148, %v5816_v29  }
 0x992   :  { %1407 = vrot.lane.b32.xlu0 %v6140_v3, %s9173_s28 }
 0x99a   :  { %896 = vrot.lane.b32.xlu0 %v6053_v48, %s9166_s5 }
 0x9a2   :  { %1139 = vperm.xlu0 %5148, %v526_v46  }
 0x9aa   :  { %5151 = vset.pattern.permute.xlu0 %v5370_v54 }
 0x9ec   :  { %v1075_v8 = vpop.permute.xlu0 %1074 }
 0x9f4   :  { %v6282_v13 = vpop.permute.xlu0 %1098 }
 0x9f5   :  { %v1048_v20 = vpop.f32.mrf.mxu2 }
 0x9f6   :  { %v1049_v39 = vadd.f32 %v5187_v27, %v1048_v20 }
 0x9f8   :  { %v5040_v40 = vmul.f32 -1.442695, %v1049_v39 }
 0x9fa   :  { %5231 = vpow2.f32 %v5040_v40  ;;  %v1332_v40 = vsub.f32 1.0, %v6259_v21 }
 0xa00   :  { %v5232_v60 = vpop.eup %5231 }
 0xa01   :  { %v1054_v15 = vadd.f32 1.0, %v5232_v60 }
 0xa03   :  { %5233 = vrcp.f32 %v1054_v15  ;;  %v1066_v49 = vand.u32 2147483648, %v1054_v15  ;;  %v1064_v48 = vand.u32 2147483647, %v1054_v15  ;;  %vm1060_vm15 = vweird.f32 %v1054_v15 }
 0xa05   :  { %v1067_v46 = vor.u32 1.1754944e-38, %v1066_v49  ;;  %vm1065_vm0 = vcmp.eq.f32.partialorder %v1064_v48, 8.507059e+37 }
 0xa09   :  { %v5234_v29 = vpop.eup %5233 }
 0xa0a   :  { %v1056_v42 = vmul.f32 %v5234_v29, %v1054_v15  ;;  %vm1061_vm14 = vweird.f32 %v5234_v29  ;;  %v1412_v15 = vld [vmem:[%s9084_s11] sm:$0xff] }
 0xa0b   :  { %vm1062_vm12 = vmor %vm1060_vm15, %vm1061_vm14  ;;  %vm1100_vm14 = vcmp.eq.s32.totalorder %v6282_v13, 1  ;;  %vm9174_vm15 = vcmask 392192  }
 0xa0c   :  { %v1057_v47 = vsub.f32 1.0, %v1056_v42  ;;  %v1340_v42 = vld [vmem:[%s9085_s0 + $0xa] sm:$0x1] }
 0xa0e   :  { %v1058_v2 = vmul.f32 %v5234_v29, %v1057_v47 }
 0xa10   :  { %v1059_v37 = vadd.f32 %v5234_v29, %v1058_v2  ;;  %v1339_v2 = vld [vmem:[%s9085_s0 + $0x2] sm:$0x1] }
 0xa12   :  { %v1063_v5 = vsel %vm1062_vm12, %v5234_v29, %v1059_v37  ;;  %v1342_v37 = vld [vmem:[%s9085_s0 + $0x1a] sm:$0x1]  ;;  %vm9175_vm12 = vcmask 654336  }
 0xa13   :  { %v1068_v50 = vsel %vm1065_vm0, %v1067_v46, %v1063_v5  ;;  %vm9177_vm0 = vcmask 588800  }
 0xa14   :  { %v1070_v6 = vmul.f32 2.0, %v1068_v50 }
 0xa16   :  { %v5041_v7 = vadd.f32 -1.0, %v1070_v6 }
 0xa18   :  { %v1072_v10 = vsel %vm5613_vm10, %v5041_v7, %v1068_v50  ;;  %v1343_v7 = vld [vmem:[%s9085_s0 + $0x22] sm:$0x1] }
 0xa19   :  { %1079 = vrot.lane.b32.xlu2 %v1072_v10, %s9165_s25  ;;  %v1077_v9 = vmul.f32 %v1075_v8, %v1072_v10 }
 0xa73   :  { %v1080_v43 = vpop.permute.xlu2 %1079 }
 0xa74   :  { %v1082_v51 = vmul.f32 %v1080_v43, %v1072_v10 }
 0xa76   :  { %1084 = vrot.lane.b32.xlu1 %v1082_v51, %s9172_s6 }
 0xae8   :  { %v1085_v52 = vpop.permute.xlu1 %1084 }
 0xae9   :  { %v6252_v11 = vadd.f32 %v1085_v52, %v1077_v9  ;;  %v1344_v9 = vld [vmem:[%s9085_s0 + $0x2a] sm:$0x1] }
 0xaeb   :  { %5235 = vtanh.f32 %v6252_v11 }
 0xaf1   :  { %v5236_v53 = vpop.eup %5235 }
 0xaf2   :  { %1090 = vrot.lane.b32.xlu2 %v5236_v53, %s9165_s25 }
 0xafa   :  { %1376 = vperm.xlu2 %5149, %v6259_v21  }
 0xb4c   :  { %v1091_v22 = vpop.permute.xlu2 %1090 }
 0xb4d   :  { %v1093_v24 = vmul.f32 %v1091_v22, %v1072_v10 }
 0xb4f   :  { %1102 = vrot.lane.b32.xlu1 %v1093_v24, %s9172_s6 }
 0xb54   :  { %v1377_v62 = vpop.permute.xlu2 %1376 }
 0xb57   :  { %1349 = vperm.xlu1 %5150, %v6269_v45  }
 0xb5f   :  { %5152 = vset.pattern.permute.xlu1 %v5368_v18  ;;  %v1418_v18 = vld [vmem:[%s9084_s11 + $0x30] sm:$0xff] }
 0xb60   :  { %1438 = vmatpush.msrb.mxu3 %v1418_v18 }
 0xb62   :  { %1439 = vmatpush.msrb.mxu3 %v1417_v28 }
 0xb64   :  { %1440 = vmatpush.msrb.mxu3 %v1416_v12 }
 0xb66   :  { %1441 = vmatpush.msrb.mxu3 %v6296_v55 }
 0xb68   :  { %1442 = vmatpush.msrb.mxu3 %v1414_v32 }
 0xb6a   :  { %1443 = vmatpush.msrb.mxu3 %v1413_v38 }
 0xb6c   :  { %1444 = vmatpush.msrb.mxu3 %v1412_v15 }
 0xb6e   :  { %2044 = vmatpush.msra.mxu3 %v1421_v4  ;;  %v1345_v4 = vld [vmem:[%s9085_s0 + $0x32] sm:$0x1] }
 0xb70   :  { %2045 = vmatpush.msra.mxu3 %v1420_v25 }
 0xb72   :  { %2046 = vmatpush.msra.mxu3 %v1419_v56 }
 0xb74   :  { %2047 = vmatpush.msra.mxu3 %v1418_v18 }
 0xb76   :  { %2048 = vmatpush.msra.mxu3 %v1417_v28 }
 0xb78   :  { %2049 = vmatpush.msra.mxu3 %v1416_v12  ;;  %v1346_v12 = vld [vmem:[%s9085_s0 + $0x3a] sm:$0x1] }
 0xb7a   :  { %2050 = vmatpush.msra.mxu3 %v6296_v55 }
 0xb7c   :  { %2051 = vmatpush.msra.mxu3 %v1414_v32 }
 0xb7e   :  { %2052 = vmatpush.msra.mxu3 %v1413_v38 }
 0xb80   :  { %2053 = vmatpush.msra.mxu3 %v1412_v15 }
 0xbc1   :  { %v1103_v30 = vpop.permute.xlu1 %1102 }
 0xbc2   :  { %v6302_v57 = vsel %vm1100_vm14, %v5846_v23, %v1103_v30  ;;  %v6316_v23 = vpop.permute.xlu0 %1153 }
 0xbc3   :  { %v1112_v34 = vrot.slane %v6302_v57, 1  ;;  %v1113_v58 = vrot.slane %v6302_v57, 2  ;;  %v1114_v36 = vrot.slane %v6302_v57, 3  ;;  %1126 = vst.msk [vmem:[%s9091_s18 + $0x1] sm:$0x1] %vm295_vm11, %v6302_v57  ;;  %v1115_v41 = vrot.slane %v6302_v57, 4 }
 0xbc4   :  { %v1379_v1 = vmul.f32 %v1377_v62, %v6302_v57  ;;  %v1116_v31 = vrot.slane %v6302_v57, 5  ;;  %v1178_v27 = vmul.f32 %v6316_v23, %v6302_v57  ;;  %v1117_v20 = vrot.slane %v6302_v57, 6 }
 0xbc5   :  { %1127 = vst.msk [vmem:[%s9091_s18 + $0x9] sm:$0x1] %vm295_vm11, %v1112_v34  ;;  %v1118_v39 = vrot.slane %v6302_v57, 7 }
 0xbc6   :  { %1128 = vst.msk [vmem:[%s9091_s18 + $0x11] sm:$0x1] %vm295_vm11, %v1113_v58  ;;  %1404 = vrot.lane.b32.xlu2 %v1379_v1, %s9158_s9  ;;  %1203 = vrot.lane.b32.xlu1 %v1178_v27, %s9167_s24  ;;  %v1144_v1 = vld [vmem:[%s9093_s2 + $0x9] sm:$0x1] }
 0xbc7   :  { %1129 = vst.msk [vmem:[%s9091_s18 + $0x19] sm:$0x1] %vm295_vm11, %v1114_v36  ;;  %v1155_v36 = vrot.slane %v6316_v23, 1  ;;  %v1145_v27 = vld [vmem:[%s9093_s2 + $0x11] sm:$0x1] }
 0xbc8   :  { %1130 = vst.msk [vmem:[%s9091_s18 + $0x21] sm:$0x1] %vm295_vm11, %v1115_v41 }
 0xbc9   :  { %1131 = vst.msk [vmem:[%s9091_s18 + $0x29] sm:$0x1] %vm295_vm11, %v1116_v31  ;;  %v1350_v60 = vpop.permute.xlu1 %1349  ;;  %v1156_v31 = vrot.slane %v6316_v23, 2 }
 0xbca   :  { %1132 = vst.msk [vmem:[%s9091_s18 + $0x31] sm:$0x1] %vm295_vm11, %v1117_v20  ;;  %v1351_v29 = vrot.slane %v1350_v60, 1  ;;  %v1352_v47 = vrot.slane %v1350_v60, 2  ;;  %v1353_v48 = vrot.slane %v1350_v60, 3  ;;  %v1366_v5 = vmul.f32 %v1350_v60, %v1339_v2  ;;  %v1408_v15 = vpop.permute.xlu0 %1407 }
 0xbcb   :  { %1133 = vst.msk [vmem:[%s9091_s18 + $0x39] sm:$0x1] %vm295_vm11, %v1118_v39  ;;  %v1354_v6 = vrot.slane %v1350_v60, 4  ;;  %v1355_v51 = vrot.slane %v1350_v60, 5  ;;  %v1356_v22 = vrot.slane %v1350_v60, 6  ;;  %v1357_v18 = vrot.slane %v1350_v60, 7 }
 0xbcc   :  { %v1367_v49 = vmul.f32 %v1351_v29, %v1340_v42  ;;  %v1369_v10 = vmul.f32 %v1353_v48, %v1342_v37  ;;  %v1171_v20 = vmul.f32 %v1155_v36, %v1144_v1  ;;  %v1146_v48 = vld [vmem:[%s9093_s2 + $0x19] sm:$0x1] }
 0xbcd   :  { %v1370_v52 = vmul.f32 %v1354_v6, %v1343_v7  ;;  %v1371_v25 = vmul.f32 %v1355_v51, %v1344_v9  ;;  %v1372_v55 = vmul.f32 %v1356_v22, %v1345_v4  ;;  %v1373_v32 = vmul.f32 %v1357_v18, %v1346_v12  ;;  %v1148_v51 = vld [vmem:[%s9093_s2 + $0x29] sm:$0x1] }
 0xbce   :  { %1206 = vrot.lane.b32.xlu2 %v6094_v19, %s9159_s4  ;;  %694 = vrot.lane.b32.xlu1 %v6055_v61, %s9166_s5  ;;  %v1341_v61 = vld [vmem:[%s9085_s0 + $0x12] sm:$0x1]  ;;  %v1388_v50 = vrot.slane %v1367_v49, 7  ;;  %v1392_v53 = vrot.slane %v1369_v10, 5  ;;  %v1157_v49 = vrot.slane %v6316_v23, 3  ;;  %v1187_v2 = vrot.slane %v1171_v20, 7 }
 0xbcf   :  { %v1368_v46 = vmul.f32 %v1352_v47, %v1341_v61  ;;  %v1394_v56 = vrot.slane %v1370_v52, 4  ;;  %v1396_v30 = vrot.slane %v1371_v25, 3  ;;  %v1398_v34 = vrot.slane %v1372_v55, 2  ;;  %v1143_v47 = vld [vmem:[%s9093_s2 + $0x1] sm:$0x1] }
 0xbd0   :  { %v1389_v8 = vsel %vm149_vm2, %v1388_v50, %v1366_v5  ;;  %v1400_v41 = vrot.slane %v1373_v32, 1  ;;  %v1172_v61 = vmul.f32 %v1156_v31, %v1145_v27  ;;  %v1170_v37 = vmul.f32 %v6316_v23, %v1143_v47  ;;  %v1147_v50 = vld [vmem:[%s9093_s2 + $0x21] sm:$0x1]  ;;  %v1150_v55 = vld [vmem:[%s9093_s2 + $0x39] sm:$0x1] }
 0xbd1   :  { %v1390_v43 = vrot.slane %v1368_v46, 6  ;;  %v1158_v46 = vrot.slane %v6316_v23, 4  ;;  %v1173_v6 = vmul.f32 %v1157_v49, %v1146_v48  ;;  %v1161_v18 = vrot.slane %v6316_v23, 7  ;;  %v5188_v27 = vld [vmem:[%s9155_s8] ss:$0 sm:$0xff] }
 0xbd2   :  { %v1189_v5 = vrot.slane %v1172_v61, 6  ;;  %v1188_v7 = vsel %vm149_vm2, %v1187_v2, %v1170_v37  ;;  %v897_v22 = vpop.permute.xlu0 %896 }
 0xbd3   :  { %v1391_v24 = vsel %vm152_vm3, %v1390_v43, %v1389_v8  ;;  %v1159_v43 = vrot.slane %v6316_v23, 5  ;;  %v1174_v8 = vmul.f32 %v1158_v46, %v1147_v50  ;;  %v1191_v52 = vrot.slane %v1173_v6, 5 }
 0xbd4   :  { %v1393_v28 = vsel %vm155_vm4, %v1392_v53, %v1391_v24  ;;  %v1190_v9 = vsel %vm152_vm3, %v1189_v5, %v1188_v7  ;;  %v1160_v53 = vrot.slane %v6316_v23, 6  ;;  %v1149_v24 = vld [vmem:[%s9093_s2 + $0x31] sm:$0x1] }
 0xbd5   :  { %v1395_v62 = vsel %vm9131_vm5, %v1394_v56, %v1393_v28  ;;  %v1175_v4 = vmul.f32 %v1159_v43, %v1148_v51  ;;  %v1192_v25 = vsel %vm155_vm4, %v1191_v52, %v1190_v9  ;;  %v1193_v56 = vrot.slane %v1174_v8, 4 }
 0xbd6   :  { %1335 = vperm.xlu2 %5149, %v1332_v40   ;;  %v1397_v58 = vsel %vm161_vm6, %v1396_v30, %v1395_v62  ;;  %v899_v28 = vsel %vm889_vm1, %v6031_v17, %v897_v22  ;;  %v1176_v30 = vmul.f32 %v1160_v53, %v1149_v24  ;;  %vm9176_vm1 = vcmask 326656  }
 0xbd7   :  { %v1399_v38 = vsel %vm164_vm7, %v1398_v34, %v1397_v58  ;;  %v1194_v62 = vsel %vm9131_vm5, %v1193_v56, %v1192_v25  ;;  %v1195_v34 = vrot.slane %v1175_v4, 3  ;;  %v1177_v58 = vmul.f32 %v1161_v18, %v1150_v55 }
 0xbd8   :  { %v1401_v39 = vsel %vm9133_vm8, %v1400_v41, %v1399_v38  ;;  %v1197_v36 = vrot.slane %v1176_v30, 2 }
 0xbd9   :  { %v1196_v23 = vsel %vm161_vm6, %v1195_v34, %v1194_v62  ;;  %v1199_v63 = vrot.slane %v1177_v58, 1 }
 0xbda   :  { %v1198_v17 = vsel %vm164_vm7, %v1197_v36, %v1196_v23  ;;  %v1140_v56 = vpop.permute.xlu0 %1139 }
 0xbdb   :  { %v1200_v41 = vsel %vm9133_vm8, %v1199_v63, %v1198_v17  ;;  %v1492_v63 = vadd.f32 %v6259_v21, %v6269_v45 }
 0xc20   :  { %v1405_v60 = vpop.permute.xlu2 %1404 }
 0xc21   :  { %v1410_v29 = vsel %vm9127_vm9, %v1401_v39, %v1405_v60  ;;  %vm9178_vm9 = vcmp.eq.s32.totalorder %v6088_v44, 1 }
 0xc22   :  { %v1411_v42 = vsel %vm9174_vm15, %v1410_v29, %v1408_v15 }
 0xc23   :  { %5047 = vmatmul.msk.f32.vlgmr.msrb.gmra.mxu3 %vm9175_vm12, %v1411_v42  ;;  %v5189_v42 = vld [vmem:[%s9095_s16] ss:$0 sm:$0xff] }
 0xc28   :  { %v1207_v10 = vpop.permute.xlu2 %1206 }
 0xc30   :  { %v1336_v12 = vpop.permute.xlu2 %1335 }
 0xc31   :  { %v6442_v32 = vmul.f32 %v1336_v12, %v899_v28 }
 0xc33   :  { %1472 = vrot.lane.b32.xlu0 %v6442_v32, %s9172_s6 }
 0xc38   :  { %v1204_v1 = vpop.permute.xlu1 %1203 }
 0xc39   :  { %v1209_v38 = vsel %vm9132_vm13, %v1200_v41, %v1204_v1 }
 0xc3a   :  { %v1210_v31 = vsel %vm9176_vm1, %v1209_v38, %v1207_v10 }
 0xc3b   :  { %5044 = vmatmul.msk.f32.vlgmr.msrb.gmra.mxu0 %vm9177_vm0, %v1210_v31 }
 0xc40   :  { %v695_v22 = vpop.permute.xlu1 %694 }
 0xc41   :  { %v697_v4 = vsel %vm9178_vm9, %v6044_v26, %v695_v22  ;;  %vm1493_vm9 = vcmp.eq.f32.partialorder %v1492_v63, 0.0  ;;  %v1625_v63 = vld [vmem:[%s9086_s12 + $0x28] sm:$0xff] }
 0xc42   :  { %v6464_v18 = vmul.f32 %v1140_v56, %v697_v4  ;;  %v6476_v31 = vsel %vm1493_vm9, 1, %v5360_v0  ;;  %v1628_v4 = vld [vmem:[%s9086_s12 + $0x40] sm:$0xff]  ;;  %vm9181_vm9 = vcmask 850944  }
 0xca6   :  { %v1446_v20 = vpop.f32.mrf.mxu3 }
 0xca7   :  { %v1447_v39 = vadd.f32 %v5188_v27, %v1446_v20  ;;  %v1473_v27 = vpop.permute.xlu0 %1472 }
 0xca9   :  { %v5048_v60 = vmul.f32 -1.442695, %v1447_v39 }
 0xcab   :  { %5237 = vpow2.f32 %v5048_v60 }
 0xcb1   :  { %v5238_v15 = vpop.eup %5237 }
 0xcb2   :  { %v1452_v29 = vadd.f32 1.0, %v5238_v15 }
 0xcb4   :  { %5239 = vrcp.f32 %v1452_v29  ;;  %v1464_v46 = vand.u32 2147483648, %v1452_v29  ;;  %v1462_v50 = vand.u32 2147483647, %v1452_v29  ;;  %vm1458_vm12 = vweird.f32 %v1452_v29 }
 0xcb6   :  { %v1465_v7 = vor.u32 1.1754944e-38, %v1464_v46  ;;  %vm1463_vm0 = vcmp.eq.f32.partialorder %v1462_v50, 8.507059e+37 }
 0xcb8   :  { %v1244_v47 = vpop.f32.mrf.mxu0 }
 0xcb9   :  { %v1245_v49 = vadd.f32 %v5189_v42, %v1244_v47 }
 0xcba   :  { %v5240_v61 = vpop.eup %5239 }
 0xcbb   :  { %v1454_v2 = vmul.f32 %v5240_v61, %v1452_v29  ;;  %v5045_v48 = vmul.f32 -1.442695, %v1245_v49  ;;  %vm1459_vm15 = vweird.f32 %v5240_v61 }
 0xcbc   :  { %vm1460_vm1 = vmor %vm1458_vm12, %vm1459_vm15 }
 0xcbd   :  { %v1455_v37 = vsub.f32 1.0, %v1454_v2  ;;  %5241 = vpow2.f32 %v5045_v48 }
 0xcbf   :  { %v1456_v5 = vmul.f32 %v5240_v61, %v1455_v37 }
 0xcc1   :  { %v1457_v6 = vadd.f32 %v5240_v61, %v1456_v5 }
 0xcc3   :  { %v1461_v10 = vsel %vm1460_vm1, %v5240_v61, %v1457_v6  ;;  %v5242_v43 = vpop.eup %5241  ;;  %v1632_v6 = vld [vmem:[%s9086_s12 + $0x60] sm:$0xff] }
 0xcc4   :  { %v1466_v51 = vsel %vm1463_vm0, %v1465_v7, %v1461_v10  ;;  %v1250_v8 = vadd.f32 1.0, %v5242_v43  ;;  %v1631_v7 = vld [vmem:[%s9086_s12 + $0x58] sm:$0xff]  ;;  %1643 = vmatpush.msrb.mxu1 %v1632_v6  ;;  %2252 = vmatpush.msra.mxu2 %v1632_v6  ;;  %v1545_v6 = vld [vmem:[%s9089_s1 + $0x22] sm:$0x1] }
 0xcc5   :  { %v1468_v9 = vmul.f32 2.0, %v1466_v51 }
 0xcc6   :  { %5243 = vrcp.f32 %v1250_v8  ;;  %v1262_v12 = vand.u32 2147483648, %v1250_v8  ;;  %v1260_v30 = vand.u32 2147483647, %v1250_v8  ;;  %vm1256_vm12 = vweird.f32 %v1250_v8  ;;  %1644 = vmatpush.msrb.mxu1 %v1631_v7  ;;  %2253 = vmatpush.msra.mxu2 %v1631_v7 }
 0xcc7   :  { %v5049_v52 = vadd.f32 -1.0, %v1468_v9  ;;  %v1630_v9 = vld [vmem:[%s9086_s12 + $0x50] sm:$0xff] }
 0xcc8   :  { %v1263_v34 = vor.u32 1.1754944e-38, %v1262_v12  ;;  %vm1261_vm0 = vcmp.eq.f32.partialorder %v1260_v30, 8.507059e+37  ;;  %1645 = vmatpush.msrb.mxu1 %v1630_v9  ;;  %2254 = vmatpush.msra.mxu2 %v1630_v9 }
 0xcc9   :  { %v1470_v53 = vsel %vm5613_vm10, %v5049_v52, %v1466_v51 }
 0xcca   :  { %1477 = vrot.lane.b32.xlu1 %v1470_v53, %s9165_s25  ;;  %v1475_v20 = vmul.f32 %v1473_v27, %v1470_v53  ;;  %v1620_v27 = vld [vmem:[%s9086_s12] sm:$0xff] }
 0xccc   :  { %v5244_v24 = vpop.eup %5243 }
 0xccd   :  { %v1252_v25 = vmul.f32 %v5244_v24, %v1250_v8  ;;  %vm1257_vm15 = vweird.f32 %v5244_v24 }
 0xcce   :  { %vm1258_vm1 = vmor %vm1256_vm12, %vm1257_vm15 }
 0xccf   :  { %v1253_v28 = vsub.f32 1.0, %v1252_v25 }
 0xcd1   :  { %v1254_v55 = vmul.f32 %v5244_v24, %v1253_v28 }
 0xcd2   :  { %1270 = vrot.lane.b32.xlu1 %v6464_v18, %s9172_s6 }
 0xcd3   :  { %v1255_v62 = vadd.f32 %v5244_v24, %v1254_v55 }
 0xcd5   :  { %v1259_v58 = vsel %vm1258_vm1, %v5244_v24, %v1255_v62  ;;  %vm9179_vm1 = vcmask 326656  }
 0xcd6   :  { %v1264_v44 = vsel %vm1261_vm0, %v1263_v34, %v1259_v58  ;;  %vm9180_vm0 = vcmask 588800  }
 0xcd7   :  { %v1266_v26 = vmul.f32 2.0, %v1264_v44 }
 0xcd9   :  { %v5046_v23 = vadd.f32 -1.0, %v1266_v26 }
 0xcdb   :  { %v1268_v36 = vsel %vm5613_vm10, %v5046_v23, %v1264_v44 }
 0xcdc   :  { %1275 = vrot.lane.b32.xlu2 %v1268_v36, %s9165_s25 }
 0xd36   :  { %v1276_v17 = vpop.permute.xlu2 %1275 }
 0xd37   :  { %v1278_v41 = vmul.f32 %v1276_v17, %v1268_v36  ;;  %v1626_v17 = vld [vmem:[%s9086_s12 + $0x30] sm:$0xff] }
 0xd39   :  { %1280 = vrot.lane.b32.xlu0 %v1278_v41, %s9172_s6  ;;  %v1622_v41 = vld [vmem:[%s9086_s12 + $0x10] sm:$0xff] }
 0xd3c   :  { %v1478_v1 = vpop.permute.xlu1 %1477 }
 0xd3d   :  { %v1480_v38 = vmul.f32 %v1478_v1, %v1470_v53 }
 0xd3f   :  { %1482 = vrot.lane.b32.xlu2 %v1480_v38, %s9172_s6  ;;  %v1621_v38 = vld [vmem:[%s9086_s12 + $0x8] sm:$0xff] }
 0xd41   :  { %1496 = vperm.xlu0 %5151, %v6476_v31  }
 0xd44   :  { %v1271_v29 = vpop.permute.xlu1 %1270 }
 0xd45   :  { %v1273_v42 = vmul.f32 %v1271_v29, %v1268_v36 }
 0xd49   :  { %1579 = vperm.xlu0 %5151, %v6083_v14   ;;  %v1624_v14 = vld [vmem:[%s9086_s12 + $0x20] sm:$0xff] }
 0xd51   :  { %1614 = vrot.lane.b32.xlu0 %v6302_v57, %s9168_s26 }
 0xd99   :  { %v1483_v39 = vpop.permute.xlu2 %1482 }
 0xd9a   :  { %v6482_v60 = vadd.f32 %v1483_v39, %v1475_v20  ;;  %v1542_v20 = vld [vmem:[%s9089_s1 + $0xa] sm:$0x1] }
 0xd9c   :  { %5245 = vtanh.f32 %v6482_v60 }
 0xda2   :  { %v5246_v15 = vpop.eup %5245 }
 0xda3   :  { %1488 = vrot.lane.b32.xlu1 %v5246_v15, %s9165_s25  ;;  %v1543_v15 = vld [vmem:[%s9089_s1 + $0x12] sm:$0x1] }
 0xdab   :  { %1294 = vperm.xlu1 %5152, %v6071_v16   ;;  %v1281_v47 = vpop.permute.xlu0 %1280  ;;  %v6497_v16 = vld [vmem:[%s9151_s14 + $0x8] sm:$0xff] }
 0xdac   :  { %v6487_v61 = vadd.f32 %v1281_v47, %v1273_v42  ;;  %v1541_v42 = vld [vmem:[%s9089_s1 + $0x2] sm:$0x1] }
 0xdae   :  { %5247 = vtanh.f32 %v6487_v61 }
 0xdb3   :  { %5153 = vset.pattern.permute.xlu1 %v5370_v54  ;;  %v6500_v5 = vpop.permute.xlu0 %1496 }
 0xdb4   :  { %v5248_v49 = vpop.eup %5247  ;;  %vm1498_vm15 = vcmp.eq.s32.totalorder %v6500_v5, 1 }
 0xdb5   :  { %1286 = vrot.lane.b32.xlu2 %v5248_v49, %s9165_s25 }
 0xdbb   :  { %v1580_v30 = vpop.permute.xlu0 %1579 }
 0xe0f   :  { %v1287_v2 = vpop.permute.xlu2 %1286 }
 0xe10   :  { %v1289_v48 = vmul.f32 %v1287_v2, %v1268_v36  ;;  %v1627_v36 = vld [vmem:[%s9086_s12 + $0x38] sm:$0xff] }
 0xe12   :  { %1298 = vrot.lane.b32.xlu1 %v1289_v48, %s9172_s6  ;;  %v1544_v48 = vld [vmem:[%s9089_s1 + $0x1a] sm:$0x1] }
 0xe15   :  { %v1489_v37 = vpop.permute.xlu1 %1488 }
 0xe16   :  { %v1491_v46 = vmul.f32 %v1489_v37, %v1470_v53  ;;  %v1629_v53 = vld [vmem:[%s9086_s12 + $0x48] sm:$0xff] }
 0xe17   :  { %1646 = vmatpush.msrb.mxu1 %v1629_v53  ;;  %2255 = vmatpush.msra.mxu2 %v1629_v53 }
 0xe18   :  { %1500 = vrot.lane.b32.xlu2 %v1491_v46, %s9172_s6 }
 0xe19   :  { %1647 = vmatpush.msrb.mxu1 %v1628_v4  ;;  %2256 = vmatpush.msra.mxu2 %v1628_v4 }
 0xe1b   :  { %1648 = vmatpush.msrb.mxu1 %v1627_v36  ;;  %2257 = vmatpush.msra.mxu2 %v1627_v36 }
 0xe1d   :  { %v6561_v56 = vpop.permute.xlu1 %1294  ;;  %1649 = vmatpush.msrb.mxu1 %v1626_v17  ;;  %2258 = vmatpush.msra.mxu2 %v1626_v17 }
 0xe1e   :  { %vm1296_vm12 = vcmp.eq.s32.totalorder %v6561_v56, 1 }
 0xe1f   :  { %1650 = vmatpush.msrb.mxu1 %v1625_v63  ;;  %2259 = vmatpush.msra.mxu2 %v1625_v63 }
 0xe20   :  { %1551 = vperm.xlu2 %5149, %v6497_v16  }
 0xe21   :  { %1651 = vmatpush.msrb.mxu1 %v1624_v14  ;;  %2260 = vmatpush.msra.mxu2 %v1624_v14  ;;  %v1615_v14 = vpop.permute.xlu0 %1614 }
 0xe72   :  { %v1501_v50 = vpop.permute.xlu2 %1500 }
 0xe73   :  { %v6512_v10 = vsel %vm1498_vm15, %v6140_v3, %v1501_v50 }
 0xe74   :  { %v1510_v43 = vrot.slane %v6512_v10, 1  ;;  %v1511_v51 = vrot.slane %v6512_v10, 2  ;;  %v1512_v8 = vrot.slane %v6512_v10, 3  ;;  %1524 = vst.msk [vmem:[%s9087_s17 + $0x2] sm:$0x1] %vm295_vm11, %v6512_v10  ;;  %v1513_v3 = vrot.slane %v6512_v10, 4 }
 0xe75   :  { %v1514_v52 = vrot.slane %v6512_v10, 5  ;;  %v1515_v22 = vrot.slane %v6512_v10, 6  ;;  %v1516_v24 = vrot.slane %v6512_v10, 7 }
 0xe76   :  { %1525 = vst.msk [vmem:[%s9087_s17 + $0xa] sm:$0x1] %vm295_vm11, %v1510_v43 }
 0xe77   :  { %1526 = vst.msk [vmem:[%s9087_s17 + $0x12] sm:$0x1] %vm295_vm11, %v1511_v51 }
 0xe78   :  { %1527 = vst.msk [vmem:[%s9087_s17 + $0x1a] sm:$0x1] %vm295_vm11, %v1512_v8  ;;  %v1546_v8 = vld [vmem:[%s9089_s1 + $0x2a] sm:$0x1] }
 0xe79   :  { %1528 = vst.msk [vmem:[%s9087_s17 + $0x22] sm:$0x1] %vm295_vm11, %v1513_v3 }
 0xe7a   :  { %1529 = vst.msk [vmem:[%s9087_s17 + $0x2a] sm:$0x1] %vm295_vm11, %v1514_v52  ;;  %v6555_v25 = vpop.permute.xlu2 %1551 }
 0xe7b   :  { %1530 = vst.msk [vmem:[%s9087_s17 + $0x32] sm:$0x1] %vm295_vm11, %v1515_v22  ;;  %v1576_v28 = vmul.f32 %v6555_v25, %v6512_v10  ;;  %v1553_v1 = vrot.slane %v6555_v25, 1  ;;  %v1554_v39 = vrot.slane %v6555_v25, 2  ;;  %v1555_v49 = vrot.slane %v6555_v25, 3 }
 0xe7c   :  { %1531 = vst.msk [vmem:[%s9087_s17 + $0x3a] sm:$0x1] %vm295_vm11, %v1516_v24  ;;  %v1568_v37 = vmul.f32 %v6555_v25, %v1541_v42  ;;  %v1556_v46 = vrot.slane %v6555_v25, 4  ;;  %v1557_v51 = vrot.slane %v6555_v25, 5  ;;  %v1558_v53 = vrot.slane %v6555_v25, 6 }
 0xe7d   :  { %1607 = vrot.lane.b32.xlu1 %v1576_v28, %s9167_s24  ;;  %v1569_v29 = vmul.f32 %v1553_v1, %v1542_v20  ;;  %v1570_v47 = vmul.f32 %v1554_v39, %v1543_v15  ;;  %v1571_v7 = vmul.f32 %v1555_v49, %v1544_v48  ;;  %v1547_v22 = vld [vmem:[%s9089_s1 + $0x32] sm:$0x1]  ;;  %v5190_v39 = vld [vmem:[%s9090_s15] ss:$0 sm:$0xff] }
 0xe7e   :  { %v1572_v9 = vmul.f32 %v1556_v46, %v1545_v6  ;;  %v1573_v24 = vmul.f32 %v1557_v51, %v1546_v8 }
 0xe7f   :  { %v1591_v2 = vrot.slane %v1569_v29, 7  ;;  %v1593_v50 = vrot.slane %v1570_v47, 6  ;;  %v1595_v52 = vrot.slane %v1571_v7, 5 }
 0xe80   :  { %v1597_v28 = vrot.slane %v1572_v9, 4 }
 0xe81   :  { %v1592_v43 = vsel %vm149_vm2, %v1591_v2, %v1568_v37 }
 0xe82   :  { %v1594_v3 = vsel %vm152_vm3, %v1593_v50, %v1592_v43 }
 0xe83   :  { %v1596_v4 = vsel %vm155_vm4, %v1595_v52, %v1594_v3 }
 0xe84   :  { %v1299_v12 = vpop.permute.xlu1 %1298 }
 0xe85   :  { %1107 = vrot.lane.b32.xlu1 %v6252_v11, %s9166_s5  ;;  %v6576_v55 = vsel %vm1296_vm12, %v6094_v19, %v1299_v12  ;;  %v1559_v12 = vrot.slane %v6555_v25, 7 }
 0xe86   :  { %v1308_v62 = vrot.slane %v6576_v55, 1  ;;  %v1309_v34 = vrot.slane %v6576_v55, 2  ;;  %v1310_v58 = vrot.slane %v6576_v55, 3  ;;  %1322 = vst.msk [vmem:[%s9096_s19 + $0x1] sm:$0x1] %vm295_vm11, %v6576_v55  ;;  %v1311_v11 = vrot.slane %v6576_v55, 4 }
 0xe87   :  { %v1582_v44 = vmul.f32 %v1580_v30, %v6576_v55  ;;  %v1312_v19 = vrot.slane %v6576_v55, 5  ;;  %v1313_v26 = vrot.slane %v6576_v55, 6  ;;  %v1314_v23 = vrot.slane %v6576_v55, 7  ;;  %v1548_v30 = vld [vmem:[%s9089_s1 + $0x3a] sm:$0x1] }
 0xe88   :  { %1323 = vst.msk [vmem:[%s9096_s19 + $0x9] sm:$0x1] %vm295_vm11, %v1308_v62  ;;  %v1574_v62 = vmul.f32 %v1558_v53, %v1547_v22  ;;  %v5354_v53 = vld [vmem:[%s9149_s29 + $0x8] sm:$0xff] }
 0xe89   :  { %1324 = vst.msk [vmem:[%s9096_s19 + $0x11] sm:$0x1] %vm295_vm11, %v1309_v34  ;;  %1611 = vrot.lane.b32.xlu2 %v1582_v44, %s9159_s4  ;;  %v1598_v34 = vsel %vm9131_vm5, %v1597_v28, %v1596_v4  ;;  %v1703_v22 = vadd.f32 %v5354_v53, %v6497_v16  ;;  %v5371_v4 = vmov 3   ;;  %v6713_v28 = vld [vmem:[%s9151_s14 + $0x10] sm:$0xff] }
 0xe8a   :  { %1325 = vst.msk [vmem:[%s9096_s19 + $0x19] sm:$0x1] %vm295_vm11, %v1310_v58  ;;  %v1599_v58 = vrot.slane %v1573_v24, 3  ;;  %5154 = vset.pattern.permute.xlu0 %v5371_v4 }
 0xe8b   :  { %1326 = vst.msk [vmem:[%s9096_s19 + $0x21] sm:$0x1] %vm295_vm11, %v1311_v11  ;;  %v1575_v11 = vmul.f32 %v1559_v12, %v1548_v30 }
 0xe8c   :  { %1327 = vst.msk [vmem:[%s9096_s19 + $0x29] sm:$0x1] %vm295_vm11, %v1312_v19  ;;  %v1600_v44 = vsel %vm161_vm6, %v1599_v58, %v1598_v34  ;;  %v1601_v19 = vrot.slane %v1574_v62, 2 }
 0xe8d   :  { %1328 = vst.msk [vmem:[%s9096_s19 + $0x31] sm:$0x1] %vm295_vm11, %v1313_v26 }
 0xe8e   :  { %1329 = vst.msk [vmem:[%s9096_s19 + $0x39] sm:$0x1] %vm295_vm11, %v1314_v23  ;;  %v1602_v26 = vsel %vm164_vm7, %v1601_v19, %v1600_v44  ;;  %v1603_v23 = vrot.slane %v1575_v11, 1  ;;  %v6733_v19 = vld [vmem:[%s9149_s29 + $0x10] sm:$0xff] }
 0xe90   :  { %v1604_v63 = vsel %vm9133_vm8, %v1603_v23, %v1602_v26  ;;  %v1745_v23 = vsub.f32 1.0, %v6733_v19 }
 0xe91   :  { %1537 = vperm.xlu2 %5149, %v925_v35   ;;  %v1623_v35 = vld [vmem:[%s9086_s12 + $0x18] sm:$0xff] }
 0xe92   :  { %1652 = vmatpush.msrb.mxu1 %v1623_v35  ;;  %2261 = vmatpush.msra.mxu2 %v1623_v35 }
 0xe94   :  { %1653 = vmatpush.msrb.mxu1 %v1622_v41  ;;  %2262 = vmatpush.msra.mxu2 %v1622_v41 }
 0xe96   :  { %1654 = vmatpush.msrb.mxu1 %v1621_v38  ;;  %2263 = vmatpush.msra.mxu2 %v1621_v38 }
 0xe98   :  { %1655 = vmatpush.msrb.mxu1 %v1620_v27  ;;  %2264 = vmatpush.msra.mxu2 %v1620_v27 }
 0xe99   :  { %5155 = vset.pattern.permute.xlu2 %v5371_v4 }
 0xee3   :  { %v1612_v36 = vpop.permute.xlu2 %1611 }
 0xeeb   :  { %v1538_v38 = vpop.permute.xlu2 %1537 }
 0xeef   :  { %v1608_v17 = vpop.permute.xlu1 %1607 }
 0xef0   :  { %v1617_v25 = vsel %vm9132_vm13, %v1604_v63, %v1608_v17 }
 0xef1   :  { %v1618_v35 = vsel %vm9179_vm1, %v1617_v25, %v1612_v36  ;;  %v1825_v36 = vld [vmem:[%s9092_s13 + $0x28] sm:$0xff] }
 0xef2   :  { %v1619_v41 = vsel %vm9180_vm0, %v1618_v35, %v1615_v14 }
 0xef3   :  { %5052 = vmatmul.msk.f32.vlgmr.msrb.gmra.mxu1 %vm9181_vm9, %v1619_v41 }
 0xef7   :  { %v1108_v1 = vpop.permute.xlu1 %1107 }
 0xef8   :  { %v1110_v27 = vsel %vm1100_vm14, %v6229_v59, %v1108_v1 }
 0xef9   :  { %v6692_v20 = vmul.f32 %v1538_v38, %v1110_v27 }
 0xefb   :  { %1683 = vrot.lane.b32.xlu1 %v6692_v20, %s9172_s6 }
 0xf6d   :  { %v1684_v12 = vpop.permute.xlu1 %1683 }
 0xf70   :  { %v1657_v15 = vpop.f32.mrf.mxu1 }
 0xf71   :  { %v1658_v29 = vadd.f32 %v5190_v39, %v1657_v15 }
 0xf73   :  { %v5053_v42 = vmul.f32 -1.442695, %v1658_v29 }
 0xf75   :  { %5249 = vpow2.f32 %v5053_v42 }
 0xf7b   :  { %v5250_v47 = vpop.eup %5249 }
 0xf7c   :  { %v1663_v49 = vadd.f32 1.0, %v5250_v47 }
 0xf7e   :  { %5251 = vrcp.f32 %v1663_v49  ;;  %v1675_v59 = vand.u32 2147483648, %v1663_v49  ;;  %v1673_v46 = vand.u32 2147483647, %v1663_v49  ;;  %vm1669_vm1 = vweird.f32 %v1663_v49 }
 0xf80   :  { %v1676_v6 = vor.u32 1.1754944e-38, %v1675_v59  ;;  %vm1674_vm9 = vcmp.eq.f32.partialorder %v1673_v46, 8.507059e+37  ;;  %v1821_v59 = vld [vmem:[%s9092_s13 + $0x8] sm:$0xff] }
 0xf84   :  { %v5252_v2 = vpop.eup %5251 }
 0xf85   :  { %v1665_v48 = vmul.f32 %v5252_v2, %v1663_v49  ;;  %vm1670_vm14 = vweird.f32 %v5252_v2  ;;  %v1824_v49 = vld [vmem:[%s9092_s13 + $0x20] sm:$0xff] }
 0xf86   :  { %vm1671_vm0 = vmor %vm1669_vm1, %vm1670_vm14  ;;  %vm1704_vm14 = vcmp.eq.f32.partialorder %v1703_v22, 0.0 }
 0xf87   :  { %v1666_v13 = vsub.f32 1.0, %v1665_v48  ;;  %v1705_v24 = vsel %vm1704_vm14, 1, %v5360_v0  ;;  %v1949_v48 = vld [vmem:[%s9085_s0 + $0xb] sm:$0x1]  ;;  %vm9184_vm14 = vcmask 654336  }
 0xf88   :  { %1707 = vperm.xlu1 %5153, %v1705_v24  }
 0xf89   :  { %v1667_v37 = vmul.f32 %v5252_v2, %v1666_v13 }
 0xf8b   :  { %v1668_v50 = vadd.f32 %v5252_v2, %v1667_v37  ;;  %v1948_v37 = vld [vmem:[%s9085_s0 + $0x3] sm:$0x1] }
 0xf8d   :  { %v1672_v7 = vsel %vm1671_vm0, %v5252_v2, %v1668_v50  ;;  %v1823_v2 = vld [vmem:[%s9092_s13 + $0x18] sm:$0xff]  ;;  %vm9182_vm0 = vcmask 130048  }
 0xf8e   :  { %v1677_v43 = vsel %vm1674_vm9, %v1676_v6, %v1672_v7  ;;  %v1951_v50 = vld [vmem:[%s9085_s0 + $0x1b] sm:$0x1]  ;;  %vm9183_vm9 = vcmask 392192  }
 0xf8f   :  { %v1679_v51 = vmul.f32 2.0, %v1677_v43 }
 0xf90   :  { %1762 = vperm.xlu1 %5153, %v6713_v28  }
 0xf91   :  { %v5054_v8 = vadd.f32 -1.0, %v1679_v51 }
 0xf93   :  { %v1681_v9 = vsel %vm5613_vm10, %v5054_v8, %v1677_v43  ;;  %v1753_v8 = vld [vmem:[%s9093_s2 + $0xa] sm:$0x1] }
 0xf94   :  { %1688 = vrot.lane.b32.xlu0 %v1681_v9, %s9165_s25  ;;  %v1686_v30 = vmul.f32 %v1684_v12, %v1681_v9  ;;  %v1754_v12 = vld [vmem:[%s9093_s2 + $0x12] sm:$0x1] }
 0xf98   :  { %5156 = vset.pattern.permute.xlu1 %v5371_v4 }
 0xffa   :  { %v6735_v26 = vpop.permute.xlu1 %1707 }
 0xffb   :  { %vm9130_vm1 = vcmp.eq.s32.totalorder %v6735_v26, 1 }
0x1002   :  { %v6766_v1 = vpop.permute.xlu1 %1762 }
0x1003   :  { %v1764_v7 = vrot.slane %v6766_v1, 1  ;;  %v1765_v22 = vrot.slane %v6766_v1, 2 }
0x1006   :  { %v1689_v3 = vpop.permute.xlu0 %1688 }
0x1007   :  { %v1691_v52 = vmul.f32 %v1689_v3, %v1681_v9 }
0x1009   :  { %1693 = vrot.lane.b32.xlu2 %v1691_v52, %s9172_s6  ;;  %v1952_v52 = vld [vmem:[%s9085_s0 + $0x23] sm:$0x1] }
0x1063   :  { %v1694_v62 = vpop.permute.xlu2 %1693 }
0x1064   :  { %v6717_v34 = vadd.f32 %v1694_v62, %v1686_v30  ;;  %v1780_v30 = vmul.f32 %v1764_v7, %v1753_v8 }
0x1066   :  { %5253 = vtanh.f32 %v6717_v34 }
0x106c   :  { %v5254_v58 = vpop.eup %5253 }
0x106d   :  { %1699 = vrot.lane.b32.xlu0 %v5254_v58, %s9165_s25 }
0x1075   :  { %1985 = vperm.xlu0 %5154, %v6259_v21   ;;  %v1822_v21 = vld [vmem:[%s9092_s13 + $0x10] sm:$0xff] }
0x107d   :  { %5159 = vset.pattern.permute.xlu0 %v5370_v54 }
0x10df   :  { %v1700_v11 = vpop.permute.xlu0 %1699 }
0x10e0   :  { %v1702_v44 = vmul.f32 %v1700_v11, %v1681_v9  ;;  %v1820_v9 = vld [vmem:[%s9092_s13] sm:$0xff] }
0x10e1   :  { %v1752_v11 = vld [vmem:[%s9093_s2 + $0x2] sm:$0x1] }
0x10e2   :  { %1711 = vrot.lane.b32.xlu2 %v1702_v44, %s9172_s6  ;;  %v1953_v44 = vld [vmem:[%s9085_s0 + $0x2b] sm:$0x1] }
0x10e7   :  { %v1986_v63 = vpop.permute.xlu0 %1985 }
0x10ea   :  { %1958 = vperm.xlu2 %5155, %v6269_v45   ;;  %v1828_v45 = vld [vmem:[%s9092_s13 + $0x40] sm:$0xff] }
0x10eb   :  { %1843 = vmatpush.msra.mxu0 %v1828_v45  ;;  %2452 = vmatpush.msra.mxu1 %v1828_v45 }
0x10f2   :  { %2016 = vrot.lane.b32.xlu2 %v6512_v10, %s9173_s28 }
0x10f3   :  { %5157 = vset.pattern.permute.xlu2 %v5370_v54  ;;  %v1827_v54 = vld [vmem:[%s9092_s13 + $0x38] sm:$0xff] }
0x10f4   :  { %1844 = vmatpush.msra.mxu0 %v1827_v54  ;;  %2453 = vmatpush.msra.mxu1 %v1827_v54  ;;  %v1766_v54 = vrot.slane %v6766_v1, 3 }
0x10fa   :  { %1505 = vrot.lane.b32.xlu2 %v6482_v60, %s9166_s5  ;;  %v1826_v60 = vld [vmem:[%s9092_s13 + $0x30] sm:$0xff] }
0x10fb   :  { %1845 = vmatpush.msra.mxu0 %v1826_v60  ;;  %2454 = vmatpush.msra.mxu1 %v1826_v60 }
0x10fd   :  { %1846 = vmatpush.msra.mxu0 %v1825_v36  ;;  %2455 = vmatpush.msra.mxu1 %v1825_v36  ;;  %v1755_v36 = vld [vmem:[%s9093_s2 + $0x1a] sm:$0x1] }
0x10ff   :  { %1847 = vmatpush.msra.mxu0 %v1824_v49  ;;  %2456 = vmatpush.msra.mxu1 %v1824_v49 }
0x1101   :  { %1848 = vmatpush.msra.mxu0 %v1823_v2  ;;  %2457 = vmatpush.msra.mxu1 %v1823_v2 }
0x1102   :  { %1748 = vperm.xlu2 %5157, %v1745_v23  }
0x1103   :  { %1849 = vmatpush.msra.mxu0 %v1822_v21  ;;  %2458 = vmatpush.msra.mxu1 %v1822_v21 }
0x1105   :  { %1850 = vmatpush.msra.mxu0 %v1821_v59  ;;  %2459 = vmatpush.msra.mxu1 %v1821_v59  ;;  %v1757_v59 = vld [vmem:[%s9093_s2 + $0x2a] sm:$0x1] }
0x1107   :  { %1851 = vmatpush.msra.mxu0 %v1820_v9  ;;  %2460 = vmatpush.msra.mxu1 %v1820_v9 }
0x110a   :  { %5158 = vset.pattern.permute.xlu2 %v5371_v4 }
0x113c   :  { %v1712_v17 = vpop.permute.xlu2 %1711 }
0x113d   :  { %v6756_v25 = vsel %vm9130_vm1, %v6302_v57, %v1712_v17  ;;  %v1781_v17 = vmul.f32 %v1765_v22, %v1754_v12  ;;  %vm9185_vm1 = vcmask 326656  }
0x113e   :  { %v1721_v14 = vrot.slane %v6756_v25, 1  ;;  %v1722_v35 = vrot.slane %v6756_v25, 2  ;;  %v1723_v41 = vrot.slane %v6756_v25, 3  ;;  %1735 = vst.msk [vmem:[%s9091_s18 + $0x2] sm:$0x1] %vm295_vm11, %v6756_v25  ;;  %v1724_v38 = vrot.slane %v6756_v25, 4 }
0x113f   :  { %v1988_v27 = vmul.f32 %v1986_v63, %v6756_v25  ;;  %v1725_v57 = vrot.slane %v6756_v25, 5  ;;  %v1787_v39 = vmul.f32 %v6766_v1, %v6756_v25  ;;  %v1726_v15 = vrot.slane %v6756_v25, 6 }
0x1140   :  { %1736 = vst.msk [vmem:[%s9091_s18 + $0xa] sm:$0x1] %vm295_vm11, %v1721_v14  ;;  %v1727_v29 = vrot.slane %v6756_v25, 7  ;;  %v1798_v2 = vrot.slane %v1781_v17, 6 }
0x1141   :  { %1737 = vst.msk [vmem:[%s9091_s18 + $0x12] sm:$0x1] %vm295_vm11, %v1722_v35  ;;  %2013 = vrot.lane.b32.xlu1 %v1988_v27, %s9158_s9  ;;  %1812 = vrot.lane.b32.xlu0 %v1787_v39, %s9167_s24  ;;  %v1779_v35 = vmul.f32 %v6766_v1, %v1752_v11 }
0x1142   :  { %1738 = vst.msk [vmem:[%s9091_s18 + $0x1a] sm:$0x1] %vm295_vm11, %v1723_v41  ;;  %v1796_v41 = vrot.slane %v1780_v30, 7 }
0x1143   :  { %1739 = vst.msk [vmem:[%s9091_s18 + $0x22] sm:$0x1] %vm295_vm11, %v1724_v38  ;;  %v1954_v38 = vld [vmem:[%s9085_s0 + $0x33] sm:$0x1] }
0x1144   :  { %1740 = vst.msk [vmem:[%s9091_s18 + $0x2a] sm:$0x1] %vm295_vm11, %v1725_v57  ;;  %v6812_v42 = vpop.permute.xlu2 %1958  ;;  %v1767_v57 = vrot.slane %v6766_v1, 4 }
0x1145   :  { %1741 = vst.msk [vmem:[%s9091_s18 + $0x32] sm:$0x1] %vm295_vm11, %v1726_v15  ;;  %v1960_v47 = vrot.slane %v6812_v42, 1  ;;  %v1962_v46 = vrot.slane %v6812_v42, 3  ;;  %v1975_v43 = vmul.f32 %v6812_v42, %v1948_v37  ;;  %v1963_v3 = vrot.slane %v6812_v42, 4 }
0x1146   :  { %1742 = vst.msk [vmem:[%s9091_s18 + $0x3a] sm:$0x1] %vm295_vm11, %v1727_v29  ;;  %v1964_v62 = vrot.slane %v6812_v42, 5  ;;  %v1965_v63 = vrot.slane %v6812_v42, 6  ;;  %v1756_v15 = vld [vmem:[%s9093_s2 + $0x22] sm:$0x1]  ;;  %v1782_v29 = vmul.f32 %v1766_v54, %v1755_v36 }
0x1147   :  { %v1976_v13 = vmul.f32 %v1960_v47, %v1949_v48  ;;  %v1978_v53 = vmul.f32 %v1962_v46, %v1951_v50  ;;  %v1979_v45 = vmul.f32 %v1963_v3, %v1952_v52  ;;  %v1966_v47 = vrot.slane %v6812_v42, 7  ;;  %v1955_v48 = vld [vmem:[%s9085_s0 + $0x3b] sm:$0x1] }
0x1148   :  { %v1980_v27 = vmul.f32 %v1964_v62, %v1953_v44  ;;  %v1981_v21 = vmul.f32 %v1965_v63, %v1954_v38  ;;  %v1783_v37 = vmul.f32 %v1767_v57, %v1756_v15  ;;  %v1800_v46 = vrot.slane %v1782_v29, 5 }
0x1149   :  { %1815 = vrot.lane.b32.xlu1 %v6576_v55, %s9159_s4  ;;  %1303 = vrot.lane.b32.xlu0 %v6487_v61, %s9166_s5  ;;  %v1950_v61 = vld [vmem:[%s9085_s0 + $0x13] sm:$0x1]  ;;  %v1997_v51 = vrot.slane %v1976_v13, 7  ;;  %v2001_v60 = vrot.slane %v1978_v53, 5  ;;  %v2003_v39 = vrot.slane %v1979_v45, 4  ;;  %v1982_v50 = vmul.f32 %v1966_v47, %v1955_v48 }
0x114a   :  { %v2005_v13 = vrot.slane %v1980_v27, 3  ;;  %v1802_v3 = vrot.slane %v1783_v37, 4  ;;  %v1770_v52 = vrot.slane %v6766_v1, 7 }
0x114b   :  { %v1998_v58 = vsel %vm149_vm2, %v1997_v51, %v1975_v43  ;;  %v2007_v43 = vrot.slane %v1981_v21, 2  ;;  %v1758_v51 = vld [vmem:[%s9093_s2 + $0x32] sm:$0x1]  ;;  %v2009_v22 = vrot.slane %v1982_v50, 1 }
0x1151   :  { %1944 = vperm.xlu1 %5156, %v1332_v40   ;;  %v1961_v40 = vrot.slane %v6812_v42, 2 }
0x1153   :  { %v1977_v6 = vmul.f32 %v1961_v40, %v1950_v61  ;;  %v1768_v40 = vrot.slane %v6766_v1, 5  ;;  %v1797_v61 = vsel %vm149_vm2, %v1796_v41, %v1779_v35 }
0x1154   :  { %v1799_v7 = vsel %vm152_vm3, %v1798_v2, %v1797_v61  ;;  %v5192_v2 = vld [vmem:[%s9095_s16] ss:$0 sm:$0xff] }
0x1155   :  { %v1999_v24 = vrot.slane %v1977_v6, 6  ;;  %v1769_v6 = vrot.slane %v6766_v1, 6  ;;  %v1784_v8 = vmul.f32 %v1768_v40, %v1757_v59  ;;  %v1801_v53 = vsel %vm155_vm4, %v1800_v46, %v1799_v7 }
0x1157   :  { %v2000_v14 = vsel %vm152_vm3, %v1999_v24, %v1998_v58  ;;  %v1759_v24 = vld [vmem:[%s9093_s2 + $0x3a] sm:$0x1]  ;;  %v1785_v12 = vmul.f32 %v1769_v6, %v1758_v51  ;;  %v1804_v62 = vrot.slane %v1784_v8, 3  ;;  %v1803_v58 = vsel %vm9131_vm5, %v1802_v3, %v1801_v53 }
0x1158   :  { %v2002_v49 = vsel %vm155_vm4, %v2001_v60, %v2000_v14  ;;  %v1786_v11 = vmul.f32 %v1770_v52, %v1759_v24  ;;  %v2017_v60 = vpop.permute.xlu2 %2016 }
0x1159   :  { %v2004_v42 = vsel %vm9131_vm5, %v2003_v39, %v2002_v49  ;;  %v1806_v54 = vrot.slane %v1785_v12, 2  ;;  %v1805_v36 = vsel %vm161_vm6, %v1804_v62, %v1803_v58  ;;  %vm9186_vm5 = vcmask 588800   ;;  %v5191_v49 = vld [vmem:[%s9155_s8] ss:$0 sm:$0xff] }
0x115a   :  { %v2006_v9 = vsel %vm161_vm6, %v2005_v13, %v2004_v42  ;;  %v1808_v63 = vrot.slane %v1786_v11, 1 }
0x115b   :  { %v2008_v30 = vsel %vm164_vm7, %v2007_v43, %v2006_v9  ;;  %v1807_v14 = vsel %vm164_vm7, %v1806_v54, %v1805_v36 }
0x115c   :  { %v2010_v44 = vsel %vm9133_vm8, %v2009_v22, %v2008_v30  ;;  %v1809_v41 = vsel %vm9133_vm8, %v1808_v63, %v1807_v14 }
0x1160   :  { %v1506_v39 = vpop.permute.xlu2 %1505 }
0x1161   :  { %v1508_v15 = vsel %vm1498_vm15, %v6442_v32, %v1506_v39 }
0x11b3   :  { %v2014_v45 = vpop.permute.xlu1 %2013  ;;  %v1813_v35 = vpop.permute.xlu0 %1812 }
0x11b4   :  { %v2019_v1 = vsel %vm9182_vm0, %v2010_v44, %v2014_v45  ;;  %v1818_v38 = vsel %vm9132_vm13, %v1809_v41, %v1813_v35  ;;  %v1749_v41 = vpop.permute.xlu2 %1748 }
0x11b5   :  { %v2020_v17 = vsel %vm9183_vm9, %v2019_v1, %v2017_v60 }
0x11b6   :  { %5060 = vmatmul.msk.f32.vlgmr.msra.gmra.mxu3 %vm9184_vm14, %v2020_v17 }
0x11bb   :  { %v1816_v27 = vpop.permute.xlu1 %1815  ;;  %v1304_v63 = vpop.permute.xlu0 %1303 }
0x11bc   :  { %v1819_v57 = vsel %vm9185_vm1, %v1818_v38, %v1816_v27  ;;  %v1306_v35 = vsel %vm1296_vm12, %v6464_v18, %v1304_v63 }
0x11bd   :  { %5057 = vmatmul.msk.f32.vlgmr.msra.gmra.mxu0 %vm9186_vm5, %v1819_v57  ;;  %v6935_v38 = vmul.f32 %v1749_v41, %v1306_v35  ;;  %v2150_v41 = vld [vmem:[%s9089_s1 + $0x3] sm:$0x1] }
0x11c3   :  { %v1945_v29 = vpop.permute.xlu1 %1944 }
0x11c4   :  { %v6916_v47 = vmul.f32 %v1945_v29, %v1508_v15 }
0x11c6   :  { %2081 = vrot.lane.b32.xlu2 %v6916_v47, %s9172_s6 }
0x1220   :  { %v2082_v29 = vpop.permute.xlu2 %2081 }
0x1239   :  { %v2055_v48 = vpop.f32.mrf.mxu3 }
0x123a   :  { %v2056_v21 = vadd.f32 %v5191_v49, %v2055_v48  ;;  %v1853_v40 = vpop.f32.mrf.mxu0 }
0x123b   :  { %v1854_v61 = vadd.f32 %v5192_v2, %v1853_v40 }
0x123c   :  { %v5061_v5 = vmul.f32 -1.442695, %v2056_v21 }
0x123d   :  { %v5058_v32 = vmul.f32 -1.442695, %v1854_v61 }
0x123e   :  { %5255 = vpow2.f32 %v5061_v5 }
0x123f   :  { %5257 = vpow2.f32 %v5058_v32 }
0x1244   :  { %v5256_v13 = vpop.eup %5255 }
0x1245   :  { %v5258_v59 = vpop.eup %5257  ;;  %v2061_v37 = vadd.f32 1.0, %v5256_v13 }
0x1246   :  { %v1859_v42 = vadd.f32 1.0, %v5258_v59 }
0x1247   :  { %5259 = vrcp.f32 %v2061_v37  ;;  %v2073_v8 = vand.u32 2147483648, %v2061_v37  ;;  %v2071_v3 = vand.u32 2147483647, %v2061_v37  ;;  %vm2067_vm1 = vweird.f32 %v2061_v37 }
0x1248   :  { %5261 = vrcp.f32 %v1859_v42  ;;  %v1871_v52 = vand.u32 2147483648, %v1859_v42  ;;  %v1869_v22 = vand.u32 2147483647, %v1859_v42  ;;  %vm1865_vm9 = vweird.f32 %v1859_v42 }
0x1249   :  { %v2074_v12 = vor.u32 1.1754944e-38, %v2073_v8  ;;  %vm2072_vm14 = vcmp.eq.f32.partialorder %v2071_v3, 8.507059e+37 }
0x124a   :  { %v1872_v58 = vor.u32 1.1754944e-38, %v1871_v52  ;;  %vm1870_vm8 = vcmp.eq.f32.partialorder %v1869_v22, 8.507059e+37 }
0x124d   :  { %v5260_v46 = vpop.eup %5259 }
0x124e   :  { %v5262_v50 = vpop.eup %5261  ;;  %v2063_v6 = vmul.f32 %v5260_v46, %v2061_v37  ;;  %vm2068_vm5 = vweird.f32 %v5260_v46  ;;  %v6961_v37 = vld [vmem:[%s9149_s29 + $0x8] sm:$0xff] }
0x124f   :  { %v1861_v7 = vmul.f32 %v5262_v50, %v1859_v42  ;;  %vm1866_vm15 = vweird.f32 %v5262_v50  ;;  %vm2069_vm0 = vmor %vm2067_vm1, %vm2068_vm5  ;;  %vm9187_vm5 = vcmask 1044484   ;;  %vm9189_vm1 = vcmask 64512  }
0x1250   :  { %v2064_v43 = vsub.f32 1.0, %v2063_v6  ;;  %vm1867_vm13 = vmor %vm1865_vm9, %vm1866_vm15  ;;  %vm9188_vm15 = vcmask 1047559   ;;  %vm9191_vm9 = vcmask 588800  }
0x1251   :  { %v1862_v51 = vsub.f32 1.0, %v1861_v7 }
0x1252   :  { %v2065_v9 = vmul.f32 %v5260_v46, %v2064_v43 }
0x1253   :  { %v1863_v53 = vmul.f32 %v5262_v50, %v1862_v51 }
0x1254   :  { %v2066_v24 = vadd.f32 %v5260_v46, %v2065_v9 }
0x1255   :  { %v1864_v30 = vadd.f32 %v5262_v50, %v1863_v53 }
0x1256   :  { %v2070_v62 = vsel %vm2069_vm0, %v5260_v46, %v2066_v24  ;;  %v2143_v24 = vsub.f32 1.0, %v6961_v37  ;;  %vm9190_vm0 = vcmask 326656  }
0x1257   :  { %v2075_v11 = vsel %vm2072_vm14, %v2074_v12, %v2070_v62  ;;  %v1868_v44 = vsel %vm1867_vm13, %v5262_v50, %v1864_v30  ;;  %vm9192_vm14 = vcmask 850944  }
0x1258   :  { %v2077_v45 = vmul.f32 2.0, %v2075_v11  ;;  %v1873_v54 = vsel %vm1870_vm8, %v1872_v58, %v1868_v44 }
0x1259   :  { %v1875_v60 = vmul.f32 2.0, %v1873_v54 }
0x125a   :  { %v5062_v1 = vadd.f32 -1.0, %v2077_v45 }
0x125b   :  { %v5059_v36 = vadd.f32 -1.0, %v1875_v60 }
0x125c   :  { %v2079_v17 = vsel %vm5613_vm10, %v5062_v1, %v2075_v11 }
0x125d   :  { %2086 = vrot.lane.b32.xlu0 %v2079_v17, %s9165_s25  ;;  %v1877_v14 = vsel %vm5613_vm10, %v5059_v36, %v1873_v54  ;;  %v2084_v21 = vmul.f32 %v2082_v29, %v2079_v17 }
0x125e   :  { %1884 = vrot.lane.b32.xlu1 %v1877_v14, %s9165_s25 }
0x1265   :  { %1879 = vrot.lane.b32.xlu0 %v6935_v38, %s9172_s6 }
0x12cf   :  { %v2087_v27 = vpop.permute.xlu0 %2086 }
0x12d0   :  { %v2089_v57 = vmul.f32 %v2087_v27, %v2079_v17  ;;  %v1885_v39 = vpop.permute.xlu1 %1884 }
0x12d1   :  { %v1887_v15 = vmul.f32 %v1885_v39, %v1877_v14 }
0x12d2   :  { %2091 = vrot.lane.b32.xlu1 %v2089_v57, %s9172_s6 }
0x12d3   :  { %1889 = vrot.lane.b32.xlu2 %v1887_v15, %s9172_s6 }
0x12d7   :  { %v1880_v49 = vpop.permute.xlu0 %1879 }
0x12d8   :  { %v1882_v56 = vmul.f32 %v1880_v49, %v1877_v14 }
0x12db   :  { %2105 = vperm.xlu2 %5158, %v6476_v31   ;;  %v1899_v31 = vadd.f32 %v6733_v19, %v6713_v28  ;;  %v2559_v19 = vld [vmem:[%s9085_s0 + $0x14] sm:$0x1] }
0x12dd   :  { %vm1900_vm8 = vcmp.eq.f32.partialorder %v1899_v31, 0.0 }
0x12de   :  { %v6953_v32 = vsel %vm1900_vm8, 1, %v5360_v0  ;;  %vm9193_vm8 = vcmp.eq.s32.totalorder %v6735_v26, 1 }
0x132d   :  { %v1890_v18 = vpop.permute.xlu2 %1889 }
0x132e   :  { %v6942_v2 = vadd.f32 %v1890_v18, %v1882_v56  ;;  %v2154_v56 = vld [vmem:[%s9089_s1 + $0x23] sm:$0x1] }
0x1330   :  { %5263 = vtanh.f32 %v6942_v2 }
0x1335   :  { %v6968_v50 = vpop.permute.xlu2 %2105 }
0x1336   :  { %v5264_v48 = vpop.eup %5263  ;;  %vm2107_vm12 = vcmp.eq.s32.totalorder %v6968_v50, 1 }
0x1337   :  { %1895 = vrot.lane.b32.xlu1 %v5264_v48, %s9165_s25 }
0x1344   :  { %v2092_v40 = vpop.permute.xlu1 %2091 }
0x1345   :  { %v6946_v61 = vadd.f32 %v2092_v40, %v2084_v21  ;;  %v2155_v40 = vld [vmem:[%s9089_s1 + $0x2b] sm:$0x1] }
0x1347   :  { %5265 = vtanh.f32 %v6946_v61 }
0x134d   :  { %v5266_v5 = vpop.eup %5265 }
0x134e   :  { %2097 = vrot.lane.b32.xlu0 %v5266_v5, %s9165_s25 }
0x1356   :  { %1903 = vperm.xlu0 %5159, %v6953_v32  }
0x135e   :  { %5160 = vset.pattern.permute.xlu0 %v5371_v4 }
0x13a9   :  { %v1896_v13 = vpop.permute.xlu1 %1895 }
0x13aa   :  { %v1898_v59 = vmul.f32 %v1896_v13, %v1877_v14  ;;  %v2152_v14 = vld [vmem:[%s9089_s1 + $0x13] sm:$0x1] }
0x13ac   :  { %1907 = vrot.lane.b32.xlu2 %v1898_v59, %s9172_s6 }
0x13b4   :  { %2188 = vperm.xlu2 %5158, %v6961_v37  }
0x13bc   :  { %2223 = vrot.lane.b32.xlu2 %v6756_v25, %s9168_s26 }
0x13c0   :  { %v2098_v42 = vpop.permute.xlu0 %2097 }
0x13c1   :  { %v2100_v46 = vmul.f32 %v2098_v42, %v2079_v17  ;;  %v2151_v17 = vld [vmem:[%s9089_s1 + $0xb] sm:$0x1]  ;;  %v2156_v42 = vld [vmem:[%s9089_s1 + $0x33] sm:$0x1] }
0x13c3   :  { %2109 = vrot.lane.b32.xlu1 %v2100_v46, %s9172_s6 }
0x13c8   :  { %v6970_v6 = vpop.permute.xlu0 %1903 }
0x13c9   :  { %vm1905_vm13 = vcmp.eq.s32.totalorder %v6970_v6, 1 }
0x13cb   :  { %2160 = vperm.xlu1 %5156, %v6497_v16  }
0x1406   :  { %v1908_v7 = vpop.permute.xlu2 %1907 }
0x1407   :  { %v6976_v43 = vsel %vm1905_vm13, %v6576_v55, %v1908_v7 }
0x1408   :  { %v1917_v51 = vrot.slane %v6976_v43, 1  ;;  %v1918_v8 = vrot.slane %v6976_v43, 2  ;;  %v1919_v9 = vrot.slane %v6976_v43, 3  ;;  %1931 = vst.msk [vmem:[%s9096_s19 + $0x2] sm:$0x1] %vm295_vm11, %v6976_v43  ;;  %v1920_v16 = vrot.slane %v6976_v43, 4 }
0x1409   :  { %v1921_v3 = vrot.slane %v6976_v43, 5  ;;  %v1922_v55 = vrot.slane %v6976_v43, 6  ;;  %v1923_v52 = vrot.slane %v6976_v43, 7 }
0x140a   :  { %1932 = vst.msk [vmem:[%s9096_s19 + $0xa] sm:$0x1] %vm295_vm11, %v1917_v51 }
0x140b   :  { %1933 = vst.msk [vmem:[%s9096_s19 + $0x12] sm:$0x1] %vm295_vm11, %v1918_v8 }
0x140c   :  { %1934 = vst.msk [vmem:[%s9096_s19 + $0x1a] sm:$0x1] %vm295_vm11, %v1919_v9  ;;  %v2157_v9 = vld [vmem:[%s9089_s1 + $0x3b] sm:$0x1] }
0x140d   :  { %1935 = vst.msk [vmem:[%s9096_s19 + $0x22] sm:$0x1] %vm295_vm11, %v1920_v16 }
0x140e   :  { %1936 = vst.msk [vmem:[%s9096_s19 + $0x2a] sm:$0x1] %vm295_vm11, %v1921_v3  ;;  %v2189_v53 = vpop.permute.xlu2 %2188 }
0x140f   :  { %1937 = vst.msk [vmem:[%s9096_s19 + $0x32] sm:$0x1] %vm295_vm11, %v1922_v55  ;;  %v2191_v22 = vmul.f32 %v2189_v53, %v6976_v43 }
0x1410   :  { %1938 = vst.msk [vmem:[%s9096_s19 + $0x3a] sm:$0x1] %vm295_vm11, %v1923_v52 }
0x1411   :  { %2220 = vrot.lane.b32.xlu1 %v2191_v22, %s9159_s4 }
0x1419   :  { %2146 = vperm.xlu1 %5156, %v2143_v24  }
0x1435   :  { %v2110_v12 = vpop.permute.xlu1 %2109 }
0x1436   :  { %v7027_v30 = vsel %vm2107_vm12, %v6512_v10, %v2110_v12 }
0x1437   :  { %v2119_v62 = vrot.slane %v7027_v30, 1  ;;  %v2120_v58 = vrot.slane %v7027_v30, 2  ;;  %v2121_v11 = vrot.slane %v7027_v30, 3  ;;  %2133 = vst.msk [vmem:[%s9087_s17 + $0x3] sm:$0x1] %vm295_vm11, %v7027_v30  ;;  %v2122_v44 = vrot.slane %v7027_v30, 4 }
0x1438   :  { %v2123_v45 = vrot.slane %v7027_v30, 5  ;;  %v2124_v10 = vrot.slane %v7027_v30, 6  ;;  %v2125_v54 = vrot.slane %v7027_v30, 7 }
0x1439   :  { %2134 = vst.msk [vmem:[%s9087_s17 + $0xb] sm:$0x1] %vm295_vm11, %v2119_v62 }
0x143a   :  { %2135 = vst.msk [vmem:[%s9087_s17 + $0x13] sm:$0x1] %vm295_vm11, %v2120_v58 }
0x143b   :  { %2136 = vst.msk [vmem:[%s9087_s17 + $0x1b] sm:$0x1] %vm295_vm11, %v2121_v11 }
0x143c   :  { %2137 = vst.msk [vmem:[%s9087_s17 + $0x23] sm:$0x1] %vm295_vm11, %v2122_v44 }
0x143d   :  { %2138 = vst.msk [vmem:[%s9087_s17 + $0x2b] sm:$0x1] %vm295_vm11, %v2123_v45  ;;  %v2161_v60 = vpop.permute.xlu1 %2160 }
0x143e   :  { %2139 = vst.msk [vmem:[%s9087_s17 + $0x33] sm:$0x1] %vm295_vm11, %v2124_v10  ;;  %v2185_v1 = vmul.f32 %v2161_v60, %v7027_v30  ;;  %v2162_v36 = vrot.slane %v2161_v60, 1  ;;  %v2163_v63 = vrot.slane %v2161_v60, 2  ;;  %v2164_v57 = vrot.slane %v2161_v60, 3  ;;  %v2224_v10 = vpop.permute.xlu2 %2223 }
0x143f   :  { %2140 = vst.msk [vmem:[%s9087_s17 + $0x3b] sm:$0x1] %vm295_vm11, %v2125_v54  ;;  %v2177_v15 = vmul.f32 %v2161_v60, %v2150_v41  ;;  %v2165_v29 = vrot.slane %v2161_v60, 4  ;;  %v2166_v21 = vrot.slane %v2161_v60, 5  ;;  %v2167_v59 = vrot.slane %v2161_v60, 6 }
0x1440   :  { %2216 = vrot.lane.b32.xlu0 %v2185_v1, %s9167_s24  ;;  %v2178_v35 = vmul.f32 %v2162_v36, %v2151_v17  ;;  %v2179_v27 = vmul.f32 %v2163_v63, %v2152_v14  ;;  %v2168_v8 = vrot.slane %v2161_v60, 7  ;;  %v5193_v14 = vld [vmem:[%s9090_s15] ss:$0 sm:$0xff] }
0x1441   :  { %v2181_v31 = vmul.f32 %v2165_v29, %v2154_v56  ;;  %v2182_v46 = vmul.f32 %v2166_v21, %v2155_v40  ;;  %v2183_v16 = vmul.f32 %v2167_v59, %v2156_v42  ;;  %v5372_v42 = vmov 4  }
0x1442   :  { %v2200_v39 = vrot.slane %v2178_v35, 7  ;;  %v2202_v49 = vrot.slane %v2179_v27, 6  ;;  %v2184_v52 = vmul.f32 %v2168_v8, %v2157_v9  ;;  %5161 = vset.pattern.permute.xlu2 %v5372_v42 }
0x1443   :  { %v2206_v51 = vrot.slane %v2181_v31, 4  ;;  %v2208_v55 = vrot.slane %v2182_v46, 3  ;;  %v2210_v22 = vrot.slane %v2183_v16, 2  ;;  %v7130_v16 = vld [vmem:[%s9149_s29] sm:$0xff] }
0x1444   :  { %v2201_v48 = vsel %vm149_vm2, %v2200_v39, %v2177_v15  ;;  %v2212_v62 = vrot.slane %v2184_v52, 1 }
0x1445   :  { %v2203_v5 = vsel %vm152_vm3, %v2202_v49, %v2201_v48 }
0x1448   :  { %1716 = vrot.lane.b32.xlu0 %v6717_v34, %s9166_s5  ;;  %v2153_v34 = vld [vmem:[%s9089_s1 + $0x1b] sm:$0x1] }
0x1449   :  { %v2180_v18 = vmul.f32 %v2164_v57, %v2153_v34 }
0x144b   :  { %v2204_v13 = vrot.slane %v2180_v18, 5 }
0x144d   :  { %v2205_v7 = vsel %vm155_vm4, %v2204_v13, %v2203_v5 }
0x144e   :  { %v2207_v3 = vsel %vm9187_vm5, %v2206_v51, %v2205_v7 }
0x144f   :  { %v2209_v53 = vsel %vm161_vm6, %v2208_v55, %v2207_v3  ;;  %v7136_v3 = vld [vmem:[%s9151_s14] sm:$0xff]  ;;  %v5355_v55 = vld [vmem:[%s9151_s14 + $0x8] sm:$0xff] }
0x1450   :  { %v2211_v12 = vsel %vm164_vm7, %v2210_v22, %v2209_v53  ;;  %v2312_v52 = vadd.f32 %v5355_v55, %v6961_v37  ;;  %v2363_v55 = vld [vmem:[%s9093_s2 + $0x13] sm:$0x1]  ;;  %v2710_v50 = vadd.f32 %v7130_v16, %v7136_v3 }
0x1451   :  { %v2213_v11 = vsel %vm9188_vm15, %v2212_v62, %v2211_v12 }
0x1483   :  { %v2221_v58 = vpop.permute.xlu1 %2220 }
0x148b   :  { %v2147_v36 = vpop.permute.xlu1 %2146 }
0x14b2   :  { %v2217_v44 = vpop.permute.xlu0 %2216 }
0x14b3   :  { %v2226_v45 = vsel %vm9189_vm1, %v2213_v11, %v2217_v44  ;;  %v2637_v11 = vld [vmem:[%s9194_s3 + $0x38] sm:$0xff] }
0x14b4   :  { %v2227_v54 = vsel %vm9190_vm0, %v2226_v45, %v2221_v58  ;;  %v2638_v58 = vld [vmem:[%s9194_s3 + $0x40] sm:$0xff] }
0x14b5   :  { %v2228_v60 = vsel %vm9191_vm9, %v2227_v54, %v2224_v10  ;;  %vm2313_vm9 = vcmp.eq.f32.partialorder %v2312_v52, 0.0  ;;  %v2635_v10 = vld [vmem:[%s9194_s3 + $0x28] sm:$0xff] }
0x14b6   :  { %5065 = vmatmul.msk.f32.vlgmr.msra.gmra.mxu2 %vm9192_vm14, %v2228_v60  ;;  %v2314_v53 = vsel %vm2313_vm9, 1, %v5360_v0  ;;  %vm9200_vm9 = vcmask 654336  }
0x14ba   :  { %v1717_v1 = vpop.permute.xlu0 %1716 }
0x14bb   :  { %v1719_v17 = vsel %vm9193_vm8, %v6692_v20, %v1717_v1  ;;  %vm9195_vm8 = vcmask 1044484  }
0x14bc   :  { %v7111_v63 = vmul.f32 %v2147_v36, %v1719_v17 }
0x14be   :  { %2292 = vrot.lane.b32.xlu0 %v7111_v63, %s9172_s6 }
0x14c6   :  { %2316 = vperm.xlu0 %5160, %v2314_v53  }
0x14ce   :  { %5162 = vset.pattern.permute.xlu0 %v5372_v42 }
0x1530   :  { %v2293_v46 = vpop.permute.xlu0 %2292 }
0x1538   :  { %v7151_v62 = vpop.permute.xlu0 %2316 }
0x1539   :  { %v2266_v35 = vpop.f32.mrf.mxu2  ;;  %vm9134_vm14 = vcmp.eq.s32.totalorder %v7151_v62, 1 }
0x153a   :  { %v2267_v41 = vadd.f32 %v5193_v14, %v2266_v35  ;;  %v2634_v14 = vld [vmem:[%s9194_s3 + $0x20] sm:$0xff] }
0x153c   :  { %v5066_v27 = vmul.f32 -1.442695, %v2267_v41 }
0x153e   :  { %5267 = vpow2.f32 %v5066_v27  ;;  %v2633_v27 = vld [vmem:[%s9194_s3 + $0x18] sm:$0xff] }
0x1544   :  { %v5268_v57 = vpop.eup %5267 }
0x1545   :  { %v2272_v39 = vadd.f32 1.0, %v5268_v57 }
0x1547   :  { %5269 = vrcp.f32 %v2272_v39  ;;  %v2284_v20 = vand.u32 2147483648, %v2272_v39  ;;  %v2282_v49 = vand.u32 2147483647, %v2272_v39  ;;  %vm2278_vm15 = vweird.f32 %v2272_v39 }
0x1549   :  { %v2285_v18 = vor.u32 1.1754944e-38, %v2284_v20  ;;  %vm2283_vm0 = vcmp.eq.f32.partialorder %v2282_v49, 8.507059e+37  ;;  %v2550_v20 = vsub.f32 1.0, %v7130_v16 }
0x154d   :  { %v5270_v34 = vpop.eup %5269 }
0x154e   :  { %v2274_v15 = vmul.f32 %v5270_v34, %v2272_v39  ;;  %vm2279_vm5 = vweird.f32 %v5270_v34  ;;  %v2632_v39 = vld [vmem:[%s9194_s3 + $0x10] sm:$0xff] }
0x154f   :  { %vm2280_vm1 = vmor %vm2278_vm15, %vm2279_vm5  ;;  %vm9197_vm15 = vcmask 1047559  }
0x1550   :  { %v2275_v26 = vsub.f32 1.0, %v2274_v15  ;;  %vm9196_vm5 = vmmov %vm9195_vm8 }
0x1552   :  { %v2276_v29 = vmul.f32 %v5270_v34, %v2275_v26  ;;  %v2631_v26 = vld [vmem:[%s9194_s3 + $0x8] sm:$0xff] }
0x1554   :  { %v2277_v56 = vadd.f32 %v5270_v34, %v2276_v29 }
0x1556   :  { %v2281_v48 = vsel %vm2280_vm1, %v5270_v34, %v2277_v56  ;;  %v2630_v56 = vld [vmem:[%s9194_s3] sm:$0xff]  ;;  %vm9198_vm1 = vcmask 130048  }
0x1557   :  { %v2286_v21 = vsel %vm2283_vm0, %v2285_v18, %v2281_v48  ;;  %vm9199_vm0 = vcmask 392192  }
0x1558   :  { %v2288_v40 = vmul.f32 2.0, %v2286_v21 }
0x155a   :  { %v5067_v31 = vadd.f32 -1.0, %v2288_v40  ;;  %v2560_v40 = vld [vmem:[%s9085_s0 + $0x1c] sm:$0x1] }
0x155c   :  { %v2290_v5 = vsel %vm5613_vm10, %v5067_v31, %v2286_v21 }
0x155d   :  { %2297 = vrot.lane.b32.xlu2 %v2290_v5, %s9165_s25  ;;  %v2295_v7 = vmul.f32 %v2293_v46, %v2290_v5 }
0x15b7   :  { %v2298_v13 = vpop.permute.xlu2 %2297 }
0x15b8   :  { %v2300_v59 = vmul.f32 %v2298_v13, %v2290_v5 }
0x15ba   :  { %2302 = vrot.lane.b32.xlu1 %v2300_v59, %s9172_s6 }
0x162c   :  { %v2303_v51 = vpop.permute.xlu1 %2302 }
0x162d   :  { %v7123_v8 = vadd.f32 %v2303_v51, %v2295_v7  ;;  %v2561_v51 = vld [vmem:[%s9085_s0 + $0x24] sm:$0x1] }
0x162f   :  { %5271 = vtanh.f32 %v7123_v8 }
0x1635   :  { %v5272_v9 = vpop.eup %5271 }
0x1636   :  { %2308 = vrot.lane.b32.xlu2 %v5272_v9, %s9165_s25 }
0x163e   :  { %2594 = vperm.xlu2 %5161, %v7130_v16  }
0x1646   :  { %2567 = vperm.xlu2 %5161, %v7136_v3  }
0x164e   :  { %2625 = vrot.lane.b32.xlu2 %v7027_v30, %s9173_s28 }
0x1656   :  { %1912 = vrot.lane.b32.xlu2 %v6942_v2, %s9166_s5  ;;  %v2639_v2 = vld [vmem:[%s9194_s3 + $0x48] sm:$0xff] }
0x1657   :  { %2653 = vmatpush.msrb.mxu0 %v2639_v2  ;;  %3262 = vmatpush.msrb.mxu2 %v2639_v2  ;;  %v2562_v2 = vld [vmem:[%s9085_s0 + $0x2c] sm:$0x1] }
0x1659   :  { %2654 = vmatpush.msrb.mxu0 %v2638_v58  ;;  %3263 = vmatpush.msrb.mxu2 %v2638_v58 }
0x165b   :  { %2655 = vmatpush.msrb.mxu0 %v2637_v11  ;;  %3264 = vmatpush.msrb.mxu2 %v2637_v11  ;;  %v2361_v11 = vld [vmem:[%s9093_s2 + $0x3] sm:$0x1] }
0x1690   :  { %v2309_v22 = vpop.permute.xlu2 %2308 }
0x1691   :  { %v2311_v12 = vmul.f32 %v2309_v22, %v2290_v5  ;;  %v2362_v5 = vld [vmem:[%s9093_s2 + $0xb] sm:$0x1] }
0x1693   :  { %2320 = vrot.lane.b32.xlu1 %v2311_v12, %s9172_s6 }
0x1698   :  { %v2595_v54 = vpop.permute.xlu2 %2594 }
0x169b   :  { %2371 = vperm.xlu1 %5156, %v6713_v28   ;;  %v2636_v28 = vld [vmem:[%s9194_s3 + $0x30] sm:$0xff] }
0x169c   :  { %2656 = vmatpush.msrb.mxu0 %v2636_v28  ;;  %3265 = vmatpush.msrb.mxu2 %v2636_v28 }
0x169e   :  { %2657 = vmatpush.msrb.mxu0 %v2635_v10  ;;  %3266 = vmatpush.msrb.mxu2 %v2635_v10 }
0x16a0   :  { %2658 = vmatpush.msrb.mxu0 %v2634_v14  ;;  %3267 = vmatpush.msrb.mxu2 %v2634_v14  ;;  %v2568_v29 = vpop.permute.xlu2 %2567 }
0x16a1   :  { %v2569_v49 = vrot.slane %v2568_v29, 1  ;;  %v2570_v18 = vrot.slane %v2568_v29, 2  ;;  %v2571_v48 = vrot.slane %v2568_v29, 3  ;;  %v2572_v46 = vrot.slane %v2568_v29, 4 }
0x16a2   :  { %2659 = vmatpush.msrb.mxu0 %v2633_v27  ;;  %3268 = vmatpush.msrb.mxu2 %v2633_v27  ;;  %v2573_v22 = vrot.slane %v2568_v29, 5 }
0x16a3   :  { %v2586_v31 = vmul.f32 %v2570_v18, %v2559_v19  ;;  %v2587_v9 = vmul.f32 %v2571_v48, %v2560_v40  ;;  %v2588_v58 = vmul.f32 %v2572_v46, %v2561_v51 }
0x16a4   :  { %2660 = vmatpush.msrb.mxu0 %v2632_v39  ;;  %3269 = vmatpush.msrb.mxu2 %v2632_v39 }
0x16a5   :  { %v2608_v53 = vrot.slane %v2586_v31, 6 }
0x16a6   :  { %2661 = vmatpush.msrb.mxu0 %v2631_v26  ;;  %3270 = vmatpush.msrb.mxu2 %v2631_v26 }
0x16a8   :  { %2662 = vmatpush.msrb.mxu0 %v2630_v56  ;;  %3271 = vmatpush.msrb.mxu2 %v2630_v56  ;;  %v2564_v56 = vld [vmem:[%s9085_s0 + $0x3c] sm:$0x1] }
0x1705   :  { %v2321_v44 = vpop.permute.xlu1 %2320 }
0x1706   :  { %v7169_v45 = vsel %vm9134_vm14, %v6756_v25, %v2321_v44  ;;  %v2610_v44 = vrot.slane %v2587_v9, 5  ;;  %vm9204_vm14 = vcmask 588800  }
0x1707   :  { %v2330_v60 = vrot.slane %v7169_v45, 1  ;;  %v2331_v1 = vrot.slane %v7169_v45, 2  ;;  %v2332_v36 = vrot.slane %v7169_v45, 3  ;;  %2344 = vst.msk [vmem:[%s9091_s18 + $0x3] sm:$0x1] %vm295_vm11, %v7169_v45  ;;  %v2333_v25 = vrot.slane %v7169_v45, 4 }
0x1708   :  { %v2597_v17 = vmul.f32 %v2595_v54, %v7169_v45  ;;  %v2334_v35 = vrot.slane %v7169_v45, 5  ;;  %v2335_v41 = vrot.slane %v7169_v45, 6  ;;  %v2336_v57 = vrot.slane %v7169_v45, 7 }
0x1709   :  { %2345 = vst.msk [vmem:[%s9091_s18 + $0xb] sm:$0x1] %vm295_vm11, %v2330_v60  ;;  %v2574_v60 = vrot.slane %v2568_v29, 6 }
0x170a   :  { %2346 = vst.msk [vmem:[%s9091_s18 + $0x13] sm:$0x1] %vm295_vm11, %v2331_v1  ;;  %2622 = vrot.lane.b32.xlu0 %v2597_v17, %s9158_s9  ;;  %v2589_v17 = vmul.f32 %v2573_v22, %v2562_v2 }
0x170b   :  { %2347 = vst.msk [vmem:[%s9091_s18 + $0x1b] sm:$0x1] %vm295_vm11, %v2332_v36  ;;  %v2364_v36 = vld [vmem:[%s9093_s2 + $0x1b] sm:$0x1] }
0x170c   :  { %2348 = vst.msk [vmem:[%s9091_s18 + $0x23] sm:$0x1] %vm295_vm11, %v2333_v25  ;;  %v2563_v25 = vld [vmem:[%s9085_s0 + $0x34] sm:$0x1]  ;;  %v2614_v18 = vrot.slane %v2589_v17, 3 }
0x170d   :  { %2349 = vst.msk [vmem:[%s9091_s18 + $0x2b] sm:$0x1] %vm295_vm11, %v2334_v35  ;;  %v7217_v34 = vpop.permute.xlu1 %2371  ;;  %v2612_v35 = vrot.slane %v2588_v58, 4 }
0x170e   :  { %2350 = vst.msk [vmem:[%s9091_s18 + $0x33] sm:$0x1] %vm295_vm11, %v2335_v41  ;;  %v2396_v15 = vmul.f32 %v7217_v34, %v7169_v45  ;;  %v2373_v21 = vrot.slane %v7217_v34, 1  ;;  %v2374_v7 = vrot.slane %v7217_v34, 2  ;;  %v2375_v10 = vrot.slane %v7217_v34, 3 }
0x170f   :  { %2351 = vst.msk [vmem:[%s9091_s18 + $0x3b] sm:$0x1] %vm295_vm11, %v2336_v57  ;;  %v2388_v14 = vmul.f32 %v7217_v34, %v2361_v11  ;;  %v2376_v41 = vrot.slane %v7217_v34, 4  ;;  %v2575_v57 = vrot.slane %v2568_v29, 7  ;;  %v2377_v19 = vrot.slane %v7217_v34, 5 }
0x1710   :  { %2421 = vrot.lane.b32.xlu1 %v2396_v15, %s9167_s24  ;;  %v2389_v52 = vmul.f32 %v2373_v21, %v2362_v5  ;;  %v2390_v28 = vmul.f32 %v2374_v7, %v2363_v55  ;;  %v2365_v15 = vld [vmem:[%s9093_s2 + $0x23] sm:$0x1]  ;;  %v2391_v26 = vmul.f32 %v2375_v10, %v2364_v36  ;;  %v2378_v5 = vrot.slane %v7217_v34, 6  ;;  %v2626_v10 = vpop.permute.xlu2 %2625 }
0x1711   :  { %v2591_v21 = vmul.f32 %v2575_v57, %v2564_v56  ;;  %v2379_v55 = vrot.slane %v7217_v34, 7 }
0x1712   :  { %2424 = vrot.lane.b32.xlu0 %v6976_v43, %s9159_s4  ;;  %v2405_v54 = vrot.slane %v2389_v52, 7  ;;  %v2407_v27 = vrot.slane %v2390_v28, 6  ;;  %v2409_v40 = vrot.slane %v2391_v26, 5 }
0x1713   :  { %v2618_v9 = vrot.slane %v2591_v21, 1 }
0x1718   :  { %2114 = vrot.lane.b32.xlu1 %v6946_v61, %s9166_s5  ;;  %v2558_v61 = vld [vmem:[%s9085_s0 + $0xc] sm:$0x1]  ;;  %v1913_v57 = vpop.permute.xlu2 %1912 }
0x171a   :  { %2553 = vperm.xlu0 %5162, %v2550_v20  }
0x1720   :  { %2357 = vperm.xlu1 %5156, %v1745_v23   ;;  %v2557_v23 = vld [vmem:[%s9085_s0 + $0x4] sm:$0x1] }
0x1721   :  { %v2584_v13 = vmul.f32 %v2568_v29, %v2557_v23  ;;  %v2366_v29 = vld [vmem:[%s9093_s2 + $0x2b] sm:$0x1]  ;;  %v2392_v23 = vmul.f32 %v2376_v41, %v2365_v15 }
0x1722   :  { %5163 = vset.pattern.permute.xlu0 %v5371_v4  ;;  %v2585_v4 = vmul.f32 %v2569_v49, %v2558_v61  ;;  %v2406_v49 = vsel %vm149_vm2, %v2405_v54, %v2388_v14  ;;  %v2590_v61 = vmul.f32 %v2574_v60, %v2563_v25  ;;  %v2393_v46 = vmul.f32 %v2377_v19, %v2366_v29  ;;  %v5195_v19 = vld [vmem:[%s9095_s16] ss:$0 sm:$0xff] }
0x1723   :  { %v2408_v48 = vsel %vm152_vm3, %v2407_v27, %v2406_v49  ;;  %v2411_v51 = vrot.slane %v2392_v23, 4  ;;  %v5194_v49 = vld [vmem:[%s9155_s8] ss:$0 sm:$0xff] }
0x1724   :  { %v2606_v59 = vrot.slane %v2585_v4, 7  ;;  %v2616_v31 = vrot.slane %v2590_v61, 2  ;;  %v2410_v7 = vsel %vm155_vm4, %v2409_v40, %v2408_v48  ;;  %v2413_v2 = vrot.slane %v2393_v46, 3 }
0x1726   :  { %v2607_v12 = vsel %vm149_vm2, %v2606_v59, %v2584_v13  ;;  %v2367_v59 = vld [vmem:[%s9093_s2 + $0x33] sm:$0x1] }
0x1727   :  { %v2609_v1 = vsel %vm152_vm3, %v2608_v53, %v2607_v12  ;;  %v2368_v53 = vld [vmem:[%s9093_s2 + $0x3b] sm:$0x1]  ;;  %v2394_v22 = vmul.f32 %v2378_v5, %v2367_v59  ;;  %v2412_v12 = vsel %vm9196_vm5, %v2411_v51, %v2410_v7  ;;  %vm9202_vm5 = vcmask 64512  }
0x1728   :  { %5164 = vset.pattern.permute.xlu1 %v5372_v42  ;;  %v2611_v39 = vsel %vm155_vm4, %v2610_v44, %v2609_v1  ;;  %v2395_v28 = vmul.f32 %v2379_v55, %v2368_v53  ;;  %v2414_v44 = vsel %vm161_vm6, %v2413_v2, %v2412_v12 }
0x1729   :  { %v2613_v4 = vsel %vm9195_vm8, %v2612_v35, %v2611_v39  ;;  %v2415_v34 = vrot.slane %v2394_v22, 2  ;;  %vm9201_vm8 = vmmov %vm9197_vm15  ;;  %v1915_v39 = vsel %vm1905_vm13, %v6935_v38, %v1913_v57 }
0x172a   :  { %v2615_v13 = vsel %vm161_vm6, %v2614_v18, %v2613_v4  ;;  %v2417_v36 = vrot.slane %v2395_v28, 1 }
0x172b   :  { %v2617_v52 = vsel %vm164_vm7, %v2616_v31, %v2615_v13  ;;  %v2416_v1 = vsel %vm164_vm7, %v2415_v34, %v2414_v44 }
0x172c   :  { %v2619_v58 = vsel %vm9197_vm15, %v2618_v9, %v2617_v52  ;;  %v2418_v25 = vsel %vm9201_vm8, %v2417_v36, %v2416_v1  ;;  %vm9203_vm15 = vcmask 326656  }
0x177c   :  { %v2623_v11 = vpop.permute.xlu0 %2622 }
0x177d   :  { %v2628_v54 = vsel %vm9198_vm1, %v2619_v58, %v2623_v11 }
0x177e   :  { %v2629_v60 = vsel %vm9199_vm0, %v2628_v54, %v2626_v10 }
0x177f   :  { %5073 = vmatmul.msk.f32.vlgmr.msrb.gmra.mxu0 %vm9200_vm9, %v2629_v60 }
0x1782   :  { %v2422_v17 = vpop.permute.xlu1 %2421 }
0x1783   :  { %v2427_v14 = vsel %vm9202_vm5, %v2418_v25, %v2422_v17 }
0x1784   :  { %v2425_v35 = vpop.permute.xlu0 %2424 }
0x1785   :  { %v2428_v41 = vsel %vm9203_vm15, %v2427_v14, %v2425_v35 }
0x1786   :  { %5070 = vmatmul.msk.f32.vlgmr.msra.gmra.mxu1 %vm9204_vm14, %v2428_v41 }
0x178a   :  { %v2115_v27 = vpop.permute.xlu1 %2114 }
0x178b   :  { %v2117_v25 = vsel %vm2107_vm12, %v6916_v47, %v2115_v27  ;;  %vm2711_vm12 = vcmp.eq.f32.partialorder %v2710_v50, 0.0 }
0x178c   :  { %v2554_v36 = vpop.permute.xlu0 %2553  ;;  %v7354_v27 = vsel %vm2711_vm12, 1, %v5360_v0  ;;  %vm9211_vm12 = vcmp.eq.s32.totalorder %v7151_v62, 1 }
0x178d   :  { %v7342_v14 = vmul.f32 %v2554_v36, %v2117_v25  ;;  %v2847_v36 = vld [vmem:[%s9086_s12 + $0x48] sm:$0xff]  ;;  %v2846_v25 = vld [vmem:[%s9086_s12 + $0x40] sm:$0xff] }
0x1792   :  { %v2358_v15 = vpop.permute.xlu1 %2357 }
0x1793   :  { %v7326_v26 = vmul.f32 %v2358_v15, %v1915_v39 }
0x1795   :  { %2488 = vrot.lane.b32.xlu0 %v7326_v26, %s9172_s6 }
0x17fc   :  { %v2664_v56 = vpop.f32.mrf.mxu0 }
0x17fd   :  { %v2665_v61 = vadd.f32 %v5194_v49, %v2664_v56 }
0x17ff   :  { %v5074_v18 = vmul.f32 -1.442695, %v2665_v61 }
0x1801   :  { %5273 = vpow2.f32 %v5074_v18 }
0x1803   :  { %v2462_v6 = vpop.f32.mrf.mxu1 }
0x1804   :  { %v2463_v38 = vadd.f32 %v5195_v19, %v2462_v6 }
0x1806   :  { %v5071_v4 = vmul.f32 -1.442695, %v2463_v38 }
0x1807   :  { %v5274_v29 = vpop.eup %5273  ;;  %v2489_v18 = vpop.permute.xlu0 %2488 }
0x1808   :  { %v2670_v23 = vadd.f32 1.0, %v5274_v29  ;;  %5275 = vpow2.f32 %v5071_v4 }
0x180a   :  { %5277 = vrcp.f32 %v2670_v23  ;;  %v2682_v13 = vand.u32 2147483648, %v2670_v23  ;;  %v2680_v46 = vand.u32 2147483647, %v2670_v23  ;;  %vm2676_vm14 = vweird.f32 %v2670_v23 }
0x180c   :  { %v2683_v55 = vor.u32 1.1754944e-38, %v2682_v13  ;;  %vm2681_vm0 = vcmp.eq.f32.partialorder %v2680_v46, 8.507059e+37 }
0x180e   :  { %v5276_v48 = vpop.eup %5275 }
0x180f   :  { %v2468_v21 = vadd.f32 1.0, %v5276_v48 }
0x1810   :  { %v5278_v40 = vpop.eup %5277 }
0x1811   :  { %v2672_v31 = vmul.f32 %v5278_v40, %v2670_v23  ;;  %5279 = vrcp.f32 %v2468_v21  ;;  %vm2677_vm13 = vweird.f32 %v5278_v40  ;;  %v2480_v12 = vand.u32 2147483648, %v2468_v21 }
0x1812   :  { %vm2678_vm1 = vmor %vm2676_vm14, %vm2677_vm13  ;;  %v2478_v11 = vand.u32 2147483647, %v2468_v21  ;;  %vm2474_vm8 = vweird.f32 %v2468_v21 }
0x1813   :  { %v2673_v5 = vsub.f32 1.0, %v2672_v31  ;;  %v2481_v10 = vor.u32 1.1754944e-38, %v2480_v12  ;;  %v7371_v31 = vld [vmem:[%s9151_s14 + $0x8] sm:$0xff]  ;;  %v2848_v12 = vld [vmem:[%s9086_s12 + $0x50] sm:$0xff] }
0x1814   :  { %vm2479_vm15 = vcmp.eq.f32.partialorder %v2478_v11, 8.507059e+37 }
0x1815   :  { %v2674_v59 = vmul.f32 %v5278_v40, %v2673_v5 }
0x1817   :  { %v5280_v7 = vpop.eup %5279  ;;  %v2675_v51 = vadd.f32 %v5278_v40, %v2674_v59 }
0x1818   :  { %v2470_v9 = vmul.f32 %v5280_v7, %v2468_v21  ;;  %vm2475_vm9 = vweird.f32 %v5280_v7 }
0x1819   :  { %v2679_v52 = vsel %vm2678_vm1, %v5278_v40, %v2675_v51  ;;  %vm2476_vm5 = vmor %vm2474_vm8, %vm2475_vm9  ;;  %vm9205_vm1 = vcmask 1044484   ;;  %vm9207_vm9 = vcmask 64512   ;;  %vm9208_vm8 = vcmask 326656  }
0x181a   :  { %v2471_v53 = vsub.f32 1.0, %v2470_v9  ;;  %v2684_v22 = vsel %vm2681_vm0, %v2683_v55, %v2679_v52  ;;  %v2849_v52 = vld [vmem:[%s9086_s12 + $0x58] sm:$0xff]  ;;  %vm9206_vm0 = vcmask 1047559  }
0x181b   :  { %v2686_v2 = vmul.f32 2.0, %v2684_v22 }
0x181c   :  { %v2472_v58 = vmul.f32 %v5280_v7, %v2471_v53 }
0x181d   :  { %v5075_v28 = vadd.f32 -1.0, %v2686_v2 }
0x181e   :  { %v2473_v44 = vadd.f32 %v5280_v7, %v2472_v58 }
0x181f   :  { %v2688_v54 = vsel %vm5613_vm10, %v5075_v28, %v2684_v22 }
0x1820   :  { %v2477_v34 = vsel %vm2476_vm5, %v5280_v7, %v2473_v44  ;;  %2695 = vrot.lane.b32.xlu2 %v2688_v54, %s9165_s25  ;;  %vm9209_vm5 = vcmask 588800  }
0x1821   :  { %v2482_v60 = vsel %vm2479_vm15, %v2481_v10, %v2477_v34  ;;  %vm9210_vm15 = vcmask 850944  }
0x1822   :  { %v2484_v1 = vmul.f32 2.0, %v2482_v60 }
0x1824   :  { %v5072_v17 = vadd.f32 -1.0, %v2484_v1 }
0x1826   :  { %v2486_v35 = vsel %vm5613_vm10, %v5072_v17, %v2482_v60  ;;  %v2845_v17 = vld [vmem:[%s9086_s12 + $0x38] sm:$0xff] }
0x1827   :  { %2493 = vrot.lane.b32.xlu1 %v2486_v35, %s9165_s25  ;;  %v2491_v19 = vmul.f32 %v2489_v18, %v2486_v35  ;;  %v2761_v18 = vld [vmem:[%s9089_s1 + $0x14] sm:$0x1] }
0x1828   :  { %2690 = vrot.lane.b32.xlu2 %v7342_v14, %s9172_s6 }
0x187a   :  { %v2696_v41 = vpop.permute.xlu2 %2695 }
0x187b   :  { %v2698_v57 = vmul.f32 %v2696_v41, %v2688_v54  ;;  %v2842_v41 = vld [vmem:[%s9086_s12 + $0x20] sm:$0xff] }
0x187d   :  { %2700 = vrot.lane.b32.xlu1 %v2698_v57, %s9172_s6  ;;  %v2841_v57 = vld [vmem:[%s9086_s12 + $0x18] sm:$0xff] }
0x1882   :  { %v2691_v15 = vpop.permute.xlu2 %2690 }
0x1883   :  { %v2693_v49 = vmul.f32 %v2691_v15, %v2688_v54  ;;  %v2838_v15 = vld [vmem:[%s9086_s12] sm:$0xff] }
0x1899   :  { %v2494_v39 = vpop.permute.xlu1 %2493 }
0x189a   :  { %v2496_v47 = vmul.f32 %v2494_v39, %v2486_v35  ;;  %v2840_v39 = vld [vmem:[%s9086_s12 + $0x10] sm:$0xff] }
0x189c   :  { %2498 = vrot.lane.b32.xlu2 %v2496_v47, %s9172_s6  ;;  %v2839_v47 = vld [vmem:[%s9086_s12 + $0x8] sm:$0xff] }
0x18a4   :  { %2714 = vperm.xlu2 %5161, %v7354_v27  }
0x18ef   :  { %v2701_v56 = vpop.permute.xlu1 %2700 }
0x18f0   :  { %v7357_v61 = vadd.f32 %v2701_v56, %v2693_v49  ;;  %v2760_v49 = vld [vmem:[%s9089_s1 + $0xc] sm:$0x1] }
0x18f2   :  { %5281 = vtanh.f32 %v7357_v61 }
0x18f6   :  { %v2499_v6 = vpop.permute.xlu2 %2498 }
0x18f7   :  { %v7360_v38 = vadd.f32 %v2499_v6, %v2491_v19  ;;  %v2759_v6 = vld [vmem:[%s9089_s1 + $0x4] sm:$0x1] }
0x18f8   :  { %v5282_v4 = vpop.eup %5281 }
0x18f9   :  { %5283 = vtanh.f32 %v7360_v38  ;;  %2706 = vrot.lane.b32.xlu0 %v5282_v4, %s9165_s25 }
0x18ff   :  { %v5284_v29 = vpop.eup %5283 }
0x1900   :  { %2504 = vrot.lane.b32.xlu1 %v5284_v29, %s9165_s25 }
0x1901   :  { %2512 = vperm.xlu0 %5163, %v6953_v32   ;;  %v7378_v32 = vpop.permute.xlu2 %2714 }
0x1902   :  { %vm2716_vm14 = vcmp.eq.s32.totalorder %v7378_v32, 1 }
0x1909   :  { %5165 = vset.pattern.permute.xlu0 %v5372_v42 }
0x196b   :  { %v2707_v23 = vpop.permute.xlu0 %2706 }
0x196c   :  { %v2709_v48 = vmul.f32 %v2707_v23, %v2688_v54 }
0x196e   :  { %2718 = vrot.lane.b32.xlu1 %v2709_v48, %s9172_s6  ;;  %v2762_v48 = vld [vmem:[%s9089_s1 + $0x1c] sm:$0x1] }
0x1972   :  { %v2505_v21 = vpop.permute.xlu1 %2504 }
0x1973   :  { %v2507_v40 = vmul.f32 %v2505_v21, %v2486_v35  ;;  %v7380_v5 = vpop.permute.xlu0 %2512  ;;  %v2843_v35 = vld [vmem:[%s9086_s12 + $0x28] sm:$0xff] }
0x1974   :  { %vm2514_vm13 = vcmp.eq.s32.totalorder %v7380_v5, 1  ;;  %v2976_v5 = vld [vmem:[%s9093_s2 + $0x34] sm:$0x1] }
0x1975   :  { %2516 = vrot.lane.b32.xlu2 %v2507_v40, %s9172_s6 }
0x1976   :  { %2769 = vperm.xlu1 %5164, %v7371_v31  }
0x197d   :  { %2797 = vperm.xlu2 %5161, %v6961_v37  }
0x1985   :  { %2832 = vrot.lane.b32.xlu2 %v7169_v45, %s9168_s26 }
0x19cf   :  { %v2517_v13 = vpop.permute.xlu2 %2516 }
0x19d0   :  { %v7386_v59 = vsel %vm2514_vm13, %v6976_v43, %v2517_v13  ;;  %v2850_v43 = vld [vmem:[%s9086_s12 + $0x60] sm:$0xff] }
0x19d1   :  { %v2526_v46 = vrot.slane %v7386_v59, 1  ;;  %v2527_v7 = vrot.slane %v7386_v59, 2  ;;  %v2528_v51 = vrot.slane %v7386_v59, 3  ;;  %2540 = vst.msk [vmem:[%s9096_s19 + $0x3] sm:$0x1] %vm295_vm11, %v7386_v59  ;;  %v2529_v9 = vrot.slane %v7386_v59, 4  ;;  %2861 = vmatpush.msrb.mxu3 %v2850_v43  ;;  %3470 = vmatpush.msra.mxu0 %v2850_v43 }
0x19d2   :  { %v2530_v55 = vrot.slane %v7386_v59, 5  ;;  %v2531_v53 = vrot.slane %v7386_v59, 6  ;;  %v2532_v22 = vrot.slane %v7386_v59, 7 }
0x19d3   :  { %2541 = vst.msk [vmem:[%s9096_s19 + $0xb] sm:$0x1] %vm295_vm11, %v2526_v46  ;;  %2862 = vmatpush.msrb.mxu3 %v2849_v52  ;;  %3471 = vmatpush.msra.mxu0 %v2849_v52  ;;  %v2763_v46 = vld [vmem:[%s9089_s1 + $0x24] sm:$0x1] }
0x19d4   :  { %2542 = vst.msk [vmem:[%s9096_s19 + $0x13] sm:$0x1] %vm295_vm11, %v2527_v7 }
0x19d5   :  { %2543 = vst.msk [vmem:[%s9096_s19 + $0x1b] sm:$0x1] %vm295_vm11, %v2528_v51  ;;  %2863 = vmatpush.msrb.mxu3 %v2848_v12  ;;  %3472 = vmatpush.msra.mxu0 %v2848_v12  ;;  %v2765_v12 = vld [vmem:[%s9089_s1 + $0x34] sm:$0x1] }
0x19d6   :  { %2544 = vst.msk [vmem:[%s9096_s19 + $0x23] sm:$0x1] %vm295_vm11, %v2529_v9 }
0x19d7   :  { %2545 = vst.msk [vmem:[%s9096_s19 + $0x2b] sm:$0x1] %vm295_vm11, %v2530_v55  ;;  %v2798_v2 = vpop.permute.xlu2 %2797  ;;  %2864 = vmatpush.msrb.mxu3 %v2847_v36  ;;  %3473 = vmatpush.msra.mxu0 %v2847_v36  ;;  %v2764_v55 = vld [vmem:[%s9089_s1 + $0x2c] sm:$0x1] }
0x19d8   :  { %2546 = vst.msk [vmem:[%s9096_s19 + $0x33] sm:$0x1] %vm295_vm11, %v2531_v53  ;;  %v2800_v58 = vmul.f32 %v2798_v2, %v7386_v59 }
0x19d9   :  { %2547 = vst.msk [vmem:[%s9096_s19 + $0x3b] sm:$0x1] %vm295_vm11, %v2532_v22  ;;  %2865 = vmatpush.msrb.mxu3 %v2846_v25  ;;  %3474 = vmatpush.msra.mxu0 %v2846_v25 }
0x19da   :  { %2829 = vrot.lane.b32.xlu1 %v2800_v58, %s9159_s4 }
0x19db   :  { %2866 = vmatpush.msrb.mxu3 %v2845_v17  ;;  %3475 = vmatpush.msra.mxu0 %v2845_v17 }
0x19e0   :  { %v2719_v11 = vpop.permute.xlu1 %2718 }
0x19e1   :  { %v7443_v28 = vsel %vm2716_vm14, %v7027_v30, %v2719_v11 }
0x19e2   :  { %v2728_v44 = vrot.slane %v7443_v28, 1  ;;  %v2729_v10 = vrot.slane %v7443_v28, 2  ;;  %v2730_v54 = vrot.slane %v7443_v28, 3  ;;  %2742 = vst.msk [vmem:[%s9087_s17 + $0x4] sm:$0x1] %vm295_vm11, %v7443_v28  ;;  %2755 = vperm.xlu1 %5164, %v2143_v24   ;;  %v2731_v34 = vrot.slane %v7443_v28, 4 }
0x19e3   :  { %v2732_v30 = vrot.slane %v7443_v28, 5  ;;  %v2733_v60 = vrot.slane %v7443_v28, 6  ;;  %v2734_v1 = vrot.slane %v7443_v28, 7 }
0x19e4   :  { %2743 = vst.msk [vmem:[%s9087_s17 + $0xc] sm:$0x1] %vm295_vm11, %v2728_v44 }
0x19e5   :  { %2744 = vst.msk [vmem:[%s9087_s17 + $0x14] sm:$0x1] %vm295_vm11, %v2729_v10  ;;  %v2766_v10 = vld [vmem:[%s9089_s1 + $0x3c] sm:$0x1] }
0x19e6   :  { %2745 = vst.msk [vmem:[%s9087_s17 + $0x1c] sm:$0x1] %vm295_vm11, %v2730_v54 }
0x19e7   :  { %2746 = vst.msk [vmem:[%s9087_s17 + $0x24] sm:$0x1] %vm295_vm11, %v2731_v34 }
0x19e8   :  { %2747 = vst.msk [vmem:[%s9087_s17 + $0x2c] sm:$0x1] %vm295_vm11, %v2732_v30  ;;  %v7479_v37 = vpop.permute.xlu1 %2769 }
0x19e9   :  { %2748 = vst.msk [vmem:[%s9087_s17 + $0x34] sm:$0x1] %vm295_vm11, %v2733_v60  ;;  %v2794_v24 = vmul.f32 %v7479_v37, %v7443_v28  ;;  %v2771_v50 = vrot.slane %v7479_v37, 1  ;;  %v2772_v56 = vrot.slane %v7479_v37, 2  ;;  %v2773_v29 = vrot.slane %v7479_v37, 3 }
0x19ea   :  { %2749 = vst.msk [vmem:[%s9087_s17 + $0x3c] sm:$0x1] %vm295_vm11, %v2734_v1  ;;  %v2786_v21 = vmul.f32 %v7479_v37, %v2759_v6  ;;  %v2774_v40 = vrot.slane %v7479_v37, 4  ;;  %v2775_v9 = vrot.slane %v7479_v37, 5  ;;  %v2776_v22 = vrot.slane %v7479_v37, 6 }
0x19eb   :  { %2825 = vrot.lane.b32.xlu0 %v2794_v24, %s9167_s24  ;;  %v2787_v19 = vmul.f32 %v2771_v50, %v2760_v49  ;;  %v2788_v4 = vmul.f32 %v2772_v56, %v2761_v18  ;;  %v2789_v7 = vmul.f32 %v2773_v29, %v2762_v48  ;;  %v2777_v44 = vrot.slane %v7479_v37, 7  ;;  %v5196_v56 = vld [vmem:[%s9090_s15] ss:$0 sm:$0xff] }
0x19ec   :  { %v2790_v43 = vmul.f32 %v2774_v40, %v2763_v46  ;;  %v2791_v2 = vmul.f32 %v2775_v9, %v2764_v55  ;;  %v2792_v54 = vmul.f32 %v2776_v22, %v2765_v12 }
0x19ed   :  { %v2809_v23 = vrot.slane %v2787_v19, 7  ;;  %v2811_v13 = vrot.slane %v2788_v4, 6  ;;  %v2813_v53 = vrot.slane %v2789_v7, 5  ;;  %v2793_v60 = vmul.f32 %v2777_v44, %v2766_v10  ;;  %v5356_v44 = vld [vmem:[%s9149_s29 + $0x8] sm:$0xff] }
0x19ee   :  { %v2815_v11 = vrot.slane %v2790_v43, 4  ;;  %v2817_v30 = vrot.slane %v2791_v2, 3  ;;  %v2819_v24 = vrot.slane %v2792_v54, 2  ;;  %v2921_v10 = vadd.f32 %v5356_v44, %v7371_v31  ;;  %v2972_v44 = vld [vmem:[%s9093_s2 + $0x14] sm:$0x1] }
0x19ef   :  { %v2810_v51 = vsel %vm149_vm2, %v2809_v23, %v2786_v21  ;;  %v2821_v25 = vrot.slane %v2793_v60, 1 }
0x19f0   :  { %v2812_v52 = vsel %vm152_vm3, %v2811_v13, %v2810_v51 }
0x19f1   :  { %v2814_v58 = vsel %vm155_vm4, %v2813_v53, %v2812_v52 }
0x19f2   :  { %v2816_v34 = vsel %vm9205_vm1, %v2815_v11, %v2814_v58 }
0x19f3   :  { %2325 = vrot.lane.b32.xlu0 %v7123_v8, %s9166_s5  ;;  %v2844_v8 = vld [vmem:[%s9086_s12 + $0x30] sm:$0xff]  ;;  %v2818_v1 = vsel %vm161_vm6, %v2817_v30, %v2816_v34  ;;  %v5373_v34 = vmov 5  }
0x19f4   :  { %2867 = vmatpush.msrb.mxu3 %v2844_v8  ;;  %3476 = vmatpush.msra.mxu0 %v2844_v8  ;;  %v2820_v36 = vsel %vm164_vm7, %v2819_v24, %v2818_v1  ;;  %v7598_v1 = vld [vmem:[%s9151_s14 + $0x10] sm:$0xff] }
0x19f5   :  { %5166 = vset.pattern.permute.xlu2 %v5373_v34 }
0x19f6   :  { %2868 = vmatpush.msrb.mxu3 %v2843_v35  ;;  %3477 = vmatpush.msra.mxu0 %v2843_v35  ;;  %v2822_v35 = vsel %vm9206_vm0, %v2821_v25, %v2820_v36 }
0x19f8   :  { %2869 = vmatpush.msrb.mxu3 %v2842_v41  ;;  %3478 = vmatpush.msra.mxu0 %v2842_v41  ;;  %v2833_v41 = vpop.permute.xlu2 %2832 }
0x19fa   :  { %2870 = vmatpush.msrb.mxu3 %v2841_v57  ;;  %3479 = vmatpush.msra.mxu0 %v2841_v57 }
0x19fc   :  { %2871 = vmatpush.msrb.mxu3 %v2840_v39  ;;  %3480 = vmatpush.msra.mxu0 %v2840_v39 }
0x19fe   :  { %2872 = vmatpush.msrb.mxu3 %v2839_v47  ;;  %3481 = vmatpush.msra.mxu0 %v2839_v47 }
0x1a00   :  { %2873 = vmatpush.msrb.mxu3 %v2838_v15  ;;  %3482 = vmatpush.msra.mxu0 %v2838_v15 }
0x1a4c   :  { %v2830_v17 = vpop.permute.xlu1 %2829 }
0x1a54   :  { %v2756_v47 = vpop.permute.xlu1 %2755 }
0x1a5d   :  { %v2826_v8 = vpop.permute.xlu0 %2825 }
0x1a5e   :  { %v2835_v37 = vsel %vm9207_vm9, %v2822_v35, %v2826_v8 }
0x1a5f   :  { %v2836_v57 = vsel %vm9208_vm8, %v2835_v37, %v2830_v17 }
0x1a60   :  { %v2837_v39 = vsel %vm9209_vm5, %v2836_v57, %v2833_v41  ;;  %vm2922_vm5 = vcmp.eq.f32.partialorder %v2921_v10, 0.0 }
0x1a61   :  { %5078 = vmatmul.msk.f32.vlgmr.msrb.gmra.mxu3 %vm9210_vm15, %v2837_v39  ;;  %v2923_v54 = vsel %vm2922_vm5, 1, %v5360_v0 }
0x1a65   :  { %v2326_v50 = vpop.permute.xlu0 %2325 }
0x1a66   :  { %v2328_v15 = vsel %vm9211_vm12, %v7111_v63, %v2326_v50  ;;  %vm9212_vm12 = vcmask 1044484  }
0x1a67   :  { %v7570_v49 = vmul.f32 %v2756_v47, %v2328_v15 }
0x1a69   :  { %2901 = vrot.lane.b32.xlu0 %v7570_v49, %s9172_s6 }
0x1a71   :  { %2925 = vperm.xlu0 %5165, %v2923_v54  }
0x1a79   :  { %5167 = vset.pattern.permute.xlu0 %v5373_v34 }
0x1adb   :  { %v2902_v22 = vpop.permute.xlu0 %2901 }
0x1ae3   :  { %v7614_v36 = vpop.permute.xlu0 %2925 }
0x1ae4   :  { %v2875_v18 = vpop.f32.mrf.mxu3  ;;  %vm9135_vm15 = vcmp.eq.s32.totalorder %v7614_v36, 1 }
0x1ae5   :  { %v2876_v19 = vadd.f32 %v5196_v56, %v2875_v18  ;;  %v3046_v56 = vld [vmem:[%s9092_s13 + $0x40] sm:$0xff]  ;;  %v3045_v18 = vld [vmem:[%s9092_s13 + $0x38] sm:$0xff] }
0x1ae6   :  { %3061 = vmatpush.msrb.mxu1 %v3046_v56  ;;  %3670 = vmatpush.msra.mxu3 %v3046_v56  ;;  %v3172_v56 = vld [vmem:[%s9085_s0 + $0x35] sm:$0x1] }
0x1ae7   :  { %v5079_v6 = vmul.f32 -1.442695, %v2876_v19  ;;  %v3044_v19 = vld [vmem:[%s9092_s13 + $0x30] sm:$0xff] }
0x1ae8   :  { %3062 = vmatpush.msrb.mxu1 %v3045_v18  ;;  %3671 = vmatpush.msra.mxu3 %v3045_v18 }
0x1ae9   :  { %5285 = vpow2.f32 %v5079_v6  ;;  %v3041_v6 = vld [vmem:[%s9092_s13 + $0x18] sm:$0xff] }
0x1aea   :  { %3063 = vmatpush.msrb.mxu1 %v3044_v19  ;;  %3672 = vmatpush.msra.mxu3 %v3044_v19 }
0x1aef   :  { %v5286_v4 = vpop.eup %5285 }
0x1af0   :  { %v2881_v29 = vadd.f32 1.0, %v5286_v4  ;;  %v3167_v4 = vld [vmem:[%s9085_s0 + $0xd] sm:$0x1] }
0x1af2   :  { %5287 = vrcp.f32 %v2881_v29  ;;  %v2893_v63 = vand.u32 2147483648, %v2881_v29  ;;  %v2891_v40 = vand.u32 2147483647, %v2881_v29  ;;  %vm2887_vm0 = vweird.f32 %v2881_v29 }
0x1af4   :  { %v2894_v46 = vor.u32 1.1754944e-38, %v2893_v63  ;;  %vm2892_vm8 = vcmp.eq.f32.partialorder %v2891_v40, 8.507059e+37  ;;  %v3168_v63 = vld [vmem:[%s9085_s0 + $0x15] sm:$0x1]  ;;  %v3166_v40 = vld [vmem:[%s9085_s0 + $0x5] sm:$0x1] }
0x1af8   :  { %v5288_v23 = vpop.eup %5287 }
0x1af9   :  { %v2883_v48 = vmul.f32 %v5288_v23, %v2881_v29  ;;  %vm2888_vm1 = vweird.f32 %v5288_v23 }
0x1afa   :  { %vm2889_vm9 = vmor %vm2887_vm0, %vm2888_vm1  ;;  %vm9214_vm1 = vcmask 1047559   ;;  %vm9215_vm0 = vcmask 130048  }
0x1afb   :  { %v2884_v62 = vsub.f32 1.0, %v2883_v48  ;;  %vm9218_vm5 = vmmov %vm9214_vm1 }
0x1afd   :  { %v2885_v21 = vmul.f32 %v5288_v23, %v2884_v62 }
0x1aff   :  { %v2886_v13 = vadd.f32 %v5288_v23, %v2885_v21  ;;  %v3039_v21 = vld [vmem:[%s9092_s13 + $0x8] sm:$0xff] }
0x1b01   :  { %v2890_v7 = vsel %vm2889_vm9, %v5288_v23, %v2886_v13  ;;  %v3040_v23 = vld [vmem:[%s9092_s13 + $0x10] sm:$0xff]  ;;  %vm9216_vm9 = vcmask 392192  }
0x1b02   :  { %v2895_v51 = vsel %vm2892_vm8, %v2894_v46, %v2890_v7  ;;  %v3169_v7 = vld [vmem:[%s9085_s0 + $0x1d] sm:$0x1]  ;;  %vm9217_vm8 = vcmask 654336  }
0x1b03   :  { %v2897_v9 = vmul.f32 2.0, %v2895_v51 }
0x1b05   :  { %v5080_v55 = vadd.f32 -1.0, %v2897_v9  ;;  %v3038_v9 = vld [vmem:[%s9092_s13] sm:$0xff] }
0x1b07   :  { %v2899_v43 = vsel %vm5613_vm10, %v5080_v55, %v2895_v51 }
0x1b08   :  { %2906 = vrot.lane.b32.xlu2 %v2899_v43, %s9165_s25  ;;  %v2904_v12 = vmul.f32 %v2902_v22, %v2899_v43 }
0x1b62   :  { %v2907_v52 = vpop.permute.xlu2 %2906 }
0x1b63   :  { %v2909_v53 = vmul.f32 %v2907_v52, %v2899_v43 }
0x1b65   :  { %2911 = vrot.lane.b32.xlu1 %v2909_v53, %s9172_s6 }
0x1bd7   :  { %v2912_v2 = vpop.permute.xlu1 %2911 }
0x1bd8   :  { %v7581_v58 = vadd.f32 %v2912_v2, %v2904_v12  ;;  %v3170_v12 = vld [vmem:[%s9085_s0 + $0x25] sm:$0x1] }
0x1bda   :  { %5289 = vtanh.f32 %v7581_v58 }
0x1be0   :  { %v5290_v11 = vpop.eup %5289 }
0x1be1   :  { %2917 = vrot.lane.b32.xlu2 %v5290_v11, %s9165_s25 }
0x1be9   :  { %3203 = vperm.xlu2 %5166, %v7130_v16  }
0x1bf1   :  { %3176 = vperm.xlu2 %5166, %v7136_v3   ;;  %v7608_v3 = vld [vmem:[%s9149_s29 + $0x10] sm:$0xff] }
0x1bf2   :  { %v2963_v24 = vsub.f32 1.0, %v7608_v3 }
0x1c3b   :  { %v2918_v30 = vpop.permute.xlu2 %2917 }
0x1c3c   :  { %v2920_v60 = vmul.f32 %v2918_v30, %v2899_v43  ;;  %v2971_v43 = vld [vmem:[%s9093_s2 + $0xc] sm:$0x1] }
0x1c3e   :  { %2929 = vrot.lane.b32.xlu1 %v2920_v60, %s9172_s6 }
0x1c43   :  { %v3204_v17 = vpop.permute.xlu2 %3203 }
0x1c46   :  { %2980 = vperm.xlu1 %5164, %v7598_v1  }
0x1c4b   :  { %v7688_v16 = vpop.permute.xlu2 %3176 }
0x1c4c   :  { %v3179_v48 = vrot.slane %v7688_v16, 2  ;;  %v3180_v13 = vrot.slane %v7688_v16, 3  ;;  %v3193_v55 = vmul.f32 %v7688_v16, %v3166_v40  ;;  %v3181_v53 = vrot.slane %v7688_v16, 4 }
0x1c4d   :  { %v3182_v60 = vrot.slane %v7688_v16, 5 }
0x1c4e   :  { %3234 = vrot.lane.b32.xlu1 %v7443_v28, %s9173_s28  ;;  %v3195_v51 = vmul.f32 %v3179_v48, %v3168_v63  ;;  %v3196_v2 = vmul.f32 %v3180_v13, %v3169_v7  ;;  %v3173_v63 = vld [vmem:[%s9085_s0 + $0x3d] sm:$0x1] }
0x1c50   :  { %v3217_v54 = vrot.slane %v3195_v51, 6 }
0x1c56   :  { %2723 = vrot.lane.b32.xlu1 %v7357_v61, %s9166_s5 }
0x1c5e   :  { %2966 = vperm.xlu1 %5164, %v2963_v24  }
0x1c66   :  { %5169 = vset.pattern.permute.xlu1 %v5373_v34 }
0x1cb0   :  { %v2930_v25 = vpop.permute.xlu1 %2929 }
0x1cb1   :  { %v7620_v61 = vsel %vm9135_vm15, %v7169_v45, %v2930_v25 }
0x1cb2   :  { %v2939_v8 = vrot.slane %v7620_v61, 1  ;;  %v2940_v35 = vrot.slane %v7620_v61, 2  ;;  %v2941_v37 = vrot.slane %v7620_v61, 3  ;;  %2953 = vst.msk [vmem:[%s9091_s18 + $0x4] sm:$0x1] %vm295_vm11, %v7620_v61  ;;  %v2942_v41 = vrot.slane %v7620_v61, 4 }
0x1cb3   :  { %v3206_v57 = vmul.f32 %v3204_v17, %v7620_v61  ;;  %v2943_v45 = vrot.slane %v7620_v61, 5  ;;  %v2944_v39 = vrot.slane %v7620_v61, 6  ;;  %v2945_v50 = vrot.slane %v7620_v61, 7  ;;  %v3171_v17 = vld [vmem:[%s9085_s0 + $0x2d] sm:$0x1] }
0x1cb4   :  { %2954 = vst.msk [vmem:[%s9091_s18 + $0xc] sm:$0x1] %vm295_vm11, %v2939_v8  ;;  %v3197_v8 = vmul.f32 %v3181_v53, %v3170_v12  ;;  %v3198_v18 = vmul.f32 %v3182_v60, %v3171_v17 }
0x1cb5   :  { %2955 = vst.msk [vmem:[%s9091_s18 + $0x14] sm:$0x1] %vm295_vm11, %v2940_v35  ;;  %3231 = vrot.lane.b32.xlu0 %v3206_v57, %s9158_s9  ;;  %v2970_v35 = vld [vmem:[%s9093_s2 + $0x4] sm:$0x1] }
0x1cb6   :  { %2956 = vst.msk [vmem:[%s9091_s18 + $0x1c] sm:$0x1] %vm295_vm11, %v2941_v37  ;;  %v3223_v13 = vrot.slane %v3198_v18, 3 }
0x1cb7   :  { %2957 = vst.msk [vmem:[%s9091_s18 + $0x24] sm:$0x1] %vm295_vm11, %v2942_v41  ;;  %v3219_v41 = vrot.slane %v3196_v2, 5 }
0x1cb8   :  { %2958 = vst.msk [vmem:[%s9091_s18 + $0x2c] sm:$0x1] %vm295_vm11, %v2943_v45  ;;  %v7656_v47 = vpop.permute.xlu1 %2980 }
0x1cb9   :  { %2959 = vst.msk [vmem:[%s9091_s18 + $0x34] sm:$0x1] %vm295_vm11, %v2944_v39  ;;  %v3005_v15 = vmul.f32 %v7656_v47, %v7620_v61  ;;  %v2982_v46 = vrot.slane %v7656_v47, 1  ;;  %v2983_v22 = vrot.slane %v7656_v47, 2  ;;  %v2984_v57 = vrot.slane %v7656_v47, 3 }
0x1cba   :  { %2960 = vst.msk [vmem:[%s9091_s18 + $0x3c] sm:$0x1] %vm295_vm11, %v2945_v50  ;;  %v3183_v39 = vrot.slane %v7688_v16, 6  ;;  %v2997_v19 = vmul.f32 %v7656_v47, %v2970_v35  ;;  %v2986_v7 = vrot.slane %v7656_v47, 5  ;;  %v2987_v2 = vrot.slane %v7656_v47, 6 }
0x1cbb   :  { %3030 = vrot.lane.b32.xlu2 %v3005_v15, %s9167_s24  ;;  %v2998_v10 = vmul.f32 %v2982_v46, %v2971_v43  ;;  %v2999_v37 = vmul.f32 %v2983_v22, %v2972_v44  ;;  %v2973_v15 = vld [vmem:[%s9093_s2 + $0x1c] sm:$0x1] }
0x1cbc   :  { %v3000_v48 = vmul.f32 %v2984_v57, %v2973_v15  ;;  %v3003_v35 = vmul.f32 %v2987_v2, %v2976_v5 }
0x1cbd   :  { %3033 = vrot.lane.b32.xlu0 %v7386_v59, %s9159_s4  ;;  %v3014_v45 = vrot.slane %v2998_v10, 7 }
0x1cbe   :  { %v3018_v22 = vrot.slane %v3000_v48, 5 }
0x1cc0   :  { %v7700_v29 = vpop.permute.xlu1 %3234 }
0x1cc3   :  { %2521 = vrot.lane.b32.xlu2 %v7360_v38, %s9166_s5  ;;  %v3042_v38 = vld [vmem:[%s9092_s13 + $0x20] sm:$0xff] }
0x1cc5   :  { %3162 = vperm.xlu0 %5167, %v2550_v20   ;;  %v3178_v20 = vrot.slane %v7688_v16, 1 }
0x1cc7   :  { %v3194_v62 = vmul.f32 %v3178_v20, %v3167_v4  ;;  %v2985_v20 = vrot.slane %v7656_v47, 4 }
0x1cc8   :  { %v7732_v11 = vpop.permute.xlu1 %2723 }
0x1cc9   :  { %v3215_v52 = vrot.slane %v3194_v62, 7  ;;  %v3015_v62 = vsel %vm149_vm2, %v3014_v45, %v2997_v19 }
0x1ccb   :  { %v3216_v25 = vsel %vm149_vm2, %v3215_v52, %v3193_v55 }
0x1ccc   :  { %v3218_v50 = vsel %vm152_vm3, %v3217_v54, %v3216_v25  ;;  %v2988_v25 = vrot.slane %v7656_v47, 7 }
0x1ccd   :  { %5168 = vset.pattern.permute.xlu0 %v5372_v42  ;;  %v3043_v42 = vld [vmem:[%s9092_s13 + $0x28] sm:$0xff]  ;;  %v3220_v4 = vsel %vm155_vm4, %v3219_v41, %v3218_v50 }
0x1cce   :  { %3064 = vmatpush.msrb.mxu1 %v3043_v42  ;;  %3673 = vmatpush.msra.mxu3 %v3043_v42  ;;  %v3221_v42 = vrot.slane %v3197_v8, 4  ;;  %v2977_v8 = vld [vmem:[%s9093_s2 + $0x3c] sm:$0x1] }
0x1cd0   :  { %3065 = vmatpush.msrb.mxu1 %v3042_v38  ;;  %3674 = vmatpush.msra.mxu3 %v3042_v38  ;;  %v3016_v38 = vrot.slane %v2999_v37, 6  ;;  %v2967_v46 = vpop.permute.xlu1 %2966  ;;  %v3222_v51 = vsel %vm9212_vm12, %v3221_v42, %v3220_v4  ;;  %v5197_v4 = vld [vmem:[%s9155_s8] ss:$0 sm:$0xff] }
0x1cd2   :  { %3066 = vmatpush.msrb.mxu1 %v3041_v6  ;;  %3675 = vmatpush.msra.mxu3 %v3041_v6  ;;  %v3184_v6 = vrot.slane %v7688_v16, 7  ;;  %v3017_v43 = vsel %vm152_vm3, %v3016_v38, %v3015_v62 }
0x1cd3   :  { %v3019_v10 = vsel %vm155_vm4, %v3018_v22, %v3017_v43 }
0x1cd4   :  { %3067 = vmatpush.msrb.mxu1 %v3040_v23  ;;  %3676 = vmatpush.msra.mxu3 %v3040_v23  ;;  %v2974_v23 = vld [vmem:[%s9093_s2 + $0x24] sm:$0x1]  ;;  %v3200_v53 = vmul.f32 %v3184_v6, %v3173_v63 }
0x1cd5   :  { %v3001_v55 = vmul.f32 %v2985_v20, %v2974_v23 }
0x1cd6   :  { %3068 = vmatpush.msrb.mxu1 %v3039_v21  ;;  %3677 = vmatpush.msra.mxu3 %v3039_v21  ;;  %v3199_v21 = vmul.f32 %v3183_v39, %v3172_v56  ;;  %v3227_v60 = vrot.slane %v3200_v53, 1  ;;  %v3004_v39 = vmul.f32 %v2988_v25, %v2977_v8  ;;  %v3024_v56 = vrot.slane %v3003_v35, 2 }
0x1cd7   :  { %v3020_v54 = vrot.slane %v3001_v55, 4 }
0x1cd8   :  { %3069 = vmatpush.msrb.mxu1 %v3038_v9  ;;  %3678 = vmatpush.msra.mxu3 %v3038_v9  ;;  %v2975_v9 = vld [vmem:[%s9093_s2 + $0x2c] sm:$0x1]  ;;  %v3225_v12 = vrot.slane %v3199_v21, 2  ;;  %v3026_v19 = vrot.slane %v3004_v39, 1 }
0x1cd9   :  { %v3002_v44 = vmul.f32 %v2986_v7, %v2975_v9 }
0x1cdb   :  { %v3022_v41 = vrot.slane %v3002_v44, 3 }
0x1d15   :  { %v7737_v30 = vpop.permute.xlu2 %3030 }
0x1d1d   :  { %v2522_v40 = vpop.permute.xlu2 %2521 }
0x1d1e   :  { %v2524_v16 = vsel %vm2514_vm13, %v7326_v26, %v2522_v40  ;;  %v3224_v26 = vsel %vm161_vm6, %v3223_v13, %v3222_v51  ;;  %vm9213_vm13 = vmmov %vm9212_vm12  ;;  %vm9219_vm12 = vcmask 64512  }
0x1d1f   :  { %v7776_v52 = vmul.f32 %v2967_v46, %v2524_v16  ;;  %v3226_v17 = vsel %vm164_vm7, %v3225_v12, %v3224_v26  ;;  %v3021_v37 = vsel %vm9213_vm13, %v3020_v54, %v3019_v10  ;;  %vm9220_vm13 = vcmask 326656  }
0x1d20   :  { %v3228_v45 = vsel %vm9214_vm1, %v3227_v60, %v3226_v17  ;;  %v3023_v50 = vsel %vm161_vm6, %v3022_v41, %v3021_v37  ;;  %vm9221_vm1 = vcmask 588800  }
0x1d21   :  { %3097 = vrot.lane.b32.xlu0 %v7776_v52, %s9172_s6  ;;  %v3025_v18 = vsel %vm164_vm7, %v3024_v56, %v3023_v50 }
0x1d22   :  { %v3027_v42 = vsel %vm9218_vm5, %v3026_v19, %v3025_v18 }
0x1d23   :  { %v3036_v20 = vsel %vm9219_vm12, %v3027_v42, %v7737_v30 }
0x1d27   :  { %v3232_v57 = vpop.permute.xlu0 %3231 }
0x1d28   :  { %v3237_v15 = vsel %vm9215_vm0, %v3228_v45, %v3232_v57 }
0x1d29   :  { %v3238_v47 = vsel %vm9216_vm9, %v3237_v15, %v7700_v29  ;;  %v5198_v29 = vld [vmem:[%s9095_s16] ss:$0 sm:$0xff] }
0x1d2a   :  { %5086 = vmatmul.msk.f32.vlgmr.msrb.gmra.mxu2 %vm9217_vm8, %v3238_v47  ;;  %v2726_v47 = vsel %vm2716_vm14, %v7342_v14, %v7732_v11 }
0x1d2f   :  { %v3034_v38 = vpop.permute.xlu0 %3033 }
0x1d30   :  { %v3037_v6 = vsel %vm9220_vm13, %v3036_v20, %v3034_v38 }
0x1d31   :  { %5083 = vmatmul.msk.f32.vlgmr.msrb.gmra.mxu1 %vm9221_vm1, %v3037_v6 }
0x1d37   :  { %v3163_v56 = vpop.permute.xlu0 %3162 }
0x1d38   :  { %v7820_v18 = vmul.f32 %v3163_v56, %v2726_v47  ;;  %v3368_v47 = vld [vmem:[%s9089_s1 + $0x5] sm:$0x1] }
0x1dad   :  { %v3273_v23 = vpop.f32.mrf.mxu2 }
0x1dae   :  { %v3274_v48 = vadd.f32 %v5197_v4, %v3273_v23  ;;  %v3071_v62 = vpop.f32.mrf.mxu1  ;;  %v3098_v4 = vpop.permute.xlu0 %3097 }
0x1daf   :  { %v3072_v63 = vadd.f32 %v5198_v29, %v3071_v62  ;;  %v3117_v62 = vadd.f32 %v7608_v3, %v7598_v1 }
0x1db0   :  { %v5087_v21 = vmul.f32 -1.442695, %v3274_v48 }
0x1db1   :  { %v5084_v40 = vmul.f32 -1.442695, %v3072_v63  ;;  %vm3118_vm14 = vcmp.eq.f32.partialorder %v3117_v62, 0.0  ;;  %v3373_v62 = vld [vmem:[%s9089_s1 + $0x2d] sm:$0x1] }
0x1db2   :  { %5291 = vpow2.f32 %v5087_v21 }
0x1db3   :  { %5293 = vpow2.f32 %v5084_v40 }
0x1db8   :  { %v5292_v30 = vpop.eup %5291 }
0x1db9   :  { %v5294_v13 = vpop.eup %5293  ;;  %v3279_v46 = vadd.f32 1.0, %v5292_v30 }
0x1dba   :  { %v3077_v7 = vadd.f32 1.0, %v5294_v13 }
0x1dbb   :  { %5295 = vrcp.f32 %v3279_v46  ;;  %v3291_v22 = vand.u32 2147483648, %v3279_v46  ;;  %v3289_v2 = vand.u32 2147483647, %v3279_v46  ;;  %vm3285_vm8 = vweird.f32 %v3279_v46 }
0x1dbc   :  { %5297 = vrcp.f32 %v3077_v7  ;;  %v3089_v26 = vand.u32 2147483648, %v3077_v7  ;;  %v3087_v44 = vand.u32 2147483647, %v3077_v7  ;;  %vm3083_vm12 = vweird.f32 %v3077_v7 }
0x1dbd   :  { %v3292_v54 = vor.u32 1.1754944e-38, %v3291_v22  ;;  %vm3290_vm13 = vcmp.eq.f32.partialorder %v3289_v2, 8.507059e+37 }
0x1dbe   :  { %v3090_v17 = vor.u32 1.1754944e-38, %v3089_v26  ;;  %vm3088_vm15 = vcmp.eq.f32.partialorder %v3087_v44, 8.507059e+37 }
0x1dc1   :  { %v5296_v16 = vpop.eup %5295 }
0x1dc2   :  { %v5298_v51 = vpop.eup %5297  ;;  %v3281_v9 = vmul.f32 %v5296_v16, %v3279_v46  ;;  %vm3286_vm0 = vweird.f32 %v5296_v16 }
0x1dc3   :  { %v3079_v55 = vmul.f32 %v5298_v51, %v3077_v7  ;;  %vm3084_vm9 = vweird.f32 %v5298_v51  ;;  %vm3287_vm5 = vmor %vm3285_vm8, %vm3286_vm0  ;;  %v7847_v7 = vld [vmem:[%s9149_s29 + $0x8] sm:$0xff]  ;;  %vm9223_vm8 = vcmask 1047559  }
0x1dc4   :  { %v3282_v43 = vsub.f32 1.0, %v3281_v9  ;;  %vm3085_vm1 = vmor %vm3083_vm12, %vm3084_vm9  ;;  %v3361_v44 = vsub.f32 1.0, %v7847_v7  ;;  %vm9222_vm9 = vcmask 1044484   ;;  %vm9225_vm12 = vcmask 326656  }
0x1dc5   :  { %v3080_v53 = vsub.f32 1.0, %v3079_v55 }
0x1dc6   :  { %v3283_v12 = vmul.f32 %v5296_v16, %v3282_v43 }
0x1dc7   :  { %v3081_v5 = vmul.f32 %v5298_v51, %v3080_v53 }
0x1dc8   :  { %v3284_v10 = vadd.f32 %v5296_v16, %v3283_v12 }
0x1dc9   :  { %v3082_v60 = vadd.f32 %v5298_v51, %v3081_v5 }
0x1dca   :  { %v3288_v25 = vsel %vm3287_vm5, %v5296_v16, %v3284_v10  ;;  %vm9224_vm5 = vcmask 64512  }
0x1dcb   :  { %v3293_v8 = vsel %vm3290_vm13, %v3292_v54, %v3288_v25  ;;  %v3086_v35 = vsel %vm3085_vm1, %v5298_v51, %v3082_v60  ;;  %vm9226_vm13 = vcmask 588800   ;;  %vm9227_vm1 = vcmask 850944  }
0x1dcc   :  { %v3295_v37 = vmul.f32 2.0, %v3293_v8  ;;  %v3091_v41 = vsel %vm3088_vm15, %v3090_v17, %v3086_v35 }
0x1dcd   :  { %v3093_v57 = vmul.f32 2.0, %v3091_v41 }
0x1dce   :  { %v5088_v45 = vadd.f32 -1.0, %v3295_v37 }
0x1dcf   :  { %v5085_v39 = vadd.f32 -1.0, %v3093_v57 }
0x1dd0   :  { %v3297_v50 = vsel %vm5613_vm10, %v5088_v45, %v3293_v8 }
0x1dd1   :  { %3304 = vrot.lane.b32.xlu2 %v3297_v50, %s9165_s25  ;;  %v3095_v15 = vsel %vm5613_vm10, %v5085_v39, %v3091_v41  ;;  %v3369_v39 = vld [vmem:[%s9089_s1 + $0xd] sm:$0x1] }
0x1dd2   :  { %3102 = vrot.lane.b32.xlu1 %v3095_v15, %s9165_s25  ;;  %v3100_v14 = vmul.f32 %v3098_v4, %v3095_v15 }
0x1dd9   :  { %3299 = vrot.lane.b32.xlu2 %v7820_v18, %s9172_s6 }
0x1e2b   :  { %v3305_v19 = vpop.permute.xlu2 %3304 }
0x1e2c   :  { %v3307_v42 = vmul.f32 %v3305_v19, %v3297_v50 }
0x1e2e   :  { %3309 = vrot.lane.b32.xlu1 %v3307_v42, %s9172_s6 }
0x1e33   :  { %v3300_v6 = vpop.permute.xlu2 %3299 }
0x1e34   :  { %v3302_v29 = vmul.f32 %v3300_v6, %v3297_v50 }
0x1e44   :  { %v3103_v20 = vpop.permute.xlu1 %3102 }
0x1e45   :  { %v3105_v38 = vmul.f32 %v3103_v20, %v3095_v15 }
0x1e47   :  { %3107 = vrot.lane.b32.xlu2 %v3105_v38, %s9172_s6 }
0x1e4f   :  { %3323 = vperm.xlu2 %5166, %v7354_v27   ;;  %v7838_v27 = vsel %vm3118_vm14, 1, %v5360_v0  ;;  %vm9228_vm14 = vcmp.eq.s32.totalorder %v7614_v36, 1 }
0x1ea0   :  { %v3310_v32 = vpop.permute.xlu1 %3309 }
0x1ea1   :  { %v7827_v11 = vadd.f32 %v3310_v32, %v3302_v29  ;;  %v3108_v23 = vpop.permute.xlu2 %3107  ;;  %v3372_v29 = vld [vmem:[%s9089_s1 + $0x25] sm:$0x1] }
0x1ea2   :  { %v7829_v48 = vadd.f32 %v3108_v23, %v3100_v14 }
0x1ea3   :  { %5299 = vtanh.f32 %v7827_v11 }
0x1ea4   :  { %5301 = vtanh.f32 %v7829_v48 }
0x1ea9   :  { %v5300_v63 = vpop.eup %5299  ;;  %v7853_v16 = vpop.permute.xlu2 %3323 }
0x1eaa   :  { %v5302_v21 = vpop.eup %5301  ;;  %3315 = vrot.lane.b32.xlu0 %v5300_v63, %s9165_s25  ;;  %vm3325_vm0 = vcmp.eq.s32.totalorder %v7853_v16, 1 }
0x1eab   :  { %3113 = vrot.lane.b32.xlu1 %v5302_v21, %s9165_s25 }
0x1eb2   :  { %3121 = vperm.xlu0 %5168, %v7838_v27  }
0x1eba   :  { %5170 = vset.pattern.permute.xlu0 %v5373_v34 }
0x1f1c   :  { %v3316_v40 = vpop.permute.xlu0 %3315 }
0x1f1d   :  { %v3318_v30 = vmul.f32 %v3316_v40, %v3297_v50  ;;  %v3114_v13 = vpop.permute.xlu1 %3113 }
0x1f1e   :  { %v3116_v46 = vmul.f32 %v3114_v13, %v3095_v15  ;;  %v3370_v15 = vld [vmem:[%s9089_s1 + $0x15] sm:$0x1] }
0x1f1f   :  { %3327 = vrot.lane.b32.xlu1 %v3318_v30, %s9172_s6  ;;  %v3374_v13 = vld [vmem:[%s9089_s1 + $0x35] sm:$0x1] }
0x1f20   :  { %3125 = vrot.lane.b32.xlu2 %v3116_v46, %s9172_s6 }
0x1f24   :  { %v7855_v51 = vpop.permute.xlu0 %3121 }
0x1f25   :  { %vm3123_vm15 = vcmp.eq.s32.totalorder %v7855_v51, 1  ;;  %v3782_v51 = vld [vmem:[%s9085_s0 + $0x3e] sm:$0x1] }
0x1f27   :  { %3378 = vperm.xlu1 %5169, %v7371_v31  }
0x1f28   :  { %3406 = vperm.xlu2 %5166, %v7847_v7  }
0x1f30   :  { %3441 = vrot.lane.b32.xlu2 %v7620_v61, %s9168_s26 }
0x1f7a   :  { %v3126_v9 = vpop.permute.xlu2 %3125 }
0x1f7b   :  { %v7861_v55 = vsel %vm3123_vm15, %v7386_v59, %v3126_v9 }
0x1f7c   :  { %v3135_v43 = vrot.slane %v7861_v55, 1  ;;  %v3136_v31 = vrot.slane %v7861_v55, 2  ;;  %v3137_v53 = vrot.slane %v7861_v55, 3  ;;  %3149 = vst.msk [vmem:[%s9096_s19 + $0x4] sm:$0x1] %vm295_vm11, %v7861_v55  ;;  %v3138_v22 = vrot.slane %v7861_v55, 4 }
0x1f7d   :  { %v3139_v12 = vrot.slane %v7861_v55, 5  ;;  %v3140_v59 = vrot.slane %v7861_v55, 6  ;;  %v3141_v2 = vrot.slane %v7861_v55, 7 }
0x1f7e   :  { %3150 = vst.msk [vmem:[%s9096_s19 + $0xc] sm:$0x1] %vm295_vm11, %v3135_v43 }
0x1f7f   :  { %3151 = vst.msk [vmem:[%s9096_s19 + $0x14] sm:$0x1] %vm295_vm11, %v3136_v31 }
0x1f80   :  { %3152 = vst.msk [vmem:[%s9096_s19 + $0x1c] sm:$0x1] %vm295_vm11, %v3137_v53  ;;  %v3375_v53 = vld [vmem:[%s9089_s1 + $0x3d] sm:$0x1] }
0x1f81   :  { %3153 = vst.msk [vmem:[%s9096_s19 + $0x24] sm:$0x1] %vm295_vm11, %v3138_v22 }
0x1f82   :  { %3154 = vst.msk [vmem:[%s9096_s19 + $0x2c] sm:$0x1] %vm295_vm11, %v3139_v12  ;;  %v3407_v26 = vpop.permute.xlu2 %3406 }
0x1f83   :  { %3155 = vst.msk [vmem:[%s9096_s19 + $0x34] sm:$0x1] %vm295_vm11, %v3140_v59  ;;  %v3409_v5 = vmul.f32 %v3407_v26, %v7861_v55 }
0x1f84   :  { %3156 = vst.msk [vmem:[%s9096_s19 + $0x3c] sm:$0x1] %vm295_vm11, %v3141_v2 }
0x1f85   :  { %3438 = vrot.lane.b32.xlu1 %v3409_v5, %s9159_s4 }
0x1f8d   :  { %3364 = vperm.xlu1 %5169, %v3361_v44  }
0x1f91   :  { %v3328_v10 = vpop.permute.xlu1 %3327 }
0x1f92   :  { %v7912_v54 = vsel %vm3325_vm0, %v7443_v28, %v3328_v10 }
0x1f93   :  { %v3337_v60 = vrot.slane %v7912_v54, 1  ;;  %v3338_v25 = vrot.slane %v7912_v54, 2  ;;  %v3339_v17 = vrot.slane %v7912_v54, 3  ;;  %3351 = vst.msk [vmem:[%s9087_s17 + $0x5] sm:$0x1] %vm295_vm11, %v7912_v54  ;;  %v3340_v8 = vrot.slane %v7912_v54, 4 }
0x1f94   :  { %v3341_v35 = vrot.slane %v7912_v54, 5  ;;  %v3342_v28 = vrot.slane %v7912_v54, 6  ;;  %v3343_v37 = vrot.slane %v7912_v54, 7 }
0x1f95   :  { %3352 = vst.msk [vmem:[%s9087_s17 + $0xd] sm:$0x1] %vm295_vm11, %v3337_v60 }
0x1f96   :  { %3353 = vst.msk [vmem:[%s9087_s17 + $0x15] sm:$0x1] %vm295_vm11, %v3338_v25 }
0x1f97   :  { %3354 = vst.msk [vmem:[%s9087_s17 + $0x1d] sm:$0x1] %vm295_vm11, %v3339_v17 }
0x1f98   :  { %3355 = vst.msk [vmem:[%s9087_s17 + $0x25] sm:$0x1] %vm295_vm11, %v3340_v8 }
0x1f99   :  { %3356 = vst.msk [vmem:[%s9087_s17 + $0x2d] sm:$0x1] %vm295_vm11, %v3341_v35  ;;  %v3379_v41 = vpop.permute.xlu1 %3378 }
0x1f9a   :  { %3357 = vst.msk [vmem:[%s9087_s17 + $0x35] sm:$0x1] %vm295_vm11, %v3342_v28  ;;  %v3403_v57 = vmul.f32 %v3379_v41, %v7912_v54  ;;  %v3380_v45 = vrot.slane %v3379_v41, 1  ;;  %v3381_v50 = vrot.slane %v3379_v41, 2  ;;  %v3382_v42 = vrot.slane %v3379_v41, 3  ;;  %v3442_v28 = vpop.permute.xlu2 %3441 }
0x1f9b   :  { %3358 = vst.msk [vmem:[%s9087_s17 + $0x3d] sm:$0x1] %vm295_vm11, %v3343_v37  ;;  %v3395_v38 = vmul.f32 %v3379_v41, %v3368_v47  ;;  %v3383_v6 = vrot.slane %v3379_v41, 4  ;;  %v3384_v23 = vrot.slane %v3379_v41, 5  ;;  %v3385_v30 = vrot.slane %v3379_v41, 6 }
0x1f9c   :  { %3434 = vrot.lane.b32.xlu0 %v3403_v57, %s9167_s24  ;;  %v3396_v56 = vmul.f32 %v3380_v45, %v3369_v39  ;;  %v3397_v19 = vmul.f32 %v3381_v50, %v3370_v15  ;;  %v3386_v31 = vrot.slane %v3379_v41, 7  ;;  %v5199_v15 = vld [vmem:[%s9090_s15] ss:$0 sm:$0xff] }
0x1f9d   :  { %v3399_v63 = vmul.f32 %v3383_v6, %v3372_v29  ;;  %v3400_v46 = vmul.f32 %v3384_v23, %v3373_v62  ;;  %v3401_v22 = vmul.f32 %v3385_v30, %v3374_v13 }
0x1f9e   :  { %v3418_v20 = vrot.slane %v3396_v56, 7  ;;  %v3420_v4 = vrot.slane %v3397_v19, 6  ;;  %v3402_v2 = vmul.f32 %v3386_v31, %v3375_v53  ;;  %v5357_v53 = vld [vmem:[%s9151_s14 + $0x8] sm:$0xff] }
0x1f9f   :  { %v3424_v43 = vrot.slane %v3399_v63, 4  ;;  %v3426_v59 = vrot.slane %v3400_v46, 3  ;;  %v3428_v5 = vrot.slane %v3401_v22, 2  ;;  %v3530_v22 = vadd.f32 %v5357_v53, %v7847_v7 }
0x1fa0   :  { %v3419_v14 = vsel %vm149_vm2, %v3418_v20, %v3395_v38  ;;  %v3430_v60 = vrot.slane %v3402_v2, 1 }
0x1fa1   :  { %v3421_v21 = vsel %vm152_vm3, %v3420_v4, %v3419_v14 }
0x1fa4   :  { %2934 = vrot.lane.b32.xlu0 %v7581_v58, %s9166_s5  ;;  %v3371_v58 = vld [vmem:[%s9089_s1 + $0x1d] sm:$0x1] }
0x1fa5   :  { %v3398_v32 = vmul.f32 %v3382_v42, %v3371_v58 }
0x1fa7   :  { %v3422_v40 = vrot.slane %v3398_v32, 5 }
0x1fa9   :  { %v3423_v9 = vsel %vm155_vm4, %v3422_v40, %v3421_v21 }
0x1faa   :  { %v3425_v12 = vsel %vm9222_vm9, %v3424_v43, %v3423_v9 }
0x1fab   :  { %v3427_v26 = vsel %vm161_vm6, %v3426_v59, %v3425_v12  ;;  %v5374_v59 = vmov 6  }
0x1fac   :  { %v3429_v10 = vsel %vm164_vm7, %v3428_v5, %v3427_v26  ;;  %5171 = vset.pattern.permute.xlu1 %v5374_v59  ;;  %v8030_v5 = vld [vmem:[%s9149_s29] sm:$0xff] }
0x1fad   :  { %v3431_v17 = vsel %vm9223_vm8, %v3430_v60, %v3429_v10 }
0x1ff7   :  { %v3439_v25 = vpop.permute.xlu1 %3438 }
0x1fff   :  { %v3365_v45 = vpop.permute.xlu1 %3364 }
0x200e   :  { %v3435_v8 = vpop.permute.xlu0 %3434 }
0x200f   :  { %v3444_v35 = vsel %vm9224_vm5, %v3431_v17, %v3435_v8 }
0x2010   :  { %v3445_v37 = vsel %vm9225_vm12, %v3444_v35, %v3439_v25 }
0x2011   :  { %v3446_v41 = vsel %vm9226_vm13, %v3445_v37, %v3442_v28  ;;  %vm3531_vm13 = vcmp.eq.f32.partialorder %v3530_v22, 0.0 }
0x2012   :  { %5091 = vmatmul.msk.f32.vlgmr.msra.gmra.mxu0 %vm9227_vm1, %v3446_v41  ;;  %v3532_v12 = vsel %vm3531_vm13, 1, %v5360_v0 }
0x2016   :  { %v2935_v57 = vpop.permute.xlu0 %2934 }
0x2017   :  { %v2937_v39 = vsel %vm9228_vm14, %v7570_v49, %v2935_v57  ;;  %vm9229_vm14 = vcmask 1044484  }
0x2018   :  { %v7996_v50 = vmul.f32 %v3365_v45, %v2937_v39  ;;  %v3768_v45 = vsub.f32 1.0, %v8030_v5  ;;  %v3857_v39 = vld [vmem:[%s9194_s3 + $0x48] sm:$0xff] }
0x2019   :  { %3871 = vmatpush.msra.mxu1 %v3857_v39  ;;  %4480 = vmatpush.msrb.mxu3 %v3857_v39 }
0x201a   :  { %3510 = vrot.lane.b32.xlu0 %v7996_v50, %s9172_s6 }
0x2022   :  { %3534 = vperm.xlu0 %5170, %v3532_v12  }
0x202a   :  { %5173 = vset.pattern.permute.xlu0 %v5374_v59 }
0x208c   :  { %v3511_v13 = vpop.permute.xlu0 %3510 }
0x208f   :  { %v3484_v56 = vpop.f32.mrf.mxu0 }
0x2090   :  { %v3485_v47 = vadd.f32 %v5199_v15, %v3484_v56  ;;  %v3856_v15 = vld [vmem:[%s9194_s3 + $0x40] sm:$0xff]  ;;  %v3855_v56 = vld [vmem:[%s9194_s3 + $0x38] sm:$0xff] }
0x2091   :  { %3872 = vmatpush.msra.mxu1 %v3856_v15  ;;  %4481 = vmatpush.msrb.mxu3 %v3856_v15  ;;  %v3584_v15 = vld [vmem:[%s9093_s2 + $0x2d] sm:$0x1] }
0x2092   :  { %v5092_v19 = vmul.f32 -1.442695, %v3485_v47 }
0x2093   :  { %3873 = vmatpush.msra.mxu1 %v3855_v56  ;;  %4482 = vmatpush.msrb.mxu3 %v3855_v56 }
0x2094   :  { %5303 = vpow2.f32 %v5092_v19  ;;  %v8041_v10 = vpop.permute.xlu0 %3534  ;;  %v3852_v19 = vld [vmem:[%s9194_s3 + $0x20] sm:$0xff] }
0x2095   :  { %vm9136_vm1 = vcmp.eq.s32.totalorder %v8041_v10, 1 }
0x209a   :  { %v5304_v42 = vpop.eup %5303 }
0x209b   :  { %v3490_v20 = vadd.f32 1.0, %v5304_v42 }
0x209d   :  { %5305 = vrcp.f32 %v3490_v20  ;;  %v3502_v49 = vand.u32 2147483648, %v3490_v20  ;;  %v3500_v4 = vand.u32 2147483647, %v3490_v20  ;;  %vm3496_vm8 = vweird.f32 %v3490_v20 }
0x209f   :  { %v3503_v32 = vor.u32 1.1754944e-38, %v3502_v49  ;;  %vm3501_vm12 = vcmp.eq.f32.partialorder %v3500_v4, 8.507059e+37 }
0x20a3   :  { %v5306_v58 = vpop.eup %5305 }
0x20a4   :  { %v3492_v38 = vmul.f32 %v5306_v58, %v3490_v20  ;;  %vm3497_vm9 = vweird.f32 %v5306_v58  ;;  %v3580_v20 = vld [vmem:[%s9093_s2 + $0xd] sm:$0x1] }
0x20a5   :  { %vm3498_vm5 = vmor %vm3496_vm8, %vm3497_vm9  ;;  %vm9231_vm9 = vcmask 1047559   ;;  %vm9232_vm8 = vcmask 64512  }
0x20a6   :  { %v3493_v36 = vsub.f32 1.0, %v3492_v38  ;;  %vm9235_vm13 = vmmov %vm9231_vm9 }
0x20a8   :  { %v3494_v6 = vmul.f32 %v5306_v58, %v3493_v36  ;;  %v3850_v36 = vld [vmem:[%s9194_s3 + $0x10] sm:$0xff] }
0x20aa   :  { %v3495_v29 = vadd.f32 %v5306_v58, %v3494_v6  ;;  %v3581_v6 = vld [vmem:[%s9093_s2 + $0x15] sm:$0x1] }
0x20ac   :  { %v3499_v14 = vsel %vm3498_vm5, %v5306_v58, %v3495_v29  ;;  %v3851_v58 = vld [vmem:[%s9194_s3 + $0x18] sm:$0xff]  ;;  %v3849_v29 = vld [vmem:[%s9194_s3 + $0x8] sm:$0xff]  ;;  %vm9233_vm5 = vcmask 326656  }
0x20ad   :  { %v3504_v23 = vsel %vm3501_vm12, %v3503_v32, %v3499_v14  ;;  %v3776_v14 = vld [vmem:[%s9085_s0 + $0xe] sm:$0x1]  ;;  %vm9234_vm12 = vcmask 588800  }
0x20ae   :  { %v3506_v62 = vmul.f32 2.0, %v3504_v23 }
0x20b0   :  { %v5093_v63 = vadd.f32 -1.0, %v3506_v62 }
0x20b2   :  { %v3508_v21 = vsel %vm5613_vm10, %v5093_v63, %v3504_v23  ;;  %v3579_v23 = vld [vmem:[%s9093_s2 + $0x5] sm:$0x1] }
0x20b3   :  { %3515 = vrot.lane.b32.xlu2 %v3508_v21, %s9165_s25  ;;  %v3513_v46 = vmul.f32 %v3511_v13, %v3508_v21  ;;  %v3848_v63 = vld [vmem:[%s9194_s3] sm:$0xff] }
0x210d   :  { %v3516_v40 = vpop.permute.xlu2 %3515 }
0x210e   :  { %v3518_v30 = vmul.f32 %v3516_v40, %v3508_v21 }
0x2110   :  { %3520 = vrot.lane.b32.xlu1 %v3518_v30, %s9172_s6 }
0x2182   :  { %v3521_v9 = vpop.permute.xlu1 %3520 }
0x2183   :  { %v8007_v43 = vadd.f32 %v3521_v9, %v3513_v46  ;;  %v3777_v46 = vld [vmem:[%s9085_s0 + $0x16] sm:$0x1]  ;;  %v3582_v9 = vld [vmem:[%s9093_s2 + $0x1d] sm:$0x1] }
0x2185   :  { %5307 = vtanh.f32 %v8007_v43 }
0x218b   :  { %v5308_v31 = vpop.eup %5307 }
0x218c   :  { %3526 = vrot.lane.b32.xlu2 %v5308_v31, %s9165_s25  ;;  %v3775_v31 = vld [vmem:[%s9085_s0 + $0x6] sm:$0x1] }
0x2194   :  { %3589 = vperm.xlu2 %5166, %v7598_v1   ;;  %v8024_v1 = vld [vmem:[%s9151_s14] sm:$0xff] }
0x219c   :  { %5172 = vset.pattern.permute.xlu2 %v5374_v59 }
0x219d   :  { %3785 = vperm.xlu2 %5172, %v8024_v1  }
0x21e6   :  { %v3527_v2 = vpop.permute.xlu2 %3526 }
0x21e7   :  { %v3529_v26 = vmul.f32 %v3527_v2, %v3508_v21 }
0x21e9   :  { %3538 = vrot.lane.b32.xlu1 %v3529_v26, %s9172_s6 }
0x21ee   :  { %v8049_v17 = vpop.permute.xlu2 %3589 }
0x21ef   :  { %v3591_v47 = vrot.slane %v8049_v17, 1  ;;  %v3592_v49 = vrot.slane %v8049_v17, 2  ;;  %v3593_v40 = vrot.slane %v8049_v17, 3  ;;  %v3606_v53 = vmul.f32 %v8049_v17, %v3579_v23 }
0x21f0   :  { %v3594_v2 = vrot.slane %v8049_v17, 4 }
0x21f1   :  { %3812 = vperm.xlu1 %5171, %v8030_v5   ;;  %v3607_v4 = vmul.f32 %v3591_v47, %v3580_v20  ;;  %v3608_v62 = vmul.f32 %v3592_v49, %v3581_v6  ;;  %v3585_v6 = vld [vmem:[%s9093_s2 + $0x35] sm:$0x1] }
0x21f3   :  { %v3623_v30 = vrot.slane %v3607_v4, 7  ;;  %v3625_v26 = vrot.slane %v3608_v62, 6 }
0x21f7   :  { %v8131_v38 = vpop.permute.xlu2 %3785 }
0x21f8   :  { %v3787_v32 = vrot.slane %v8131_v38, 1  ;;  %v3788_v21 = vrot.slane %v8131_v38, 2  ;;  %v3789_v12 = vrot.slane %v8131_v38, 3  ;;  %v3792_v62 = vrot.slane %v8131_v38, 6 }
0x21f9   :  { %3642 = vrot.lane.b32.xlu1 %v7861_v55, %s9159_s4 }
0x21fa   :  { %5174 = vset.pattern.permute.xlu1 %v5373_v34  ;;  %v3803_v13 = vmul.f32 %v3787_v32, %v3776_v14 }
0x2201   :  { %3332 = vrot.lane.b32.xlu1 %v7827_v11, %s9166_s5 }
0x2209   :  { %3575 = vperm.xlu1 %5174, %v2963_v24  }
0x2211   :  { %5176 = vset.pattern.permute.xlu1 %v5374_v59 }
0x225b   :  { %v3539_v60 = vpop.permute.xlu1 %3538 }
0x225c   :  { %v8047_v25 = vsel %vm9136_vm1, %v7620_v61, %v3539_v60  ;;  %v3778_v60 = vld [vmem:[%s9085_s0 + $0x1e] sm:$0x1]  ;;  %vm9238_vm1 = vcmask 654336  }
0x225d   :  { %v3548_v8 = vrot.slane %v8047_v25, 1  ;;  %v3549_v11 = vrot.slane %v8047_v25, 2  ;;  %v3550_v3 = vrot.slane %v8047_v25, 3  ;;  %3562 = vst.msk [vmem:[%s9091_s18 + $0x5] sm:$0x1] %vm295_vm11, %v8047_v25  ;;  %v3551_v24 = vrot.slane %v8047_v25, 4 }
0x225e   :  { %v3614_v61 = vmul.f32 %v8049_v17, %v8047_v25  ;;  %v3552_v35 = vrot.slane %v8047_v25, 5  ;;  %v3553_v28 = vrot.slane %v8047_v25, 6  ;;  %v3554_v37 = vrot.slane %v8047_v25, 7 }
0x225f   :  { %3563 = vst.msk [vmem:[%s9091_s18 + $0xd] sm:$0x1] %vm295_vm11, %v3548_v8  ;;  %v3804_v8 = vmul.f32 %v3788_v21, %v3777_v46  ;;  %v3805_v39 = vmul.f32 %v3789_v12, %v3778_v60 }
0x2260   :  { %3564 = vst.msk [vmem:[%s9091_s18 + $0x15] sm:$0x1] %vm295_vm11, %v3549_v11  ;;  %3639 = vrot.lane.b32.xlu0 %v3614_v61, %s9167_s24  ;;  %v3624_v61 = vsel %vm149_vm2, %v3623_v30, %v3606_v53  ;;  %v3781_v30 = vld [vmem:[%s9085_s0 + $0x36] sm:$0x1] }
0x2261   :  { %3565 = vst.msk [vmem:[%s9091_s18 + $0x1d] sm:$0x1] %vm295_vm11, %v3550_v3  ;;  %v3583_v3 = vld [vmem:[%s9093_s2 + $0x25] sm:$0x1]  ;;  %v3828_v32 = vrot.slane %v3805_v39, 5 }
0x2262   :  { %3566 = vst.msk [vmem:[%s9091_s18 + $0x25] sm:$0x1] %vm295_vm11, %v3551_v24  ;;  %v3609_v24 = vmul.f32 %v3593_v40, %v3582_v9  ;;  %v3610_v56 = vmul.f32 %v3594_v2, %v3583_v3  ;;  %v3597_v40 = vrot.slane %v8049_v17, 7  ;;  %v3586_v9 = vld [vmem:[%s9093_s2 + $0x3d] sm:$0x1] }
0x2263   :  { %3567 = vst.msk [vmem:[%s9091_s18 + $0x2d] sm:$0x1] %vm295_vm11, %v3552_v35  ;;  %v3813_v41 = vpop.permute.xlu1 %3812  ;;  %v3802_v35 = vmul.f32 %v8131_v38, %v3775_v31 }
0x2264   :  { %3568 = vst.msk [vmem:[%s9091_s18 + $0x35] sm:$0x1] %vm295_vm11, %v3553_v28  ;;  %v3815_v57 = vmul.f32 %v3813_v41, %v8047_v25  ;;  %v3824_v28 = vrot.slane %v3803_v13, 7  ;;  %v3595_v41 = vrot.slane %v8049_v17, 5  ;;  %v3627_v47 = vrot.slane %v3609_v24, 5 }
0x2265   :  { %3569 = vst.msk [vmem:[%s9091_s18 + $0x3d] sm:$0x1] %vm295_vm11, %v3554_v37  ;;  %v3790_v37 = vrot.slane %v8131_v38, 4  ;;  %v3629_v23 = vrot.slane %v3610_v56, 4 }
0x2266   :  { %3840 = vrot.lane.b32.xlu2 %v3815_v57, %s9158_s9  ;;  %v3779_v57 = vld [vmem:[%s9085_s0 + $0x26] sm:$0x1]  ;;  %v3825_v20 = vsel %vm149_vm2, %v3824_v28, %v3802_v35  ;;  %v3611_v4 = vmul.f32 %v3595_v41, %v3584_v15 }
0x2267   :  { %v3806_v49 = vmul.f32 %v3790_v37, %v3779_v57 }
0x2268   :  { %3843 = vrot.lane.b32.xlu0 %v7912_v54, %s9173_s28 }
0x2269   :  { %v3830_v12 = vrot.slane %v3806_v49, 4  ;;  %v5200_v49 = vld [vmem:[%s9095_s16] ss:$0 sm:$0xff] }
0x226b   :  { %v8123_v42 = vpop.permute.xlu1 %3642 }
0x226e   :  { %3130 = vrot.lane.b32.xlu2 %v7829_v48, %s9166_s5  ;;  %v3853_v48 = vld [vmem:[%s9194_s3 + $0x28] sm:$0xff] }
0x2270   :  { %3771 = vperm.xlu0 %5173, %v3768_v45  }
0x2273   :  { %v8165_v22 = vpop.permute.xlu1 %3332 }
0x2278   :  { %5175 = vset.pattern.permute.xlu0 %v5373_v34  ;;  %v3854_v34 = vld [vmem:[%s9194_s3 + $0x30] sm:$0xff] }
0x2279   :  { %3874 = vmatpush.msra.mxu1 %v3854_v34  ;;  %4483 = vmatpush.msrb.mxu3 %v3854_v34  ;;  %v3626_v34 = vsel %vm152_vm3, %v3625_v26, %v3624_v61  ;;  %v3793_v26 = vrot.slane %v8131_v38, 7 }
0x227b   :  { %3875 = vmatpush.msra.mxu1 %v3853_v48  ;;  %4484 = vmatpush.msrb.mxu3 %v3853_v48  ;;  %v3826_v48 = vrot.slane %v3804_v8, 6  ;;  %v3576_v14 = vpop.permute.xlu1 %3575  ;;  %v3613_v8 = vmul.f32 %v3597_v40, %v3586_v9  ;;  %v3809_v28 = vmul.f32 %v3793_v26, %v3782_v51 }
0x227d   :  { %3876 = vmatpush.msra.mxu1 %v3852_v19  ;;  %4485 = vmatpush.msrb.mxu3 %v3852_v19  ;;  %v3791_v19 = vrot.slane %v8131_v38, 5  ;;  %v3635_v41 = vrot.slane %v3613_v8, 1  ;;  %v3836_v56 = vrot.slane %v3809_v28, 1 }
0x227f   :  { %3877 = vmatpush.msra.mxu1 %v3851_v58  ;;  %4486 = vmatpush.msrb.mxu3 %v3851_v58  ;;  %v3596_v58 = vrot.slane %v8049_v17, 6  ;;  %v3631_v17 = vrot.slane %v3611_v4, 3 }
0x2281   :  { %3878 = vmatpush.msra.mxu1 %v3850_v36  ;;  %4487 = vmatpush.msrb.mxu3 %v3850_v36  ;;  %v3780_v36 = vld [vmem:[%s9085_s0 + $0x2e] sm:$0x1]  ;;  %v3612_v31 = vmul.f32 %v3596_v58, %v3585_v6 }
0x2282   :  { %v3807_v13 = vmul.f32 %v3791_v19, %v3780_v36 }
0x2283   :  { %3879 = vmatpush.msra.mxu1 %v3849_v29  ;;  %4488 = vmatpush.msrb.mxu3 %v3849_v29  ;;  %v3628_v29 = vsel %vm155_vm4, %v3627_v47, %v3626_v34  ;;  %v3633_v61 = vrot.slane %v3612_v31, 2 }
0x2284   :  { %v3630_v53 = vsel %vm9229_vm14, %v3629_v23, %v3628_v29  ;;  %v3832_v24 = vrot.slane %v3807_v13, 3 }
0x2285   :  { %3880 = vmatpush.msra.mxu1 %v3848_v63  ;;  %4489 = vmatpush.msrb.mxu3 %v3848_v63  ;;  %v3827_v63 = vsel %vm152_vm3, %v3826_v48, %v3825_v20  ;;  %v3632_v3 = vsel %vm161_vm6, %v3631_v17, %v3630_v53 }
0x2286   :  { %v3829_v60 = vsel %vm155_vm4, %v3828_v32, %v3827_v63  ;;  %v3634_v38 = vsel %vm164_vm7, %v3633_v61, %v3632_v3 }
0x2287   :  { %v3636_v15 = vsel %vm9231_vm9, %v3635_v41, %v3634_v38 }
0x22c0   :  { %v8172_v11 = vpop.permute.xlu2 %3840 }
0x22c8   :  { %v3131_v21 = vpop.permute.xlu2 %3130 }
0x22c9   :  { %v3133_v46 = vsel %vm3123_vm15, %v7776_v52, %v3131_v21  ;;  %v3808_v52 = vmul.f32 %v3792_v62, %v3781_v30  ;;  %vm9230_vm15 = vmmov %vm9229_vm14  ;;  %vm9236_vm14 = vcmask 130048  }
0x22ca   :  { %v8211_v2 = vmul.f32 %v3576_v14, %v3133_v46  ;;  %v3831_v35 = vsel %vm9230_vm15, %v3830_v12, %v3829_v60  ;;  %vm9237_vm15 = vcmask 392192  }
0x22cb   :  { %v3834_v37 = vrot.slane %v3808_v52, 2  ;;  %v3833_v57 = vsel %vm161_vm6, %v3832_v24, %v3831_v35 }
0x22cc   :  { %3706 = vrot.lane.b32.xlu0 %v8211_v2, %s9172_s6 }
0x22cd   :  { %v3835_v48 = vsel %vm164_vm7, %v3834_v37, %v3833_v57 }
0x22ce   :  { %v3837_v19 = vsel %vm9235_vm13, %v3836_v56, %v3835_v48  ;;  %v3335_v48 = vsel %vm3325_vm0, %v7820_v18, %v8165_v22 }
0x22cf   :  { %v3846_v20 = vsel %vm9236_vm14, %v3837_v19, %v8172_v11 }
0x22d2   :  { %v3640_v39 = vpop.permute.xlu0 %3639 }
0x22d3   :  { %v3645_v34 = vsel %vm9232_vm8, %v3636_v15, %v3640_v39 }
0x22d4   :  { %v3646_v47 = vsel %vm9233_vm5, %v3645_v34, %v8123_v42  ;;  %v5201_v42 = vld [vmem:[%s9155_s8] ss:$0 sm:$0xff] }
0x22d5   :  { %5096 = vmatmul.msk.f32.vlgmr.msra.gmra.mxu3 %vm9234_vm12, %v3646_v47 }
0x22da   :  { %v3844_v58 = vpop.permute.xlu0 %3843 }
0x22db   :  { %v3847_v36 = vsel %vm9237_vm15, %v3846_v20, %v3844_v58 }
0x22dc   :  { %5099 = vmatmul.msk.f32.vlgmr.msra.gmra.mxu1 %vm9238_vm1, %v3847_v36  ;;  %v3928_v36 = vadd.f32 %v8030_v5, %v8024_v1 }
0x22e2   :  { %v3772_v34 = vpop.permute.xlu0 %3771 }
0x22e3   :  { %v8251_v47 = vmul.f32 %v3772_v34, %v3335_v48  ;;  %v4062_v34 = vld [vmem:[%s9086_s12 + $0x30] sm:$0xff]  ;;  %v4061_v48 = vld [vmem:[%s9086_s12 + $0x28] sm:$0xff] }
0x233e   :  { %v3707_v22 = vpop.permute.xlu0 %3706 }
0x2358   :  { %v3680_v6 = vpop.f32.mrf.mxu3 }
0x2359   :  { %v3681_v4 = vadd.f32 %v5200_v49, %v3680_v6  ;;  %v3882_v29 = vpop.f32.mrf.mxu1 }
0x235a   :  { %v3883_v32 = vadd.f32 %v5201_v42, %v3882_v29 }
0x235b   :  { %v5097_v14 = vmul.f32 -1.442695, %v3681_v4 }
0x235c   :  { %v5100_v23 = vmul.f32 -1.442695, %v3883_v32 }
0x235d   :  { %5309 = vpow2.f32 %v5097_v14 }
0x235e   :  { %5311 = vpow2.f32 %v5100_v23 }
0x2363   :  { %v5310_v11 = vpop.eup %5309 }
0x2364   :  { %v5312_v62 = vpop.eup %5311  ;;  %v3686_v63 = vadd.f32 1.0, %v5310_v11 }
0x2365   :  { %v3888_v21 = vadd.f32 1.0, %v5312_v62 }
0x2366   :  { %5313 = vrcp.f32 %v3686_v63  ;;  %v3698_v53 = vand.u32 2147483648, %v3686_v63  ;;  %v3696_v17 = vand.u32 2147483647, %v3686_v63  ;;  %vm3692_vm8 = vweird.f32 %v3686_v63 }
0x2367   :  { %5315 = vrcp.f32 %v3888_v21  ;;  %v3900_v26 = vand.u32 2147483648, %v3888_v21  ;;  %v3898_v51 = vand.u32 2147483647, %v3888_v21  ;;  %vm3894_vm12 = vweird.f32 %v3888_v21 }
0x2368   :  { %v3699_v8 = vor.u32 1.1754944e-38, %v3698_v53  ;;  %vm3697_vm13 = vcmp.eq.f32.partialorder %v3696_v17, 8.507059e+37 }
0x2369   :  { %v3901_v61 = vor.u32 1.1754944e-38, %v3900_v26  ;;  %vm3899_vm15 = vcmp.eq.f32.partialorder %v3898_v51, 8.507059e+37 }
0x236c   :  { %v5314_v40 = vpop.eup %5313 }
0x236d   :  { %v5316_v30 = vpop.eup %5315  ;;  %v3688_v13 = vmul.f32 %v5314_v40, %v3686_v63  ;;  %vm3693_vm1 = vweird.f32 %v5314_v40 }
0x236e   :  { %v3890_v46 = vmul.f32 %v5316_v30, %v3888_v21  ;;  %vm3895_vm9 = vweird.f32 %v5316_v30  ;;  %vm3694_vm5 = vmor %vm3692_vm8, %vm3693_vm1  ;;  %vm3929_vm1 = vcmp.eq.f32.partialorder %v3928_v36, 0.0  ;;  %vm9239_vm8 = vcmask 1044484  }
0x236f   :  { %v3689_v9 = vsub.f32 1.0, %v3688_v13  ;;  %vm3896_vm14 = vmor %vm3894_vm12, %vm3895_vm9  ;;  %v8260_v16 = vsel %vm3929_vm1, 1, %v5360_v0  ;;  %vm9241_vm12 = vcmask 64512   ;;  %vm9245_vm1 = vcmp.eq.s32.totalorder %v8041_v10, 1 }
0x2370   :  { %v3891_v31 = vsub.f32 1.0, %v3890_v46 }
0x2371   :  { %v3690_v12 = vmul.f32 %v5314_v40, %v3689_v9 }
0x2372   :  { %v3892_v60 = vmul.f32 %v5316_v30, %v3891_v31 }
0x2373   :  { %v3691_v52 = vadd.f32 %v5314_v40, %v3690_v12 }
0x2374   :  { %v3893_v3 = vadd.f32 %v5316_v30, %v3892_v60 }
0x2375   :  { %v3695_v24 = vsel %vm3694_vm5, %v5314_v40, %v3691_v52  ;;  %vm9240_vm5 = vcmask 1047559  }
0x2376   :  { %v3700_v35 = vsel %vm3697_vm13, %v3699_v8, %v3695_v24  ;;  %v3897_v28 = vsel %vm3896_vm14, %v5316_v30, %v3893_v3  ;;  %v8278_v30 = vld [vmem:[%s9151_s14 + $0x8] sm:$0xff]  ;;  %vm9242_vm13 = vcmask 326656   ;;  %vm9243_vm14 = vcmask 588800  }
0x2377   :  { %v3702_v38 = vmul.f32 2.0, %v3700_v35  ;;  %v3902_v37 = vsel %vm3899_vm15, %v3901_v61, %v3897_v28  ;;  %vm9244_vm15 = vcmask 850944  }
0x2378   :  { %v3904_v41 = vmul.f32 2.0, %v3902_v37 }
0x2379   :  { %v5098_v57 = vadd.f32 -1.0, %v3702_v38 }
0x237a   :  { %v5101_v39 = vadd.f32 -1.0, %v3904_v41  ;;  %v4068_v41 = vld [vmem:[%s9086_s12 + $0x60] sm:$0xff] }
0x237b   :  { %v3704_v15 = vsel %vm5613_vm10, %v5098_v57, %v3700_v35  ;;  %v4067_v57 = vld [vmem:[%s9086_s12 + $0x58] sm:$0xff]  ;;  %4079 = vmatpush.msra.mxu2 %v4068_v41  ;;  %4688 = vmatpush.msrb.mxu1 %v4068_v41 }
0x237c   :  { %3711 = vrot.lane.b32.xlu1 %v3704_v15, %s9165_s25  ;;  %v3906_v56 = vsel %vm5613_vm10, %v5101_v39, %v3902_v37  ;;  %v3709_v42 = vmul.f32 %v3707_v22, %v3704_v15  ;;  %v4066_v39 = vld [vmem:[%s9086_s12 + $0x50] sm:$0xff]  ;;  %v3978_v22 = vld [vmem:[%s9089_s1 + $0xe] sm:$0x1] }
0x237d   :  { %3913 = vrot.lane.b32.xlu2 %v3906_v56, %s9165_s25  ;;  %4080 = vmatpush.msra.mxu2 %v4067_v57 }
0x237e   :  { %4689 = vmatpush.msrb.mxu1 %v4067_v57 }
0x237f   :  { %4081 = vmatpush.msra.mxu2 %v4066_v39 }
0x2380   :  { %4690 = vmatpush.msrb.mxu1 %v4066_v39 }
0x2385   :  { %3908 = vrot.lane.b32.xlu2 %v8251_v47, %s9172_s6 }
0x23d7   :  { %v3914_v19 = vpop.permute.xlu2 %3913 }
0x23d8   :  { %v3916_v20 = vmul.f32 %v3914_v19, %v3906_v56  ;;  %v4060_v19 = vld [vmem:[%s9086_s12 + $0x20] sm:$0xff] }
0x23da   :  { %3918 = vrot.lane.b32.xlu1 %v3916_v20, %s9172_s6  ;;  %v4059_v20 = vld [vmem:[%s9086_s12 + $0x18] sm:$0xff] }
0x23df   :  { %v3909_v18 = vpop.permute.xlu2 %3908 }
0x23e0   :  { %v3911_v6 = vmul.f32 %v3909_v18, %v3906_v56  ;;  %v4056_v18 = vld [vmem:[%s9086_s12] sm:$0xff] }
0x23ee   :  { %v3712_v58 = vpop.permute.xlu1 %3711 }
0x23ef   :  { %v3714_v49 = vmul.f32 %v3712_v58, %v3704_v15  ;;  %v4058_v58 = vld [vmem:[%s9086_s12 + $0x10] sm:$0xff] }
0x23f1   :  { %3716 = vrot.lane.b32.xlu2 %v3714_v49, %s9172_s6  ;;  %v4057_v49 = vld [vmem:[%s9086_s12 + $0x8] sm:$0xff] }
0x23f9   :  { %3932 = vperm.xlu2 %5172, %v8260_v16  }
0x244b   :  { %v3717_v4 = vpop.permute.xlu2 %3716 }
0x244c   :  { %v8263_v29 = vadd.f32 %v3717_v4, %v3709_v42  ;;  %v3919_v32 = vpop.permute.xlu1 %3918 }
0x244d   :  { %v8265_v14 = vadd.f32 %v3919_v32, %v3911_v6  ;;  %v3979_v6 = vld [vmem:[%s9089_s1 + $0x16] sm:$0x1]  ;;  %v3977_v32 = vld [vmem:[%s9089_s1 + $0x6] sm:$0x1] }
0x244e   :  { %5317 = vtanh.f32 %v8263_v29 }
0x244f   :  { %5319 = vtanh.f32 %v8265_v14 }
0x2454   :  { %v5318_v23 = vpop.eup %5317 }
0x2455   :  { %v5320_v11 = vpop.eup %5319  ;;  %3722 = vrot.lane.b32.xlu1 %v5318_v23, %s9165_s25 }
0x2456   :  { %3924 = vrot.lane.b32.xlu0 %v5320_v11, %s9165_s25 }
0x245e   :  { %3730 = vperm.xlu0 %5175, %v7838_v27   ;;  %v8284_v27 = vpop.permute.xlu2 %3932 }
0x245f   :  { %vm3934_vm9 = vcmp.eq.s32.totalorder %v8284_v27, 1 }
0x2466   :  { %5177 = vset.pattern.permute.xlu0 %v5374_v59 }
0x24c7   :  { %v3723_v62 = vpop.permute.xlu1 %3722 }
0x24c8   :  { %v3725_v63 = vmul.f32 %v3723_v62, %v3704_v15  ;;  %v3925_v21 = vpop.permute.xlu0 %3924  ;;  %v4064_v15 = vld [vmem:[%s9086_s12 + $0x40] sm:$0xff] }
0x24c9   :  { %v3927_v40 = vmul.f32 %v3925_v21, %v3906_v56  ;;  %v4063_v56 = vld [vmem:[%s9086_s12 + $0x38] sm:$0xff] }
0x24ca   :  { %3734 = vrot.lane.b32.xlu2 %v3725_v63, %s9172_s6  ;;  %v3980_v63 = vld [vmem:[%s9089_s1 + $0x1e] sm:$0x1] }
0x24cb   :  { %3936 = vrot.lane.b32.xlu1 %v3927_v40, %s9172_s6 }
0x24d0   :  { %v8286_v13 = vpop.permute.xlu0 %3730 }
0x24d1   :  { %vm3732_vm0 = vcmp.eq.s32.totalorder %v8286_v13, 1  ;;  %v4194_v13 = vld [vmem:[%s9093_s2 + $0x36] sm:$0x1] }
0x24d2   :  { %4015 = vperm.xlu2 %5172, %v7847_v7  }
0x24d3   :  { %3987 = vperm.xlu1 %5176, %v8278_v30  }
0x24da   :  { %4050 = vrot.lane.b32.xlu2 %v8047_v25, %s9168_s26 }
0x2524   :  { %v3735_v46 = vpop.permute.xlu2 %3734 }
0x2525   :  { %v8292_v9 = vsel %vm3732_vm0, %v7861_v55, %v3735_v46 }
0x2526   :  { %v3744_v31 = vrot.slane %v8292_v9, 1  ;;  %v3745_v53 = vrot.slane %v8292_v9, 2  ;;  %v3746_v12 = vrot.slane %v8292_v9, 3  ;;  %3758 = vst.msk [vmem:[%s9096_s19 + $0x5] sm:$0x1] %vm295_vm11, %v8292_v9  ;;  %v3747_v17 = vrot.slane %v8292_v9, 4 }
0x2527   :  { %v3748_v26 = vrot.slane %v8292_v9, 5  ;;  %v3749_v55 = vrot.slane %v8292_v9, 6  ;;  %v3750_v60 = vrot.slane %v8292_v9, 7 }
0x2528   :  { %3759 = vst.msk [vmem:[%s9096_s19 + $0xd] sm:$0x1] %vm295_vm11, %v3744_v31  ;;  %v3981_v31 = vld [vmem:[%s9089_s1 + $0x26] sm:$0x1] }
0x2529   :  { %3760 = vst.msk [vmem:[%s9096_s19 + $0x15] sm:$0x1] %vm295_vm11, %v3745_v53 }
0x252a   :  { %3761 = vst.msk [vmem:[%s9096_s19 + $0x1d] sm:$0x1] %vm295_vm11, %v3746_v12 }
0x252b   :  { %3762 = vst.msk [vmem:[%s9096_s19 + $0x25] sm:$0x1] %vm295_vm11, %v3747_v17 }
0x252c   :  { %3763 = vst.msk [vmem:[%s9096_s19 + $0x2d] sm:$0x1] %vm295_vm11, %v3748_v26  ;;  %v4016_v51 = vpop.permute.xlu2 %4015  ;;  %v3982_v26 = vld [vmem:[%s9089_s1 + $0x2e] sm:$0x1] }
0x252d   :  { %3764 = vst.msk [vmem:[%s9096_s19 + $0x35] sm:$0x1] %vm295_vm11, %v3749_v55  ;;  %v4018_v52 = vmul.f32 %v4016_v51, %v8292_v9 }
0x252e   :  { %3765 = vst.msk [vmem:[%s9096_s19 + $0x3d] sm:$0x1] %vm295_vm11, %v3750_v60 }
0x252f   :  { %4047 = vrot.lane.b32.xlu1 %v4018_v52, %s9159_s4 }
0x2537   :  { %3973 = vperm.xlu1 %5176, %v3361_v44  }
0x253d   :  { %v3937_v8 = vpop.permute.xlu1 %3936 }
0x253e   :  { %v8342_v3 = vsel %vm3934_vm9, %v7912_v54, %v3937_v8  ;;  %v3983_v8 = vld [vmem:[%s9089_s1 + $0x36] sm:$0x1] }
0x253f   :  { %v3946_v24 = vrot.slane %v8342_v3, 1  ;;  %v3947_v61 = vrot.slane %v8342_v3, 2  ;;  %v3948_v35 = vrot.slane %v8342_v3, 3  ;;  %3960 = vst.msk [vmem:[%s9087_s17 + $0x6] sm:$0x1] %vm295_vm11, %v8342_v3  ;;  %v3949_v7 = vrot.slane %v8342_v3, 4 }
0x2540   :  { %v3950_v44 = vrot.slane %v8342_v3, 5  ;;  %v3951_v54 = vrot.slane %v8342_v3, 6  ;;  %v3952_v28 = vrot.slane %v8342_v3, 7 }
0x2541   :  { %3961 = vst.msk [vmem:[%s9087_s17 + $0xe] sm:$0x1] %vm295_vm11, %v3946_v24 }
0x2542   :  { %3962 = vst.msk [vmem:[%s9087_s17 + $0x16] sm:$0x1] %vm295_vm11, %v3947_v61 }
0x2543   :  { %3963 = vst.msk [vmem:[%s9087_s17 + $0x1e] sm:$0x1] %vm295_vm11, %v3948_v35 }
0x2544   :  { %3964 = vst.msk [vmem:[%s9087_s17 + $0x26] sm:$0x1] %vm295_vm11, %v3949_v7 }
0x2545   :  { %3965 = vst.msk [vmem:[%s9087_s17 + $0x2e] sm:$0x1] %vm295_vm11, %v3950_v44  ;;  %v8376_v38 = vpop.permute.xlu1 %3987  ;;  %v3984_v44 = vld [vmem:[%s9089_s1 + $0x3e] sm:$0x1] }
0x2546   :  { %3966 = vst.msk [vmem:[%s9087_s17 + $0x36] sm:$0x1] %vm295_vm11, %v3951_v54  ;;  %v4012_v37 = vmul.f32 %v8376_v38, %v8342_v3  ;;  %v3989_v36 = vrot.slane %v8376_v38, 1  ;;  %v3990_v42 = vrot.slane %v8376_v38, 2  ;;  %v3991_v11 = vrot.slane %v8376_v38, 3 }
0x2547   :  { %3967 = vst.msk [vmem:[%s9087_s17 + $0x3e] sm:$0x1] %vm295_vm11, %v3952_v28  ;;  %v4004_v21 = vmul.f32 %v8376_v38, %v3977_v32  ;;  %v3992_v40 = vrot.slane %v8376_v38, 4  ;;  %v3993_v17 = vrot.slane %v8376_v38, 5  ;;  %v3994_v52 = vrot.slane %v8376_v38, 6 }
0x2548   :  { %4043 = vrot.lane.b32.xlu0 %v4012_v37, %s9167_s24  ;;  %v4005_v4 = vmul.f32 %v3989_v36, %v3978_v22  ;;  %v4006_v23 = vmul.f32 %v3990_v42, %v3979_v6  ;;  %v4007_v53 = vmul.f32 %v3991_v11, %v3980_v63  ;;  %v3995_v7 = vrot.slane %v8376_v38, 7  ;;  %v5202_v42 = vld [vmem:[%s9090_s15] ss:$0 sm:$0xff] }
0x2549   :  { %v4008_v55 = vmul.f32 %v3992_v40, %v3981_v31  ;;  %v4009_v24 = vmul.f32 %v3993_v17, %v3982_v26  ;;  %v4010_v54 = vmul.f32 %v3994_v52, %v3983_v8 }
0x254a   :  { %v4027_v62 = vrot.slane %v4005_v4, 7  ;;  %v4029_v46 = vrot.slane %v4006_v23, 6  ;;  %v4031_v51 = vrot.slane %v4007_v53, 5  ;;  %v4011_v41 = vmul.f32 %v3995_v7, %v3984_v44  ;;  %v5358_v7 = vld [vmem:[%s9149_s29 + $0x8] sm:$0xff] }
0x254b   :  { %v4033_v35 = vrot.slane %v4008_v55, 4  ;;  %v4035_v37 = vrot.slane %v4009_v24, 3  ;;  %v4037_v39 = vrot.slane %v4010_v54, 2  ;;  %v4139_v44 = vadd.f32 %v5358_v7, %v8278_v30  ;;  %v4190_v7 = vld [vmem:[%s9093_s2 + $0x16] sm:$0x1] }
0x254c   :  { %v4028_v12 = vsel %vm149_vm2, %v4027_v62, %v4004_v21 }
0x254d   :  { %v4030_v60 = vsel %vm152_vm3, %v4029_v46, %v4028_v12 }
0x254e   :  { %v4032_v61 = vsel %vm155_vm4, %v4031_v51, %v4030_v60 }
0x254f   :  { %v4034_v28 = vsel %vm9239_vm8, %v4033_v35, %v4032_v61 }
0x2550   :  { %3543 = vrot.lane.b32.xlu0 %v8007_v43, %s9166_s5  ;;  %v4065_v43 = vld [vmem:[%s9086_s12 + $0x48] sm:$0xff]  ;;  %v4036_v57 = vsel %vm161_vm6, %v4035_v37, %v4034_v28  ;;  %v5375_v28 = vmov 7   ;;  %s9275_s12 = sld [smem:[#allocation17_spill]] }
0x2551   :  { %4082 = vmatpush.msra.mxu2 %v4065_v43  ;;  %4691 = vmatpush.msrb.mxu1 %v4065_v43  ;;  %v4038_v43 = vsel %vm164_vm7, %v4037_v39, %v4036_v57  ;;  %v8504_v57 = vld [vmem:[%s9151_s14 + $0x10] sm:$0xff] }
0x2552   :  { %5178 = vset.pattern.permute.xlu2 %v5375_v28 }
0x2553   :  { %4083 = vmatpush.msra.mxu2 %v4064_v15  ;;  %4692 = vmatpush.msrb.mxu1 %v4064_v15  ;;  %v4039_v15 = vrot.slane %v4011_v41, 1 }
0x2555   :  { %4084 = vmatpush.msra.mxu2 %v4063_v56  ;;  %4693 = vmatpush.msrb.mxu1 %v4063_v56 }
0x2557   :  { %4085 = vmatpush.msra.mxu2 %v4062_v34  ;;  %4694 = vmatpush.msrb.mxu1 %v4062_v34  ;;  %v4040_v34 = vsel %vm9240_vm5, %v4039_v15, %v4038_v43 }
0x2559   :  { %4086 = vmatpush.msra.mxu2 %v4061_v48  ;;  %4695 = vmatpush.msrb.mxu1 %v4061_v48 }
0x255b   :  { %4087 = vmatpush.msra.mxu2 %v4060_v19  ;;  %4696 = vmatpush.msrb.mxu1 %v4060_v19  ;;  %v4051_v19 = vpop.permute.xlu2 %4050 }
0x255d   :  { %4088 = vmatpush.msra.mxu2 %v4059_v20  ;;  %4697 = vmatpush.msrb.mxu1 %v4059_v20 }
0x255f   :  { %4089 = vmatpush.msra.mxu2 %v4058_v58  ;;  %4698 = vmatpush.msrb.mxu1 %v4058_v58 }
0x2561   :  { %4090 = vmatpush.msra.mxu2 %v4057_v49  ;;  %4699 = vmatpush.msrb.mxu1 %v4057_v49 }
0x2563   :  { %4091 = vmatpush.msra.mxu2 %v4056_v18  ;;  %4700 = vmatpush.msrb.mxu1 %v4056_v18 }
0x25a1   :  { %v4048_v56 = vpop.permute.xlu1 %4047 }
0x25a9   :  { %v3974_v49 = vpop.permute.xlu1 %3973 }
0x25ba   :  { %v4044_v48 = vpop.permute.xlu0 %4043 }
0x25bb   :  { %v4053_v38 = vsel %vm9241_vm12, %v4040_v34, %v4044_v48 }
0x25bc   :  { %v4054_v20 = vsel %vm9242_vm13, %v4053_v38, %v4048_v56 }
0x25bd   :  { %v4055_v58 = vsel %vm9243_vm14, %v4054_v20, %v4051_v19  ;;  %vm4140_vm14 = vcmp.eq.f32.partialorder %v4139_v44, 0.0 }
0x25be   :  { %5104 = vmatmul.msk.f32.vlgmr.msra.gmra.mxu2 %vm9244_vm15, %v4055_v58  ;;  %v4141_v54 = vsel %vm4140_vm14, 1, %v5360_v0 }
0x25c2   :  { %v3544_v36 = vpop.permute.xlu0 %3543 }
0x25c3   :  { %v3546_v18 = vsel %vm9245_vm1, %v7996_v50, %v3544_v36  ;;  %vm9246_vm1 = vcmask 1044484  }
0x25c4   :  { %v8476_v22 = vmul.f32 %v3974_v49, %v3546_v18 }
0x25c6   :  { %4119 = vrot.lane.b32.xlu0 %v8476_v22, %s9172_s6 }
0x25ce   :  { %4143 = vperm.xlu0 %5177, %v4141_v54  }
0x25d6   :  { %5179 = vset.pattern.permute.xlu0 %v5375_v28 }
0x2638   :  { %v4120_v52 = vpop.permute.xlu0 %4119 }
0x2640   :  { %v8520_v43 = vpop.permute.xlu0 %4143 }
0x2641   :  { %v4093_v6 = vpop.f32.mrf.mxu2  ;;  %vm9137_vm15 = vcmp.eq.s32.totalorder %v8520_v43, 1 }
0x2642   :  { %v4094_v4 = vadd.f32 %v5202_v42, %v4093_v6  ;;  %v4264_v42 = vld [vmem:[%s9092_s13 + $0x40] sm:$0xff]  ;;  %v4263_v6 = vld [vmem:[%s9092_s13 + $0x38] sm:$0xff] }
0x2643   :  { %4279 = vmatpush.msrb.mxu0 %v4264_v42  ;;  %4888 = vmatpush.msrb.mxu2 %v4264_v42  ;;  %v4390_v42 = vld [vmem:[%s9085_s0 + $0x37] sm:$0x1] }
0x2644   :  { %v5105_v32 = vmul.f32 -1.442695, %v4094_v4  ;;  %v4262_v4 = vld [vmem:[%s9092_s13 + $0x30] sm:$0xff] }
0x2645   :  { %4280 = vmatpush.msrb.mxu0 %v4263_v6  ;;  %4889 = vmatpush.msrb.mxu2 %v4263_v6 }
0x2646   :  { %5321 = vpow2.f32 %v5105_v32  ;;  %v4259_v32 = vld [vmem:[%s9092_s13 + $0x18] sm:$0xff] }
0x2647   :  { %4281 = vmatpush.msrb.mxu0 %v4262_v4  ;;  %4890 = vmatpush.msrb.mxu2 %v4262_v4 }
0x264c   :  { %v5322_v23 = vpop.eup %5321 }
0x264d   :  { %v4099_v11 = vadd.f32 1.0, %v5322_v23  ;;  %v4385_v23 = vld [vmem:[%s9085_s0 + $0xf] sm:$0x1] }
0x264f   :  { %5323 = vrcp.f32 %v4099_v11  ;;  %v4111_v50 = vand.u32 2147483648, %v4099_v11  ;;  %v4109_v40 = vand.u32 2147483647, %v4099_v11  ;;  %vm4105_vm5 = vweird.f32 %v4099_v11 }
0x2651   :  { %v4112_v31 = vor.u32 1.1754944e-38, %v4111_v50  ;;  %vm4110_vm13 = vcmp.eq.f32.partialorder %v4109_v40, 8.507059e+37  ;;  %v4386_v50 = vld [vmem:[%s9085_s0 + $0x17] sm:$0x1]  ;;  %v4384_v40 = vld [vmem:[%s9085_s0 + $0x7] sm:$0x1] }
0x2655   :  { %v5324_v62 = vpop.eup %5323 }
0x2656   :  { %v4101_v63 = vmul.f32 %v5324_v62, %v4099_v11  ;;  %vm4106_vm8 = vweird.f32 %v5324_v62 }
0x2657   :  { %vm4107_vm12 = vmor %vm4105_vm5, %vm4106_vm8  ;;  %vm9248_vm8 = vcmask 1047559   ;;  %vm9249_vm5 = vcmask 130048  }
0x2658   :  { %v4102_v10 = vsub.f32 1.0, %v4101_v63  ;;  %vm9252_vm14 = vmmov %vm9248_vm8 }
0x265a   :  { %v4103_v21 = vmul.f32 %v5324_v62, %v4102_v10 }
0x265c   :  { %v4104_v46 = vadd.f32 %v5324_v62, %v4103_v21  ;;  %v4257_v21 = vld [vmem:[%s9092_s13 + $0x8] sm:$0xff] }
0x265e   :  { %v4108_v53 = vsel %vm4107_vm12, %v5324_v62, %v4104_v46  ;;  %v4258_v62 = vld [vmem:[%s9092_s13 + $0x10] sm:$0xff]  ;;  %vm9250_vm12 = vcmask 392192  }
0x265f   :  { %v4113_v12 = vsel %vm4110_vm13, %v4112_v31, %v4108_v53  ;;  %v4387_v53 = vld [vmem:[%s9085_s0 + $0x1f] sm:$0x1]  ;;  %vm9251_vm13 = vcmask 654336  }
0x2660   :  { %v4115_v17 = vmul.f32 2.0, %v4113_v12 }
0x2662   :  { %v5106_v26 = vadd.f32 -1.0, %v4115_v17  ;;  %v4256_v17 = vld [vmem:[%s9092_s13] sm:$0xff] }
0x2664   :  { %v4117_v55 = vsel %vm5613_vm10, %v5106_v26, %v4113_v12 }
0x2665   :  { %4124 = vrot.lane.b32.xlu2 %v4117_v55, %s9165_s25  ;;  %v4122_v8 = vmul.f32 %v4120_v52, %v4117_v55 }
0x26bf   :  { %v4125_v60 = vpop.permute.xlu2 %4124 }
0x26c0   :  { %v4127_v51 = vmul.f32 %v4125_v60, %v4117_v55 }
0x26c2   :  { %4129 = vrot.lane.b32.xlu1 %v4127_v51, %s9172_s6 }
0x2734   :  { %v4130_v24 = vpop.permute.xlu1 %4129 }
0x2735   :  { %v8487_v61 = vadd.f32 %v4130_v24, %v4122_v8  ;;  %v4388_v8 = vld [vmem:[%s9085_s0 + $0x27] sm:$0x1] }
0x2737   :  { %5325 = vtanh.f32 %v8487_v61 }
0x273d   :  { %v5326_v35 = vpop.eup %5325 }
0x273e   :  { %4135 = vrot.lane.b32.xlu2 %v5326_v35, %s9165_s25 }
0x2746   :  { %4421 = vperm.xlu2 %5178, %v8030_v5  }
0x274e   :  { %4394 = vperm.xlu2 %5178, %v8024_v1   ;;  %v8514_v1 = vld [vmem:[%s9149_s29 + $0x10] sm:$0xff] }
0x274f   :  { %v4181_v39 = vsub.f32 1.0, %v8514_v1 }
0x2798   :  { %v4136_v37 = vpop.permute.xlu2 %4135 }
0x2799   :  { %v4138_v41 = vmul.f32 %v4136_v37, %v4117_v55  ;;  %v4189_v55 = vld [vmem:[%s9093_s2 + $0xe] sm:$0x1] }
0x279b   :  { %4147 = vrot.lane.b32.xlu1 %v4138_v41, %s9172_s6 }
0x27a0   :  { %v4422_v56 = vpop.permute.xlu2 %4421 }
0x27a3   :  { %4198 = vperm.xlu1 %5176, %v8504_v57  }
0x27a8   :  { %v8594_v5 = vpop.permute.xlu2 %4394 }
0x27a9   :  { %v4397_v63 = vrot.slane %v8594_v5, 2  ;;  %v4398_v46 = vrot.slane %v8594_v5, 3  ;;  %v4411_v26 = vmul.f32 %v8594_v5, %v4384_v40  ;;  %v4399_v51 = vrot.slane %v8594_v5, 4 }
0x27aa   :  { %v4400_v41 = vrot.slane %v8594_v5, 5 }
0x27ab   :  { %4452 = vrot.lane.b32.xlu1 %v8342_v3, %s9173_s28  ;;  %v4413_v12 = vmul.f32 %v4397_v63, %v4386_v50  ;;  %v4414_v24 = vmul.f32 %v4398_v46, %v4387_v53  ;;  %v4391_v50 = vld [vmem:[%s9085_s0 + $0x3f] sm:$0x1]  ;;  %s9279_s28 = sld [smem:[#allocation18_spill]] }
0x27ad   :  { %v4435_v54 = vrot.slane %v4413_v12, 6 }
0x27b3   :  { %3941 = vrot.lane.b32.xlu1 %v8265_v14, %s9166_s5 }
0x27bb   :  { %4184 = vperm.xlu1 %5176, %v4181_v39  }
0x27c3   :  { %5181 = vset.pattern.permute.xlu1 %v5375_v28 }
0x280d   :  { %v4148_v15 = vpop.permute.xlu1 %4147 }
0x280e   :  { %v8526_v14 = vsel %vm9137_vm15, %v8047_v25, %v4148_v15 }
0x280f   :  { %v4157_v34 = vrot.slane %v8526_v14, 1  ;;  %v4158_v48 = vrot.slane %v8526_v14, 2  ;;  %v4159_v38 = vrot.slane %v8526_v14, 3  ;;  %4171 = vst.msk [vmem:[%s9091_s18 + $0x6] sm:$0x1] %vm295_vm11, %v8526_v14  ;;  %v4160_v19 = vrot.slane %v8526_v14, 4 }
0x2810   :  { %v4424_v20 = vmul.f32 %v4422_v56, %v8526_v14  ;;  %v4161_v25 = vrot.slane %v8526_v14, 5  ;;  %v4162_v58 = vrot.slane %v8526_v14, 6  ;;  %v4163_v36 = vrot.slane %v8526_v14, 7  ;;  %v4389_v56 = vld [vmem:[%s9085_s0 + $0x2f] sm:$0x1] }
0x2811   :  { %4172 = vst.msk [vmem:[%s9091_s18 + $0xe] sm:$0x1] %vm295_vm11, %v4157_v34  ;;  %v4415_v34 = vmul.f32 %v4399_v51, %v4388_v8  ;;  %v4416_v6 = vmul.f32 %v4400_v41, %v4389_v56 }
0x2812   :  { %4173 = vst.msk [vmem:[%s9091_s18 + $0x16] sm:$0x1] %vm295_vm11, %v4158_v48  ;;  %4449 = vrot.lane.b32.xlu0 %v4424_v20, %s9158_s9  ;;  %v4188_v48 = vld [vmem:[%s9093_s2 + $0x6] sm:$0x1] }
0x2813   :  { %4174 = vst.msk [vmem:[%s9091_s18 + $0x1e] sm:$0x1] %vm295_vm11, %v4159_v38  ;;  %v4441_v46 = vrot.slane %v4416_v6, 3 }
0x2814   :  { %4175 = vst.msk [vmem:[%s9091_s18 + $0x26] sm:$0x1] %vm295_vm11, %v4160_v19  ;;  %v4437_v19 = vrot.slane %v4414_v24, 5 }
0x2815   :  { %4176 = vst.msk [vmem:[%s9091_s18 + $0x2e] sm:$0x1] %vm295_vm11, %v4161_v25  ;;  %v8562_v49 = vpop.permute.xlu1 %4198 }
0x2816   :  { %4177 = vst.msk [vmem:[%s9091_s18 + $0x36] sm:$0x1] %vm295_vm11, %v4162_v58  ;;  %v4223_v18 = vmul.f32 %v8562_v49, %v8526_v14  ;;  %v4200_v31 = vrot.slane %v8562_v49, 1  ;;  %v4201_v52 = vrot.slane %v8562_v49, 2  ;;  %v4202_v20 = vrot.slane %v8562_v49, 3 }
0x2817   :  { %4178 = vst.msk [vmem:[%s9091_s18 + $0x3e] sm:$0x1] %vm295_vm11, %v4163_v36  ;;  %v4401_v58 = vrot.slane %v8594_v5, 6  ;;  %v4215_v4 = vmul.f32 %v8562_v49, %v4188_v48  ;;  %v4204_v53 = vrot.slane %v8562_v49, 5  ;;  %v4205_v24 = vrot.slane %v8562_v49, 6 }
0x2818   :  { %4248 = vrot.lane.b32.xlu2 %v4223_v18, %s9167_s24  ;;  %v4216_v44 = vmul.f32 %v4200_v31, %v4189_v55  ;;  %v4217_v38 = vmul.f32 %v4201_v52, %v4190_v7  ;;  %v4191_v18 = vld [vmem:[%s9093_s2 + $0x1e] sm:$0x1] }
0x2819   :  { %v4218_v63 = vmul.f32 %v4202_v20, %v4191_v18  ;;  %v4221_v48 = vmul.f32 %v4205_v24, %v4194_v13 }
0x281a   :  { %4251 = vrot.lane.b32.xlu0 %v8292_v9, %s9159_s4  ;;  %v4232_v25 = vrot.slane %v4216_v44, 7 }
0x281b   :  { %v4236_v52 = vrot.slane %v4218_v63, 5 }
0x281d   :  { %v8606_v11 = vpop.permute.xlu1 %4452 }
0x2820   :  { %3739 = vrot.lane.b32.xlu2 %v8263_v29, %s9166_s5  ;;  %v4260_v29 = vld [vmem:[%s9092_s13 + $0x20] sm:$0xff] }
0x2822   :  { %4380 = vperm.xlu0 %5179, %v3768_v45   ;;  %v4396_v45 = vrot.slane %v8594_v5, 1 }
0x2824   :  { %v4412_v10 = vmul.f32 %v4396_v45, %v4385_v23  ;;  %v4203_v45 = vrot.slane %v8562_v49, 4 }
0x2825   :  { %v8638_v35 = vpop.permute.xlu1 %3941 }
0x2826   :  { %v4433_v60 = vrot.slane %v4412_v10, 7  ;;  %v4233_v10 = vsel %vm149_vm2, %v4232_v25, %v4215_v4 }
0x2828   :  { %v4434_v15 = vsel %vm149_vm2, %v4433_v60, %v4411_v26 }
0x2829   :  { %v4436_v36 = vsel %vm152_vm3, %v4435_v54, %v4434_v15  ;;  %v4206_v15 = vrot.slane %v8562_v49, 7 }
0x282a   :  { %5180 = vset.pattern.permute.xlu0 %v5374_v59  ;;  %v4261_v59 = vld [vmem:[%s9092_s13 + $0x28] sm:$0xff]  ;;  %v4438_v23 = vsel %vm155_vm4, %v4437_v19, %v4436_v36 }
0x282b   :  { %4282 = vmatpush.msrb.mxu0 %v4261_v59  ;;  %4891 = vmatpush.msrb.mxu2 %v4261_v59  ;;  %v4439_v59 = vrot.slane %v4415_v34, 4  ;;  %v4195_v34 = vld [vmem:[%s9093_s2 + $0x3e] sm:$0x1] }
0x282d   :  { %4283 = vmatpush.msrb.mxu0 %v4260_v29  ;;  %4892 = vmatpush.msrb.mxu2 %v4260_v29  ;;  %v4234_v29 = vrot.slane %v4217_v38, 6  ;;  %v4185_v31 = vpop.permute.xlu1 %4184  ;;  %v4440_v12 = vsel %vm9246_vm1, %v4439_v59, %v4438_v23  ;;  %v5203_v23 = vld [vmem:[%s9155_s8] ss:$0 sm:$0xff] }
0x282f   :  { %4284 = vmatpush.msrb.mxu0 %v4259_v32  ;;  %4893 = vmatpush.msrb.mxu2 %v4259_v32  ;;  %v4402_v32 = vrot.slane %v8594_v5, 7  ;;  %v4235_v55 = vsel %vm152_vm3, %v4234_v29, %v4233_v10 }
0x2830   :  { %v4237_v44 = vsel %vm155_vm4, %v4236_v52, %v4235_v55 }
0x2831   :  { %4285 = vmatpush.msrb.mxu0 %v4258_v62  ;;  %4894 = vmatpush.msrb.mxu2 %v4258_v62  ;;  %v4192_v62 = vld [vmem:[%s9093_s2 + $0x26] sm:$0x1]  ;;  %v4418_v51 = vmul.f32 %v4402_v32, %v4391_v50 }
0x2832   :  { %v4219_v26 = vmul.f32 %v4203_v45, %v4192_v62 }
0x2833   :  { %4286 = vmatpush.msrb.mxu0 %v4257_v21  ;;  %4895 = vmatpush.msrb.mxu2 %v4257_v21  ;;  %v4417_v21 = vmul.f32 %v4401_v58, %v4390_v42  ;;  %v4445_v41 = vrot.slane %v4418_v51, 1  ;;  %v4222_v58 = vmul.f32 %v4206_v15, %v4195_v34  ;;  %v4242_v42 = vrot.slane %v4221_v48, 2 }
0x2834   :  { %v4238_v54 = vrot.slane %v4219_v26, 4 }
0x2835   :  { %4287 = vmatpush.msrb.mxu0 %v4256_v17  ;;  %4896 = vmatpush.msrb.mxu2 %v4256_v17  ;;  %v4193_v17 = vld [vmem:[%s9093_s2 + $0x2e] sm:$0x1]  ;;  %v4443_v8 = vrot.slane %v4417_v21, 2  ;;  %v4244_v4 = vrot.slane %v4222_v58, 1 }
0x2836   :  { %v4220_v7 = vmul.f32 %v4204_v53, %v4193_v17 }
0x2838   :  { %v4240_v19 = vrot.slane %v4220_v7, 3 }
0x2872   :  { %v8643_v37 = vpop.permute.xlu2 %4248 }
0x287a   :  { %v3740_v40 = vpop.permute.xlu2 %3739 }
0x287b   :  { %v3742_v5 = vsel %vm3732_vm0, %v8211_v2, %v3740_v40  ;;  %v4442_v2 = vsel %vm161_vm6, %v4441_v46, %v4440_v12  ;;  %vm9247_vm0 = vmmov %vm9246_vm1  ;;  %vm9253_vm1 = vcmask 64512  }
0x287c   :  { %v8682_v60 = vmul.f32 %v4185_v31, %v3742_v5  ;;  %v4444_v56 = vsel %vm164_vm7, %v4443_v8, %v4442_v2  ;;  %v4239_v38 = vsel %vm9247_vm0, %v4238_v54, %v4237_v44  ;;  %vm9254_vm0 = vcmask 326656  }
0x287d   :  { %v4446_v25 = vsel %vm9248_vm8, %v4445_v41, %v4444_v56  ;;  %v4241_v36 = vsel %vm161_vm6, %v4240_v19, %v4239_v38  ;;  %vm9255_vm8 = vcmask 588800  }
0x287e   :  { %4315 = vrot.lane.b32.xlu0 %v8682_v60, %s9172_s6  ;;  %v4243_v6 = vsel %vm164_vm7, %v4242_v42, %v4241_v36 }
0x287f   :  { %v4245_v59 = vsel %vm9252_vm14, %v4244_v4, %v4243_v6 }
0x2880   :  { %v4254_v45 = vsel %vm9253_vm1, %v4245_v59, %v8643_v37 }
0x2884   :  { %v4450_v20 = vpop.permute.xlu0 %4449 }
0x2885   :  { %v4455_v18 = vsel %vm9249_vm5, %v4446_v25, %v4450_v20 }
0x2886   :  { %v4456_v49 = vsel %vm9250_vm12, %v4455_v18, %v8606_v11  ;;  %v5204_v11 = vld [vmem:[%s9095_s16] ss:$0 sm:$0xff] }
0x2887   :  { %5112 = vmatmul.msk.f32.vlgmr.msrb.gmra.mxu3 %vm9251_vm13, %v4456_v49  ;;  %v3944_v49 = vsel %vm3934_vm9, %v8251_v47, %v8638_v35 }
0x288c   :  { %v4252_v29 = vpop.permute.xlu0 %4251 }
0x288d   :  { %v4255_v32 = vsel %vm9254_vm0, %v4254_v45, %v4252_v29 }
0x288e   :  { %5109 = vmatmul.msk.f32.vlgmr.msrb.gmra.mxu0 %vm9255_vm8, %v4255_v32 }
0x2894   :  { %v4381_v42 = vpop.permute.xlu0 %4380 }
0x2895   :  { %v8726_v6 = vmul.f32 %v4381_v42, %v3944_v49  ;;  %v4586_v42 = vld [vmem:[%s9089_s1 + $0x7] sm:$0x1] }
0x290a   :  { %v4491_v62 = vpop.f32.mrf.mxu3 }
0x290b   :  { %v4492_v63 = vadd.f32 %v5203_v23, %v4491_v62  ;;  %v4289_v10 = vpop.f32.mrf.mxu0  ;;  %v4316_v23 = vpop.permute.xlu0 %4315 }
0x290c   :  { %v4290_v50 = vadd.f32 %v5204_v11, %v4289_v10  ;;  %v4335_v10 = vadd.f32 %v8514_v1, %v8504_v57  ;;  %v4800_v1 = vld [vmem:[%s9093_s2 + $0x1f] sm:$0x1] }
0x290d   :  { %v5113_v21 = vmul.f32 -1.442695, %v4492_v63 }
0x290e   :  { %v5110_v40 = vmul.f32 -1.442695, %v4290_v50  ;;  %vm4336_vm9 = vcmp.eq.f32.partialorder %v4335_v10, 0.0 }
0x290f   :  { %5327 = vpow2.f32 %v5113_v21 }
0x2910   :  { %5329 = vpow2.f32 %v5110_v40 }
0x2915   :  { %v5328_v37 = vpop.eup %5327 }
0x2916   :  { %v5330_v46 = vpop.eup %5329  ;;  %v4497_v31 = vadd.f32 1.0, %v5328_v37 }
0x2917   :  { %v4295_v53 = vadd.f32 1.0, %v5330_v46 }
0x2918   :  { %5331 = vrcp.f32 %v4497_v31  ;;  %v4509_v52 = vand.u32 2147483648, %v4497_v31  ;;  %v4507_v24 = vand.u32 2147483647, %v4497_v31  ;;  %vm4503_vm13 = vweird.f32 %v4497_v31 }
0x2919   :  { %5333 = vrcp.f32 %v4295_v53  ;;  %v4307_v2 = vand.u32 2147483648, %v4295_v53  ;;  %v4305_v7 = vand.u32 2147483647, %v4295_v53  ;;  %vm4301_vm1 = vweird.f32 %v4295_v53 }
0x291a   :  { %v4510_v54 = vor.u32 1.1754944e-38, %v4509_v52  ;;  %vm4508_vm0 = vcmp.eq.f32.partialorder %v4507_v24, 8.507059e+37 }
0x291b   :  { %v4308_v56 = vor.u32 1.1754944e-38, %v4307_v2  ;;  %vm4306_vm15 = vcmp.eq.f32.partialorder %v4305_v7, 8.507059e+37 }
0x291e   :  { %v5332_v5 = vpop.eup %5331 }
0x291f   :  { %v5334_v12 = vpop.eup %5333  ;;  %v4499_v17 = vmul.f32 %v5332_v5, %v4497_v31  ;;  %vm4504_vm5 = vweird.f32 %v5332_v5 }
0x2920   :  { %v4297_v26 = vmul.f32 %v5334_v12, %v4295_v53  ;;  %vm4302_vm12 = vweird.f32 %v5334_v12  ;;  %vm4505_vm14 = vmor %vm4503_vm13, %vm4504_vm5  ;;  %v8753_v53 = vld [vmem:[%s9149_s29 + $0x8] sm:$0xff]  ;;  %vm9257_vm13 = vcmask 1044484  }
0x2921   :  { %v4500_v55 = vsub.f32 1.0, %v4499_v17  ;;  %vm4303_vm8 = vmor %vm4301_vm1, %vm4302_vm12  ;;  %vm9256_vm12 = vcmask 261120   ;;  %vm9259_vm1 = vcmask 64512  }
0x2922   :  { %v4298_v51 = vsub.f32 1.0, %v4297_v26 }
0x2923   :  { %v4501_v8 = vmul.f32 %v5332_v5, %v4500_v55 }
0x2924   :  { %v4299_v13 = vmul.f32 %v5334_v12, %v4298_v51 }
0x2925   :  { %v4502_v44 = vadd.f32 %v5332_v5, %v4501_v8 }
0x2926   :  { %v4300_v41 = vadd.f32 %v5334_v12, %v4299_v13  ;;  %v4579_v13 = vsub.f32 1.0, %v8753_v53 }
0x2927   :  { %v4506_v15 = vsel %vm4505_vm14, %v5332_v5, %v4502_v44  ;;  %vm9258_vm14 = vcmask 1047559  }
0x2928   :  { %v4511_v34 = vsel %vm4508_vm0, %v4510_v54, %v4506_v15  ;;  %v4304_v48 = vsel %vm4303_vm8, %v5334_v12, %v4300_v41  ;;  %vm9260_vm0 = vcmask 326656   ;;  %vm9261_vm8 = vcmask 588800  }
0x2929   :  { %v4513_v38 = vmul.f32 2.0, %v4511_v34  ;;  %v4309_v19 = vsel %vm4306_vm15, %v4308_v56, %v4304_v48 }
0x292a   :  { %v4311_v20 = vmul.f32 2.0, %v4309_v19 }
0x292b   :  { %v5114_v25 = vadd.f32 -1.0, %v4513_v38 }
0x292c   :  { %v5111_v58 = vadd.f32 -1.0, %v4311_v20 }
0x292d   :  { %v4515_v36 = vsel %vm5613_vm10, %v5114_v25, %v4511_v34  ;;  %v4587_v25 = vld [vmem:[%s9089_s1 + $0xf] sm:$0x1] }
0x292e   :  { %4522 = vrot.lane.b32.xlu2 %v4515_v36, %s9165_s25  ;;  %v4313_v18 = vsel %vm5613_vm10, %v5111_v58, %v4309_v19 }
0x292f   :  { %4320 = vrot.lane.b32.xlu1 %v4313_v18, %s9165_s25  ;;  %v4318_v47 = vmul.f32 %v4316_v23, %v4313_v18  ;;  %v4590_v23 = vld [vmem:[%s9089_s1 + $0x27] sm:$0x1] }
0x2936   :  { %4517 = vrot.lane.b32.xlu2 %v8726_v6, %s9172_s6 }
0x2988   :  { %v4523_v4 = vpop.permute.xlu2 %4522 }
0x2989   :  { %v4525_v59 = vmul.f32 %v4523_v4, %v4515_v36 }
0x298b   :  { %4527 = vrot.lane.b32.xlu1 %v4525_v59, %s9172_s6 }
0x2990   :  { %v4518_v32 = vpop.permute.xlu2 %4517 }
0x2991   :  { %v4520_v11 = vmul.f32 %v4518_v32, %v4515_v36 }
0x29a1   :  { %v4321_v45 = vpop.permute.xlu1 %4320 }
0x29a2   :  { %v4323_v29 = vmul.f32 %v4321_v45, %v4313_v18 }
0x29a4   :  { %4325 = vrot.lane.b32.xlu2 %v4323_v29, %s9172_s6 }
0x29ac   :  { %4541 = vperm.xlu2 %5178, %v8260_v16   ;;  %v8744_v16 = vsel %vm4336_vm9, 1, %v5360_v0  ;;  %vm9262_vm9 = vcmask 850944  }
0x29fd   :  { %v4528_v27 = vpop.permute.xlu1 %4527 }
0x29fe   :  { %v8733_v35 = vadd.f32 %v4528_v27, %v4520_v11  ;;  %v4326_v62 = vpop.permute.xlu2 %4325 }
0x29ff   :  { %v8735_v63 = vadd.f32 %v4326_v62, %v4318_v47  ;;  %v4591_v62 = vld [vmem:[%s9089_s1 + $0x2f] sm:$0x1] }
0x2a00   :  { %5335 = vtanh.f32 %v8733_v35 }
0x2a01   :  { %5337 = vtanh.f32 %v8735_v63 }
0x2a06   :  { %v5336_v50 = vpop.eup %5335 }
0x2a07   :  { %v5338_v21 = vpop.eup %5337  ;;  %4533 = vrot.lane.b32.xlu0 %v5336_v50, %s9165_s25 }
0x2a08   :  { %4331 = vrot.lane.b32.xlu1 %v5338_v21, %s9165_s25 }
0x2a0f   :  { %4339 = vperm.xlu0 %5180, %v8744_v16  }
0x2a17   :  { %5182 = vset.pattern.permute.xlu0 %v5375_v28  ;;  %v8759_v28 = vpop.permute.xlu2 %4541 }
0x2a18   :  { %vm4543_vm5 = vcmp.eq.s32.totalorder %v8759_v28, 1 }
0x2a79   :  { %v4534_v40 = vpop.permute.xlu0 %4533 }
0x2a7a   :  { %v4536_v37 = vmul.f32 %v4534_v40, %v4515_v36  ;;  %v4332_v46 = vpop.permute.xlu1 %4331  ;;  %v4588_v36 = vld [vmem:[%s9089_s1 + $0x17] sm:$0x1] }
0x2a7b   :  { %v4334_v31 = vmul.f32 %v4332_v46, %v4313_v18 }
0x2a7c   :  { %4545 = vrot.lane.b32.xlu1 %v4536_v37, %s9172_s6  ;;  %v4592_v37 = vld [vmem:[%s9089_s1 + $0x37] sm:$0x1] }
0x2a7d   :  { %4343 = vrot.lane.b32.xlu2 %v4334_v31, %s9172_s6 }
0x2a81   :  { %v8761_v5 = vpop.permute.xlu0 %4339 }
0x2a82   :  { %vm4341_vm15 = vcmp.eq.s32.totalorder %v8761_v5, 1 }
0x2a84   :  { %4596 = vperm.xlu1 %5181, %v8278_v30  }
0x2a85   :  { %4624 = vperm.xlu2 %5178, %v8753_v53  }
0x2a8d   :  { %4659 = vrot.lane.b32.xlu2 %v8526_v14, %s9168_s26 }
0x2ad7   :  { %v4344_v12 = vpop.permute.xlu2 %4343 }
0x2ad8   :  { %v8767_v17 = vsel %vm4341_vm15, %v8292_v9, %v4344_v12 }
0x2ad9   :  { %v4353_v26 = vrot.slane %v8767_v17, 1  ;;  %v4354_v30 = vrot.slane %v8767_v17, 2  ;;  %v4355_v55 = vrot.slane %v8767_v17, 3  ;;  %4367 = vst.msk [vmem:[%s9096_s19 + $0x6] sm:$0x1] %vm295_vm11, %v8767_v17  ;;  %v4356_v51 = vrot.slane %v8767_v17, 4 }
0x2ada   :  { %v4357_v52 = vrot.slane %v8767_v17, 5  ;;  %v4358_v9 = vrot.slane %v8767_v17, 6  ;;  %v4359_v8 = vrot.slane %v8767_v17, 7 }
0x2adb   :  { %4368 = vst.msk [vmem:[%s9096_s19 + $0xe] sm:$0x1] %vm295_vm11, %v4353_v26 }
0x2adc   :  { %4369 = vst.msk [vmem:[%s9096_s19 + $0x16] sm:$0x1] %vm295_vm11, %v4354_v30  ;;  %v4593_v30 = vld [vmem:[%s9089_s1 + $0x3f] sm:$0x1] }
0x2add   :  { %4370 = vst.msk [vmem:[%s9096_s19 + $0x1e] sm:$0x1] %vm295_vm11, %v4355_v55 }
0x2ade   :  { %4371 = vst.msk [vmem:[%s9096_s19 + $0x26] sm:$0x1] %vm295_vm11, %v4356_v51 }
0x2adf   :  { %4372 = vst.msk [vmem:[%s9096_s19 + $0x2e] sm:$0x1] %vm295_vm11, %v4357_v52  ;;  %v4625_v24 = vpop.permute.xlu2 %4624 }
0x2ae0   :  { %4373 = vst.msk [vmem:[%s9096_s19 + $0x36] sm:$0x1] %vm295_vm11, %v4358_v9  ;;  %v4627_v2 = vmul.f32 %v4625_v24, %v8767_v17 }
0x2ae1   :  { %4374 = vst.msk [vmem:[%s9096_s19 + $0x3e] sm:$0x1] %vm295_vm11, %v4359_v8 }
0x2ae2   :  { %4656 = vrot.lane.b32.xlu1 %v4627_v2, %s9159_s4 }
0x2aea   :  { %4582 = vperm.xlu1 %5181, %v4579_v13  }
0x2aee   :  { %v4546_v7 = vpop.permute.xlu1 %4545 }
0x2aef   :  { %v4548_v44 = vsel %vm4543_vm5, %v8342_v3, %v4546_v7 }
0x2af0   :  { %v4555_v54 = vrot.slane %v4548_v44, 1  ;;  %v4556_v41 = vrot.slane %v4548_v44, 2  ;;  %v4557_v15 = vrot.slane %v4548_v44, 3  ;;  %4569 = vst.msk [vmem:[%s9087_s17 + $0x7] sm:$0x1] %vm295_vm11, %v4548_v44  ;;  %v4558_v56 = vrot.slane %v4548_v44, 4 }
0x2af1   :  { %4985 = vst.msk [vmem:[#allocation2] sm:$0xff] %vm9256_vm12, %v4548_v44  ;;  %v4559_v34 = vrot.slane %v4548_v44, 5  ;;  %v4560_v48 = vrot.slane %v4548_v44, 6  ;;  %v4561_v3 = vrot.slane %v4548_v44, 7  ;;  %vm9263_vm12 = vcmp.eq.s32.totalorder %v8520_v43, 1 }
0x2af2   :  { %4570 = vst.msk [vmem:[%s9087_s17 + $0xf] sm:$0x1] %vm295_vm11, %v4555_v54 }
0x2af3   :  { %4571 = vst.msk [vmem:[%s9087_s17 + $0x17] sm:$0x1] %vm295_vm11, %v4556_v41 }
0x2af4   :  { %4572 = vst.msk [vmem:[%s9087_s17 + $0x1f] sm:$0x1] %vm295_vm11, %v4557_v15  ;;  %v4660_v15 = vpop.permute.xlu2 %4659 }
0x2af5   :  { %4573 = vst.msk [vmem:[%s9087_s17 + $0x27] sm:$0x1] %vm295_vm11, %v4558_v56 }
0x2af6   :  { %4574 = vst.msk [vmem:[%s9087_s17 + $0x2f] sm:$0x1] %vm295_vm11, %v4559_v34  ;;  %v4597_v38 = vpop.permute.xlu1 %4596 }
0x2af7   :  { %4575 = vst.msk [vmem:[%s9087_s17 + $0x37] sm:$0x1] %vm295_vm11, %v4560_v48  ;;  %v4621_v19 = vmul.f32 %v4597_v38, %v4548_v44  ;;  %v4598_v20 = vrot.slane %v4597_v38, 1  ;;  %v4599_v58 = vrot.slane %v4597_v38, 2  ;;  %v4600_v4 = vrot.slane %v4597_v38, 3 }
0x2af8   :  { %4576 = vst.msk [vmem:[%s9087_s17 + $0x3f] sm:$0x1] %vm295_vm11, %v4561_v3  ;;  %v4613_v45 = vmul.f32 %v4597_v38, %v4586_v42  ;;  %v4601_v29 = vrot.slane %v4597_v38, 4  ;;  %v4602_v47 = vrot.slane %v4597_v38, 5  ;;  %v4603_v40 = vrot.slane %v4597_v38, 6 }
0x2af9   :  { %4652 = vrot.lane.b32.xlu0 %v4621_v19, %s9167_s24  ;;  %v4614_v18 = vmul.f32 %v4598_v20, %v4587_v25  ;;  %v4615_v49 = vmul.f32 %v4599_v58, %v4588_v36  ;;  %v4604_v26 = vrot.slane %v4597_v38, 7  ;;  %v5359_v20 = vld [vmem:[%s9151_s14 + $0x8] sm:$0xff] }
0x2afa   :  { %v4617_v10 = vmul.f32 %v4601_v29, %v4590_v23  ;;  %v4618_v46 = vmul.f32 %v4602_v47, %v4591_v62  ;;  %v4619_v55 = vmul.f32 %v4603_v40, %v4592_v37  ;;  %v4748_v25 = vadd.f32 %v5359_v20, %v8753_v53 }
0x2afb   :  { %v4636_v59 = vrot.slane %v4614_v18, 7  ;;  %v4638_v32 = vrot.slane %v4615_v49, 6  ;;  %v4620_v9 = vmul.f32 %v4604_v26, %v4593_v30 }
0x2afc   :  { %v4642_v12 = vrot.slane %v4617_v10, 4  ;;  %v4644_v52 = vrot.slane %v4618_v46, 3  ;;  %v4646_v24 = vrot.slane %v4619_v55, 2 }
0x2afd   :  { %v4637_v27 = vsel %vm149_vm2, %v4636_v59, %v4613_v45  ;;  %v4648_v13 = vrot.slane %v4620_v9, 1 }
0x2afe   :  { %v4639_v50 = vsel %vm152_vm3, %v4638_v32, %v4637_v27 }
0x2b01   :  { %4152 = vrot.lane.b32.xlu0 %v8487_v61, %s9166_s5  ;;  %v4589_v61 = vld [vmem:[%s9089_s1 + $0x1f] sm:$0x1] }
0x2b02   :  { %v4616_v11 = vmul.f32 %v4600_v4, %v4589_v61 }
0x2b04   :  { %v4640_v21 = vrot.slane %v4616_v11, 5 }
0x2b06   :  { %v4641_v31 = vsel %vm155_vm4, %v4640_v21, %v4639_v50 }
0x2b07   :  { %v4643_v51 = vsel %vm9257_vm13, %v4642_v12, %v4641_v31  ;;  %vm4749_vm13 = vcmp.eq.f32.partialorder %v4748_v25, 0.0  ;;  %v4801_v25 = vld [vmem:[%s9093_s2 + $0x27] sm:$0x1] }
0x2b08   :  { %v4645_v8 = vsel %vm161_vm6, %v4644_v52, %v4643_v51  ;;  %v4750_v58 = vsel %vm4749_vm13, 1, %v5360_v0  ;;  %vm9268_vm13 = vcmask 326656  }
0x2b09   :  { %v4647_v2 = vsel %vm164_vm7, %v4646_v24, %v4645_v8 }
0x2b0a   :  { %v4649_v44 = vsel %vm9258_vm14, %v4648_v13, %v4647_v2 }
0x2b54   :  { %v4657_v7 = vpop.permute.xlu1 %4656 }
0x2b5c   :  { %v4583_v3 = vpop.permute.xlu1 %4582 }
0x2b6b   :  { %v4653_v54 = vpop.permute.xlu0 %4652 }
0x2b6c   :  { %v4662_v41 = vsel %vm9259_vm1, %v4649_v44, %v4653_v54  ;;  %v4798_v44 = vld [vmem:[%s9093_s2 + $0xf] sm:$0x1] }
0x2b6d   :  { %v4663_v56 = vsel %vm9260_vm0, %v4662_v41, %v4657_v7  ;;  %v4799_v41 = vld [vmem:[%s9093_s2 + $0x17] sm:$0x1] }
0x2b6e   :  { %v4664_v34 = vsel %vm9261_vm8, %v4663_v56, %v4660_v15  ;;  %v4797_v56 = vld [vmem:[%s9093_s2 + $0x7] sm:$0x1] }
0x2b6f   :  { %5117 = vmatmul.msk.f32.vlgmr.msrb.gmra.mxu1 %vm9262_vm9, %v4664_v34 }
0x2b73   :  { %v4153_v48 = vpop.permute.xlu0 %4152 }
0x2b74   :  { %v4155_v38 = vsel %vm9263_vm12, %v8476_v22, %v4153_v48  ;;  %v5205_v22 = vld [vmem:[%s9090_s15] ss:$0 sm:$0xff]  ;;  %vm9264_vm12 = vcmask 261120  }
0x2b75   :  { %v8890_v19 = vmul.f32 %v4583_v3, %v4155_v38 }
0x2b77   :  { %4728 = vrot.lane.b32.xlu0 %v8890_v19, %s9172_s6 }
0x2b7f   :  { %4752 = vperm.xlu0 %5182, %v4750_v58  }
0x2b87   :  { %4348 = vrot.lane.b32.xlu0 %v8735_v63, %s9166_s5 }
0x2be9   :  { %v4729_v50 = vpop.permute.xlu0 %4728 }
0x2bec   :  { %v4702_v43 = vpop.f32.mrf.mxu1 }
0x2bed   :  { %v4703_v36 = vadd.f32 %v5205_v22, %v4702_v43 }
0x2bef   :  { %v5118_v18 = vmul.f32 -1.442695, %v4703_v36  ;;  %v4802_v36 = vld [vmem:[%s9093_s2 + $0x2f] sm:$0x1] }
0x2bf1   :  { %5339 = vpow2.f32 %v5118_v18  ;;  %v8916_v26 = vpop.permute.xlu0 %4752 }
0x2bf2   :  { %vm4754_vm9 = vcmp.eq.s32.totalorder %v8916_v26, 1 }
0x2bf7   :  { %v5340_v42 = vpop.eup %5339 }
0x2bf8   :  { %v4708_v53 = vadd.f32 1.0, %v5340_v42 }
0x2bfa   :  { %5341 = vrcp.f32 %v4708_v53  ;;  %v4720_v61 = vand.u32 2147483648, %v4708_v53  ;;  %v4718_v45 = vand.u32 2147483647, %v4708_v53  ;;  %vm4714_vm1 = vweird.f32 %v4708_v53 }
0x2bfc   :  { %v4721_v63 = vor.u32 1.1754944e-38, %v4720_v61  ;;  %vm4719_vm8 = vcmp.eq.f32.partialorder %v4718_v45, 8.507059e+37 }
0x2c00   :  { %v5342_v49 = vpop.eup %5341 }
0x2c01   :  { %v4710_v4 = vmul.f32 %v5342_v49, %v4708_v53  ;;  %vm4715_vm14 = vweird.f32 %v5342_v49 }
0x2c02   :  { %vm4716_vm0 = vmor %vm4714_vm1, %vm4715_vm14  ;;  %vm9269_vm14 = vcmask 588800  }
0x2c03   :  { %v4711_v59 = vsub.f32 1.0, %v4710_v4  ;;  %v4803_v4 = vld [vmem:[%s9093_s2 + $0x37] sm:$0x1] }
0x2c05   :  { %v4712_v0 = vmul.f32 %v5342_v49, %v4711_v59 }
0x2c07   :  { %v4713_v29 = vadd.f32 %v5342_v49, %v4712_v0 }
0x2c09   :  { %v4717_v32 = vsel %vm4716_vm0, %v5342_v49, %v4713_v29  ;;  %v4804_v29 = vld [vmem:[%s9093_s2 + $0x3f] sm:$0x1] }
0x2c0a   :  { %v4722_v23 = vsel %vm4719_vm8, %v4721_v63, %v4717_v32 }
0x2c0b   :  { %v4724_v11 = vmul.f32 2.0, %v4722_v23 }
0x2c0d   :  { %v5119_v27 = vadd.f32 -1.0, %v4724_v11 }
0x2c0f   :  { %v4726_v47 = vsel %vm5613_vm10, %v5119_v27, %v4722_v23 }
0x2c10   :  { %4733 = vrot.lane.b32.xlu2 %v4726_v47, %s9165_s25  ;;  %v4731_v21 = vmul.f32 %v4729_v50, %v4726_v47 }
0x2c6a   :  { %v4734_v62 = vpop.permute.xlu2 %4733 }
0x2c6b   :  { %v4736_v10 = vmul.f32 %v4734_v62, %v4726_v47 }
0x2c6d   :  { %4738 = vrot.lane.b32.xlu1 %v4736_v10, %s9172_s6 }
0x2cdf   :  { %v4739_v40 = vpop.permute.xlu1 %4738 }
0x2ce0   :  { %v8908_v37 = vadd.f32 %v4739_v40, %v4731_v21 }
0x2ce2   :  { %5343 = vtanh.f32 %v8908_v37 }
0x2ce8   :  { %v5344_v46 = vpop.eup %5343 }
0x2ce9   :  { %4744 = vrot.lane.b32.xlu2 %v5344_v46, %s9165_s25 }
0x2cf1   :  { %4807 = vperm.xlu2 %5178, %v8504_v57  }
0x2cf9   :  { %4860 = vrot.lane.b32.xlu2 %v8767_v17, %s9159_s4 }
0x2d43   :  { %v4745_v31 = vpop.permute.xlu2 %4744 }
0x2d44   :  { %v4747_v12 = vmul.f32 %v4745_v31, %v4726_v47 }
0x2d46   :  { %4756 = vrot.lane.b32.xlu1 %v4747_v12, %s9172_s6  ;;  %v4349_v12 = vpop.permute.xlu0 %4348 }
0x2d4b   :  { %v4808_v51 = vpop.permute.xlu2 %4807 }
0x2d4c   :  { %v4809_v7 = vrot.slane %v4808_v51, 1  ;;  %v4810_v54 = vrot.slane %v4808_v51, 2  ;;  %v4811_v48 = vrot.slane %v4808_v51, 3  ;;  %v4812_v38 = vrot.slane %v4808_v51, 4 }
0x2d4d   :  { %v4813_v43 = vrot.slane %v4808_v51, 5  ;;  %v4814_v49 = vrot.slane %v4808_v51, 6  ;;  %v4815_v45 = vrot.slane %v4808_v51, 7 }
0x2d4e   :  { %v4825_v15 = vmul.f32 %v4809_v7, %v4798_v44  ;;  %v4826_v34 = vmul.f32 %v4810_v54, %v4799_v41  ;;  %v4827_v58 = vmul.f32 %v4811_v48, %v4800_v1  ;;  %v4828_v18 = vmul.f32 %v4812_v38, %v4801_v25 }
0x2d4f   :  { %v4829_v59 = vmul.f32 %v4813_v43, %v4802_v36  ;;  %v4830_v63 = vmul.f32 %v4814_v49, %v4803_v4  ;;  %v4831_v11 = vmul.f32 %v4815_v45, %v4804_v29 }
0x2d50   :  { %v4841_v3 = vrot.slane %v4825_v15, 7  ;;  %v4843_v20 = vrot.slane %v4826_v34, 6  ;;  %v4845_v53 = vrot.slane %v4827_v58, 5  ;;  %v4847_v0 = vrot.slane %v4828_v18, 4 }
0x2d51   :  { %v4849_v23 = vrot.slane %v4829_v59, 3  ;;  %v4851_v47 = vrot.slane %v4830_v63, 2  ;;  %v4853_v10 = vrot.slane %v4831_v11, 1 }
0x2d53   :  { %v4861_v40 = vpop.permute.xlu2 %4860 }
0x2db8   :  { %v4757_v30 = vpop.permute.xlu1 %4756 }
0x2db9   :  { %v4759_v55 = vsel %vm4754_vm9, %v8526_v14, %v4757_v30  ;;  %v4351_v30 = vsel %vm4341_vm15, %v8682_v60, %v4349_v12 }
0x2dba   :  { %v4766_v52 = vrot.slane %v4759_v55, 1  ;;  %v4767_v9 = vrot.slane %v4759_v55, 2  ;;  %v4768_v57 = vrot.slane %v4759_v55, 3  ;;  %4780 = vst.msk [vmem:[%s9091_s18 + $0x7] sm:$0x1] %vm295_vm11, %v4759_v55  ;;  %v4769_v8 = vrot.slane %v4759_v55, 4 }
0x2dbb   :  { %4987 = vst.msk [vmem:[#allocation3] sm:$0xff] %vm9264_vm12, %v4759_v55  ;;  %v4832_v24 = vmul.f32 %v4808_v51, %v4759_v55  ;;  %v4770_v2 = vrot.slane %v4759_v55, 5  ;;  %v4771_v14 = vrot.slane %v4759_v55, 6  ;;  %v4772_v13 = vrot.slane %v4759_v55, 7 }
0x2dbc   :  { %4781 = vst.msk [vmem:[%s9091_s18 + $0xf] sm:$0x1] %vm295_vm11, %v4766_v52 }
0x2dbd   :  { %4782 = vst.msk [vmem:[%s9091_s18 + $0x17] sm:$0x1] %vm295_vm11, %v4767_v9  ;;  %4857 = vrot.lane.b32.xlu1 %v4832_v24, %s9167_s24  ;;  %v5206_v9 = vld [vmem:[%s9095_s16] ss:$0 sm:$0xff] }
0x2dbe   :  { %4783 = vst.msk [vmem:[%s9091_s18 + $0x1f] sm:$0x1] %vm295_vm11, %v4768_v57 }
0x2dbf   :  { %4784 = vst.msk [vmem:[%s9091_s18 + $0x27] sm:$0x1] %vm295_vm11, %v4769_v8 }
0x2dc0   :  { %4785 = vst.msk [vmem:[%s9091_s18 + $0x2f] sm:$0x1] %vm295_vm11, %v4770_v2 }
0x2dc1   :  { %4786 = vst.msk [vmem:[%s9091_s18 + $0x37] sm:$0x1] %vm295_vm11, %v4771_v14 }
0x2dc2   :  { %4787 = vst.msk [vmem:[%s9091_s18 + $0x3f] sm:$0x1] %vm295_vm11, %v4772_v13 }
0x2dc5   :  { %4793 = vperm.xlu1 %5181, %v4181_v39   ;;  %v4824_v39 = vmul.f32 %v4808_v51, %v4797_v56 }
0x2dc7   :  { %v4842_v22 = vsel %vm149_vm2, %v4841_v3, %v4824_v39  ;;  %vm9265_vm2 = vcmask 1044484  }
0x2dc8   :  { %v4844_v42 = vsel %vm152_vm3, %v4843_v20, %v4842_v22  ;;  %vm9266_vm3 = vcmask 1047559  }
0x2dc9   :  { %v4846_v61 = vsel %vm155_vm4, %v4845_v53, %v4844_v42  ;;  %vm9267_vm4 = vcmask 64512  }
0x2dca   :  { %v4848_v32 = vsel %vm9265_vm2, %v4847_v0, %v4846_v61 }
0x2dcb   :  { %v4850_v27 = vsel %vm161_vm6, %v4849_v23, %v4848_v32  ;;  %vm9270_vm6 = vmmov %vm9264_vm12 }
0x2dcc   :  { %v4852_v62 = vsel %vm164_vm7, %v4851_v47, %v4850_v27  ;;  %vm9271_vm7 = vmmov %vm9270_vm6 }
0x2dcd   :  { %v4854_v21 = vsel %vm9266_vm3, %v4853_v10, %v4852_v62 }
0x2e2f   :  { %v4858_v50 = vpop.permute.xlu1 %4857 }
0x2e30   :  { %v4863_v46 = vsel %vm9267_vm4, %v4854_v21, %v4858_v50 }
0x2e31   :  { %v4864_v31 = vsel %vm9268_vm13, %v4863_v46, %v4861_v40 }
0x2e32   :  { %5122 = vmatmul.msk.f32.vlgmr.msrb.gmra.mxu2 %vm9269_vm14, %v4864_v31 }
0x2e37   :  { %v4794_v55 = vpop.permute.xlu1 %4793 }
0x2e38   :  { %v8995_v51 = vmul.f32 %v4794_v55, %v4351_v30 }
0x2e3a   :  { %4924 = vrot.lane.b32.xlu0 %v8995_v51, %s9172_s6 }
0x2e42   :  { %4948 = vperm.xlu0 %5182, %v8744_v16  }
0x2e4a   :  { %4761 = vrot.lane.b32.xlu0 %v8908_v37, %s9166_s5 }
0x2eac   :  { %v4925_v52 = vpop.permute.xlu0 %4924 }
0x2eb4   :  { %v9005_v57 = vpop.permute.xlu0 %4948 }
0x2eb5   :  { %v4898_v5 = vpop.f32.mrf.mxu2  ;;  %vm4950_vm12 = vcmp.eq.s32.totalorder %v9005_v57, 1 }
0x2eb6   :  { %v4899_v60 = vadd.f32 %v5206_v9, %v4898_v5 }
0x2eb8   :  { %v5123_v8 = vmul.f32 -1.442695, %v4899_v60 }
0x2eba   :  { %5345 = vpow2.f32 %v5123_v8 }
0x2ebc   :  { %v4762_v24 = vpop.permute.xlu0 %4761 }
0x2ebd   :  { %v4764_v2 = vsel %vm4754_vm9, %v8890_v19, %v4762_v24  ;;  %vm9274_vm9 = vmmov %vm9270_vm6 }
0x2ebe   :  { %4988 = vst.msk [vmem:[#allocation6] sm:$0xff] %vm9270_vm6, %v4764_v2 }
0x2ebf   :  { %4995 = vst.msk [vmem:[%s9272_s20] sm:$0xff] %vm9271_vm7, %v4764_v2 }
0x2ec0   :  { %v5346_v16 = vpop.eup %5345 }
0x2ec1   :  { %v4904_v37 = vadd.f32 1.0, %v5346_v16 }
0x2ec3   :  { %5347 = vrcp.f32 %v4904_v37  ;;  %v4916_v44 = vand.u32 2147483648, %v4904_v37  ;;  %v4914_v41 = vand.u32 2147483647, %v4904_v37  ;;  %vm4910_vm1 = vweird.f32 %v4904_v37 }
0x2ec5   :  { %v4917_v19 = vor.u32 1.1754944e-38, %v4916_v44  ;;  %vm4915_vm8 = vcmp.eq.f32.partialorder %v4914_v41, 8.507059e+37 }
0x2ec9   :  { %v5348_v14 = vpop.eup %5347 }
0x2eca   :  { %v4906_v13 = vmul.f32 %v5348_v14, %v4904_v37  ;;  %vm4911_vm15 = vweird.f32 %v5348_v14 }
0x2ecb   :  { %vm4912_vm0 = vmor %vm4910_vm1, %vm4911_vm15 }
0x2ecc   :  { %v4907_v7 = vsub.f32 1.0, %v4906_v13 }
0x2ece   :  { %v4908_v54 = vmul.f32 %v5348_v14, %v4907_v7 }
0x2ed0   :  { %v4909_v15 = vadd.f32 %v5348_v14, %v4908_v54 }
0x2ed2   :  { %v4913_v26 = vsel %vm4912_vm0, %v5348_v14, %v4909_v15 }
0x2ed3   :  { %v4918_v56 = vsel %vm4915_vm8, %v4917_v19, %v4913_v26 }
0x2ed4   :  { %v4920_v34 = vmul.f32 2.0, %v4918_v56 }
0x2ed6   :  { %v5124_v48 = vadd.f32 -1.0, %v4920_v34 }
0x2ed8   :  { %v4922_v3 = vsel %vm5613_vm10, %v5124_v48, %v4918_v56  ;;  %vm9273_vm10 = vmmov %vm9270_vm6 }
0x2ed9   :  { %4929 = vrot.lane.b32.xlu2 %v4922_v3, %s9165_s25  ;;  %v4927_v38 = vmul.f32 %v4925_v52, %v4922_v3 }
0x2f33   :  { %v4930_v1 = vpop.permute.xlu2 %4929 }
0x2f34   :  { %v4932_v39 = vmul.f32 %v4930_v1, %v4922_v3 }
0x2f36   :  { %4934 = vrot.lane.b32.xlu1 %v4932_v39, %s9172_s6 }
0x2fa8   :  { %v4935_v20 = vpop.permute.xlu1 %4934 }
0x2fa9   :  { %v4937_v25 = vadd.f32 %v4935_v20, %v4927_v38 }
0x2fab   :  { %5349 = vtanh.f32 %v4937_v25 }
0x2fb1   :  { %v5350_v58 = vpop.eup %5349 }
0x2fb2   :  { %4940 = vrot.lane.b32.xlu2 %v5350_v58, %s9165_s25 }
0x2fba   :  { %4550 = vrot.lane.b32.xlu2 %v8733_v35, %s9166_s5 }
0x300c   :  { %v4941_v22 = vpop.permute.xlu2 %4940 }
0x300d   :  { %v4943_v43 = vmul.f32 %v4941_v22, %v4922_v3 }
0x300f   :  { %4952 = vrot.lane.b32.xlu1 %v4943_v43, %s9172_s6 }
0x3014   :  { %v4551_v33 = vpop.permute.xlu2 %4550 }
0x3015   :  { %v4553_v36 = vsel %vm4543_vm5, %v8726_v6, %v4551_v33  ;;  %vm9276_vm5 = vmmov %vm9270_vm6 }
0x3016   :  { %4986 = vst.msk [vmem:[#allocation5] sm:$0xff] %vm9273_vm10, %v4553_v36  ;;  %vm9277_vm2 = vmmov %vm9276_vm5 }
0x3017   :  { %4994 = vst.msk [vmem:[%s9275_s12] sm:$0xff] %vm9274_vm9, %v4553_v36  ;;  %4957 = vrot.lane.b32.xlu1 %v4937_v25, %s9166_s5  ;;  %vm9278_vm3 = vmmov %vm9277_vm2 }
0x3081   :  { %v4953_v35 = vpop.permute.xlu1 %4952 }
0x3082   :  { %v4955_v18 = vsel %vm4950_vm12, %v8767_v17, %v4953_v35 }
0x3083   :  { %v4962_v42 = vrot.slane %v4955_v18, 1  ;;  %v4963_v53 = vrot.slane %v4955_v18, 2  ;;  %v4964_v28 = vrot.slane %v4955_v18, 3  ;;  %4976 = vst.msk [vmem:[%s9096_s19 + $0x7] sm:$0x1] %vm295_vm11, %v4955_v18  ;;  %v4965_v6 = vrot.slane %v4955_v18, 4 }
0x3084   :  { %4989 = vst.msk [vmem:[#allocation4] sm:$0xff] %vm9276_vm5, %v4955_v18  ;;  %v4966_v49 = vrot.slane %v4955_v18, 5  ;;  %v4967_v4 = vrot.slane %v4955_v18, 6  ;;  %v4968_v17 = vrot.slane %v4955_v18, 7 }
0x3085   :  { %4977 = vst.msk [vmem:[%s9096_s19 + $0xf] sm:$0x1] %vm295_vm11, %v4962_v42 }
0x3086   :  { %4978 = vst.msk [vmem:[%s9096_s19 + $0x17] sm:$0x1] %vm295_vm11, %v4963_v53 }
0x3087   :  { %4979 = vst.msk [vmem:[%s9096_s19 + $0x1f] sm:$0x1] %vm295_vm11, %v4964_v28 }
0x3088   :  { %4980 = vst.msk [vmem:[%s9096_s19 + $0x27] sm:$0x1] %vm295_vm11, %v4965_v6 }
0x3089   :  { %4981 = vst.msk [vmem:[%s9096_s19 + $0x2f] sm:$0x1] %vm295_vm11, %v4966_v49  ;;  %v4958_v59 = vpop.permute.xlu1 %4957 }
0x308a   :  { %4982 = vst.msk [vmem:[%s9096_s19 + $0x37] sm:$0x1] %vm295_vm11, %v4967_v4  ;;  %v4960_v61 = vsel %vm4950_vm12, %v8995_v51, %v4958_v59 }
0x308b   :  { %4983 = vst.msk [vmem:[%s9096_s19 + $0x3f] sm:$0x1] %vm295_vm11, %v4968_v17 }
0x308c   :  { %4990 = vst.msk [vmem:[#allocation7] sm:$0xff] %vm9277_vm2, %v4960_v61 }
0x308d   :  { %4996 = vst.msk [vmem:[%s9279_s28] sm:$0xff] %vm9278_vm3, %v4960_v61 }

</bundles_post_ra>
